<compile_context>
chip_gen: v7x
topology: tpu7x:2x2x1
jax: 0.10.0
libtpu: 0.0.40
codegen_flags: <defaults>
</compile_context>

<pallas_src>
import jax
import jax.numpy as jnp
from jax.experimental import pallas as pl
from jax.experimental.pallas import tpu as pltpu

EPS = 1e-5


def basic_block_kernel(patch1_ref, id_ref, w1_ref, g1_ref, b1_ref,
                       w2_ref, g2_ref, b2_ref, o_ref, pad_scr):
    # patch1_ref : (N*H*W, 9*Cin) bf16  -- im2col of padded x (built in wrapper)
    # id_ref     : (N*H*W, C)     f32   -- residual identity (unpadded x, flat)
    # w1_ref     : (9*Cin, C)     bf16  -- conv1 weights, taps folded into K
    # w2_ref     : (9*C,   C)     bf16  -- conv2 weights, taps folded into K
    # g*/b*      : (1, C)         f32   -- BN gamma / beta
    # o_ref      : (N*H*W, C)     f32
    # pad_scr    : (N, H+2, W+2, C) f32 -- zero-border scratch feeding conv2
    N, Hp2, Wp2, C = pad_scr.shape
    H, W = Hp2 - 2, Wp2 - 2
    M = N * H * W

    def batchnorm(y, g_ref, b_ref):
        # Single pass over the flat (M, C) activation: sum + sum-of-squares,
        # biased variance (training-mode BatchNorm), then one fused mul-add.
        s = jnp.sum(y, axis=0, keepdims=True)                  # (1, C)
        ss = jnp.sum(y * y, axis=0, keepdims=True)             # (1, C)
        mean = s * (1.0 / M)
        var = ss * (1.0 / M) - mean * mean
        scale = g_ref[...] * jax.lax.rsqrt(var + EPS)          # (1, C)
        shift = b_ref[...] - mean * scale                      # (1, C)
        return y * scale + shift

    # ---- conv1 (one im2col matmul on the MXU) -> bn1 -> relu ----
    y1 = jnp.dot(patch1_ref[...], w1_ref[...],
                 preferred_element_type=jnp.float32)           # (M, C) f32
    y1 = jnp.maximum(batchnorm(y1, g1_ref, b1_ref), 0.0)

    # ---- zero only the 1-pixel border of the conv2 input scratch, ----
    # ---- then write the interior once.                            ----
    zrow = jnp.zeros((N, 1, Wp2, C), pad_scr.dtype)
    zcol = jnp.zeros((N, Hp2, 1, C), pad_scr.dtype)
    pad_scr[:, 0:1, :, :] = zrow
    pad_scr[:, H + 1:H + 2, :, :] = zrow
    pad_scr[:, :, 0:1, :] = zcol
    pad_scr[:, :, W + 1:W + 2, :] = zcol
    pad_scr[:, 1:H + 1, 1:W + 1, :] = y1.reshape(N, H, W, C)

    # ---- conv2: build im2col once (9 shifted windows concatenated along ----
    # ---- the channel axis), single bf16 matmul -> bn2                   ----
    src = pad_scr[...]
    patch2 = jnp.concatenate(
        [src[:, dy:dy + H, dx:dx + W, :] for dy in range(3) for dx in range(3)],
        axis=-1).reshape(M, 9 * C).astype(jnp.bfloat16)
    y2 = jnp.dot(patch2, w2_ref[...],
                 preferred_element_type=jnp.float32)           # (M, C) f32
    y2 = batchnorm(y2, g2_ref, b2_ref)

    # ---- residual add + relu (identity supplied pre-flattened, f32) ----
    o_ref[...] = jnp.maximum(y2 + id_ref[...], 0.0)


def basic_block_forward(x_nchw, w1, g1, b1, w2, g2, b2):
    """x_nchw: (N, C, H, W) float32; w*: (Cout, Cin, 3, 3) torch OIHW layout."""
    N, C, H, W = x_nchw.shape
    Cout = w1.shape[0]
    # stride=1 / identity residual only (downsample branch not implemented).
    assert w1.shape == (Cout, C, 3, 3) and w2.shape == (Cout, Cout, 3, 3)
    assert Cout == C, "BasicBlock kernel requires inplanes == planes (stride=1, no downsample)"

    x = jnp.transpose(x_nchw, (0, 2, 3, 1)).astype(jnp.float32)   # NHWC
    xpad = jnp.pad(x, ((0, 0), (1, 1), (1, 1), (0, 0)))

    # conv1 im2col built once in plain JAX (layout plumbing outside the
    # kernel). Column order = (tap, cin), matching reshape_w below.
    patch1 = jnp.concatenate(
        [xpad[:, dy:dy + H, dx:dx + W, :] for dy in range(3) for dx in range(3)],
        axis=-1).reshape(N * H * W, 9 * C).astype(jnp.bfloat16)

    identity = x.reshape(N * H * W, C)                            # f32 residual

    def reshape_w(w):
        # OIHW -> (kh*kw*Cin, Cout), bf16 for the MXU.
        return jnp.transpose(w, (2, 3, 1, 0)).reshape(
            9 * w.shape[1], w.shape[0]).astype(jnp.bfloat16)

    w1r, w2r = reshape_w(w1), reshape_w(w2)
    g1r, b1r = g1.reshape(1, C), b1.reshape(1, C)
    g2r, b2r = g2.reshape(1, C), b2.reshape(1, C)

    M = N * H * W
    flops = 2 * (2 * M * (9 * C) * C)           # two im2col matmuls
    bytes_accessed = (patch1.size * 2 + identity.size * 4
                      + (w1r.size + w2r.size) * 2 + M * C * 4)

    out_flat = pl.pallas_call(
        basic_block_kernel,
        out_shape=jax.ShapeDtypeStruct((M, C), jnp.float32),
        in_specs=[pl.BlockSpec(memory_space=pltpu.MemorySpace.VMEM)] * 8,
        out_specs=pl.BlockSpec(memory_space=pltpu.MemorySpace.VMEM),
        scratch_shapes=[pltpu.VMEM((N, H + 2, W + 2, C), jnp.float32)],
        cost_estimate=pl.CostEstimate(flops=flops,
                                      transcendentals=2 * C,
                                      bytes_accessed=bytes_accessed),
    )(patch1, identity, w1r, g1r, b1r, w2r, g2r, b2r)

    out_nhwc = out_flat.reshape(N, H, W, C)
    return jnp.transpose(out_nhwc, (0, 3, 1, 2))                  # -> NCHW


def reference_forward(x, w1, g1, b1, w2, g2, b2):
    """Plain-JAX f32 reference (NCHW), mirrors the PyTorch forward."""
    def conv(x, w):
        return jax.lax.conv_general_dilated(
            x, w, window_strides=(1, 1), padding=((1, 1), (1, 1)),
            dimension_numbers=("NCHW", "OIHW", "NCHW"))

    def bn(y, g, b):
        mean = jnp.mean(y, axis=(0, 2, 3), keepdims=True)
        var = jnp.mean((y - mean) ** 2, axis=(0, 2, 3), keepdims=True)
        return ((y - mean) * jax.lax.rsqrt(var + EPS) * g.reshape(1, -1, 1, 1)
                + b.reshape(1, -1, 1, 1))

    out = jax.nn.relu(bn(conv(x, w1), g1, b1))
    out = bn(conv(out, w2), g2, b2)
    return jax.nn.relu(out + x)


if __name__ == "__main__":
    N, C, H, W = 2, 4, 16, 16  # inplanes = planes = 4, stride = 1
    key = jax.random.PRNGKey(0)
    kx, k1, k2, k3, k4, k5, k6 = jax.random.split(key, 7)

    x = jax.random.normal(kx, (N, C, H, W), jnp.float32)
    w1 = jax.random.normal(k1, (C, C, 3, 3), jnp.float32) * 0.1
    w2 = jax.random.normal(k2, (C, C, 3, 3), jnp.float32) * 0.1
    g1 = 1.0 + 0.1 * jax.random.normal(k3, (C,), jnp.float32)
    b1 = 0.1 * jax.random.normal(k4, (C,), jnp.float32)
    g2 = 1.0 + 0.1 * jax.random.normal(k5, (C,), jnp.float32)
    b2 = 0.1 * jax.random.normal(k6, (C,), jnp.float32)

    out = basic_block_forward(x, w1, g1, b1, w2, g2, b2)
    out = jax.block_until_ready(out)

    ref = reference_forward(x, w1, g1, b1, w2, g2, b2)
    assert out.shape == (N, C, H, W)
    # bf16 MXU inputs (f32 accumulation / BN / residual) -> relaxed tolerance
    # vs. the pure-f32 reference.
    assert jnp.max(jnp.abs(out - ref)) < 5e-2, "mismatch vs reference"

    print("KERNEL_OK")
</pallas_src>

<mosaic_0001>
module attributes {stable_mosaic.version = 11 : i64} {
  func.func @basic_block_kernel(%arg0: memref<512x36xbf16, #tpu.memory_space<vmem>>, %arg1: memref<512x4xf32, #tpu.memory_space<vmem>>, %arg2: memref<36x4xbf16, #tpu.memory_space<vmem>>, %arg3: memref<1x4xf32, #tpu.memory_space<vmem>>, %arg4: memref<1x4xf32, #tpu.memory_space<vmem>>, %arg5: memref<36x4xbf16, #tpu.memory_space<vmem>>, %arg6: memref<1x4xf32, #tpu.memory_space<vmem>>, %arg7: memref<1x4xf32, #tpu.memory_space<vmem>>, %arg8: memref<512x4xf32, #tpu.memory_space<vmem>>, %arg9: memref<2x18x18x4xf32, #tpu.memory_space<vmem>>) attributes {dimension_semantics = [], scalar_prefetch = 0 : i64, scratch_operands = 1 : i64, tpu.core_type = #tpu.core_type<tc>} {
    %c0 = arith.constant 0 : index
    %c0_0 = arith.constant 0 : index
    %0 = vector.load %arg0[%c0, %c0_0] : memref<512x36xbf16, #tpu.memory_space<vmem>>, vector<512x36xbf16>
    %c0_1 = arith.constant 0 : index
    %c0_2 = arith.constant 0 : index
    %1 = vector.load %arg2[%c0_1, %c0_2] : memref<36x4xbf16, #tpu.memory_space<vmem>>, vector<36x4xbf16>
    %cst = arith.constant dense<0.000000e+00> : vector<512x4xf32>
    %2 = tpu.matmul %0, %1, %cst {dimension_numbers = #tpu.dot_dimension_numbers<[1], [0], [0], [1], [0, 0, 1, 1], [], []>} : vector<512x36xbf16>, vector<36x4xbf16>, vector<512x4xf32> -> vector<512x4xf32>
    %cst_3 = arith.constant dense<0.000000e+00> : vector<4xf32>
    %3 = vector.multi_reduction <add>, %2, %cst_3 [0] : vector<512x4xf32> to vector<4xf32>
    %4 = vector.shape_cast %3 : vector<4xf32> to vector<1x4xf32>
    %5 = arith.mulf %2, %2 : vector<512x4xf32>
    %cst_4 = arith.constant dense<0.000000e+00> : vector<4xf32>
    %6 = vector.multi_reduction <add>, %5, %cst_4 [0] : vector<512x4xf32> to vector<4xf32>
    %7 = vector.shape_cast %6 : vector<4xf32> to vector<1x4xf32>
    %cst_5 = arith.constant 0.001953125 : f32
    %8 = vector.broadcast %cst_5 : f32 to vector<1x4xf32>
    %9 = arith.mulf %4, %8 : vector<1x4xf32>
    %cst_6 = arith.constant 0.001953125 : f32
    %10 = vector.broadcast %cst_6 : f32 to vector<1x4xf32>
    %11 = arith.mulf %7, %10 : vector<1x4xf32>
    %12 = arith.mulf %9, %9 : vector<1x4xf32>
    %13 = arith.subf %11, %12 : vector<1x4xf32>
    %c0_7 = arith.constant 0 : index
    %c0_8 = arith.constant 0 : index
    %14 = vector.load %arg3[%c0_7, %c0_8] : memref<1x4xf32, #tpu.memory_space<vmem>>, vector<1x4xf32>
    %cst_9 = arith.constant 9.99999974E-6 : f32
    %15 = vector.broadcast %cst_9 : f32 to vector<1x4xf32>
    %16 = arith.addf %13, %15 : vector<1x4xf32>
    %17 = math.rsqrt %16 : vector<1x4xf32>
    %18 = arith.mulf %14, %17 : vector<1x4xf32>
    %c0_10 = arith.constant 0 : index
    %c0_11 = arith.constant 0 : index
    %19 = vector.load %arg4[%c0_10, %c0_11] : memref<1x4xf32, #tpu.memory_space<vmem>>, vector<1x4xf32>
    %20 = arith.mulf %9, %18 : vector<1x4xf32>
    %21 = arith.subf %19, %20 : vector<1x4xf32>
    %22 = vector.broadcast %18 : vector<1x4xf32> to vector<512x4xf32>
    %23 = arith.mulf %2, %22 : vector<512x4xf32>
    %24 = vector.broadcast %21 : vector<1x4xf32> to vector<512x4xf32>
    %25 = arith.addf %23, %24 : vector<512x4xf32>
    %cst_12 = arith.constant 0.000000e+00 : f32
    %26 = vector.broadcast %cst_12 : f32 to vector<512x4xf32>
    %27 = arith.maximumf %25, %26 : vector<512x4xf32>
    %cst_13 = arith.constant 0.000000e+00 : f32
    %28 = vector.broadcast %cst_13 : f32 to vector<2x1x18x4xf32>
    %cst_14 = arith.constant 0.000000e+00 : f32
    %29 = vector.broadcast %cst_14 : f32 to vector<2x18x1x4xf32>
    %c0_15 = arith.constant 0 : index
    %c0_16 = arith.constant 0 : index
    %c0_17 = arith.constant 0 : index
    %c0_18 = arith.constant 0 : index
    %30 = vector.load %arg9[%c0_15, %c0_16, %c0_17, %c0_18] : memref<2x18x18x4xf32, #tpu.memory_space<vmem>>, vector<2x1x18x4xf32>
    tpu.vector_store %arg9[%c0_15, %c0_16, %c0_17, %c0_18], %28 {strides = array<i32>} : memref<2x18x18x4xf32, #tpu.memory_space<vmem>>, vector<2x1x18x4xf32>,
    %c0_19 = arith.constant 0 : index
    %c17 = arith.constant 17 : index
    %c0_20 = arith.constant 0 : index
    %c0_21 = arith.constant 0 : index
    %31 = vector.load %arg9[%c0_19, %c17, %c0_20, %c0_21] : memref<2x18x18x4xf32, #tpu.memory_space<vmem>>, vector<2x1x18x4xf32>
    tpu.vector_store %arg9[%c0_19, %c17, %c0_20, %c0_21], %28 {strides = array<i32>} : memref<2x18x18x4xf32, #tpu.memory_space<vmem>>, vector<2x1x18x4xf32>,
    %c0_22 = arith.constant 0 : index
    %c0_23 = arith.constant 0 : index
    %c0_24 = arith.constant 0 : index
    %c0_25 = arith.constant 0 : index
    %32 = vector.load %arg9[%c0_22, %c0_23, %c0_24, %c0_25] : memref<2x18x18x4xf32, #tpu.memory_space<vmem>>, vector<2x18x1x4xf32>
    tpu.vector_store %arg9[%c0_22, %c0_23, %c0_24, %c0_25], %29 {strides = array<i32>} : memref<2x18x18x4xf32, #tpu.memory_space<vmem>>, vector<2x18x1x4xf32>,
    %c0_26 = arith.constant 0 : index
    %c0_27 = arith.constant 0 : index
    %c17_28 = arith.constant 17 : index
    %c0_29 = arith.constant 0 : index
    %33 = vector.load %arg9[%c0_26, %c0_27, %c17_28, %c0_29] : memref<2x18x18x4xf32, #tpu.memory_space<vmem>>, vector<2x18x1x4xf32>
    tpu.vector_store %arg9[%c0_26, %c0_27, %c17_28, %c0_29], %29 {strides = array<i32>} : memref<2x18x18x4xf32, #tpu.memory_space<vmem>>, vector<2x18x1x4xf32>,
    %34 = vector.shape_cast %27 : vector<512x4xf32> to vector<2x16x16x4xf32>
    %c0_30 = arith.constant 0 : index
    %c1 = arith.constant 1 : index
    %c1_31 = arith.constant 1 : index
    %c0_32 = arith.constant 0 : index
    %35 = vector.load %arg9[%c0_30, %c1, %c1_31, %c0_32] : memref<2x18x18x4xf32, #tpu.memory_space<vmem>>, vector<2x16x16x4xf32>
    tpu.vector_store %arg9[%c0_30, %c1, %c1_31, %c0_32], %34 {strides = array<i32>} : memref<2x18x18x4xf32, #tpu.memory_space<vmem>>, vector<2x16x16x4xf32>,
    %c0_33 = arith.constant 0 : index
    %c0_34 = arith.constant 0 : index
    %c0_35 = arith.constant 0 : index
    %c0_36 = arith.constant 0 : index
    %36 = vector.load %arg9[%c0_33, %c0_34, %c0_35, %c0_36] : memref<2x18x18x4xf32, #tpu.memory_space<vmem>>, vector<2x18x18x4xf32>
    %37 = vector.extract_strided_slice %36 {offsets = [0, 0, 0, 0], sizes = [2, 16, 16, 4], strides = [1, 1, 1, 1]} : vector<2x18x18x4xf32> to vector<2x16x16x4xf32>
    %38 = vector.extract_strided_slice %36 {offsets = [0, 0, 1, 0], sizes = [2, 16, 16, 4], strides = [1, 1, 1, 1]} : vector<2x18x18x4xf32> to vector<2x16x16x4xf32>
    %39 = vector.extract_strided_slice %36 {offsets = [0, 0, 2, 0], sizes = [2, 16, 16, 4], strides = [1, 1, 1, 1]} : vector<2x18x18x4xf32> to vector<2x16x16x4xf32>
    %40 = vector.extract_strided_slice %36 {offsets = [0, 1, 0, 0], sizes = [2, 16, 16, 4], strides = [1, 1, 1, 1]} : vector<2x18x18x4xf32> to vector<2x16x16x4xf32>
    %41 = vector.extract_strided_slice %36 {offsets = [0, 1, 1, 0], sizes = [2, 16, 16, 4], strides = [1, 1, 1, 1]} : vector<2x18x18x4xf32> to vector<2x16x16x4xf32>
    %42 = vector.extract_strided_slice %36 {offsets = [0, 1, 2, 0], sizes = [2, 16, 16, 4], strides = [1, 1, 1, 1]} : vector<2x18x18x4xf32> to vector<2x16x16x4xf32>
    %43 = vector.extract_strided_slice %36 {offsets = [0, 2, 0, 0], sizes = [2, 16, 16, 4], strides = [1, 1, 1, 1]} : vector<2x18x18x4xf32> to vector<2x16x16x4xf32>
    %44 = vector.extract_strided_slice %36 {offsets = [0, 2, 1, 0], sizes = [2, 16, 16, 4], strides = [1, 1, 1, 1]} : vector<2x18x18x4xf32> to vector<2x16x16x4xf32>
    %45 = vector.extract_strided_slice %36 {offsets = [0, 2, 2, 0], sizes = [2, 16, 16, 4], strides = [1, 1, 1, 1]} : vector<2x18x18x4xf32> to vector<2x16x16x4xf32>
    %46 = tpu.concatenate %37, %38, %39, %40, %41, %42, %43, %44, %45 in 3 : vector<2x16x16x4xf32>, vector<2x16x16x4xf32>, vector<2x16x16x4xf32>, vector<2x16x16x4xf32>, vector<2x16x16x4xf32>, vector<2x16x16x4xf32>, vector<2x16x16x4xf32>, vector<2x16x16x4xf32>, vector<2x16x16x4xf32> -> vector<2x16x16x36xf32>
    %47 = vector.shape_cast %46 : vector<2x16x16x36xf32> to vector<512x36xf32>
    %48 = arith.truncf %47 : vector<512x36xf32> to vector<512x36xbf16>
    %c0_37 = arith.constant 0 : index
    %c0_38 = arith.constant 0 : index
    %49 = vector.load %arg5[%c0_37, %c0_38] : memref<36x4xbf16, #tpu.memory_space<vmem>>, vector<36x4xbf16>
    %cst_39 = arith.constant dense<0.000000e+00> : vector<512x4xf32>
    %50 = tpu.matmul %48, %49, %cst_39 {dimension_numbers = #tpu.dot_dimension_numbers<[1], [0], [0], [1], [0, 0, 1, 1], [], []>} : vector<512x36xbf16>, vector<36x4xbf16>, vector<512x4xf32> -> vector<512x4xf32>
    %cst_40 = arith.constant dense<0.000000e+00> : vector<4xf32>
    %51 = vector.multi_reduction <add>, %50, %cst_40 [0] : vector<512x4xf32> to vector<4xf32>
    %52 = vector.shape_cast %51 : vector<4xf32> to vector<1x4xf32>
    %53 = arith.mulf %50, %50 : vector<512x4xf32>
    %cst_41 = arith.constant dense<0.000000e+00> : vector<4xf32>
    %54 = vector.multi_reduction <add>, %53, %cst_41 [0] : vector<512x4xf32> to vector<4xf32>
    %55 = vector.shape_cast %54 : vector<4xf32> to vector<1x4xf32>
    %cst_42 = arith.constant 0.001953125 : f32
    %56 = vector.broadcast %cst_42 : f32 to vector<1x4xf32>
    %57 = arith.mulf %52, %56 : vector<1x4xf32>
    %cst_43 = arith.constant 0.001953125 : f32
    %58 = vector.broadcast %cst_43 : f32 to vector<1x4xf32>
    %59 = arith.mulf %55, %58 : vector<1x4xf32>
    %60 = arith.mulf %57, %57 : vector<1x4xf32>
    %61 = arith.subf %59, %60 : vector<1x4xf32>
    %c0_44 = arith.constant 0 : index
    %c0_45 = arith.constant 0 : index
    %62 = vector.load %arg6[%c0_44, %c0_45] : memref<1x4xf32, #tpu.memory_space<vmem>>, vector<1x4xf32>
    %cst_46 = arith.constant 9.99999974E-6 : f32
    %63 = vector.broadcast %cst_46 : f32 to vector<1x4xf32>
    %64 = arith.addf %61, %63 : vector<1x4xf32>
    %65 = math.rsqrt %64 : vector<1x4xf32>
    %66 = arith.mulf %62, %65 : vector<1x4xf32>
    %c0_47 = arith.constant 0 : index
    %c0_48 = arith.constant 0 : index
    %67 = vector.load %arg7[%c0_47, %c0_48] : memref<1x4xf32, #tpu.memory_space<vmem>>, vector<1x4xf32>
    %68 = arith.mulf %57, %66 : vector<1x4xf32>
    %69 = arith.subf %67, %68 : vector<1x4xf32>
    %70 = vector.broadcast %66 : vector<1x4xf32> to vector<512x4xf32>
    %71 = arith.mulf %50, %70 : vector<512x4xf32>
    %72 = vector.broadcast %69 : vector<1x4xf32> to vector<512x4xf32>
    %73 = arith.addf %71, %72 : vector<512x4xf32>
    %c0_49 = arith.constant 0 : index
    %c0_50 = arith.constant 0 : index
    %74 = vector.load %arg1[%c0_49, %c0_50] : memref<512x4xf32, #tpu.memory_space<vmem>>, vector<512x4xf32>
    %75 = arith.addf %73, %74 : vector<512x4xf32>
    %cst_51 = arith.constant 0.000000e+00 : f32
    %76 = vector.broadcast %cst_51 : f32 to vector<512x4xf32>
    %77 = arith.maximumf %75, %76 : vector<512x4xf32>
    %c0_52 = arith.constant 0 : index
    %c0_53 = arith.constant 0 : index
    %78 = vector.load %arg8[%c0_52, %c0_53] : memref<512x4xf32, #tpu.memory_space<vmem>>, vector<512x4xf32>
    tpu.vector_store %arg8[%c0_52, %c0_53], %77 {strides = array<i32>} : memref<512x4xf32, #tpu.memory_space<vmem>>, vector<512x4xf32>,
    return
  }
}

</mosaic_0001>

<bundles_post_ra>
// kernel: tpu_custom_call.1
= control target key start
LH: loop header
LB: loop body
LE: loop exit
PB: predicated region body
PF: predicated region fallthrough
CT: control target
= control target key end

     0   :  { %vm274_vm0 = vcmask 293888   ;;  %vm371_vm1 = vcmask 1041408   ;;  %vm664_vm2 = vcmask 31744   ;;  %vm1212_vm3 = vcmask 25600   ;;  %s6909_s28 = smov 24   ;;  %s6910_s29 = smov 8   ;;  %s13346_s2 = inlined_call_operand.vmem [shape: bf16[36,4], index: 2, kind: input, shape index: {}]   ;;  %s13347_s0 = inlined_call_operand.vmem [shape: bf16[512,36], index: 0, kind: input, shape index: {}]   ;;  %s13348_s3 = inlined_call_operand.vmem [shape: f32[1,4], index: 3, kind: input, shape index: {}]   ;;  %s13349_s4 = inlined_call_operand.vmem [shape: f32[1,4], index: 4, kind: input, shape index: {}]   ;;  %s13350_s5 = inlined_call_operand.vmem [shape: bf16[36,4], index: 5, kind: input, shape index: {}]   ;;  %s13351_s6 = inlined_call_operand.vmem [shape: f32[1,4], index: 6, kind: input, shape index: {}]   ;;  %s13352_s7 = inlined_call_operand.vmem [shape: f32[1,4], index: 7, kind: input, shape index: {}]   ;;  %s13353_s1 = inlined_call_operand.vmem [shape: f32[512,4], index: 1, kind: input, shape index: {}]   ;;  %s13354_s8 = inlined_call_operand.vmem [shape: f32[512,4], index: 8, kind: output, shape index: {}]  }
   0x1   :  { %v6779_v0 = vld [vmem:[%s13346_s2] sm:$0xff]   ;;  %v6780_v1 = vld [vmem:[%s13346_s2 + $0x8] sm:$0xff]   ;;  %v6781_v2 = vld [vmem:[%s13346_s2 + $0x10] ss:$0 sps:$4 sm:$0x33]   ;;  %vm1224_vm4 = vcmask 24576  }
   0x2   :  { %5348 = vmatprep.subr.bf16.mxu0 %v6779_v0  ;;  %v6782_v3 = vld [vmem:[%s13347_s0] sm:$0xff]   ;;  %v373_v4 = vsel %vm371_vm1, %v6781_v2, 0  ;;  %v6783_v5 = vld [vmem:[%s13347_s0 + $0x8] sm:$0xff]   ;;  %v6784_v6 = vld [vmem:[%s13347_s0 + $0x10] sm:$0xff]   ;;  %vm1566_vm5 = vcmask 1046528   ;;  %vm1919_vm6 = vcmask 1045504  }
   0x3   :  { %5349 = vmatpush3.bf16.msra.mxu0 %v6779_v0  ;;  %5354 = vmatprep.mubr.msk.bf16.mxu0 %vm274_vm0, %v6782_v3  ;;  %v6785_v7 = vld [vmem:[%s13347_s0 + $0x18] sm:$0xff]   ;;  %v6786_v8 = vld [vmem:[%s13347_s0 + $0x20] sm:$0xff]   ;;  %v6787_v9 = vld [vmem:[%s13347_s0 + $0x28] sm:$0xff]   ;;  %s6911_s30 = smov 28   ;;  %s6912_s9 = smov 32   ;;  %vm3540_vm7 = vcmask 64512  }
   0x4   :  { %5350 = vmatprep.subr.bf16.mxu0 %v6780_v1  ;;  %v6788_v10 = vld [vmem:[%s13347_s0 + $0x30] sm:$0xff]   ;;  %v6789_v11 = vld [vmem:[%s13347_s0 + $0x38] sm:$0xff]   ;;  %v6790_v12 = vld [vmem:[%s13347_s0 + $0x40] sm:$0xff]   ;;  %s6915_s14 = smov 20   ;;  %vm3605_vm8 = vcmask 97280   ;;  %vm3670_vm9 = vcmask 130048  }
   0x5   :  { %v6791_v13 = vld [vmem:[%s13347_s0 + $0x48] sm:$0xff]   ;;  %v6792_v14 = vld [vmem:[%s13347_s0 + $0x50] sm:$0xff]   ;;  %v6793_v15 = vld [vmem:[%s13347_s0 + $0x58] sm:$0xff]   ;;  %vm3735_vm10 = vcmask 162816   ;;  %vm3800_vm11 = vcmask 195584   ;;  %vm3865_vm12 = vcmask 228352  }
   0x6   :  { %v6794_v16 = vld [vmem:[%s13347_s0 + $0x60] sm:$0xff]   ;;  %v6795_v17 = vld [vmem:[%s13347_s0 + $0x68] sm:$0xff]   ;;  %v6796_v18 = vld [vmem:[%s13347_s0 + $0x70] sm:$0xff]   ;;  %vm3930_vm13 = vcmask 261120  }
   0x7   :  { %5351 = vmatpush3.bf16.msra.mxu0 %v6780_v1  ;;  %v6797_v19 = vld [vmem:[%s13347_s0 + $0x78] sm:$0xff]   ;;  %v6798_v20 = vld [vmem:[%s13347_s0 + $0x80] sm:$0xff]   ;;  %v6799_v21 = vld [vmem:[%s13347_s0 + $0x88] sm:$0xff]  }
   0x8   :  { %5488 = vmatprep.subr.msk.bf16.mxu0 %vm371_vm1, %v6781_v2  ;;  %v6800_v22 = vld [vmem:[%s13347_s0 + $0x90] sm:$0xff]   ;;  %v6801_v23 = vld [vmem:[%s13347_s0 + $0x98] sm:$0xff]   ;;  %v6802_v24 = vld [vmem:[%s13347_s0 + $0xa0] sm:$0xff]  }
   0x9   :  { %v6803_v25 = vld [vmem:[%s13347_s0 + $0xa8] sm:$0xff]   ;;  %v6804_v26 = vld [vmem:[%s13347_s0 + $0xb0] sm:$0xff]   ;;  %v6805_v27 = vld [vmem:[%s13347_s0 + $0xb8] sm:$0xff]  }
   0xa   :  { %v6806_v28 = vld [vmem:[%s13347_s0 + $0xc0] sm:$0xff]   ;;  %v6807_v29 = vld [vmem:[%s13347_s0 + $0xc8] sm:$0xff]   ;;  %v6808_v30 = vld [vmem:[%s13347_s0 + $0xd0] sm:$0xff]  }
   0xb   :  { %5353 = vmatpush3.bf16.msra.mxu0 %v373_v4  ;;  %v6809_v31 = vld [vmem:[%s13347_s0 + $0xd8] sm:$0xff]   ;;  %v6810_v32 = vld [vmem:[%s13347_s0 + $0xe0] sm:$0xff]   ;;  %v6811_v33 = vld [vmem:[%s13347_s0 + $0xe8] sm:$0xff]  }
   0xc   :  { %v6812_v34 = vld [vmem:[%s13347_s0 + $0xf0] sm:$0xff]   ;;  %v6813_v35 = vld [vmem:[%s13347_s0 + $0xf8] sm:$0xff]   ;;  %s6908_s0 = smov 4  }
   0xe   :  { %5355 = vmatmul.mubr.msk.bf16.vlgmr.msra.gmra.mrb[0].mxu0 %vm274_vm0, %v6783_v5 }
   0xf   :  { %5358 = vmatprep.mubr.msk.bf16.mxu0 %vm274_vm0, %v6784_v6 }
  0x16   :  { %5359 = vmatmul.mubr.msk.bf16.gmra.mrb[4].mxu0 %vm274_vm0, %v6785_v7 }
  0x17   :  { %5362 = vmatprep.mubr.msk.bf16.mxu0 %vm274_vm0, %v6786_v8 }
  0x1e   :  { %5363 = vmatmul.mubr.msk.bf16.gmra.mrb[8].mxu0 %vm274_vm0, %v6787_v9 }
  0x1f   :  { %5366 = vmatprep.mubr.msk.bf16.mxu0 %vm274_vm0, %v6788_v10 }
  0x26   :  { %5367 = vmatmul.mubr.msk.bf16.gmra.mrb[12].mxu0 %vm274_vm0, %v6789_v11 }
  0x27   :  { %5370 = vmatprep.mubr.msk.bf16.mxu0 %vm274_vm0, %v6790_v12 }
  0x2e   :  { %5371 = vmatmul.mubr.msk.bf16.gmra.mrb[16].mxu0 %vm274_vm0, %v6791_v13 }
  0x2f   :  { %5374 = vmatprep.mubr.msk.bf16.mxu0 %vm274_vm0, %v6792_v14 }
  0x36   :  { %5375 = vmatmul.mubr.msk.bf16.gmra.mrb[20].mxu0 %vm274_vm0, %v6793_v15 }
  0x37   :  { %5378 = vmatprep.mubr.msk.bf16.mxu0 %vm274_vm0, %v6794_v16 }
  0x3e   :  { %5379 = vmatmul.mubr.msk.bf16.gmra.mrb[24].mxu0 %vm274_vm0, %v6795_v17 }
  0x3f   :  { %5382 = vmatprep.mubr.msk.bf16.mxu0 %vm274_vm0, %v6796_v18 }
  0x46   :  { %5383 = vmatmul.mubr.msk.bf16.gmra.mrb[28].mxu0 %vm274_vm0, %v6797_v19 }
  0x47   :  { %5386 = vmatprep.mubr.msk.bf16.mxu0 %vm274_vm0, %v6798_v20 }
  0x4e   :  { %5387 = vmatmul.mubr.msk.bf16.gmra.mrb[32].mxu0 %vm274_vm0, %v6799_v21 }
  0x4f   :  { %5390 = vmatprep.mubr.msk.bf16.mxu0 %vm274_vm0, %v6800_v22 }
  0x56   :  { %5391 = vmatmul.mubr.msk.bf16.gmra.mrb[36].mxu0 %vm274_vm0, %v6801_v23 }
  0x57   :  { %5394 = vmatprep.mubr.msk.bf16.mxu0 %vm274_vm0, %v6802_v24 }
  0x5e   :  { %5395 = vmatmul.mubr.msk.bf16.gmra.mrb[40].mxu0 %vm274_vm0, %v6803_v25 }
  0x5f   :  { %5398 = vmatprep.mubr.msk.bf16.mxu0 %vm274_vm0, %v6804_v26 }
  0x66   :  { %5399 = vmatmul.mubr.msk.bf16.gmra.mrb[44].mxu0 %vm274_vm0, %v6805_v27 }
  0x67   :  { %5402 = vmatprep.mubr.msk.bf16.mxu0 %vm274_vm0, %v6806_v28 }
  0x6e   :  { %5403 = vmatmul.mubr.msk.bf16.gmra.mrb[48].mxu0 %vm274_vm0, %v6807_v29 }
  0x6f   :  { %5406 = vmatprep.mubr.msk.bf16.mxu0 %vm274_vm0, %v6808_v30 }
  0x76   :  { %5407 = vmatmul.mubr.msk.bf16.gmra.mrb[52].mxu0 %vm274_vm0, %v6809_v31 }
  0x77   :  { %5410 = vmatprep.mubr.msk.bf16.mxu0 %vm274_vm0, %v6810_v32 }
  0x7e   :  { %5411 = vmatmul.mubr.msk.bf16.gmra.mrb[56].mxu0 %vm274_vm0, %v6811_v33 }
  0x7f   :  { %5414 = vmatprep.mubr.msk.bf16.mxu0 %vm274_vm0, %v6812_v34 }
  0x86   :  { %5415 = vmatmul.mubr.msk.bf16.gmra.mrb[60].mxu0 %vm274_vm0, %v6813_v35 }
  0xe1   :  { %v7100_v36 = vpop.f32.mrb[0].mxu0 }
  0xe2   :  { %v7102_v37 = vpop.f32.mrb[1].mxu0  ;;  %v800_v41 = vmul.f32 %v7100_v36, %v7100_v36  ;;  %v668_v46 = vsel %vm664_vm2, %v7100_v36, 0.0 }
  0xe3   :  { %v798_v38 = vmul.f32 %v7102_v37, %v7102_v37  ;;  %v7106_v39 = vpop.f32.mrb[2].mxu0  ;;  %v665_v42 = vsel %vm664_vm2, %v7102_v37, 0.0 }
  0xe4   :  { %v7108_v40 = vpop.f32.mrb[3].mxu0  ;;  %v801_v48 = vmul.f32 %v7106_v39, %v7106_v39  ;;  %v865_v52 = vsel %vm664_vm2, %v800_v41, 0.0  ;;  %v670_v53 = vsel %vm664_vm2, %v7106_v39, 0.0 }
  0xe5   :  { %v666_v43 = vsel %vm664_vm2, %v7108_v40, 0.0  ;;  %v799_v44 = vmul.f32 %v7108_v40, %v7108_v40  ;;  %v862_v47 = vsel %vm664_vm2, %v798_v38, 0.0 }
  0xe6   :  { %v667_v45 = vadd.f32 %v666_v43, %v665_v42  ;;  %v867_v58 = vsel %vm664_vm2, %v801_v48, 0.0 }
  0xe7   :  { %v863_v49 = vsel %vm664_vm2, %v799_v44, 0.0 }
  0xe8   :  { %v669_v50 = vadd.f32 %v668_v46, %v667_v45  ;;  %v864_v51 = vadd.f32 %v863_v49, %v862_v47 }
  0xe9   :  { %v7127_v54 = vpop.f32.mrb[4].mxu0 }
  0xea   :  { %v866_v55 = vadd.f32 %v865_v52, %v864_v51  ;;  %v7129_v56 = vpop.f32.mrb[5].mxu0  ;;  %v671_v57 = vadd.f32 %v670_v53, %v669_v50  ;;  %v804_v1 = vmul.f32 %v7127_v54, %v7127_v54  ;;  %v676_v7 = vsel %vm664_vm2, %v7127_v54, 0.0 }
  0xeb   :  { %v672_v59 = vsel %vm664_vm2, %v7129_v56, 0.0  ;;  %v802_v60 = vmul.f32 %v7129_v56, %v7129_v56  ;;  %v7136_v61 = vpop.f32.mrb[6].mxu0 }
  0xec   :  { %v673_v62 = vadd.f32 %v672_v59, %v671_v57  ;;  %v868_v63 = vadd.f32 %v867_v58, %v866_v55  ;;  %v7138_v0 = vpop.f32.mrb[7].mxu0  ;;  %v805_v8 = vmul.f32 %v7136_v61, %v7136_v61  ;;  %v873_v12 = vsel %vm664_vm2, %v804_v1, 0.0 }
  0xed   :  { %v869_v2 = vsel %vm664_vm2, %v802_v60, 0.0  ;;  %v674_v3 = vsel %vm664_vm2, %v7138_v0, 0.0  ;;  %v803_v4 = vmul.f32 %v7138_v0, %v7138_v0  ;;  %v678_v13 = vsel %vm664_vm2, %v7136_v61, 0.0 }
  0xee   :  { %v870_v5 = vadd.f32 %v869_v2, %v868_v63  ;;  %v675_v6 = vadd.f32 %v674_v3, %v673_v62  ;;  %v875_v18 = vsel %vm664_vm2, %v805_v8, 0.0 }
  0xef   :  { %v871_v9 = vsel %vm664_vm2, %v803_v4, 0.0 }
  0xf0   :  { %v677_v10 = vadd.f32 %v676_v7, %v675_v6  ;;  %v872_v11 = vadd.f32 %v871_v9, %v870_v5 }
  0xf1   :  { %v7155_v14 = vpop.f32.mrb[8].mxu0 }
  0xf2   :  { %v874_v15 = vadd.f32 %v873_v12, %v872_v11  ;;  %v7157_v16 = vpop.f32.mrb[9].mxu0  ;;  %v679_v17 = vadd.f32 %v678_v13, %v677_v10  ;;  %v808_v25 = vmul.f32 %v7155_v14, %v7155_v14  ;;  %v684_v31 = vsel %vm664_vm2, %v7155_v14, 0.0 }
  0xf3   :  { %v680_v19 = vsel %vm664_vm2, %v7157_v16, 0.0  ;;  %v806_v20 = vmul.f32 %v7157_v16, %v7157_v16  ;;  %v7164_v21 = vpop.f32.mrb[10].mxu0 }
  0xf4   :  { %v681_v22 = vadd.f32 %v680_v19, %v679_v17  ;;  %v876_v23 = vadd.f32 %v875_v18, %v874_v15  ;;  %v7166_v24 = vpop.f32.mrb[11].mxu0  ;;  %v809_v32 = vmul.f32 %v7164_v21, %v7164_v21  ;;  %v881_v38 = vsel %vm664_vm2, %v808_v25, 0.0 }
  0xf5   :  { %v877_v26 = vsel %vm664_vm2, %v806_v20, 0.0  ;;  %v682_v27 = vsel %vm664_vm2, %v7166_v24, 0.0  ;;  %v807_v28 = vmul.f32 %v7166_v24, %v7166_v24  ;;  %v686_v41 = vsel %vm664_vm2, %v7164_v21, 0.0 }
  0xf6   :  { %v878_v29 = vadd.f32 %v877_v26, %v876_v23  ;;  %v683_v30 = vadd.f32 %v682_v27, %v681_v22  ;;  %v883_v46 = vsel %vm664_vm2, %v809_v32, 0.0 }
  0xf7   :  { %v879_v33 = vsel %vm664_vm2, %v807_v28, 0.0 }
  0xf8   :  { %v685_v34 = vadd.f32 %v684_v31, %v683_v30  ;;  %v880_v35 = vadd.f32 %v879_v33, %v878_v29  ;;  %v6907_v30 = vmov 0.0  }
  0xf9   :  { %v7183_v42 = vpop.f32.mrb[12].mxu0  ;;  %1210 = vst.msk [vmem:[#allocation2] sm:$0xff] %vm664_vm2, %v6907_v30  ;;  %1211 = vst.msk [vmem:[#allocation2 + $0x8] sm:$0xff] %vm664_vm2, %v6907_v30 }
  0xfa   :  { %v882_v43 = vadd.f32 %v881_v38, %v880_v35  ;;  %v7185_v44 = vpop.f32.mrb[13].mxu0  ;;  %v687_v45 = vadd.f32 %v686_v41, %v685_v34  ;;  %v812_v53 = vmul.f32 %v7183_v42, %v7183_v42  ;;  %v692_v62 = vsel %vm664_vm2, %v7183_v42, 0.0  ;;  %1214 = vst.msk [vmem:[#allocation2 + $0x1b0] sm:$0xff] %vm664_vm2, %v6907_v30  ;;  %1215 = vst.msk [vmem:[#allocation2 + $0x1b8] sm:$0xff] %vm664_vm2, %v6907_v30 }
  0xfb   :  { %v688_v47 = vsel %vm664_vm2, %v7185_v44, 0.0  ;;  %v810_v48 = vmul.f32 %v7185_v44, %v7185_v44  ;;  %v7192_v49 = vpop.f32.mrb[14].mxu0  ;;  %1218 = vst.msk [vmem:[#allocation2 + $0x198] sm:$0xff] %vm664_vm2, %v6907_v30  ;;  %1219 = vst.msk [vmem:[#allocation2 + $0x1a0] sm:$0xff] %vm664_vm2, %v6907_v30 }
  0xfc   :  { %v689_v50 = vadd.f32 %v688_v47, %v687_v45  ;;  %v884_v51 = vadd.f32 %v883_v46, %v882_v43  ;;  %v7194_v52 = vpop.f32.mrb[15].mxu0  ;;  %v813_v63 = vmul.f32 %v7192_v49, %v7192_v49  ;;  %v889_v4 = vsel %vm664_vm2, %v812_v53, 0.0  ;;  %1221 = vst.msk [vmem:[#allocation2 + $0x348] sm:$0xff] %vm664_vm2, %v6907_v30  ;;  %1222 = vst.msk [vmem:[#allocation2 + $0x350] sm:$0xff] %vm664_vm2, %v6907_v30 }
  0xfd   :  { %v885_v55 = vsel %vm664_vm2, %v810_v48, 0.0  ;;  %v690_v57 = vsel %vm664_vm2, %v7194_v52, 0.0  ;;  %v811_v58 = vmul.f32 %v7194_v52, %v7194_v52  ;;  %v694_v5 = vsel %vm664_vm2, %v7192_v49, 0.0  ;;  %1213 = vst.msk [vmem:[#allocation2 + $0x10] sm:$0x3] %vm1212_vm3, %v6907_v30 }
  0xfe   :  { %v886_v59 = vadd.f32 %v885_v55, %v884_v51  ;;  %v691_v60 = vadd.f32 %v690_v57, %v689_v50  ;;  %v891_v10 = vsel %vm664_vm2, %v813_v63, 0.0  ;;  %1225 = vst.msk [vmem:[#allocation2] sm:$0x1] %vm1224_vm4, %v6907_v30  ;;  %1226 = vst.msk [vmem:[#allocation2 + $0x18] sm:$0x1] %vm1224_vm4, %v6907_v30 }
  0xff   :  { %v887_v1 = vsel %vm664_vm2, %v811_v58, 0.0  ;;  %1216 = vst.msk [vmem:[#allocation2 + $0x1c0] sm:$0x3] %vm1212_vm3, %v6907_v30  ;;  %1220 = vst.msk [vmem:[#allocation2 + $0x1a8] sm:$0x3] %vm1212_vm3, %v6907_v30 }
 0x100   :  { %v693_v2 = vadd.f32 %v692_v62, %v691_v60  ;;  %v888_v3 = vadd.f32 %v887_v1, %v886_v59  ;;  %1223 = vst.msk [vmem:[#allocation2 + $0x358] sm:$0x3] %vm1212_vm3, %v6907_v30 }
 0x101   :  { %v7211_v6 = vpop.f32.mrb[16].mxu0  ;;  %1227 = vst.msk [vmem:[#allocation2 + $0x30] sm:$0x1] %vm1224_vm4, %v6907_v30  ;;  %1228 = vst.msk [vmem:[#allocation2 + $0x48] sm:$0x1] %vm1224_vm4, %v6907_v30 }
 0x102   :  { %v890_v7 = vadd.f32 %v889_v4, %v888_v3  ;;  %v7213_v8 = vpop.f32.mrb[17].mxu0  ;;  %v695_v9 = vadd.f32 %v694_v5, %v693_v2  ;;  %v7226_v19 = vmul.f32 %v7211_v6, %v7211_v6  ;;  %v700_v25 = vsel %vm664_vm2, %v7211_v6, 0.0  ;;  %1229 = vst.msk [vmem:[#allocation2 + $0x60] sm:$0x1] %vm1224_vm4, %v6907_v30  ;;  %1230 = vst.msk [vmem:[#allocation2 + $0x78] sm:$0x1] %vm1224_vm4, %v6907_v30 }
 0x103   :  { %v696_v11 = vsel %vm664_vm2, %v7213_v8, 0.0  ;;  %v814_v12 = vmul.f32 %v7213_v8, %v7213_v8  ;;  %v7220_v13 = vpop.f32.mrb[18].mxu0  ;;  %1231 = vst.msk [vmem:[#allocation2 + $0x90] sm:$0x1] %vm1224_vm4, %v6907_v30  ;;  %1232 = vst.msk [vmem:[#allocation2 + $0xa8] sm:$0x1] %vm1224_vm4, %v6907_v30 }
 0x104   :  { %v697_v15 = vadd.f32 %v696_v11, %v695_v9  ;;  %v892_v17 = vadd.f32 %v891_v10, %v890_v7  ;;  %v7222_v18 = vpop.f32.mrb[19].mxu0  ;;  %v7237_v28 = vmul.f32 %v7220_v13, %v7220_v13  ;;  %1233 = vst.msk [vmem:[#allocation2 + $0xc0] sm:$0x1] %vm1224_vm4, %v6907_v30  ;;  %1234 = vst.msk [vmem:[#allocation2 + $0xd8] sm:$0x1] %vm1224_vm4, %v6907_v30  ;;  %v897_v33 = vsel %vm664_vm2, %v7226_v19, 0.0 }
 0x105   :  { %v893_v20 = vsel %vm664_vm2, %v814_v12, 0.0  ;;  %v698_v22 = vsel %vm664_vm2, %v7222_v18, 0.0  ;;  %v815_v23 = vmul.f32 %v7222_v18, %v7222_v18  ;;  %1235 = vst.msk [vmem:[#allocation2 + $0xf0] sm:$0x1] %vm1224_vm4, %v6907_v30  ;;  %1236 = vst.msk [vmem:[#allocation2 + $0x108] sm:$0x1] %vm1224_vm4, %v6907_v30 }
 0x106   :  { %v894_v26 = vadd.f32 %v893_v20, %v892_v17  ;;  %v699_v27 = vadd.f32 %v698_v22, %v697_v15  ;;  %1237 = vst.msk [vmem:[#allocation2 + $0x120] sm:$0x1] %vm1224_vm4, %v6907_v30  ;;  %1238 = vst.msk [vmem:[#allocation2 + $0x138] sm:$0x1] %vm1224_vm4, %v6907_v30  ;;  %v702_v34 = vsel %vm664_vm2, %v7220_v13, 0.0  ;;  %v899_v45 = vsel %vm664_vm2, %v7237_v28, 0.0 }
 0x107   :  { %v895_v29 = vsel %vm664_vm2, %v815_v23, 0.0  ;;  %1239 = vst.msk [vmem:[#allocation2 + $0x150] sm:$0x1] %vm1224_vm4, %v6907_v30  ;;  %1240 = vst.msk [vmem:[#allocation2 + $0x168] sm:$0x1] %vm1224_vm4, %v6907_v30  ;;  %v7440_v3 = vld [vmem:[#allocation2] sm:$0xff] }
 0x108   :  { %v7256_v31 = vadd.f32 %v700_v25, %v699_v27  ;;  %v7258_v32 = vadd.f32 %v895_v29, %v894_v26  ;;  %1241 = vst.msk [vmem:[#allocation2 + $0x180] sm:$0x1] %vm1224_vm4, %v6907_v30  ;;  %1244 = vst.msk [vmem:[#allocation2 + $0x1c8] sm:$0x1] %vm1224_vm4, %v6907_v30  ;;  %v7442_v4 = vld [vmem:[#allocation2 + $0x8] sm:$0xff]  ;;  %v1567_v10 = vrot.slane %v7440_v3, 1 }
 0x109   :  { %1245 = vst.msk [vmem:[#allocation2 + $0x1e0] sm:$0x1] %vm1224_vm4, %v6907_v30  ;;  %1246 = vst.msk [vmem:[#allocation2 + $0x1f8] sm:$0x1] %vm1224_vm4, %v6907_v30  ;;  %v7404_v35 = vpop.f32.mrb[20].mxu0  ;;  %v1568_v11 = vrot.slane %v7442_v4, 1 }
 0x10a   :  { %1247 = vst.msk [vmem:[#allocation2 + $0x210] sm:$0x1] %vm1224_vm4, %v6907_v30  ;;  %1248 = vst.msk [vmem:[#allocation2 + $0x228] sm:$0x1] %vm1224_vm4, %v6907_v30  ;;  %v898_v38 = vadd.f32 %v897_v33, %v7258_v32  ;;  %v7415_v41 = vpop.f32.mrb[21].mxu0  ;;  %v703_v43 = vadd.f32 %v702_v34, %v7256_v31  ;;  %v820_v55 = vmul.f32 %v7404_v35, %v7404_v35  ;;  %v708_v1 = vsel %vm664_vm2, %v7404_v35, 0.0 }
 0x10b   :  { %1249 = vst.msk [vmem:[#allocation2 + $0x240] sm:$0x1] %vm1224_vm4, %v6907_v30  ;;  %1250 = vst.msk [vmem:[#allocation2 + $0x258] sm:$0x1] %vm1224_vm4, %v6907_v30  ;;  %v704_v46 = vsel %vm664_vm2, %v7415_v41, 0.0  ;;  %v818_v47 = vmul.f32 %v7415_v41, %v7415_v41  ;;  %v7424_v48 = vpop.f32.mrb[22].mxu0  ;;  %v1569_v29 = vsel %vm1566_vm5, %v1567_v10, %v1568_v11 }
 0x10c   :  { %1251 = vst.msk [vmem:[#allocation2 + $0x270] sm:$0x1] %vm1224_vm4, %v6907_v30  ;;  %1252 = vst.msk [vmem:[#allocation2 + $0x288] sm:$0x1] %vm1224_vm4, %v6907_v30  ;;  %v705_v50 = vadd.f32 %v704_v46, %v703_v43  ;;  %v900_v51 = vadd.f32 %v899_v45, %v898_v38  ;;  %v7426_v53 = vpop.f32.mrb[23].mxu0  ;;  %v821_v62 = vmul.f32 %v7424_v48, %v7424_v48  ;;  %v905_v12 = vsel %vm664_vm2, %v820_v55, 0.0 }
 0x10d   :  { %1253 = vst.msk [vmem:[#allocation2 + $0x2a0] sm:$0x1] %vm1224_vm4, %v6907_v30  ;;  %1254 = vst.msk [vmem:[#allocation2 + $0x2b8] sm:$0x1] %vm1224_vm4, %v6907_v30  ;;  %v901_v57 = vsel %vm664_vm2, %v818_v47, 0.0  ;;  %v706_v58 = vsel %vm664_vm2, %v7426_v53, 0.0  ;;  %v819_v59 = vmul.f32 %v7426_v53, %v7426_v53 }
 0x10e   :  { %1255 = vst.msk [vmem:[#allocation2 + $0x2d0] sm:$0x1] %vm1224_vm4, %v6907_v30  ;;  %1256 = vst.msk [vmem:[#allocation2 + $0x2e8] sm:$0x1] %vm1224_vm4, %v6907_v30  ;;  %v902_v60 = vadd.f32 %v901_v57, %v900_v51  ;;  %v707_v63 = vadd.f32 %v706_v58, %v705_v50  ;;  %v710_v15 = vsel %vm664_vm2, %v7424_v48, 0.0  ;;  %v907_v20 = vsel %vm664_vm2, %v821_v62, 0.0 }
 0x10f   :  { %1257 = vst.msk [vmem:[#allocation2 + $0x300] sm:$0x1] %vm1224_vm4, %v6907_v30  ;;  %1258 = vst.msk [vmem:[#allocation2 + $0x318] sm:$0x1] %vm1224_vm4, %v6907_v30  ;;  %v903_v2 = vsel %vm664_vm2, %v819_v59, 0.0 }
 0x110   :  { %1259 = vst.msk [vmem:[#allocation2 + $0x330] sm:$0x1] %vm1224_vm4, %v6907_v30  ;;  %1262 = vst.msk [vmem:[#allocation2 + $0x29] sm:$0x1] %vm1224_vm4, %v6907_v30  ;;  %v709_v5 = vadd.f32 %v708_v1, %v707_v63  ;;  %v904_v7 = vadd.f32 %v903_v2, %v902_v60 }
 0x111   :  { %1263 = vst.msk [vmem:[#allocation2 + $0x41] sm:$0x1] %vm1224_vm4, %v6907_v30  ;;  %1264 = vst.msk [vmem:[#allocation2 + $0x59] sm:$0x1] %vm1224_vm4, %v6907_v30  ;;  %v7451_v17 = vpop.f32.mrb[24].mxu0 }
 0x112   :  { %1265 = vst.msk [vmem:[#allocation2 + $0x71] sm:$0x1] %vm1224_vm4, %v6907_v30  ;;  %1266 = vst.msk [vmem:[#allocation2 + $0x89] sm:$0x1] %vm1224_vm4, %v6907_v30  ;;  %v906_v22 = vadd.f32 %v905_v12, %v904_v7  ;;  %v7455_v23 = vpop.f32.mrb[25].mxu0  ;;  %v711_v25 = vadd.f32 %v710_v15, %v709_v5  ;;  %v824_v34 = vmul.f32 %v7451_v17, %v7451_v17  ;;  %v716_v51 = vsel %vm664_vm2, %v7451_v17, 0.0 }
 0x113   :  { %1267 = vst.msk [vmem:[#allocation2 + $0xa1] sm:$0x1] %vm1224_vm4, %v6907_v30  ;;  %1268 = vst.msk [vmem:[#allocation2 + $0xb9] sm:$0x1] %vm1224_vm4, %v6907_v30  ;;  %v712_v26 = vsel %vm664_vm2, %v7455_v23, 0.0  ;;  %v822_v27 = vmul.f32 %v7455_v23, %v7455_v23  ;;  %v7461_v28 = vpop.f32.mrb[26].mxu0 }
 0x114   :  { %1269 = vst.msk [vmem:[#allocation2 + $0xd1] sm:$0x1] %vm1224_vm4, %v6907_v30  ;;  %1270 = vst.msk [vmem:[#allocation2 + $0xe9] sm:$0x1] %vm1224_vm4, %v6907_v30  ;;  %v713_v31 = vadd.f32 %v712_v26, %v711_v25  ;;  %v908_v32 = vadd.f32 %v907_v20, %v906_v22  ;;  %v7465_v33 = vpop.f32.mrb[27].mxu0  ;;  %v825_v55 = vmul.f32 %v7461_v28, %v7461_v28  ;;  %v913_v60 = vsel %vm664_vm2, %v824_v34, 0.0 }
 0x115   :  { %1271 = vst.msk [vmem:[#allocation2 + $0x101] sm:$0x1] %vm1224_vm4, %v6907_v30  ;;  %1272 = vst.msk [vmem:[#allocation2 + $0x119] sm:$0x1] %vm1224_vm4, %v6907_v30  ;;  %v909_v38 = vsel %vm664_vm2, %v822_v27, 0.0  ;;  %v714_v43 = vsel %vm664_vm2, %v7465_v33, 0.0  ;;  %v823_v45 = vmul.f32 %v7465_v33, %v7465_v33 }
 0x116   :  { %1273 = vst.msk [vmem:[#allocation2 + $0x131] sm:$0x1] %vm1224_vm4, %v6907_v30  ;;  %1274 = vst.msk [vmem:[#allocation2 + $0x149] sm:$0x1] %vm1224_vm4, %v6907_v30  ;;  %v910_v46 = vadd.f32 %v909_v38, %v908_v32  ;;  %v715_v47 = vadd.f32 %v714_v43, %v713_v31  ;;  %v718_v62 = vsel %vm664_vm2, %v7461_v28, 0.0  ;;  %v915_v7 = vsel %vm664_vm2, %v825_v55, 0.0 }
 0x117   :  { %1275 = vst.msk [vmem:[#allocation2 + $0x161] sm:$0x1] %vm1224_vm4, %v6907_v30  ;;  %1276 = vst.msk [vmem:[#allocation2 + $0x179] sm:$0x1] %vm1224_vm4, %v6907_v30  ;;  %v911_v57 = vsel %vm664_vm2, %v823_v45, 0.0  ;;  %v7510_v43 = vld [vmem:[#allocation2 + $0x1b8] sm:$0xff] }
 0x118   :  { %1277 = vst.msk [vmem:[#allocation2 + $0x191] sm:$0x1] %vm1224_vm4, %v6907_v30  ;;  %1280 = vst.msk [vmem:[#allocation2 + $0x1d9] sm:$0x1] %vm1224_vm4, %v6907_v30  ;;  %v717_v58 = vadd.f32 %v716_v51, %v715_v47  ;;  %v912_v59 = vadd.f32 %v911_v57, %v910_v46  ;;  %v1648_v51 = vrot.slane %v7510_v43, 1 }
 0x119   :  { %1281 = vst.msk [vmem:[#allocation2 + $0x1f1] sm:$0x1] %vm1224_vm4, %v6907_v30  ;;  %1282 = vst.msk [vmem:[#allocation2 + $0x209] sm:$0x1] %vm1224_vm4, %v6907_v30  ;;  %v7483_v63 = vpop.f32.mrb[28].mxu0 }
 0x11a   :  { %1283 = vst.msk [vmem:[#allocation2 + $0x221] sm:$0x1] %vm1224_vm4, %v6907_v30  ;;  %1284 = vst.msk [vmem:[#allocation2 + $0x239] sm:$0x1] %vm1224_vm4, %v6907_v30  ;;  %v914_v1 = vadd.f32 %v913_v60, %v912_v59  ;;  %v7485_v2 = vpop.f32.mrb[29].mxu0  ;;  %v719_v5 = vadd.f32 %v718_v62, %v717_v58  ;;  %v828_v22 = vmul.f32 %v7483_v63, %v7483_v63  ;;  %v724_v32 = vsel %vm664_vm2, %v7483_v63, 0.0 }
 0x11b   :  { %1285 = vst.msk [vmem:[#allocation2 + $0x251] sm:$0x1] %vm1224_vm4, %v6907_v30  ;;  %1286 = vst.msk [vmem:[#allocation2 + $0x269] sm:$0x1] %vm1224_vm4, %v6907_v30  ;;  %v720_v10 = vsel %vm664_vm2, %v7485_v2, 0.0  ;;  %v7492_v12 = vpop.f32.mrb[30].mxu0 }
 0x11c   :  { %1287 = vst.msk [vmem:[#allocation2 + $0x281] sm:$0x1] %vm1224_vm4, %v6907_v30  ;;  %1288 = vst.msk [vmem:[#allocation2 + $0x299] sm:$0x1] %vm1224_vm4, %v6907_v30  ;;  %v721_v15 = vadd.f32 %v720_v10, %v719_v5  ;;  %v7494_v20 = vpop.f32.mrb[31].mxu0  ;;  %v921_v55 = vsel %vm664_vm2, %v828_v22, 0.0 }
 0x11d   :  { %1289 = vst.msk [vmem:[#allocation2 + $0x2b1] sm:$0x1] %vm1224_vm4, %v6907_v30  ;;  %1290 = vst.msk [vmem:[#allocation2 + $0x2c9] sm:$0x1] %vm1224_vm4, %v6907_v30  ;;  %v722_v26 = vsel %vm664_vm2, %v7494_v20, 0.0  ;;  %v827_v27 = vmul.f32 %v7494_v20, %v7494_v20  ;;  %v726_v57 = vsel %vm664_vm2, %v7492_v12, 0.0 }
 0x11e   :  { %1291 = vst.msk [vmem:[#allocation2 + $0x2e1] sm:$0x1] %vm1224_vm4, %v6907_v30  ;;  %1292 = vst.msk [vmem:[#allocation2 + $0x2f9] sm:$0x1] %vm1224_vm4, %v6907_v30  ;;  %v723_v31 = vadd.f32 %v722_v26, %v721_v15 }
 0x11f   :  { %1293 = vst.msk [vmem:[#allocation2 + $0x311] sm:$0x1] %vm1224_vm4, %v6907_v30  ;;  %1294 = vst.msk [vmem:[#allocation2 + $0x329] sm:$0x1] %vm1224_vm4, %v6907_v30  ;;  %v919_v34 = vsel %vm664_vm2, %v827_v27, 0.0 }
 0x120   :  { %1295 = vst.msk [vmem:[#allocation2 + $0x341] sm:$0x1] %vm1224_vm4, %v6907_v30  ;;  %1243 = vst.msk [vmem:[#allocation2 + $0x1b0] sm:$0x1] %vm1224_vm4, %v6907_v30  ;;  %v725_v46 = vadd.f32 %v724_v32, %v723_v31 }
 0x121   :  { %1242 = vst.msk [vmem:[#allocation2 + $0x198] sm:$0x1] %vm1224_vm4, %v6907_v30  ;;  %1260 = vst.msk [vmem:[#allocation2 + $0x348] sm:$0x1] %vm1224_vm4, %v6907_v30  ;;  %v7519_v58 = vpop.f32.mrb[32].mxu0 }
 0x122   :  { %1261 = vst.msk [vmem:[#allocation2 + $0x11] sm:$0x1] %vm1224_vm4, %v6907_v30  ;;  %1279 = vst.msk [vmem:[#allocation2 + $0x1c1] sm:$0x1] %vm1224_vm4, %v6907_v30  ;;  %v727_v5 = vadd.f32 %v726_v57, %v725_v46  ;;  %v832_v27 = vmul.f32 %v7519_v58, %v7519_v58 }
 0x123   :  { %1278 = vst.msk [vmem:[#allocation2 + $0x1a9] sm:$0x1] %vm1224_vm4, %v6907_v30  ;;  %1296 = vst.msk [vmem:[#allocation2 + $0x359] sm:$0x1] %vm1224_vm4, %v6907_v30 }
 0x124   :  { %13784 = vst [vmem:[#allocation3_spill] sm:$0xff] %v7519_v58 }
 0x127   :  { %v7508_v38 = vld [vmem:[#allocation2 + $0x1b0] sm:$0xff] }
 0x129   :  { %v7444_v9 = vld [vmem:[#allocation2 + $0x10] sm:$0x3]  ;;  %v7512_v45 = vld [vmem:[#allocation2 + $0x1c0] sm:$0x3] }
 0x12a   :  { %v1570_v19 = vrot.slane %v7444_v9, 1  ;;  %v1650_v59 = vrot.slane %v7512_v45, 1 }
 0x12c   :  { %v1571_v30 = vsel %vm1566_vm5, %v1568_v11, %v1570_v19  ;;  %v826_v11 = vmul.f32 %v7485_v2, %v7485_v2  ;;  %v916_v19 = vadd.f32 %v915_v7, %v914_v1  ;;  %v7523_v1 = vpop.f32.mrb[33].mxu0 }
 0x12d   :  { %v5504_v50 = vpack.i.bf16 %v1571_v30, %v1569_v29  ;;  %v829_v30 = vmul.f32 %v7492_v12, %v7492_v12  ;;  %v728_v7 = vsel %vm664_vm2, %v7523_v1, 0.0  ;;  %v830_v10 = vmul.f32 %v7523_v1, %v7523_v1 }
 0x12e   :  { %v917_v25 = vsel %vm664_vm2, %v826_v11, 0.0  ;;  %v7529_v11 = vpop.f32.mrb[34].mxu0  ;;  %v729_v22 = vadd.f32 %v728_v7, %v727_v5 }
 0x12f   :  { %5505 = vrot.lane.b32.xlu0 %v5504_v50, %s6908_s0  ;;  %v918_v29 = vadd.f32 %v917_v25, %v916_v19  ;;  %v1647_v50 = vrot.slane %v7508_v38, 1  ;;  %v923_v60 = vsel %vm664_vm2, %v829_v30, 0.0  ;;  %13785 = vst [vmem:[#allocation4_spill] sm:$0xff] %v7529_v11  ;;  %v1651_v19 = vsel %vm1566_vm5, %v1648_v51, %v1650_v59  ;;  %v7533_v26 = vpop.f32.mrb[35].mxu0 }
 0x130   :  { %13786 = vst [vmem:[#allocation5_spill] sm:$0xff] %v7533_v26  ;;  %v730_v30 = vsel %vm664_vm2, %v7533_v26, 0.0  ;;  %v831_v31 = vmul.f32 %v7533_v26, %v7533_v26  ;;  %v929_v59 = vsel %vm664_vm2, %v832_v27, 0.0  ;;  %v2003_v26 = vrot.slane %v7512_v45, 2 }
 0x131   :  { %v920_v47 = vadd.f32 %v919_v34, %v918_v29  ;;  %v1649_v15 = vsel %vm1566_vm5, %v1647_v50, %v1648_v51  ;;  %v925_v29 = vsel %vm664_vm2, %v830_v10, 0.0  ;;  %v731_v34 = vadd.f32 %v730_v30, %v729_v22 }
 0x132   :  { %v5509_v46 = vpack.i.bf16 %v1651_v19, %v1649_v15  ;;  %v833_v50 = vmul.f32 %v7529_v11, %v7529_v11  ;;  %v927_v51 = vsel %vm664_vm2, %v831_v31, 0.0 }
 0x133   :  { %v922_v62 = vadd.f32 %v921_v55, %v920_v47  ;;  %v732_v47 = vsel %vm664_vm2, %v7519_v58, 0.0 }
 0x134   :  { %v733_v55 = vadd.f32 %v732_v47, %v731_v34  ;;  %5510 = vrot.lane.b32.xlu0 %v5509_v46, %s6908_s0  ;;  %v931_v15 = vsel %vm664_vm2, %v833_v50, 0.0 }
 0x135   :  { %v924_v25 = vadd.f32 %v923_v60, %v922_v62  ;;  %v734_v60 = vsel %vm664_vm2, %v7529_v11, 0.0  ;;  %v7551_v62 = vpop.f32.mrb[36].mxu0 }
 0x136   :  { %13787 = vst [vmem:[#allocation6_spill] sm:$0xff] %v7551_v62  ;;  %v7553_v7 = vpop.f32.mrb[37].mxu0  ;;  %v735_v10 = vadd.f32 %v734_v60, %v733_v55  ;;  %v836_v31 = vmul.f32 %v7551_v62, %v7551_v62 }
 0x137   :  { %v926_v32 = vadd.f32 %v925_v29, %v924_v25  ;;  %13788 = vst [vmem:[#allocation7_spill] sm:$0xff] %v7553_v7  ;;  %v736_v19 = vsel %vm664_vm2, %v7553_v7, 0.0  ;;  %v834_v22 = vmul.f32 %v7553_v7, %v7553_v7  ;;  %v7560_v25 = vpop.f32.mrb[38].mxu0 }
 0x138   :  { %13789 = vst [vmem:[#allocation8_spill] sm:$0xff] %v7560_v25  ;;  %v737_v27 = vadd.f32 %v736_v19, %v735_v10  ;;  %v7562_v30 = vpop.f32.mrb[39].mxu0  ;;  %v837_v55 = vmul.f32 %v7560_v25, %v7560_v25  ;;  %v742_v10 = vsel %vm664_vm2, %v7560_v25, 0.0 }
 0x139   :  { %v928_v57 = vadd.f32 %v927_v51, %v926_v32  ;;  %13790 = vst [vmem:[#allocation9_spill] sm:$0xff] %v7562_v30  ;;  %v933_v32 = vsel %vm664_vm2, %v834_v22, 0.0  ;;  %v738_v34 = vsel %vm664_vm2, %v7562_v30, 0.0  ;;  %v835_v46 = vmul.f32 %v7562_v30, %v7562_v30  ;;  %v1415_v30 = vld [vmem:[#allocation2 + $0x1a8] sm:$0x3] }
 0x13a   :  { %v739_v50 = vadd.f32 %v738_v34, %v737_v27  ;;  %v740_v51 = vsel %vm664_vm2, %v7551_v62, 0.0  ;;  %v1920_v62 = vrot.slane %v7440_v3, 2 }
 0x13b   :  { %v930_v5 = vadd.f32 %v929_v59, %v928_v57  ;;  %v935_v57 = vsel %vm664_vm2, %v835_v46, 0.0 }
 0x13c   :  { %v741_v59 = vadd.f32 %v740_v51, %v739_v50 }
 0x13d   :  { %v932_v29 = vadd.f32 %v931_v15, %v930_v5  ;;  %v937_v5 = vsel %vm664_vm2, %v836_v31, 0.0  ;;  %v7579_v15 = vpop.f32.mrb[40].mxu0 }
 0x13e   :  { %13791 = vst [vmem:[#allocation10_spill] sm:$0xff] %v7579_v15  ;;  %v7581_v22 = vpop.f32.mrb[41].mxu0  ;;  %v743_v27 = vadd.f32 %v742_v10, %v741_v59  ;;  %v840_v34 = vmul.f32 %v7579_v15, %v7579_v15  ;;  %v748_v50 = vsel %vm664_vm2, %v7579_v15, 0.0 }
 0x13f   :  { %v934_v47 = vadd.f32 %v933_v32, %v932_v29  ;;  %13792 = vst [vmem:[#allocation11_spill] sm:$0xff] %v7581_v22  ;;  %v1923_v29 = vrot.slane %v7444_v9, 2  ;;  %v939_v32 = vsel %vm664_vm2, %v837_v55, 0.0  ;;  %v744_v46 = vsel %vm664_vm2, %v7581_v22, 0.0  ;;  %v7597_v9 = vld [vmem:[#allocation2 + $0x198] sm:$0xff]  ;;  %v7599_v55 = vld [vmem:[#allocation2 + $0x1a0] sm:$0xff] }
 0x140   :  { %v838_v31 = vmul.f32 %v7581_v22, %v7581_v22  ;;  %v745_v51 = vadd.f32 %v744_v46, %v743_v27  ;;  %v5499_v46 = vpack.i.bf16 %v7599_v55, %v7597_v9  ;;  %v945_v22 = vsel %vm664_vm2, %v840_v34, 0.0 }
 0x141   :  { %v936_v60 = vadd.f32 %v935_v57, %v934_v47  ;;  %v7591_v47 = vpop.f32.mrb[42].mxu0  ;;  %v3072_v25 = vrot.slane %v7597_v9, 1 }
 0x142   :  { %13793 = vst [vmem:[#allocation12_spill] sm:$0xff] %v7591_v47  ;;  %v7595_v59 = vpop.f32.mrb[43].mxu0  ;;  %v750_v7 = vsel %vm664_vm2, %v7591_v47, 0.0  ;;  %5500 = vrot.lane.b32.xlu1 %v5499_v46, %s6909_s28 }
 0x143   :  { %v938_v19 = vadd.f32 %v937_v5, %v936_v60  ;;  %13794 = vst [vmem:[#allocation13_spill] sm:$0xff] %v7595_v59  ;;  %v941_v60 = vsel %vm664_vm2, %v838_v31, 0.0  ;;  %v841_v5 = vmul.f32 %v7591_v47, %v7591_v47  ;;  %v746_v10 = vsel %vm664_vm2, %v7595_v59, 0.0  ;;  %v7620_v34 = vpop.f32.mrb[44].mxu0 }
 0x144   :  { %v839_v15 = vmul.f32 %v7595_v59, %v7595_v59  ;;  %v7625_v58 = vpop.f32.mrb[45].mxu0 }
 0x145   :  { %v940_v57 = vadd.f32 %v939_v32, %v938_v19  ;;  %v747_v19 = vadd.f32 %v746_v10, %v745_v51  ;;  %v3073_v32 = vrot.slane %v7599_v55, 1  ;;  %v1921_v51 = vrot.slane %v7442_v4, 2  ;;  %13795 = vst [vmem:[#allocation14_spill] sm:$0xff] %v7625_v58  ;;  %v7632_v46 = vpop.f32.mrb[46].mxu0 }
 0x146   :  { %v943_v31 = vsel %vm664_vm2, %v839_v15, 0.0  ;;  %v3275_v15 = vrot.slane %v7599_v55, 2  ;;  %v3274_v10 = vrot.slane %v7597_v9, 2  ;;  %v752_v4 = vsel %vm664_vm2, %v7625_v58, 0.0 }
 0x147   :  { %v942_v27 = vadd.f32 %v941_v60, %v940_v57  ;;  %v749_v59 = vadd.f32 %v748_v50, %v747_v19  ;;  %v947_v60 = vsel %vm664_vm2, %v841_v5, 0.0  ;;  %v3074_v3 = vsel %vm1566_vm5, %v3072_v25, %v3073_v32 }
 0x148   :  { %v2000_v19 = vrot.slane %v7508_v38, 2  ;;  %v842_v5 = vmul.f32 %v7625_v58, %v7625_v58  ;;  %v1922_v55 = vsel %vm1919_vm6, %v1920_v62, %v1921_v51  ;;  %v1924_v9 = vsel %vm1919_vm6, %v1921_v51, %v1923_v29 }
 0x149   :  { %v944_v57 = vadd.f32 %v943_v31, %v942_v27  ;;  %v751_v50 = vadd.f32 %v750_v7, %v749_v59  ;;  %v3075_v27 = vrot.slane %v1415_v30, 1  ;;  %v844_v25 = vmul.f32 %v7620_v34, %v7620_v34  ;;  %v7638_v59 = vpop.f32.mrb[47].mxu0 }
 0x14a   :  { %13796 = vst [vmem:[#allocation15_spill] sm:$0xff] %v7638_v59  ;;  %v2001_v38 = vrot.slane %v7510_v43, 2  ;;  %v949_v31 = vsel %vm664_vm2, %v842_v5, 0.0  ;;  %v754_v58 = vsel %vm664_vm2, %v7638_v59, 0.0  ;;  %v843_v62 = vmul.f32 %v7638_v59, %v7638_v59 }
 0x14b   :  { %v946_v11 = vadd.f32 %v945_v22, %v944_v57  ;;  %v753_v22 = vadd.f32 %v752_v4, %v751_v50  ;;  %v845_v57 = vmul.f32 %v7632_v46, %v7632_v46  ;;  %v5514_v47 = vpack.i.bf16 %v1924_v9, %v1922_v55 }
 0x14c   :  { %v951_v43 = vsel %vm664_vm2, %v843_v62, 0.0  ;;  %v953_v59 = vsel %vm664_vm2, %v844_v25, 0.0  ;;  %v3276_v45 = vsel %vm1919_vm6, %v3274_v10, %v3275_v15 }
 0x14d   :  { %v948_v7 = vadd.f32 %v947_v60, %v946_v11  ;;  %v755_v51 = vadd.f32 %v754_v58, %v753_v22  ;;  %v3076_v11 = vsel %vm1566_vm5, %v3073_v32, %v3075_v27  ;;  %v756_v60 = vsel %vm664_vm2, %v7620_v34, 0.0  ;;  %5515 = vrot.lane.b32.xlu0 %v5514_v47, %s6910_s29  ;;  %v7658_v27 = vpop.f32.mrb[48].mxu0 }
 0x14e   :  { %v5524_v50 = vpack.i.bf16 %v3076_v11, %v3074_v3  ;;  %v758_v58 = vsel %vm664_vm2, %v7632_v46, 0.0  ;;  %v955_v32 = vsel %vm664_vm2, %v845_v57, 0.0  ;;  %v3277_v3 = vrot.slane %v1415_v30, 2  ;;  %v7661_v9 = vpop.f32.mrb[49].mxu0 }
 0x14f   :  { %v950_v29 = vadd.f32 %v949_v31, %v948_v7  ;;  %v757_v4 = vadd.f32 %v756_v60, %v755_v51  ;;  %v2002_v47 = vsel %vm1919_vm6, %v2000_v19, %v2001_v38  ;;  %v760_v25 = vsel %vm664_vm2, %v7661_v9, 0.0  ;;  %v7669_v31 = vpop.f32.mrb[50].mxu0 }
 0x150   :  { %5525 = vrot.lane.b32.xlu1 %v5524_v50, %s6911_s30  ;;  %v846_v7 = vmul.f32 %v7661_v9, %v7661_v9  ;;  %v2004_v57 = vsel %vm1919_vm6, %v2001_v38, %v2003_v26  ;;  %v3278_v30 = vsel %vm1919_vm6, %v3275_v15, %v3277_v3  ;;  %v848_v19 = vmul.f32 %v7658_v27, %v7658_v27 }
 0x151   :  { %v952_v5 = vadd.f32 %v951_v43, %v950_v29  ;;  %v759_v22 = vadd.f32 %v758_v58, %v757_v4  ;;  %v7673_v29 = vpop.f32.mrb[51].mxu0  ;;  %v5519_v26 = vpack.i.bf16 %v2004_v57, %v2002_v47  ;;  %v5529_v38 = vpack.i.bf16 %v3278_v30, %v3276_v45 }
 0x152   :  { %v957_v10 = vsel %vm664_vm2, %v846_v7, 0.0  ;;  %v762_v51 = vsel %vm664_vm2, %v7673_v29, 0.0  ;;  %v847_v11 = vmul.f32 %v7673_v29, %v7673_v29  ;;  %v764_v15 = vsel %vm664_vm2, %v7658_v27, 0.0 }
 0x153   :  { %v954_v55 = vadd.f32 %v953_v59, %v952_v5  ;;  %v761_v59 = vadd.f32 %v760_v25, %v759_v22  ;;  %v849_v50 = vmul.f32 %v7669_v31, %v7669_v31  ;;  %5520 = vrot.lane.b32.xlu0 %v5519_v26, %s6910_s29  ;;  %v766_v3 = vsel %vm664_vm2, %v7669_v31, 0.0 }
 0x154   :  { %v959_v4 = vsel %vm664_vm2, %v847_v11, 0.0  ;;  %5530 = vrot.lane.b32.xlu1 %v5529_v38, %s6912_s9 }
 0x155   :  { %v956_v62 = vadd.f32 %v955_v32, %v954_v55  ;;  %v763_v43 = vadd.f32 %v762_v51, %v761_v59  ;;  %v961_v32 = vsel %vm664_vm2, %v848_v19, 0.0  ;;  %v7692_v55 = vpop.f32.mrb[52].mxu0  ;;  %v963_v25 = vsel %vm664_vm2, %v849_v50, 0.0 }
 0x156   :  { %13797 = vst [vmem:[#allocation16_spill] sm:$0xff] %v7692_v55  ;;  %v7694_v47 = vpop.f32.mrb[53].mxu0  ;;  %v772_v38 = vsel %vm664_vm2, %v7692_v55, 0.0 }
 0x157   :  { %v958_v60 = vadd.f32 %v957_v10, %v956_v62  ;;  %v765_v5 = vadd.f32 %v764_v15, %v763_v43  ;;  %13798 = vst [vmem:[#allocation17_spill] sm:$0xff] %v7694_v47  ;;  %v768_v7 = vsel %vm664_vm2, %v7694_v47, 0.0  ;;  %v850_v57 = vmul.f32 %v7694_v47, %v7694_v47  ;;  %v7701_v30 = vpop.f32.mrb[54].mxu0 }
 0x158   :  { %13799 = vst [vmem:[#allocation18_spill] sm:$0xff] %v7701_v30  ;;  %v7703_v19 = vpop.f32.mrb[55].mxu0  ;;  %v852_v10 = vmul.f32 %v7692_v55, %v7692_v55  ;;  %v853_v15 = vmul.f32 %v7701_v30, %v7701_v30 }
 0x159   :  { %v960_v58 = vadd.f32 %v959_v4, %v958_v60  ;;  %v767_v45 = vadd.f32 %v766_v3, %v765_v5  ;;  %13800 = vst [vmem:[#allocation19_spill] sm:$0xff] %v7703_v19  ;;  %v965_v51 = vsel %vm664_vm2, %v850_v57, 0.0  ;;  %v770_v11 = vsel %vm664_vm2, %v7703_v19, 0.0  ;;  %v7720_v3 = vpop.f32.mrb[56].mxu0 }
 0x15a   :  { %v851_v60 = vmul.f32 %v7703_v19, %v7703_v19  ;;  %13801 = vst [vmem:[#allocation20_spill] sm:$0xff] %v7720_v3 }
 0x15b   :  { %v962_v22 = vadd.f32 %v961_v32, %v960_v58  ;;  %v769_v59 = vadd.f32 %v768_v7, %v767_v45  ;;  %v969_v58 = vsel %vm664_vm2, %v852_v10, 0.0  ;;  %v774_v32 = vsel %vm664_vm2, %v7701_v30, 0.0  ;;  %v7722_v45 = vpop.f32.mrb[57].mxu0 }
 0x15c   :  { %v967_v50 = vsel %vm664_vm2, %v851_v60, 0.0  ;;  %13802 = vst [vmem:[#allocation21_spill] sm:$0xff] %v7722_v45  ;;  %v971_v7 = vsel %vm664_vm2, %v853_v15, 0.0  ;;  %v776_v57 = vsel %vm664_vm2, %v7722_v45, 0.0  ;;  %v856_v60 = vmul.f32 %v7720_v3, %v7720_v3 }
 0x15d   :  { %v964_v62 = vadd.f32 %v963_v25, %v962_v22  ;;  %v771_v26 = vadd.f32 %v770_v11, %v769_v59  ;;  %v854_v59 = vmul.f32 %v7722_v45, %v7722_v45 }
 0x15f   :  { %v966_v43 = vadd.f32 %v965_v51, %v964_v62  ;;  %v773_v4 = vadd.f32 %v772_v38, %v771_v26  ;;  %v7729_v62 = vpop.f32.mrb[58].mxu0 }
 0x160   :  { %13803 = vst [vmem:[#allocation22_spill] sm:$0xff] %v7729_v62  ;;  %v7731_v11 = vpop.f32.mrb[59].mxu0 }
 0x161   :  { %v968_v5 = vadd.f32 %v967_v50, %v966_v43  ;;  %v775_v25 = vadd.f32 %v774_v32, %v773_v4  ;;  %13804 = vst [vmem:[#allocation23_spill] sm:$0xff] %v7731_v11  ;;  %v973_v43 = vsel %vm664_vm2, %v854_v59, 0.0  ;;  %v778_v26 = vsel %vm664_vm2, %v7731_v11, 0.0 }
 0x162   :  { %v855_v38 = vmul.f32 %v7731_v11, %v7731_v11  ;;  %v780_v4 = vsel %vm664_vm2, %v7720_v3, 0.0 }
 0x163   :  { %v970_v22 = vadd.f32 %v969_v58, %v968_v5  ;;  %v777_v10 = vadd.f32 %v776_v57, %v775_v25  ;;  %v857_v5 = vmul.f32 %v7729_v62, %v7729_v62  ;;  %v977_v25 = vsel %vm664_vm2, %v856_v60, 0.0  ;;  %v7748_v57 = vpop.f32.mrb[60].mxu0 }
 0x164   :  { %v975_v58 = vsel %vm664_vm2, %v855_v38, 0.0  ;;  %13805 = vst [vmem:[#allocation24_spill] sm:$0xff] %v7748_v57 }
 0x165   :  { %v972_v51 = vadd.f32 %v971_v7, %v970_v22  ;;  %v779_v50 = vadd.f32 %v778_v26, %v777_v10  ;;  %v782_v7 = vsel %vm664_vm2, %v7729_v62, 0.0  ;;  %v788_v62 = vsel %vm664_vm2, %v7748_v57, 0.0 }
 0x167   :  { %v974_v15 = vadd.f32 %v973_v43, %v972_v51  ;;  %v781_v32 = vadd.f32 %v780_v4, %v779_v50  ;;  %v7750_v51 = vpop.f32.mrb[61].mxu0  ;;  %v979_v43 = vsel %vm664_vm2, %v857_v5, 0.0 }
 0x168   :  { %13806 = vst [vmem:[#allocation25_spill] sm:$0xff] %v7750_v51  ;;  %v784_v26 = vsel %vm664_vm2, %v7750_v51, 0.0  ;;  %v858_v38 = vmul.f32 %v7750_v51, %v7750_v51 }
 0x169   :  { %v976_v22 = vadd.f32 %v975_v58, %v974_v15  ;;  %v783_v10 = vadd.f32 %v782_v7, %v781_v32  ;;  %v7757_v15 = vpop.f32.mrb[62].mxu0  ;;  %v860_v58 = vmul.f32 %v7748_v57, %v7748_v57 }
 0x16a   :  { %13807 = vst [vmem:[#allocation26_spill] sm:$0xff] %v7757_v15  ;;  %v652_v4 = vpop.f32.mrb[63].mxu0  ;;  %v861_v51 = vmul.f32 %v7757_v15, %v7757_v15 }
 0x16b   :  { %v978_v59 = vadd.f32 %v977_v25, %v976_v22  ;;  %v785_v60 = vadd.f32 %v784_v26, %v783_v10  ;;  %v981_v22 = vsel %vm664_vm2, %v858_v38, 0.0  ;;  %v786_v32 = vsel %vm664_vm2, %v652_v4, 0.0 }
 0x16c   :  { %v859_v25 = vmul.f32 %v652_v4, %v652_v4  ;;  %v985_v26 = vsel %vm664_vm2, %v860_v58, 0.0  ;;  %v790_v38 = vsel %vm664_vm2, %v7757_v15, 0.0 }
 0x16d   :  { %v980_v50 = vadd.f32 %v979_v43, %v978_v59  ;;  %v787_v7 = vadd.f32 %v786_v32, %v785_v60 }
 0x16e   :  { %v983_v10 = vsel %vm664_vm2, %v859_v25, 0.0 }
 0x16f   :  { %v982_v5 = vadd.f32 %v981_v22, %v980_v50  ;;  %v789_v59 = vadd.f32 %v788_v62, %v787_v7  ;;  %v987_v50 = vsel %vm664_vm2, %v861_v51, 0.0  ;;  %v1007_v51 = vlaneseq }
 0x171   :  { %v984_v43 = vadd.f32 %v983_v10, %v982_v5  ;;  %v791_v3 = vadd.f32 %v790_v38, %v789_v59 }
 0x173   :  { %v986_v11 = vadd.f32 %v985_v26, %v984_v43  ;;  %v792_v60 = vrot.slane %v791_v3, 4  ;;  %v1008_v26 = vshrl.u32 %v1007_v51, 7 }
 0x175   :  { %v988_v22 = vadd.f32 %v987_v50, %v986_v11  ;;  %v793_v32 = vadd.f32 %v792_v60, %v791_v3  ;;  %v999_v3 = vld [vmem:[%s13348_s3] sm:$0x1]  ;;  %v7775_v11 = vsub.s32 0, %v1008_v26  ;;  %v13815_v26 = vld [vmem:[#allocation8_spill] sm:$0xff]  ;;  %s6913_s3 = smov 12  }
 0x177   :  { %v989_v57 = vrot.slane %v988_v22, 4  ;;  %v794_v45 = vrot.slane %v793_v32, 2  ;;  %13808 = vst [vmem:[#allocation27_spill] sm:$0xff] %v7775_v11 }
 0x179   :  { %v990_v30 = vadd.f32 %v989_v57, %v988_v22  ;;  %v795_v55 = vadd.f32 %v794_v45, %v793_v32 }
 0x17b   :  { %v991_v19 = vrot.slane %v990_v30, 2  ;;  %v796_v25 = vrot.slane %v795_v55, 1 }
 0x17d   :  { %v992_v62 = vadd.f32 %v991_v19, %v990_v30  ;;  %v797_v5 = vadd.f32 %v796_v25, %v795_v55  ;;  %v1003_v55 = vld [vmem:[%s13349_s4] sm:$0x1]  ;;  %s6914_s4 = smov 16  }
 0x17f   :  { %v993_v7 = vrot.slane %v992_v62, 1  ;;  %v995_v10 = vmul.f32 0.001953125, %v797_v5  ;;  %v13809_v5 = vld [vmem:[#allocation5_spill] sm:$0xff] }
 0x181   :  { %v994_v58 = vadd.f32 %v993_v7, %v992_v62  ;;  %v997_v15 = vmul.f32 %v995_v10, %v995_v10  ;;  %v13810_v7 = vld [vmem:[#allocation3_spill] sm:$0xff] }
 0x183   :  { %v996_v47 = vmul.f32 0.001953125, %v994_v58  ;;  %v13811_v58 = vld [vmem:[#allocation4_spill] sm:$0xff] }
 0x185   :  { %v998_v59 = vsub.f32 %v996_v47, %v997_v15 }
 0x187   :  { %v1000_v43 = vadd.f32 1e-05, %v998_v59  ;;  %v13813_v59 = vld [vmem:[#allocation9_spill] sm:$0xff] }
 0x189   :  { %6817 = vrsqrt.f32 %v1000_v43  ;;  %v13814_v43 = vld [vmem:[#allocation6_spill] sm:$0xff] }
 0x193   :  { %v6818_v45 = vpop.eup %6817 }
 0x194   :  { %v1002_v57 = vmul.f32 %v6818_v45, %v999_v3  ;;  %v13816_v45 = vld [vmem:[#allocation11_spill] sm:$0xff] }
 0x196   :  { %v1004_v30 = vmul.f32 %v1002_v57, %v995_v10  ;;  %v7781_v19 = vrot.slane %v1002_v57, %v7775_v11  ;;  %v13812_v10 = vld [vmem:[#allocation7_spill] sm:$0xff] }
 0x198   :  { %v1005_v47 = vsub.f32 %v1003_v55, %v1004_v30  ;;  %v1073_v15 = vmul.f32 %v7781_v19, %v652_v4  ;;  %v7786_v38 = vmul.f32 %v7781_v19, %v7102_v37  ;;  %v7790_v50 = vmul.f32 %v7781_v19, %v7108_v40  ;;  %v13817_v55 = vld [vmem:[#allocation13_spill] sm:$0xff] }
 0x199   :  { %v7794_v60 = vmul.f32 %v7100_v36, %v7781_v19  ;;  %v7798_v22 = vmul.f32 %v7106_v39, %v7781_v19  ;;  %v7802_v32 = vmul.f32 %v7781_v19, %v7129_v56  ;;  %v7806_v37 = vmul.f32 %v7781_v19, %v7138_v0 }
 0x19a   :  { %v7809_v4 = vrot.slane %v1005_v47, %v7775_v11  ;;  %v7813_v40 = vmul.f32 %v7127_v54, %v7781_v19  ;;  %v7817_v36 = vmul.f32 %v7136_v61, %v7781_v19  ;;  %v7821_v39 = vmul.f32 %v7781_v19, %v7157_v16  ;;  %v13818_v47 = vld [vmem:[#allocation10_spill] sm:$0xff]  ;;  %v13831_v11 = vld [vmem:[#allocation21_spill] sm:$0xff] }
 0x19b   :  { %v7825_v56 = vmul.f32 %v7781_v19, %v7166_v24  ;;  %v7829_v0 = vmul.f32 %v7155_v14, %v7781_v19  ;;  %v7833_v54 = vmul.f32 %v7164_v21, %v7781_v19  ;;  %v7837_v61 = vmul.f32 %v7781_v19, %v7185_v44 }
 0x19c   :  { %v1143_v25 = vadd.f32 %v7809_v4, %v1073_v15  ;;  %v7842_v16 = vmul.f32 %v7781_v19, %v7194_v52  ;;  %v7846_v24 = vmul.f32 %v7183_v42, %v7781_v19  ;;  %v7850_v14 = vmul.f32 %v7192_v49, %v7781_v19 }
 0x19d   :  { %v7854_v21 = vmul.f32 %v7781_v19, %v7213_v8  ;;  %v7858_v44 = vmul.f32 %v7781_v19, %v7222_v18  ;;  %v7862_v52 = vmul.f32 %v7211_v6, %v7781_v19  ;;  %v7866_v42 = vmul.f32 %v7220_v13, %v7781_v19 }
 0x19e   :  { %v1207_v62 = vmax.f32 %v1143_v25, 0.0  ;;  %v7870_v49 = vmul.f32 %v7781_v19, %v7415_v41  ;;  %v7874_v8 = vmul.f32 %v7781_v19, %v7426_v53  ;;  %v7878_v18 = vmul.f32 %v7404_v35, %v7781_v19  ;;  %v13819_v25 = vld [vmem:[#allocation12_spill] sm:$0xff] }
 0x19f   :  { %v7882_v6 = vmul.f32 %v7424_v48, %v7781_v19  ;;  %v7886_v13 = vmul.f32 %v7781_v19, %v7455_v23  ;;  %v7890_v41 = vmul.f32 %v7781_v19, %v7465_v33  ;;  %v7894_v53 = vmul.f32 %v7451_v17, %v7781_v19 }
 0x1a0   :  { %1359 = vst.msk [vmem:[#allocation2 + $0x321] sm:$0xff] %vm664_vm2, %v1207_v62  ;;  %v7899_v35 = vmul.f32 %v7461_v28, %v7781_v19  ;;  %v7903_v48 = vmul.f32 %v7781_v19, %v7485_v2  ;;  %v7907_v23 = vmul.f32 %v7781_v19, %v7494_v20  ;;  %v7911_v33 = vmul.f32 %v7483_v63, %v7781_v19 }
 0x1a1   :  { %v7915_v17 = vmul.f32 %v7492_v12, %v7781_v19  ;;  %v7919_v28 = vmul.f32 %v7781_v19, %v7523_v1  ;;  %v7923_v2 = vmul.f32 %v7781_v19, %v13809_v5  ;;  %v7927_v20 = vmul.f32 %v13810_v7, %v7781_v19  ;;  %v13820_v5 = vld [vmem:[#allocation14_spill] sm:$0xff] }
 0x1a2   :  { %v7931_v63 = vmul.f32 %v13811_v58, %v7781_v19  ;;  %v7935_v12 = vmul.f32 %v7781_v19, %v13812_v10  ;;  %v7939_v1 = vmul.f32 %v7781_v19, %v13813_v59  ;;  %v7943_v51 = vmul.f32 %v13814_v43, %v7781_v19  ;;  %v13821_v58 = vld [vmem:[#allocation15_spill] sm:$0xff] }
 0x1a3   :  { %v7947_v3 = vmul.f32 %v13815_v26, %v7781_v19  ;;  %v7951_v57 = vmul.f32 %v7781_v19, %v13816_v45  ;;  %v7955_v30 = vmul.f32 %v7781_v19, %v13817_v55  ;;  %v7959_v15 = vmul.f32 %v13818_v47, %v7781_v19  ;;  %v13823_v47 = vld [vmem:[#allocation17_spill] sm:$0xff] }
 0x1a4   :  { %v7963_v62 = vmul.f32 %v13819_v25, %v7781_v19  ;;  %v7967_v7 = vmul.f32 %v7781_v19, %v13820_v5  ;;  %v7971_v10 = vmul.f32 %v7781_v19, %v13821_v58  ;;  %v7975_v59 = vmul.f32 %v7620_v34, %v7781_v19  ;;  %v13825_v25 = vld [vmem:[#allocation19_spill] sm:$0xff]  ;;  %v13827_v5 = vld [vmem:[#allocation16_spill] sm:$0xff]  ;;  %v13829_v58 = vld [vmem:[#allocation18_spill] sm:$0xff] }
 0x1a5   :  { %v7979_v43 = vmul.f32 %v7632_v46, %v7781_v19  ;;  %v7983_v26 = vmul.f32 %v7781_v19, %v7661_v9  ;;  %v7987_v45 = vmul.f32 %v7781_v19, %v7673_v29  ;;  %v7991_v55 = vmul.f32 %v7658_v27, %v7781_v19 }
 0x1a6   :  { %v7995_v34 = vmul.f32 %v7669_v31, %v7781_v19  ;;  %v7999_v46 = vmul.f32 %v7781_v19, %v13823_v47  ;;  %v8003_v9 = vmul.f32 %v7781_v19, %v13825_v25  ;;  %v8007_v29 = vmul.f32 %v13827_v5, %v7781_v19 }
 0x1a7   :  { %v8011_v27 = vmul.f32 %v13829_v58, %v7781_v19  ;;  %v8015_v31 = vmul.f32 %v7781_v19, %v13831_v11 }
 0x1a8   :  { %13822 = vst [vmem:[#allocation5_spill] sm:$0xff] %v7995_v34  ;;  %13824 = vst [vmem:[#allocation3_spill] sm:$0xff] %v7999_v46  ;;  %v13833_v34 = vld [vmem:[#allocation23_spill] sm:$0xff]  ;;  %v13834_v46 = vld [vmem:[#allocation20_spill] sm:$0xff] }
 0x1a9   :  { %13826 = vst [vmem:[#allocation4_spill] sm:$0xff] %v8003_v9  ;;  %13828 = vst [vmem:[#allocation7_spill] sm:$0xff] %v8007_v29  ;;  %v8019_v47 = vmul.f32 %v7781_v19, %v13833_v34  ;;  %v8023_v25 = vmul.f32 %v13834_v46, %v7781_v19  ;;  %v13835_v9 = vld [vmem:[#allocation22_spill] sm:$0xff]  ;;  %v13836_v29 = vld [vmem:[#allocation25_spill] sm:$0xff]  ;;  %v8043_v46 = vadd.f32 %v7809_v4, %v7786_v38 }
 0x1aa   :  { %13830 = vst [vmem:[#allocation9_spill] sm:$0xff] %v8011_v27  ;;  %13832 = vst [vmem:[#allocation6_spill] sm:$0xff] %v8015_v31  ;;  %v8027_v5 = vmul.f32 %v13835_v9, %v7781_v19  ;;  %v8031_v58 = vmul.f32 %v7781_v19, %v13836_v29  ;;  %v13837_v27 = vld [vmem:[#allocation24_spill] sm:$0xff]  ;;  %v13838_v31 = vld [vmem:[#allocation26_spill] sm:$0xff]  ;;  %v8047_v9 = vadd.f32 %v7809_v4, %v7790_v50 }
 0x1ab   :  { %v8035_v11 = vmul.f32 %v13837_v27, %v7781_v19  ;;  %v8039_v34 = vmul.f32 %v13838_v31, %v7781_v19  ;;  %v8051_v29 = vadd.f32 %v7809_v4, %v7794_v60  ;;  %v8055_v27 = vadd.f32 %v7809_v4, %v7798_v22 }
 0x1ac   :  { %v8059_v19 = vadd.f32 %v7809_v4, %v7802_v32  ;;  %v8063_v38 = vadd.f32 %v7809_v4, %v7806_v37  ;;  %v8067_v50 = vadd.f32 %v7809_v4, %v7813_v40  ;;  %v8071_v60 = vadd.f32 %v7809_v4, %v7817_v36 }
 0x1ad   :  { %v8075_v22 = vadd.f32 %v7809_v4, %v7821_v39  ;;  %v8079_v32 = vadd.f32 %v7809_v4, %v7825_v56  ;;  %v8083_v37 = vadd.f32 %v7809_v4, %v7829_v0  ;;  %v8087_v40 = vadd.f32 %v7809_v4, %v7833_v54 }
 0x1ae   :  { %v8091_v36 = vadd.f32 %v7809_v4, %v7837_v61  ;;  %v8095_v39 = vadd.f32 %v7809_v4, %v7842_v16  ;;  %v8099_v56 = vadd.f32 %v7809_v4, %v7846_v24  ;;  %v8103_v0 = vadd.f32 %v7809_v4, %v7850_v14 }
 0x1af   :  { %v8107_v54 = vadd.f32 %v7809_v4, %v7854_v21  ;;  %v8111_v61 = vadd.f32 %v7809_v4, %v7858_v44  ;;  %v8115_v16 = vadd.f32 %v7809_v4, %v7862_v52  ;;  %v8119_v24 = vadd.f32 %v7809_v4, %v7866_v42  ;;  %v13844_v31 = vld [vmem:[#allocation5_spill] sm:$0xff] }
 0x1b0   :  { %v8123_v14 = vadd.f32 %v7809_v4, %v7870_v49  ;;  %v8127_v21 = vadd.f32 %v7809_v4, %v7874_v8  ;;  %v8131_v44 = vadd.f32 %v7809_v4, %v7878_v18  ;;  %v8135_v52 = vadd.f32 %v7809_v4, %v7882_v6 }
 0x1b1   :  { %v8139_v42 = vadd.f32 %v7809_v4, %v7886_v13  ;;  %v8143_v49 = vadd.f32 %v7809_v4, %v7890_v41  ;;  %v8147_v8 = vadd.f32 %v7809_v4, %v7894_v53  ;;  %v8151_v18 = vadd.f32 %v7809_v4, %v7899_v35 }
 0x1b2   :  { %v8155_v6 = vadd.f32 %v7809_v4, %v7903_v48  ;;  %v8159_v13 = vadd.f32 %v7809_v4, %v7907_v23  ;;  %v8163_v41 = vadd.f32 %v7809_v4, %v7911_v33  ;;  %v8167_v53 = vadd.f32 %v7809_v4, %v7915_v17 }
 0x1b3   :  { %v8171_v35 = vadd.f32 %v7809_v4, %v7919_v28  ;;  %v8175_v48 = vadd.f32 %v7809_v4, %v7923_v2  ;;  %v8179_v23 = vadd.f32 %v7809_v4, %v7927_v20  ;;  %v8183_v33 = vadd.f32 %v7809_v4, %v7931_v63 }
 0x1b4   :  { %v8187_v17 = vadd.f32 %v7809_v4, %v7935_v12  ;;  %v8191_v28 = vadd.f32 %v7809_v4, %v7939_v1  ;;  %v8195_v2 = vadd.f32 %v7809_v4, %v7943_v51  ;;  %v8199_v20 = vadd.f32 %v7809_v4, %v7947_v3 }
 0x1b5   :  { %v8203_v63 = vadd.f32 %v7809_v4, %v7951_v57  ;;  %v8207_v12 = vadd.f32 %v7809_v4, %v7955_v30  ;;  %v8211_v1 = vadd.f32 %v7809_v4, %v7959_v15  ;;  %v8215_v51 = vadd.f32 %v7809_v4, %v7963_v62 }
 0x1b6   :  { %v8219_v3 = vadd.f32 %v7809_v4, %v7967_v7  ;;  %v8223_v57 = vadd.f32 %v7809_v4, %v7971_v10  ;;  %v8227_v30 = vadd.f32 %v7809_v4, %v7975_v59  ;;  %v8231_v15 = vadd.f32 %v7809_v4, %v7979_v43 }
 0x1b7   :  { %v8235_v62 = vadd.f32 %v7809_v4, %v7983_v26  ;;  %v8239_v7 = vadd.f32 %v7809_v4, %v7987_v45  ;;  %v8243_v10 = vadd.f32 %v7809_v4, %v7991_v55  ;;  %v8247_v59 = vadd.f32 %v7809_v4, %v13844_v31 }
 0x1b8   :  { %13839 = vst [vmem:[#allocation8_spill] sm:$0xff] %v8227_v30  ;;  %13840 = vst [vmem:[#allocation11_spill] sm:$0xff] %v8231_v15  ;;  %v13845_v30 = vld [vmem:[#allocation3_spill] sm:$0xff]  ;;  %v13846_v15 = vld [vmem:[#allocation4_spill] sm:$0xff] }
 0x1b9   :  { %13841 = vst [vmem:[#allocation13_spill] sm:$0xff] %v8235_v62  ;;  %13842 = vst [vmem:[#allocation10_spill] sm:$0xff] %v8239_v7  ;;  %v8251_v43 = vadd.f32 %v7809_v4, %v13845_v30  ;;  %v8255_v26 = vadd.f32 %v7809_v4, %v13846_v15  ;;  %v13847_v62 = vld [vmem:[#allocation7_spill] sm:$0xff]  ;;  %v13848_v7 = vld [vmem:[#allocation9_spill] sm:$0xff]  ;;  %v8271_v30 = vadd.f32 %v7809_v4, %v8019_v47 }
 0x1ba   :  { %13843 = vst [vmem:[#allocation12_spill] sm:$0xff] %v8243_v10  ;;  %v8259_v45 = vadd.f32 %v7809_v4, %v13847_v62  ;;  %v8263_v55 = vadd.f32 %v7809_v4, %v13848_v7  ;;  %v13849_v10 = vld [vmem:[#allocation6_spill] sm:$0xff]  ;;  %v8275_v15 = vadd.f32 %v7809_v4, %v8023_v25  ;;  %v8279_v62 = vadd.f32 %v7809_v4, %v8027_v5 }
 0x1bb   :  { %v8267_v31 = vadd.f32 %v7809_v4, %v13849_v10  ;;  %13850 = vst [vmem:[#allocation14_spill] sm:$0xff] %v8271_v30  ;;  %v8283_v7 = vadd.f32 %v7809_v4, %v8031_v58  ;;  %v8287_v10 = vadd.f32 %v7809_v4, %v8035_v11  ;;  %v8291_v47 = vadd.f32 %v7809_v4, %v8039_v34 }
 0x1bc   :  { %13851 = vst [vmem:[#allocation15_spill] sm:$0xff] %v8275_v15  ;;  %13852 = vst [vmem:[#allocation17_spill] sm:$0xff] %v8279_v62  ;;  %v1146_v30 = vmax.f32 %v8043_v46, 0.0  ;;  %v1147_v25 = vmax.f32 %v8047_v9, 0.0  ;;  %v1148_v15 = vmax.f32 %v8051_v29, 0.0  ;;  %v1149_v5 = vmax.f32 %v8055_v27, 0.0 }
 0x1bd   :  { %13853 = vst [vmem:[#allocation19_spill] sm:$0xff] %v8283_v7  ;;  %13854 = vst [vmem:[#allocation16_spill] sm:$0xff] %v8287_v10  ;;  %v1150_v62 = vmax.f32 %v8059_v19, 0.0  ;;  %v1151_v58 = vmax.f32 %v8063_v38, 0.0  ;;  %v1152_v7 = vmax.f32 %v8067_v50, 0.0  ;;  %v1153_v11 = vmax.f32 %v8071_v60, 0.0 }
 0x1be   :  { %v1154_v10 = vmax.f32 %v8075_v22, 0.0  ;;  %1298 = vst.msk [vmem:[#allocation2 + $0x19] sm:$0xff] %vm664_vm2, %v1146_v30  ;;  %v1155_v4 = vmax.f32 %v8079_v32, 0.0  ;;  %v1156_v34 = vmax.f32 %v8083_v37, 0.0  ;;  %v1157_v46 = vmax.f32 %v8087_v40, 0.0  ;;  %1299 = vst.msk [vmem:[#allocation2 + $0x21] sm:$0xff] %vm664_vm2, %v1147_v25 }
 0x1bf   :  { %v1158_v9 = vmax.f32 %v8091_v36, 0.0  ;;  %1300 = vst.msk [vmem:[#allocation2 + $0x31] sm:$0xff] %vm664_vm2, %v1148_v15  ;;  %1301 = vst.msk [vmem:[#allocation2 + $0x39] sm:$0xff] %vm664_vm2, %v1149_v5  ;;  %v1159_v29 = vmax.f32 %v8095_v39, 0.0  ;;  %v1160_v27 = vmax.f32 %v8099_v56, 0.0  ;;  %v1161_v19 = vmax.f32 %v8103_v0, 0.0 }
 0x1c0   :  { %1302 = vst.msk [vmem:[#allocation2 + $0x49] sm:$0xff] %vm664_vm2, %v1150_v62  ;;  %v1162_v38 = vmax.f32 %v8107_v54, 0.0  ;;  %1303 = vst.msk [vmem:[#allocation2 + $0x51] sm:$0xff] %vm664_vm2, %v1151_v58  ;;  %v1163_v50 = vmax.f32 %v8111_v61, 0.0  ;;  %v1164_v60 = vmax.f32 %v8115_v16, 0.0  ;;  %v1165_v22 = vmax.f32 %v8119_v24, 0.0 }
 0x1c1   :  { %1304 = vst.msk [vmem:[#allocation2 + $0x61] sm:$0xff] %vm664_vm2, %v1152_v7  ;;  %1305 = vst.msk [vmem:[#allocation2 + $0x69] sm:$0xff] %vm664_vm2, %v1153_v11  ;;  %v1166_v32 = vmax.f32 %v8123_v14, 0.0  ;;  %v1167_v37 = vmax.f32 %v8127_v21, 0.0  ;;  %v1168_v40 = vmax.f32 %v8131_v44, 0.0  ;;  %v1169_v36 = vmax.f32 %v8135_v52, 0.0 }
 0x1c2   :  { %1306 = vst.msk [vmem:[#allocation2 + $0x79] sm:$0xff] %vm664_vm2, %v1154_v10  ;;  %1307 = vst.msk [vmem:[#allocation2 + $0x81] sm:$0xff] %vm664_vm2, %v1155_v4  ;;  %v1170_v39 = vmax.f32 %v8139_v42, 0.0  ;;  %v1171_v56 = vmax.f32 %v8143_v49, 0.0  ;;  %v1172_v0 = vmax.f32 %v8147_v8, 0.0  ;;  %v1173_v54 = vmax.f32 %v8151_v18, 0.0 }
 0x1c3   :  { %1308 = vst.msk [vmem:[#allocation2 + $0x91] sm:$0xff] %vm664_vm2, %v1156_v34  ;;  %1309 = vst.msk [vmem:[#allocation2 + $0x99] sm:$0xff] %vm664_vm2, %v1157_v46  ;;  %v1174_v61 = vmax.f32 %v8155_v6, 0.0  ;;  %v1175_v16 = vmax.f32 %v8159_v13, 0.0  ;;  %v1176_v24 = vmax.f32 %v8163_v41, 0.0  ;;  %v1177_v14 = vmax.f32 %v8167_v53, 0.0 }
 0x1c4   :  { %1310 = vst.msk [vmem:[#allocation2 + $0xa9] sm:$0xff] %vm664_vm2, %v1158_v9  ;;  %1311 = vst.msk [vmem:[#allocation2 + $0xb1] sm:$0xff] %vm664_vm2, %v1159_v29  ;;  %v1178_v21 = vmax.f32 %v8171_v35, 0.0  ;;  %v1179_v44 = vmax.f32 %v8175_v48, 0.0  ;;  %v1180_v52 = vmax.f32 %v8179_v23, 0.0  ;;  %v1181_v42 = vmax.f32 %v8183_v33, 0.0 }
 0x1c5   :  { %1312 = vst.msk [vmem:[#allocation2 + $0xc1] sm:$0xff] %vm664_vm2, %v1160_v27  ;;  %1313 = vst.msk [vmem:[#allocation2 + $0xc9] sm:$0xff] %vm664_vm2, %v1161_v19  ;;  %v1182_v49 = vmax.f32 %v8187_v17, 0.0  ;;  %v1183_v8 = vmax.f32 %v8191_v28, 0.0  ;;  %v1184_v18 = vmax.f32 %v8195_v2, 0.0  ;;  %v1185_v6 = vmax.f32 %v8199_v20, 0.0 }
 0x1c6   :  { %1314 = vst.msk [vmem:[#allocation2 + $0xd9] sm:$0xff] %vm664_vm2, %v1162_v38  ;;  %1315 = vst.msk [vmem:[#allocation2 + $0xe1] sm:$0xff] %vm664_vm2, %v1163_v50  ;;  %v1186_v13 = vmax.f32 %v8203_v63, 0.0  ;;  %v1187_v41 = vmax.f32 %v8207_v12, 0.0  ;;  %v1188_v53 = vmax.f32 %v8211_v1, 0.0  ;;  %v1189_v35 = vmax.f32 %v8215_v51, 0.0 }
 0x1c7   :  { %1316 = vst.msk [vmem:[#allocation2 + $0xf1] sm:$0xff] %vm664_vm2, %v1164_v60  ;;  %1317 = vst.msk [vmem:[#allocation2 + $0xf9] sm:$0xff] %vm664_vm2, %v1165_v22  ;;  %v1190_v48 = vmax.f32 %v8219_v3, 0.0  ;;  %v1191_v23 = vmax.f32 %v8223_v57, 0.0  ;;  %v13855_v33 = vld [vmem:[#allocation8_spill] sm:$0xff]  ;;  %v13856_v28 = vld [vmem:[#allocation11_spill] sm:$0xff] }
 0x1c8   :  { %1318 = vst.msk [vmem:[#allocation2 + $0x109] sm:$0xff] %vm664_vm2, %v1166_v32  ;;  %1319 = vst.msk [vmem:[#allocation2 + $0x111] sm:$0xff] %vm664_vm2, %v1167_v37  ;;  %v1192_v17 = vmax.f32 %v13855_v33, 0.0  ;;  %v1193_v2 = vmax.f32 %v13856_v28, 0.0  ;;  %v13857_v20 = vld [vmem:[#allocation13_spill] sm:$0xff]  ;;  %v8385_v1 = vld [vmem:[#allocation2 + $0x18] sm:$0xff] }
 0x1c9   :  { %1320 = vst.msk [vmem:[#allocation2 + $0x121] sm:$0xff] %vm664_vm2, %v1168_v40  ;;  %1321 = vst.msk [vmem:[#allocation2 + $0x129] sm:$0xff] %vm664_vm2, %v1169_v36  ;;  %v1194_v63 = vmax.f32 %v13857_v20, 0.0  ;;  %v8383_v12 = vld [vmem:[#allocation2 + $0x30] sm:$0xff]  ;;  %v13859_v51 = vld [vmem:[#allocation10_spill] sm:$0xff]  ;;  %v1197_v15 = vmax.f32 %v8247_v59, 0.0 }
 0x1ca   :  { %1322 = vst.msk [vmem:[#allocation2 + $0x139] sm:$0xff] %vm664_vm2, %v1170_v39  ;;  %1323 = vst.msk [vmem:[#allocation2 + $0x141] sm:$0xff] %vm664_vm2, %v1171_v56  ;;  %v1195_v3 = vmax.f32 %v13859_v51, 0.0  ;;  %v13860_v57 = vld [vmem:[#allocation12_spill] sm:$0xff]  ;;  %v1198_v62 = vmax.f32 %v8251_v43, 0.0  ;;  %v8395_v7 = vld [vmem:[#allocation2 + $0x38] sm:$0xff] }
 0x1cb   :  { %1324 = vst.msk [vmem:[#allocation2 + $0x151] sm:$0xff] %vm664_vm2, %v1172_v0  ;;  %1325 = vst.msk [vmem:[#allocation2 + $0x159] sm:$0xff] %vm664_vm2, %v1173_v54  ;;  %v1196_v30 = vmax.f32 %v13860_v57, 0.0  ;;  %v8397_v10 = vld [vmem:[#allocation2 + $0x20] sm:$0xff]  ;;  %v1199_v25 = vmax.f32 %v8255_v26, 0.0  ;;  %v1200_v5 = vmax.f32 %v8259_v45, 0.0  ;;  %v8423_v27 = vpack.i.bf16 %v8395_v7, %v8383_v12 }
 0x1cc   :  { %1326 = vst.msk [vmem:[#allocation2 + $0x169] sm:$0xff] %vm664_vm2, %v1174_v61  ;;  %1327 = vst.msk [vmem:[#allocation2 + $0x171] sm:$0xff] %vm664_vm2, %v1175_v16  ;;  %v1201_v59 = vmax.f32 %v8263_v55, 0.0  ;;  %v1202_v43 = vmax.f32 %v8267_v31, 0.0  ;;  %v13862_v58 = vld [vmem:[#allocation14_spill] sm:$0xff]  ;;  %v13863_v4 = vld [vmem:[#allocation15_spill] sm:$0xff]  ;;  %v5534_v19 = vpack.i.bf16 %v8397_v10, %v8385_v1 }
 0x1cd   :  { %1328 = vst.msk [vmem:[#allocation2 + $0x181] sm:$0xff] %vm664_vm2, %v1176_v24  ;;  %1329 = vst.msk [vmem:[#allocation2 + $0x189] sm:$0xff] %vm664_vm2, %v1177_v14  ;;  %v1203_v11 = vmax.f32 %v13862_v58, 0.0  ;;  %v1204_v34 = vmax.f32 %v13863_v4, 0.0  ;;  %v13864_v46 = vld [vmem:[#allocation17_spill] sm:$0xff]  ;;  %v13865_v9 = vld [vmem:[#allocation19_spill] sm:$0xff]  ;;  %5540 = vrot.lane.b32.xlu1 %v8423_v27, %s6913_s3 }
 0x1ce   :  { %1330 = vst.msk [vmem:[#allocation2 + $0x1c9] sm:$0xff] %vm664_vm2, %v1178_v21  ;;  %1331 = vst.msk [vmem:[#allocation2 + $0x1d1] sm:$0xff] %vm664_vm2, %v1179_v44  ;;  %v1205_v26 = vmax.f32 %v13864_v46, 0.0  ;;  %v1206_v45 = vmax.f32 %v13865_v9, 0.0  ;;  %v13866_v55 = vld [vmem:[#allocation16_spill] sm:$0xff]  ;;  %v1209_v29 = vmax.f32 %v8291_v47, 0.0  ;;  %5535 = vrot.lane.b32.xlu0 %v5534_v19, %s6913_s3 }
 0x1cf   :  { %1332 = vst.msk [vmem:[#allocation2 + $0x1e1] sm:$0xff] %vm664_vm2, %v1180_v52  ;;  %1333 = vst.msk [vmem:[#allocation2 + $0x1e9] sm:$0xff] %vm664_vm2, %v1181_v42  ;;  %v1208_v31 = vmax.f32 %v13866_v55, 0.0  ;;  %v8427_v38 = vld [vmem:[#allocation2 + $0x60] sm:$0xff]  ;;  %v8433_v47 = vld [vmem:[#allocation2 + $0x68] sm:$0xff]  ;;  %v1573_v57 = vrot.slane %v8397_v10, 1 }
 0x1d0   :  { %1334 = vst.msk [vmem:[#allocation2 + $0x1f9] sm:$0xff] %vm664_vm2, %v1182_v49  ;;  %1335 = vst.msk [vmem:[#allocation2 + $0x201] sm:$0xff] %vm664_vm2, %v1183_v8  ;;  %v8435_v50 = vld [vmem:[#allocation2 + $0x48] sm:$0xff]  ;;  %v8437_v60 = vld [vmem:[#allocation2 + $0x50] sm:$0xff]  ;;  %v8446_v22 = vpack.i.bf16 %v8433_v47, %v8427_v38 }
 0x1d1   :  { %1336 = vst.msk [vmem:[#allocation2 + $0x211] sm:$0xff] %vm664_vm2, %v1184_v18  ;;  %1337 = vst.msk [vmem:[#allocation2 + $0x219] sm:$0xff] %vm664_vm2, %v1185_v6  ;;  %v8450_v32 = vpack.i.bf16 %v8437_v60, %v8435_v50  ;;  %v8452_v37 = vld [vmem:[#allocation2 + $0x90] sm:$0xff]  ;;  %v8454_v40 = vld [vmem:[#allocation2 + $0x98] sm:$0xff] }
 0x1d2   :  { %1338 = vst.msk [vmem:[#allocation2 + $0x229] sm:$0xff] %vm664_vm2, %v1186_v13  ;;  %13858 = vst [vmem:[#allocation18_spill] sm:$0xff] %v8383_v12  ;;  %v8456_v36 = vld [vmem:[#allocation2 + $0x78] sm:$0xff]  ;;  %v8458_v39 = vld [vmem:[#allocation2 + $0x80] sm:$0xff]  ;;  %5550 = vrot.lane.b32.xlu1 %v8446_v22, %s6913_s3  ;;  %v8466_v56 = vpack.i.bf16 %v8454_v40, %v8452_v37 }
 0x1d3   :  { %1339 = vst.msk [vmem:[#allocation2 + $0x231] sm:$0xff] %vm664_vm2, %v1187_v41  ;;  %1340 = vst.msk [vmem:[#allocation2 + $0x241] sm:$0xff] %vm664_vm2, %v1188_v53  ;;  %5545 = vrot.lane.b32.xlu0 %v8450_v32, %s6913_s3  ;;  %v8470_v0 = vpack.i.bf16 %v8458_v39, %v8456_v36  ;;  %v8472_v54 = vld [vmem:[#allocation2 + $0xc0] sm:$0xff]  ;;  %v8474_v61 = vld [vmem:[#allocation2 + $0xc8] sm:$0xff] }
 0x1d4   :  { %1341 = vst.msk [vmem:[#allocation2 + $0x249] sm:$0xff] %vm664_vm2, %v1189_v35  ;;  %1342 = vst.msk [vmem:[#allocation2 + $0x259] sm:$0xff] %vm664_vm2, %v1190_v48  ;;  %v8476_v16 = vld [vmem:[#allocation2 + $0xa8] sm:$0xff]  ;;  %v8478_v24 = vld [vmem:[#allocation2 + $0xb0] sm:$0xff]  ;;  %v8490_v44 = vpack.i.bf16 %v8474_v61, %v8472_v54 }
 0x1d5   :  { %13861 = vst [vmem:[#allocation21_spill] sm:$0xff] %v8395_v7  ;;  %1343 = vst.msk [vmem:[#allocation2 + $0x261] sm:$0xff] %vm664_vm2, %v1191_v23  ;;  %v8480_v14 = vld [vmem:[#allocation2 + $0x180] sm:$0xff]  ;;  %v8482_v21 = vld [vmem:[#allocation2 + $0x188] sm:$0xff]  ;;  %v8494_v52 = vpack.i.bf16 %v8478_v24, %v8476_v16 }
 0x1d6   :  { %1344 = vst.msk [vmem:[#allocation2 + $0x271] sm:$0xff] %vm664_vm2, %v1192_v17  ;;  %1345 = vst.msk [vmem:[#allocation2 + $0x279] sm:$0xff] %vm664_vm2, %v1193_v2  ;;  %5560 = vrot.lane.b32.xlu1 %v8466_v56, %s6913_s3  ;;  %v8496_v42 = vld [vmem:[#allocation2 + $0xf0] sm:$0xff]  ;;  %v8500_v49 = vpack.i.bf16 %v8482_v21, %v8480_v14  ;;  %v8502_v8 = vld [vmem:[#allocation2 + $0xf8] sm:$0xff] }
 0x1d7   :  { %1346 = vst.msk [vmem:[#allocation2 + $0x289] sm:$0xff] %vm664_vm2, %v1194_v63  ;;  %1347 = vst.msk [vmem:[#allocation2 + $0x291] sm:$0xff] %vm664_vm2, %v1195_v3  ;;  %5555 = vrot.lane.b32.xlu0 %v8470_v0, %s6913_s3  ;;  %v8504_v18 = vld [vmem:[#allocation2 + $0xd8] sm:$0xff]  ;;  %v8506_v6 = vld [vmem:[#allocation2 + $0xe0] sm:$0xff]  ;;  %v8514_v13 = vpack.i.bf16 %v8502_v8, %v8496_v42  ;;  %v1572_v3 = vrot.slane %v8385_v1, 1 }
 0x1d8   :  { %1348 = vst.msk [vmem:[#allocation2 + $0x2a1] sm:$0xff] %vm664_vm2, %v1196_v30  ;;  %1349 = vst.msk [vmem:[#allocation2 + $0x2a9] sm:$0xff] %vm664_vm2, %v1197_v15  ;;  %v8518_v41 = vpack.i.bf16 %v8506_v6, %v8504_v18  ;;  %v8520_v53 = vld [vmem:[#allocation2 + $0x120] sm:$0xff]  ;;  %v8522_v35 = vld [vmem:[#allocation2 + $0x128] sm:$0xff] }
 0x1d9   :  { %1350 = vst.msk [vmem:[#allocation2 + $0x2b9] sm:$0xff] %vm664_vm2, %v1198_v62  ;;  %1351 = vst.msk [vmem:[#allocation2 + $0x2c1] sm:$0xff] %vm664_vm2, %v1199_v25  ;;  %v8524_v48 = vld [vmem:[#allocation2 + $0x108] sm:$0xff]  ;;  %v8526_v23 = vld [vmem:[#allocation2 + $0x110] sm:$0xff]  ;;  %v8536_v17 = vpack.i.bf16 %v8522_v35, %v8520_v53  ;;  %v1574_v25 = vsel %vm1566_vm5, %v1572_v3, %v1573_v57 }
 0x1da   :  { %1352 = vst.msk [vmem:[#allocation2 + $0x2d1] sm:$0xff] %vm664_vm2, %v1200_v5  ;;  %1353 = vst.msk [vmem:[#allocation2 + $0x2d9] sm:$0xff] %vm664_vm2, %v1201_v59  ;;  %5570 = vrot.lane.b32.xlu1 %v8490_v44, %s6913_s3  ;;  %v8532_v33 = vld [vmem:[#allocation2 + $0x28] sm:$0x3]  ;;  %v8540_v28 = vpack.i.bf16 %v8526_v23, %v8524_v48  ;;  %v8542_v2 = vld [vmem:[#allocation2 + $0x150] sm:$0xff] }
 0x1db   :  { %1354 = vst.msk [vmem:[#allocation2 + $0x2e9] sm:$0xff] %vm664_vm2, %v1202_v43  ;;  %1355 = vst.msk [vmem:[#allocation2 + $0x2f1] sm:$0xff] %vm664_vm2, %v1203_v11  ;;  %5565 = vrot.lane.b32.xlu0 %v8494_v52, %s6913_s3  ;;  %v8544_v20 = vld [vmem:[#allocation2 + $0x158] sm:$0xff]  ;;  %v8548_v51 = vld [vmem:[#allocation2 + $0x140] sm:$0xff]  ;;  %v1575_v30 = vrot.slane %v8532_v33, 1 }
 0x1dc   :  { %1356 = vst.msk [vmem:[#allocation2 + $0x301] sm:$0xff] %vm664_vm2, %v1204_v34  ;;  %1357 = vst.msk [vmem:[#allocation2 + $0x309] sm:$0xff] %vm664_vm2, %v1205_v26  ;;  %v8546_v63 = vld [vmem:[#allocation2 + $0x138] sm:$0xff]  ;;  %v8559_v15 = vpack.i.bf16 %v8544_v20, %v8542_v2  ;;  %v8567_v59 = vld [vmem:[#allocation2 + $0x168] sm:$0xff] }
 0x1dd   :  { %1358 = vst.msk [vmem:[#allocation2 + $0x319] sm:$0xff] %vm664_vm2, %v1206_v45  ;;  %13867 = vst [vmem:[#allocation23_spill] sm:$0xff] %v8437_v60  ;;  %v8563_v62 = vpack.i.bf16 %v8548_v51, %v8546_v63  ;;  %v1576_v5 = vsel %vm1566_vm5, %v1573_v57, %v1575_v30  ;;  %v8569_v43 = vld [vmem:[#allocation2 + $0x170] sm:$0xff]  ;;  %v8581_v4 = vld [vmem:[#allocation2 + $0x1e0] sm:$0xff] }
 0x1de   :  { %1360 = vst.msk [vmem:[#allocation2 + $0x331] sm:$0xff] %vm664_vm2, %v1208_v31  ;;  %1361 = vst.msk [vmem:[#allocation2 + $0x339] sm:$0xff] %vm664_vm2, %v1209_v29  ;;  %5580 = vrot.lane.b32.xlu1 %v8514_v13, %s6913_s3  ;;  %v8571_v58 = vpack.i.bf16 %v1576_v5, %v1574_v25  ;;  %v8579_v11 = vpack.i.bf16 %v8569_v43, %v8567_v59  ;;  %v8583_v34 = vld [vmem:[#allocation2 + $0x1e8] sm:$0xff]  ;;  %v8587_v26 = vld [vmem:[#allocation2 + $0x1d0] sm:$0xff] }
 0x1df   :  { %13868 = vst [vmem:[#allocation20_spill] sm:$0xff] %v8458_v39  ;;  %13869 = vst [vmem:[#allocation22_spill] sm:$0xff] %v8472_v54  ;;  %5575 = vrot.lane.b32.xlu0 %v8518_v41, %s6913_s3  ;;  %v8585_v46 = vld [vmem:[#allocation2 + $0x1c8] sm:$0xff]  ;;  %v8595_v9 = vpack.i.bf16 %v8583_v34, %v8581_v4  ;;  %v8599_v55 = vld [vmem:[#allocation2 + $0x210] sm:$0xff] }
 0x1e0   :  { %13870 = vst [vmem:[#allocation25_spill] sm:$0xff] %v8474_v61  ;;  %13871 = vst [vmem:[#allocation24_spill] sm:$0xff] %v8476_v16  ;;  %v5614_v45 = vpack.i.bf16 %v8587_v26, %v8585_v46  ;;  %v8601_v31 = vld [vmem:[#allocation2 + $0x218] sm:$0xff]  ;;  %v8605_v19 = vld [vmem:[#allocation2 + $0x200] sm:$0xff] }
 0x1e1   :  { %13872 = vst [vmem:[#allocation26_spill] sm:$0xff] %v8478_v24  ;;  %13873 = vst [vmem:[#allocation5_spill] sm:$0xff] %v8480_v14  ;;  %v8603_v29 = vld [vmem:[#allocation2 + $0x1f8] sm:$0xff]  ;;  %v8612_v3 = vpack.i.bf16 %v8601_v31, %v8599_v55  ;;  %v8618_v30 = vld [vmem:[#allocation2 + $0x240] sm:$0xff]  ;;  %v1613_v14 = vrot.slane %v8506_v6, 1 }
 0x1e2   :  { %13874 = vst [vmem:[#allocation3_spill] sm:$0xff] %v8482_v21  ;;  %13875 = vst [vmem:[#allocation4_spill] sm:$0xff] %v8500_v49  ;;  %5590 = vrot.lane.b32.xlu1 %v8536_v17, %s6913_s3  ;;  %v8616_v57 = vpack.i.bf16 %v8605_v19, %v8603_v29  ;;  %v8620_v25 = vld [vmem:[#allocation2 + $0x248] sm:$0xff] }
 0x1e3   :  { %13876 = vst [vmem:[#allocation7_spill] sm:$0xff] %v8504_v18  ;;  %13877 = vst [vmem:[#allocation9_spill] sm:$0xff] %v8506_v6  ;;  %5585 = vrot.lane.b32.xlu0 %v8540_v28, %s6913_s3  ;;  %v8622_v5 = vld [vmem:[#allocation2 + $0x228] sm:$0xff]  ;;  %v1623_v6 = vrot.slane %v8526_v23, 1 }
 0x1e4   :  { %13878 = vst [vmem:[#allocation6_spill] sm:$0xff] %v8522_v35  ;;  %13879 = vst [vmem:[#allocation8_spill] sm:$0xff] %v8524_v48 }
 0x1e5   :  { %13880 = vst [vmem:[#allocation11_spill] sm:$0xff] %v8526_v23  ;;  %13881 = vst [vmem:[#allocation13_spill] sm:$0xff] %v8536_v17  ;;  %v8671_v17 = vld [vmem:[#allocation2 + $0x2d0] sm:$0xff] }
 0x1e6   :  { %13882 = vst [vmem:[#allocation10_spill] sm:$0xff] %v8544_v20  ;;  %13883 = vst [vmem:[#allocation12_spill] sm:$0xff] %v8559_v15  ;;  %5600 = vrot.lane.b32.xlu1 %v8559_v15, %s6913_s3  ;;  %v8638_v15 = vld [vmem:[#allocation2 + $0x278] sm:$0xff] }
 0x1e7   :  { %13884 = vst [vmem:[#allocation14_spill] sm:$0xff] %v8563_v62  ;;  %13885 = vst [vmem:[#allocation15_spill] sm:$0xff] %v8571_v58  ;;  %5595 = vrot.lane.b32.xlu0 %v8563_v62, %s6913_s3  ;;  %v8624_v58 = vld [vmem:[#allocation2 + $0x230] sm:$0xff] }
 0x1e8   :  { %13886 = vst [vmem:[#allocation17_spill] sm:$0xff] %v8579_v11  ;;  %13887 = vst [vmem:[#allocation19_spill] sm:$0xff] %v8581_v4 }
 0x1e9   :  { %13888 = vst [vmem:[#allocation16_spill] sm:$0xff] %v8583_v34  ;;  %13889 = vst [vmem:[#allocation28_spill] sm:$0xff] %v8585_v46 }
 0x1ea   :  { %13890 = vst [vmem:[#allocation29_spill] sm:$0xff] %v8587_v26  ;;  %5610 = vrot.lane.b32.xlu1 %v8500_v49, %s6913_s3  ;;  %13891 = vst [vmem:[#allocation30_spill] sm:$0xff] %v8595_v9  ;;  %v8636_v49 = vld [vmem:[#allocation2 + $0x270] sm:$0xff] }
 0x1eb   :  { %5605 = vrot.lane.b32.xlu0 %v8579_v11, %s6913_s3  ;;  %13892 = vst [vmem:[#allocation31_spill] sm:$0xff] %v8599_v55  ;;  %13893 = vst [vmem:[#allocation32_spill] sm:$0xff] %v8601_v31  ;;  %v8640_v11 = vld [vmem:[#allocation2 + $0x258] sm:$0xff]  ;;  %v8642_v31 = vld [vmem:[#allocation2 + $0x260] sm:$0xff] }
 0x1ec   :  { %13894 = vst [vmem:[#allocation33_spill] sm:$0xff] %v8603_v29  ;;  %13895 = vst [vmem:[#allocation34_spill] sm:$0xff] %v8605_v19  ;;  %v8658_v55 = vld [vmem:[#allocation2 + $0x288] sm:$0xff]  ;;  %v8674_v19 = vld [vmem:[#allocation2 + $0x2d8] sm:$0xff] }
 0x1ed   :  { %13896 = vst [vmem:[#allocation35_spill] sm:$0xff] %v8612_v3  ;;  %13897 = vst [vmem:[#allocation36_spill] sm:$0xff] %v8616_v57  ;;  %v8676_v29 = vld [vmem:[#allocation2 + $0x2b8] sm:$0xff] }
 0x1ee   :  { %5620 = vrot.lane.b32.xlu1 %v8595_v9, %s6913_s3  ;;  %13898 = vst [vmem:[#allocation37_spill] sm:$0xff] %v8618_v30  ;;  %13899 = vst [vmem:[#allocation38_spill] sm:$0xff] %v8620_v25  ;;  %v8634_v9 = vpack.i.bf16 %v8624_v58, %v8622_v5 }
 0x1ef   :  { %5615 = vrot.lane.b32.xlu0 %v5614_v45, %s6913_s3  ;;  %13900 = vst [vmem:[#allocation39_spill] sm:$0xff] %v8622_v5  ;;  %13901 = vst [vmem:[#allocation40_spill] sm:$0xff] %v8624_v58  ;;  %v5639_v45 = vpack.i.bf16 %v8620_v25, %v8618_v30  ;;  %v5644_v25 = vpack.i.bf16 %v8642_v31, %v8640_v11  ;;  %v8653_v30 = vld [vmem:[#allocation2 + $0x2a0] sm:$0xff]  ;;  %v1652_v58 = vrot.slane %v8585_v46, 1  ;;  %v8656_v5 = vld [vmem:[#allocation2 + $0x2a8] sm:$0xff] }
 0x1f0   :  { %13902 = vst [vmem:[#allocation41_spill] sm:$0xff] %v8634_v9  ;;  %13903 = vst [vmem:[#allocation42_spill] sm:$0xff] %v8636_v49 }
 0x1f1   :  { %13904 = vst [vmem:[#allocation43_spill] sm:$0xff] %v8638_v15  ;;  %13905 = vst [vmem:[#allocation44_spill] sm:$0xff] %v8640_v11 }
 0x1f2   :  { %5630 = vrot.lane.b32.xlu1 %v8612_v3, %s6913_s3  ;;  %13906 = vst [vmem:[#allocation45_spill] sm:$0xff] %v8642_v31  ;;  %v8647_v3 = vld [vmem:[#allocation2 + $0x1d8] sm:$0x3]  ;;  %13908 = vst [vmem:[#allocation47_spill] sm:$0xff] %v8653_v30  ;;  %v5659_v31 = vpack.i.bf16 %v8656_v5, %v8653_v30  ;;  %v8688_v30 = vld [vmem:[#allocation2 + $0x300] sm:$0xff] }
 0x1f3   :  { %5625 = vrot.lane.b32.xlu0 %v8616_v57, %s6913_s3  ;;  %13907 = vst [vmem:[#allocation46_spill] sm:$0xff] %v8647_v3  ;;  %v5649_v57 = vpack.i.bf16 %v8638_v15, %v8636_v49  ;;  %13909 = vst [vmem:[#allocation48_spill] sm:$0xff] %v8656_v5  ;;  %v1655_v15 = vrot.slane %v8647_v3, 1 }
 0x1f4   :  { %13910 = vst [vmem:[#allocation49_spill] sm:$0xff] %v8658_v55  ;;  %13912 = vst [vmem:[#allocation51_spill] sm:$0xff] %v8671_v17 }
 0x1f5   :  { %13913 = vst [vmem:[#allocation52_spill] sm:$0xff] %v8674_v19  ;;  %13914 = vst [vmem:[#allocation53_spill] sm:$0xff] %v8676_v29 }
 0x1f6   :  { %5640 = vrot.lane.b32.xlu1 %v5639_v45, %s6913_s3  ;;  %v8660_v45 = vld [vmem:[#allocation2 + $0x290] sm:$0xff]  ;;  %13917 = vst [vmem:[#allocation56_spill] sm:$0xff] %v8688_v30 }
 0x1f7   :  { %5635 = vrot.lane.b32.xlu0 %v8634_v9, %s6913_s3  ;;  %13911 = vst [vmem:[#allocation50_spill] sm:$0xff] %v8660_v45  ;;  %v1653_v9 = vrot.slane %v8587_v26, 1  ;;  %v5654_v11 = vpack.i.bf16 %v8660_v45, %v8658_v55  ;;  %v8694_v45 = vld [vmem:[#allocation2 + $0x2f0] sm:$0xff]  ;;  %v1592_v55 = vrot.slane %v8456_v36, 1 }
 0x1f8   :  { %13920 = vst [vmem:[#allocation59_spill] sm:$0xff] %v8694_v45  ;;  %v8742_v26 = vld [vmem:[#allocation2 + $0x70] sm:$0x3] }
 0x1f9   :  { %v1654_v49 = vsel %vm1566_vm5, %v1652_v58, %v1653_v9  ;;  %v1656_v62 = vsel %vm1566_vm5, %v1653_v9, %v1655_v15  ;;  %v5669_v58 = vpack.i.bf16 %v8674_v19, %v8671_v17  ;;  %v8690_v15 = vld [vmem:[#allocation2 + $0x308] sm:$0xff]  ;;  %v8708_v19 = vld [vmem:[#allocation2 + $0x338] sm:$0xff] }
 0x1fa   :  { %5650 = vrot.lane.b32.xlu1 %v5649_v57, %s6913_s3  ;;  %v8678_v57 = vld [vmem:[#allocation2 + $0x2c0] sm:$0xff]  ;;  %13918 = vst [vmem:[#allocation57_spill] sm:$0xff] %v8690_v15  ;;  %v8692_v9 = vld [vmem:[#allocation2 + $0x2e8] sm:$0xff]  ;;  %13924 = vst [vmem:[#allocation63_spill] sm:$0xff] %v8708_v19 }
 0x1fb   :  { %5645 = vrot.lane.b32.xlu0 %v5644_v25, %s6913_s3  ;;  %13915 = vst [vmem:[#allocation54_spill] sm:$0xff] %v8678_v57  ;;  %v8680_v25 = vpack.i.bf16 %v1656_v62, %v1654_v49  ;;  %v5664_v5 = vpack.i.bf16 %v8678_v57, %v8676_v29  ;;  %13919 = vst [vmem:[#allocation58_spill] sm:$0xff] %v8692_v9  ;;  %v8698_v49 = vld [vmem:[#allocation2 + $0x40] sm:$0x3]  ;;  %v8700_v62 = vld [vmem:[#allocation2 + $0x58] sm:$0x3] }
 0x1fc   :  { %13921 = vst [vmem:[#allocation60_spill] sm:$0xff] %v8698_v49  ;;  %13922 = vst [vmem:[#allocation61_spill] sm:$0xff] %v8700_v62  ;;  %v8710_v17 = vld [vmem:[#allocation2 + $0x318] sm:$0xff]  ;;  %v8712_v57 = vld [vmem:[#allocation2 + $0x320] sm:$0xff]  ;;  %v1580_v29 = vrot.slane %v8698_v49, 1 }
 0x1fd   :  { %13916 = vst [vmem:[#allocation55_spill] sm:$0xff] %v8680_v25  ;;  %v8706_v25 = vld [vmem:[#allocation2 + $0x330] sm:$0xff]  ;;  %13925 = vst [vmem:[#allocation64_spill] sm:$0xff] %v8710_v17 }
 0x1fe   :  { %5660 = vrot.lane.b32.xlu1 %v5659_v31, %s6913_s3  ;;  %v5674_v31 = vpack.i.bf16 %v8694_v45, %v8692_v9  ;;  %13923 = vst [vmem:[#allocation62_spill] sm:$0xff] %v8706_v25  ;;  %13926 = vst [vmem:[#allocation65_spill] sm:$0xff] %v8712_v57  ;;  %v1585_v45 = vrot.slane %v8700_v62, 1  ;;  %v13976_v3 = vld [vmem:[#allocation50_spill] sm:$0xff] }
 0x1ff   :  { %5655 = vrot.lane.b32.xlu0 %v5654_v11, %s6913_s3  ;;  %v5679_v11 = vpack.i.bf16 %v8690_v15, %v8688_v30  ;;  %v1582_v15 = vrot.slane %v8435_v50, 1  ;;  %v1583_v30 = vrot.slane %v8437_v60, 1  ;;  %v8744_v60 = vld [vmem:[#allocation2 + $0xb8] sm:$0x3] }
 0x200   :  { %13928 = vst [vmem:[#allocation67_spill] sm:$0xff] %v8744_v60 }
 0x201   :  { %v1586_v49 = vsel %vm1566_vm5, %v1583_v30, %v1585_v45 }
 0x202   :  { %5670 = vrot.lane.b32.xlu1 %v5669_v58, %s6913_s3  ;;  %v1578_v58 = vrot.slane %v8395_v7, 1  ;;  %v1584_v7 = vsel %vm1566_vm5, %v1582_v15, %v1583_v30  ;;  %v1587_v15 = vrot.slane %v8427_v38, 1 }
 0x203   :  { %5665 = vrot.lane.b32.xlu0 %v5664_v5, %s6913_s3  ;;  %v1577_v5 = vrot.slane %v8383_v12, 1  ;;  %v1593_v12 = vrot.slane %v8458_v39, 1 }
 0x204   :  { %v1581_v9 = vsel %vm1566_vm5, %v1578_v58, %v1580_v29  ;;  %v8748_v29 = vpack.i.bf16 %v1586_v49, %v1584_v7  ;;  %v1590_v7 = vrot.slane %v8742_v26, 1  ;;  %v1602_v49 = vrot.slane %v8476_v16, 1 }
 0x205   :  { %v1579_v62 = vsel %vm1566_vm5, %v1577_v5, %v1578_v58  ;;  %v8750_v58 = vld [vmem:[#allocation2 + $0xa0] sm:$0x3]  ;;  %v1594_v30 = vsel %vm1566_vm5, %v1592_v55, %v1593_v12  ;;  %v1598_v55 = vrot.slane %v8454_v40, 1 }
 0x206   :  { %5680 = vrot.lane.b32.xlu1 %v5679_v11, %s6913_s3  ;;  %v5689_v11 = vpack.i.bf16 %v8708_v19, %v8706_v25  ;;  %v8740_v19 = vld [vmem:[#allocation2 + $0x88] sm:$0x3]  ;;  %v8746_v5 = vpack.i.bf16 %v1581_v9, %v1579_v62  ;;  %13930 = vst [vmem:[#allocation69_spill] sm:$0xff] %v8748_v29  ;;  %v1603_v62 = vrot.slane %v8478_v24, 1  ;;  %v1600_v46 = vrot.slane %v8750_v58, 1  ;;  %v13951_v25 = vld [vmem:[#allocation14_spill] sm:$0xff] }
 0x207   :  { %5675 = vrot.lane.b32.xlu0 %v5674_v31, %s6913_s3  ;;  %v5684_v31 = vpack.i.bf16 %v8712_v57, %v8710_v17  ;;  %13927 = vst [vmem:[#allocation66_spill] sm:$0xff] %v8740_v19  ;;  %v1595_v45 = vrot.slane %v8740_v19, 1  ;;  %v8760_v9 = vld [vmem:[#allocation2 + $0xe8] sm:$0x3]  ;;  %v1612_v57 = vrot.slane %v8504_v18, 1  ;;  %v1607_v24 = vrot.slane %v8472_v54, 1 }
 0x208   :  { %13929 = vst [vmem:[#allocation68_spill] sm:$0xff] %v8746_v5  ;;  %13931 = vst [vmem:[#allocation70_spill] sm:$0xff] %v8760_v9  ;;  %v8772_v17 = vld [vmem:[#allocation2 + $0x118] sm:$0x3]  ;;  %v1615_v21 = vrot.slane %v8760_v9, 1  ;;  %v1622_v19 = vrot.slane %v8524_v48, 1 }
 0x209   :  { %13932 = vst [vmem:[#allocation71_spill] sm:$0xff] %v8772_v17  ;;  %v1596_v16 = vsel %vm1566_vm5, %v1593_v12, %v1595_v45  ;;  %v1625_v39 = vrot.slane %v8772_v17, 1  ;;  %v1601_v12 = vsel %vm1566_vm5, %v1598_v55, %v1600_v46  ;;  %v8793_v45 = vld [vmem:[#allocation2 + $0x100] sm:$0x3]  ;;  %v1925_v48 = vrot.slane %v8385_v1, 2  ;;  %v13982_v17 = vld [vmem:[#allocation30_spill] sm:$0xff] }
 0x20a   :  { %5690 = vrot.lane.b32.xlu1 %v5689_v11, %s6913_s3  ;;  %v1588_v11 = vrot.slane %v8433_v47, 1  ;;  %v1614_v23 = vsel %vm1566_vm5, %v1612_v57, %v1613_v14  ;;  %v1624_v1 = vsel %vm1566_vm5, %v1622_v19, %v1623_v6  ;;  %v1617_v57 = vrot.slane %v8496_v42, 1 }
 0x20b   :  { %5685 = vrot.lane.b32.xlu0 %v5684_v31, %s6913_s3  ;;  %v8766_v31 = vld [vmem:[#allocation2 + $0xd0] sm:$0x3] }
 0x20c   :  { %v1610_v18 = vrot.slane %v8766_v31, 1  ;;  %v1589_v9 = vsel %vm1566_vm5, %v1587_v15, %v1588_v11  ;;  %v1591_v54 = vsel %vm1566_vm5, %v1588_v11, %v1590_v7  ;;  %v1616_v15 = vsel %vm1566_vm5, %v1613_v14, %v1615_v21  ;;  %v8799_v7 = vld [vmem:[#allocation2 + $0x148] sm:$0x3] }
 0x20d   :  { %13933 = vst [vmem:[#allocation72_spill] sm:$0xff] %v8799_v7  ;;  %v1626_v14 = vsel %vm1566_vm5, %v1623_v6, %v1625_v39  ;;  %v1620_v21 = vrot.slane %v8793_v45, 1 }
 0x20e   :  { %5700 = vrot.lane.b32.xlu1 %v8450_v32, %s6909_s28  ;;  %v1605_v32 = vrot.slane %v8744_v60, 1  ;;  %v1608_v60 = vrot.slane %v8474_v61, 1  ;;  %v1604_v61 = vsel %vm1566_vm5, %v1602_v49, %v1603_v62  ;;  %v1926_v49 = vrot.slane %v8397_v10, 2 }
 0x20f   :  { %5695 = vrot.lane.b32.xlu0 %v8423_v27, %s6909_s28  ;;  %v1597_v27 = vrot.slane %v8452_v37, 1  ;;  %v1618_v10 = vrot.slane %v8502_v8, 1 }
 0x210   :  { %v1609_v11 = vsel %vm1566_vm5, %v1607_v24, %v1608_v60  ;;  %v1611_v46 = vsel %vm1566_vm5, %v1608_v60, %v1610_v18  ;;  %v1928_v24 = vrot.slane %v8532_v33, 2  ;;  %v1633_v60 = vrot.slane %v8548_v51, 1 }
 0x211   :  { %v1635_v18 = vrot.slane %v8799_v7, 1  ;;  %v1628_v33 = vrot.slane %v8522_v35, 1  ;;  %v8838_v35 = vpack.i.bf16 %v1616_v15, %v1614_v23  ;;  %v1643_v15 = vrot.slane %v8569_v43, 1  ;;  %v13981_v7 = vld [vmem:[#allocation41_spill] sm:$0xff] }
 0x212   :  { %5710 = vrot.lane.b32.xlu1 %v8470_v0, %s6909_s28  ;;  %v1606_v0 = vsel %vm1566_vm5, %v1603_v62, %v1605_v32  ;;  %v8809_v62 = vld [vmem:[#allocation2 + $0x130] sm:$0x3]  ;;  %v1929_v19 = vsel %vm1919_vm6, %v1926_v49, %v1928_v24  ;;  %v1627_v32 = vrot.slane %v8520_v53, 1 }
 0x213   :  { %5705 = vrot.lane.b32.xlu0 %v8446_v22, %s6909_s28  ;;  %v1599_v22 = vsel %vm1566_vm5, %v1597_v27, %v1598_v55  ;;  %13934 = vst [vmem:[#allocation73_spill] sm:$0xff] %v8809_v62  ;;  %v1630_v39 = vrot.slane %v8809_v62, 1  ;;  %v8832_v55 = vpack.i.bf16 %v1591_v54, %v1589_v9  ;;  %13940 = vst [vmem:[#allocation79_spill] sm:$0xff] %v8838_v35  ;;  %v8843_v27 = vld [vmem:[#allocation2 + $0x178] sm:$0x3] }
 0x214   :  { %v8836_v24 = vpack.i.bf16 %v1601_v12, %v1599_v22  ;;  %13942 = vst [vmem:[#allocation81_spill] sm:$0xff] %v8843_v27  ;;  %v1636_v23 = vsel %vm1566_vm5, %v1633_v60, %v1635_v18  ;;  %v1629_v9 = vsel %vm1566_vm5, %v1627_v32, %v1628_v33  ;;  %v1642_v22 = vrot.slane %v8567_v59, 1  ;;  %v8858_v12 = vld [vmem:[#allocation2 + $0x208] sm:$0x3] }
 0x215   :  { %13937 = vst [vmem:[#allocation76_spill] sm:$0xff] %v8832_v55  ;;  %13946 = vst [vmem:[#allocation85_spill] sm:$0xff] %v8858_v12  ;;  %v1665_v32 = vrot.slane %v8858_v12, 1  ;;  %v8922_v62 = vld [vmem:[#allocation2 + $0x268] sm:$0x3] }
 0x216   :  { %5720 = vrot.lane.b32.xlu1 %v8494_v52, %s6909_s28  ;;  %v1927_v52 = vsel %vm1919_vm6, %v1925_v48, %v1926_v49  ;;  %v8830_v48 = vpack.i.bf16 %v1596_v16, %v1594_v30  ;;  %v8834_v49 = vpack.i.bf16 %v1606_v0, %v1604_v61  ;;  %13939 = vst [vmem:[#allocation78_spill] sm:$0xff] %v8836_v24  ;;  %v8850_v61 = vld [vmem:[#allocation2 + $0x160] sm:$0x3]  ;;  %v8852_v30 = vld [vmem:[#allocation2 + $0x1f0] sm:$0x3] }
 0x217   :  { %5715 = vrot.lane.b32.xlu0 %v8466_v56, %s6909_s28  ;;  %v1632_v56 = vrot.slane %v8546_v63, 1  ;;  %v8823_v6 = vpack.i.bf16 %v1929_v19, %v1927_v52  ;;  %v8840_v52 = vpack.i.bf16 %v1611_v46, %v1609_v11  ;;  %v1621_v16 = vsel %vm1566_vm5, %v1618_v10, %v1620_v21  ;;  %13944 = vst [vmem:[#allocation83_spill] sm:$0xff] %v8850_v61 }
 0x218   :  { %13936 = vst [vmem:[#allocation75_spill] sm:$0xff] %v8830_v48  ;;  %13938 = vst [vmem:[#allocation77_spill] sm:$0xff] %v8834_v49  ;;  %v1631_v0 = vsel %vm1566_vm5, %v1628_v33, %v1630_v39  ;;  %v1645_v11 = vrot.slane %v8843_v27, 1  ;;  %v1637_v46 = vrot.slane %v8542_v2, 1  ;;  %v1660_v21 = vrot.slane %v8852_v30, 1  ;;  %v13980_v27 = vld [vmem:[#allocation54_spill] sm:$0xff] }
 0x219   :  { %13935 = vst [vmem:[#allocation74_spill] sm:$0xff] %v8823_v6  ;;  %13941 = vst [vmem:[#allocation80_spill] sm:$0xff] %v8840_v52  ;;  %v1634_v54 = vsel %vm1566_vm5, %v1632_v56, %v1633_v60  ;;  %v13947_v56 = vld [vmem:[#allocation33_spill] sm:$0xff]  ;;  %v13948_v60 = vld [vmem:[#allocation34_spill] sm:$0xff] }
 0x21a   :  { %5730 = vrot.lane.b32.xlu1 %v8518_v41, %s6909_s28  ;;  %v8845_v41 = vpack.i.bf16 %v1626_v14, %v1624_v1  ;;  %13945 = vst [vmem:[#allocation84_spill] sm:$0xff] %v8852_v30  ;;  %v1638_v1 = vrot.slane %v8544_v20, 1  ;;  %v1657_v14 = vrot.slane %v8581_v4, 1  ;;  %v1663_v18 = vrot.slane %v13948_v60, 1  ;;  %v8903_v6 = vld [vmem:[#allocation2 + $0x250] sm:$0x3] }
 0x21b   :  { %5725 = vrot.lane.b32.xlu0 %v8490_v44, %s6909_s28  ;;  %v1619_v44 = vsel %vm1566_vm5, %v1617_v57, %v1618_v10  ;;  %v1640_v57 = vrot.slane %v8850_v61, 1  ;;  %v1658_v10 = vrot.slane %v8583_v34, 1  ;;  %v8878_v39 = vpack.i.bf16 %v1636_v23, %v1634_v54  ;;  %v13952_v34 = vld [vmem:[#allocation13_spill] sm:$0xff]  ;;  %v8893_v54 = vld [vmem:[#allocation2 + $0x238] sm:$0x3] }
 0x21c   :  { %13943 = vst [vmem:[#allocation82_spill] sm:$0xff] %v8845_v41  ;;  %v8876_v33 = vpack.i.bf16 %v1621_v16, %v1619_v44  ;;  %v1644_v60 = vsel %vm1566_vm5, %v1642_v22, %v1643_v15  ;;  %v8891_v16 = vld [vmem:[#allocation2 + $0x220] sm:$0x3]  ;;  %v1639_v23 = vsel %vm1566_vm5, %v1637_v46, %v1638_v1  ;;  %v1680_v61 = vrot.slane %v8903_v6, 1 }
 0x21d   :  { %13950 = vst [vmem:[#allocation87_spill] sm:$0xff] %v8878_v39  ;;  %13954 = vst [vmem:[#allocation13_spill] sm:$0xff] %v8891_v16  ;;  %v1641_v19 = vsel %vm1566_vm5, %v1638_v1, %v1640_v57  ;;  %v13955_v22 = vld [vmem:[#allocation31_spill] sm:$0xff]  ;;  %v1670_v4 = vrot.slane %v8891_v16, 1  ;;  %v13958_v39 = vld [vmem:[#allocation40_spill] sm:$0xff]  ;;  %v1675_v57 = vrot.slane %v8893_v54, 1 }
 0x21e   :  { %5740 = vrot.lane.b32.xlu1 %v8540_v28, %s6909_s28  ;;  %13949 = vst [vmem:[#allocation86_spill] sm:$0xff] %v8876_v33  ;;  %v8886_v28 = vpack.i.bf16 %v1631_v0, %v1629_v9  ;;  %v1666_v0 = vsel %vm1566_vm5, %v1663_v18, %v1665_v32  ;;  %v1673_v1 = vrot.slane %v13958_v39, 1  ;;  %v8954_v16 = vld [vmem:[#allocation2 + $0x2c8] sm:$0x3]  ;;  %v8981_v20 = vld [vmem:[#allocation2 + $0x2e0] sm:$0x3] }
 0x21f   :  { %5735 = vrot.lane.b32.xlu0 %v8514_v13, %s6909_s28  ;;  %v1662_v13 = vrot.slane %v13947_v56, 1  ;;  %v1646_v56 = vsel %vm1566_vm5, %v1643_v15, %v1645_v11  ;;  %v1667_v15 = vrot.slane %v13955_v22, 1  ;;  %v13956_v11 = vld [vmem:[#allocation32_spill] sm:$0xff]  ;;  %13987 = vst [vmem:[#allocation92_spill] sm:$0xff] %v8981_v20 }
 0x220   :  { %13953 = vst [vmem:[#allocation14_spill] sm:$0xff] %v8886_v28  ;;  %v1668_v44 = vrot.slane %v13956_v11, 1  ;;  %v13957_v28 = vld [vmem:[#allocation39_spill] sm:$0xff]  ;;  %v13964_v11 = vld [vmem:[#allocation38_spill] sm:$0xff] }
 0x221   :  { %v1664_v9 = vsel %vm1566_vm5, %v1662_v13, %v1663_v18  ;;  %v1672_v46 = vrot.slane %v13957_v28, 1  ;;  %v8915_v13 = vpack.i.bf16 %v1641_v19, %v1639_v23  ;;  %v13963_v18 = vld [vmem:[#allocation37_spill] sm:$0xff]  ;;  %v1678_v22 = vrot.slane %v13964_v11, 1 }
 0x222   :  { %5750 = vrot.lane.b32.xlu1 %v13951_v25, %s6909_s28  ;;  %v1659_v25 = vsel %vm1566_vm5, %v1657_v14, %v1658_v10  ;;  %v13959_v14 = vld [vmem:[#allocation17_spill] sm:$0xff]  ;;  %v1677_v32 = vrot.slane %v13963_v18, 1  ;;  %v1669_v23 = vsel %vm1566_vm5, %v1667_v15, %v1668_v44  ;;  %v1671_v28 = vsel %vm1566_vm5, %v1668_v44, %v1670_v4  ;;  %v8936_v18 = vld [vmem:[#allocation2 + $0x298] sm:$0x3] }
 0x223   :  { %5745 = vrot.lane.b32.xlu0 %v13952_v34, %s6909_s28  ;;  %v1661_v34 = vsel %vm1566_vm5, %v1658_v10, %v1660_v21  ;;  %v13960_v10 = vld [vmem:[#allocation12_spill] sm:$0xff]  ;;  %v8913_v21 = vpack.i.bf16 %v1646_v56, %v1644_v60  ;;  %v8927_v56 = vpack.i.bf16 %v1666_v0, %v1664_v9  ;;  %v8930_v60 = vld [vmem:[#allocation2 + $0x280] sm:$0x3]  ;;  %v1674_v39 = vsel %vm1566_vm5, %v1672_v46, %v1673_v1  ;;  %v8942_v9 = vpop.permute.xlu0 %5505  ;;  %v13971_v19 = vld [vmem:[#allocation45_spill] sm:$0xff] }
 0x224   :  { %13962 = vst [vmem:[#allocation12_spill] sm:$0xff] %v8915_v13  ;;  %v1676_v11 = vsel %vm1566_vm5, %v1673_v1, %v1675_v57  ;;  %v1679_v0 = vsel %vm1566_vm5, %v1677_v32, %v1678_v22  ;;  %v1683_v4 = vrot.slane %v13971_v19, 1  ;;  %v1685_v44 = vrot.slane %v8922_v62, 1  ;;  %v8948_v46 = vld [vmem:[#allocation2 + $0x2b0] sm:$0x3]  ;;  %v13972_v57 = vld [vmem:[#allocation42_spill] sm:$0xff] }
 0x225   :  { %13961 = vst [vmem:[#allocation17_spill] sm:$0xff] %v8913_v21  ;;  %13966 = vst [vmem:[#allocation89_spill] sm:$0xff] %v8927_v56  ;;  %v1681_v1 = vsel %vm1566_vm5, %v1678_v22, %v1680_v61  ;;  %v1687_v12 = vrot.slane %v13972_v57, 1  ;;  %v1695_v19 = vrot.slane %v8936_v18, 1  ;;  %v13978_v13 = vld [vmem:[#allocation48_spill] sm:$0xff]  ;;  %v1700_v61 = vrot.slane %v8948_v46, 1 }
 0x226   :  { %5760 = vrot.lane.b32.xlu1 %v13959_v14, %s6909_s28  ;;  %v8924_v14 = vpack.i.bf16 %v1661_v34, %v1659_v25  ;;  %v13967_v25 = vld [vmem:[#allocation36_spill] sm:$0xff]  ;;  %v1698_v21 = vrot.slane %v13978_v13, 1  ;;  %v13979_v22 = vld [vmem:[#allocation53_spill] sm:$0xff]  ;;  %v8973_v33 = vpack.i.bf16 %v1676_v11, %v1674_v39  ;;  %v1705_v13 = vrot.slane %v8954_v16, 1 }
 0x227   :  { %5755 = vrot.lane.b32.xlu0 %v13960_v10, %s6909_s28  ;;  %v13968_v34 = vld [vmem:[#allocation4_spill] sm:$0xff]  ;;  %13969 = vst [vmem:[#allocation36_spill] sm:$0xff] %v8942_v9  ;;  %v13975_v9 = vld [vmem:[#allocation49_spill] sm:$0xff]  ;;  %v1702_v57 = vrot.slane %v13979_v22, 1  ;;  %v8977_v41 = vpack.i.bf16 %v1681_v1, %v1679_v0 }
 0x228   :  { %13965 = vst [vmem:[#allocation88_spill] sm:$0xff] %v8924_v14  ;;  %v13970_v10 = vld [vmem:[#allocation44_spill] sm:$0xff]  ;;  %13974 = vst [vmem:[#allocation4_spill] sm:$0xff] %v8954_v16  ;;  %v1692_v32 = vrot.slane %v13975_v9, 1  ;;  %v13977_v14 = vld [vmem:[#allocation47_spill] sm:$0xff]  ;;  %v8968_v9 = vpop.permute.xlu1 %5500 }
 0x229   :  { %v1682_v15 = vrot.slane %v13970_v10, 1  ;;  %v1693_v10 = vrot.slane %v13976_v3, 1  ;;  %v1697_v30 = vrot.slane %v13977_v14, 1  ;;  %13983 = vst [vmem:[#allocation41_spill] sm:$0xff] %v8968_v9  ;;  %v8970_v3 = vpack.i.bf16 %v1671_v28, %v1669_v23  ;;  %13985 = vst [vmem:[#allocation90_spill] sm:$0xff] %v8973_v33 }
 0x22a   :  { %5775 = vrot.lane.b32.xlu1 %v13967_v25, %s6909_s28  ;;  %v13973_v25 = vld [vmem:[#allocation43_spill] sm:$0xff]  ;;  %13986 = vst [vmem:[#allocation91_spill] sm:$0xff] %v8977_v41  ;;  %v1686_v28 = vsel %vm1566_vm5, %v1683_v4, %v1685_v44  ;;  %v13991_v44 = vld [vmem:[#allocation52_spill] sm:$0xff] }
 0x22b   :  { %5765 = vrot.lane.b32.xlu0 %v13968_v34, %s6909_s28  ;;  %v1688_v56 = vrot.slane %v13973_v25, 1  ;;  %v1690_v34 = vrot.slane %v8930_v60, 1  ;;  %v1703_v25 = vrot.slane %v13980_v27, 1  ;;  %13984 = vst [vmem:[#allocation30_spill] sm:$0xff] %v8970_v3  ;;  %v1684_v27 = vsel %vm1566_vm5, %v1682_v15, %v1683_v4  ;;  %v13990_v4 = vld [vmem:[#allocation51_spill] sm:$0xff] }
 0x22c   :  { %v1694_v11 = vsel %vm1566_vm5, %v1692_v32, %v1693_v10  ;;  %v1696_v22 = vsel %vm1566_vm5, %v1693_v10, %v1695_v19  ;;  %v1699_v0 = vsel %vm1566_vm5, %v1697_v30, %v1698_v21  ;;  %v1701_v15 = vsel %vm1566_vm5, %v1698_v21, %v1700_v61  ;;  %v9007_v32 = vpop.permute.xlu1 %5525 }
 0x22d   :  { %v1689_v23 = vsel %vm1566_vm5, %v1687_v12, %v1688_v56  ;;  %v1691_v39 = vsel %vm1566_vm5, %v1688_v56, %v1690_v34  ;;  %v1704_v1 = vsel %vm1566_vm5, %v1702_v57, %v1703_v25  ;;  %v1706_v12 = vsel %vm1566_vm5, %v1703_v25, %v1705_v13  ;;  %13994 = vst [vmem:[#allocation52_spill] sm:$0xff] %v9007_v32  ;;  %v14004_v13 = vld [vmem:[#allocation60_spill] sm:$0xff] }
 0x22e   :  { %5785 = vrot.lane.b32.xlu1 %v13981_v7, %s6909_s28  ;;  %v13989_v7 = vld [vmem:[#allocation35_spill] sm:$0xff]  ;;  %v1707_v56 = vrot.slane %v13990_v4, 1  ;;  %v1708_v34 = vrot.slane %v13991_v44, 1  ;;  %v1710_v10 = vrot.slane %v8981_v20, 1  ;;  %v9001_v19 = vpack.i.bf16 %v1686_v28, %v1684_v27  ;;  %v13998_v28 = vld [vmem:[#allocation58_spill] sm:$0xff] }
 0x22f   :  { %5770 = vrot.lane.b32.xlu0 %v13982_v17, %s6909_s28  ;;  %v8983_v17 = vpop.permute.xlu0 %5510  ;;  %v9004_v21 = vpack.i.bf16 %v1691_v39, %v1689_v23  ;;  %v9009_v61 = vpack.i.bf16 %v1696_v22, %v1694_v11  ;;  %v9012_v25 = vpack.i.bf16 %v1701_v15, %v1699_v0  ;;  %v9015_v14 = vpack.i.bf16 %v1706_v12, %v1704_v1  ;;  %v13999_v23 = vld [vmem:[#allocation59_spill] sm:$0xff]  ;;  %v14002_v15 = vld [vmem:[#allocation18_spill] sm:$0xff]  ;;  %v14003_v12 = vld [vmem:[#allocation21_spill] sm:$0xff] }
 0x230   :  { %13988 = vst [vmem:[#allocation93_spill] sm:$0xff] %v8983_v17  ;;  %13992 = vst [vmem:[#allocation35_spill] sm:$0xff] %v9001_v19  ;;  %v14001_v22 = vld [vmem:[#allocation15_spill] sm:$0xff]  ;;  %v1709_v11 = vsel %vm1566_vm5, %v1707_v56, %v1708_v34  ;;  %v1711_v0 = vsel %vm1566_vm5, %v1708_v34, %v1710_v10  ;;  %v1930_v1 = vrot.slane %v14002_v15, 2  ;;  %v1931_v27 = vrot.slane %v14003_v12, 2 }
 0x231   :  { %13993 = vst [vmem:[#allocation51_spill] sm:$0xff] %v9004_v21  ;;  %13995 = vst [vmem:[#allocation94_spill] sm:$0xff] %v9009_v61  ;;  %v1933_v57 = vrot.slane %v14004_v13, 2  ;;  %v1940_v30 = vrot.slane %v8427_v38, 2  ;;  %v1941_v39 = vrot.slane %v8433_v47, 2  ;;  %v1943_v32 = vrot.slane %v8742_v26, 2  ;;  %v9048_v47 = vpop.permute.xlu1 %5530 }
 0x232   :  { %5795 = vrot.lane.b32.xlu1 %v8746_v5, %s6908_s0  ;;  %13996 = vst [vmem:[#allocation95_spill] sm:$0xff] %v9012_v25  ;;  %13997 = vst [vmem:[#allocation96_spill] sm:$0xff] %v9015_v14  ;;  %v14005_v17 = vld [vmem:[#allocation23_spill] sm:$0xff]  ;;  %v14006_v5 = vld [vmem:[#allocation61_spill] sm:$0xff]  ;;  %v1950_v10 = vrot.slane %v8452_v37, 2  ;;  %v1951_v15 = vrot.slane %v8454_v40, 2 }
 0x233   :  { %5780 = vrot.lane.b32.xlu0 %v13989_v7, %s6909_s28  ;;  %v9020_v9 = vpop.permute.xlu0 %5515  ;;  %v9030_v7 = vld [vmem:[#allocation2 + $0x2f8] sm:$0x3]  ;;  %v1936_v56 = vrot.slane %v14005_v17, 2  ;;  %v1938_v34 = vrot.slane %v14006_v5, 2  ;;  %v1953_v12 = vrot.slane %v8750_v58, 2  ;;  %v1945_v13 = vrot.slane %v8456_v36, 2 }
 0x234   :  { %14000 = vst [vmem:[#allocation58_spill] sm:$0xff] %v9020_v9  ;;  %v1935_v9 = vrot.slane %v8435_v50, 2  ;;  %14008 = vst [vmem:[#allocation59_spill] sm:$0xff] %v9048_v47  ;;  %v14009_v26 = vld [vmem:[#allocation66_spill] sm:$0xff]  ;;  %v14011_v17 = vld [vmem:[#allocation25_spill] sm:$0xff]  ;;  %v1934_v50 = vsel %vm1919_vm6, %v1931_v27, %v1933_v57 }
 0x235   :  { %v1948_v37 = vrot.slane %v14009_v26, 2  ;;  %v14010_v5 = vld [vmem:[#allocation22_spill] sm:$0xff]  ;;  %v1961_v58 = vrot.slane %v14011_v17, 2  ;;  %v1942_v26 = vsel %vm1919_vm6, %v1940_v30, %v1941_v39  ;;  %v9071_v17 = vsel %vm1919_vm6, %v1950_v10, %v1951_v15  ;;  %v14014_v57 = vld [vmem:[#allocation24_spill] sm:$0xff]  ;;  %v14016_v10 = vld [vmem:[#allocation67_spill] sm:$0xff] }
 0x236   :  { %5800 = vrot.lane.b32.xlu1 %v8748_v29, %s6908_s0  ;;  %v14007_v29 = vld [vmem:[#allocation20_spill] sm:$0xff]  ;;  %v1960_v40 = vrot.slane %v14010_v5, 2  ;;  %v1944_v5 = vsel %vm1919_vm6, %v1941_v39, %v1943_v32  ;;  %v1955_v32 = vrot.slane %v14014_v57, 2 }
 0x237   :  { %5790 = vrot.lane.b32.xlu0 %v14001_v22, %s6908_s0  ;;  %v1946_v38 = vrot.slane %v14007_v29, 2  ;;  %v9054_v22 = vpack.i.bf16 %v1711_v0, %v1709_v11  ;;  %v9058_v29 = vsel %vm1919_vm6, %v1930_v1, %v1931_v27  ;;  %v9063_v47 = vpop.permute.xlu0 %5520  ;;  %v1937_v11 = vsel %vm1919_vm6, %v1935_v9, %v1936_v56  ;;  %v14027_v14 = vld [vmem:[#allocation8_spill] sm:$0xff] }
 0x238   :  { %14013 = vst [vmem:[#allocation21_spill] sm:$0xff] %v9063_v47  ;;  %v1939_v0 = vsel %vm1919_vm6, %v1936_v56, %v1938_v34  ;;  %v9074_v1 = vsel %vm1919_vm6, %v1951_v15, %v1953_v12  ;;  %v9083_v9 = vsel %vm1919_vm6, %v1960_v40, %v1961_v58  ;;  %v14015_v56 = vld [vmem:[#allocation26_spill] sm:$0xff]  ;;  %v1958_v15 = vrot.slane %v14016_v10, 2  ;;  %v14019_v40 = vld [vmem:[#allocation3_spill] sm:$0xff]  ;;  %v14021_v47 = vld [vmem:[#allocation5_spill] sm:$0xff] }
 0x239   :  { %14012 = vst [vmem:[#allocation18_spill] sm:$0xff] %v9054_v22  ;;  %v1949_v30 = vsel %vm1919_vm6, %v1946_v38, %v1948_v37  ;;  %v1956_v34 = vrot.slane %v14015_v56, 2  ;;  %v1970_v12 = vrot.slane %v8496_v42, 2  ;;  %v1973_v37 = vrot.slane %v8793_v45, 2  ;;  %v14024_v10 = vld [vmem:[#allocation7_spill] sm:$0xff]  ;;  %v14026_v22 = vld [vmem:[#allocation70_spill] sm:$0xff] }
 0x23a   :  { %5810 = vrot.lane.b32.xlu1 %v8830_v48, %s6908_s0  ;;  %v1963_v48 = vrot.slane %v8766_v31, 2  ;;  %v1947_v31 = vsel %vm1919_vm6, %v1945_v13, %v1946_v38  ;;  %v1971_v38 = vrot.slane %v8502_v8, 2  ;;  %v14020_v57 = vrot.slane %v14019_v40, 1  ;;  %v14028_v45 = vld [vmem:[#allocation11_spill] sm:$0xff] }
 0x23b   :  { %5805 = vrot.lane.b32.xlu0 %v8832_v55, %s6908_s0  ;;  %v9061_v55 = vld [vmem:[#allocation2 + $0x190] sm:$0x3]  ;;  %v1965_v42 = vrot.slane %v14024_v10, 2  ;;  %v1975_v8 = vrot.slane %v14027_v14, 2  ;;  %v1995_v14 = vrot.slane %v8567_v59, 2  ;;  %v1996_v10 = vrot.slane %v8569_v43, 2 }
 0x23c   :  { %v2473_v27 = vrot.slane %v9061_v55, 1  ;;  %v1964_v39 = vsel %vm1919_vm6, %v1961_v58, %v1963_v48  ;;  %v14023_v58 = vmov %v14020_v57  ;;  %v1990_v59 = vrot.slane %v8542_v2, 2 }
 0x23e   :  { %5820 = vrot.lane.b32.xlu1 %v8834_v49, %s6908_s0  ;;  %v2474_v56 = vsel %vm1566_vm5, %v14023_v58, %v2473_v27  ;;  %v14025_v49 = vld [vmem:[#allocation9_spill] sm:$0xff]  ;;  %v1986_v27 = vrot.slane %v8548_v51, 2  ;;  %v1980_v51 = vrot.slane %v8520_v53, 2 }
 0x23f   :  { %5815 = vrot.lane.b32.xlu0 %v8836_v24, %s6908_s0  ;;  %v9091_v13 = vpop.permute.xlu1 %5540  ;;  %v14022_v24 = vrot.slane %v14021_v47, 1 }
 0x240   :  { %14017 = vst [vmem:[#allocation60_spill] sm:$0xff] %v9091_v13  ;;  %v9093_v36 = vpop.permute.xlu0 %5535  ;;  %v1966_v13 = vrot.slane %v14025_v49, 2  ;;  %v1957_v49 = vsel %vm1919_vm6, %v1955_v32, %v1956_v34 }
 0x241   :  { %14018 = vst [vmem:[#allocation23_spill] sm:$0xff] %v9093_v36  ;;  %v2472_v48 = vsel %vm1566_vm5, %v14022_v24, %v14020_v57  ;;  %v1968_v36 = vrot.slane %v14026_v22, 2  ;;  %v1976_v24 = vrot.slane %v14028_v45, 2  ;;  %v1985_v57 = vrot.slane %v8546_v63, 2 }
 0x242   :  { %5830 = vrot.lane.b32.xlu1 %v8838_v35, %s6908_s0  ;;  %v9116_v58 = vpack.i.bf16 %v2474_v56, %v2472_v48  ;;  %v1959_v22 = vsel %vm1919_vm6, %v1956_v34, %v1958_v15  ;;  %v1972_v45 = vsel %vm1919_vm6, %v1970_v12, %v1971_v38  ;;  %v1974_v63 = vsel %vm1919_vm6, %v1971_v38, %v1973_v37  ;;  %v14032_v48 = vld [vmem:[#allocation6_spill] sm:$0xff]  ;;  %v14036_v12 = vld [vmem:[#allocation56_spill] sm:$0xff]  ;;  %v14037_v37 = vld [vmem:[#allocation71_spill] sm:$0xff] }
 0x243   :  { %5825 = vrot.lane.b32.xlu0 %v8840_v52, %s6908_s0  ;;  %v1981_v56 = vrot.slane %v14032_v48, 2  ;;  %v1967_v32 = vsel %vm1919_vm6, %v1965_v42, %v1966_v13  ;;  %v1969_v34 = vsel %vm1919_vm6, %v1966_v13, %v1968_v36  ;;  %v14033_v15 = vld [vmem:[#allocation10_spill] sm:$0xff]  ;;  %v1717_v38 = vrot.slane %v14036_v12, 1  ;;  %v14039_v13 = vld [vmem:[#allocation72_spill] sm:$0xff] }
 0x244   :  { %14029 = vst [vmem:[#allocation61_spill] sm:$0xff] %v9116_v58  ;;  %v9122_v35 = vpop.permute.xlu1 %5550  ;;  %v1991_v43 = vrot.slane %v14033_v15, 2  ;;  %v1977_v53 = vsel %vm1919_vm6, %v1975_v8, %v1976_v24  ;;  %v14038_v48 = vrot.slane %v14037_v37, 2  ;;  %v1987_v36 = vsel %vm1919_vm6, %v1985_v57, %v1986_v27  ;;  %v14043_v8 = vld [vmem:[#allocation81_spill] sm:$0xff] }
 0x245   :  { %14030 = vst [vmem:[#allocation20_spill] sm:$0xff] %v9122_v35  ;;  %v9124_v20 = vpop.permute.xlu0 %5545  ;;  %v14034_v35 = vld [vmem:[#allocation82_spill] sm:$0xff]  ;;  %v14040_v2 = vrot.slane %v14039_v13, 2  ;;  %v1997_v58 = vsel %vm1919_vm6, %v1995_v14, %v1996_v10  ;;  %v9148_v52 = vpack.i.bf16 %v1939_v0, %v1937_v11  ;;  %v14044_v37 = vrot.slane %v14043_v8, 2  ;;  %v14045_v0 = vld [vmem:[#allocation73_spill] sm:$0xff]  ;;  %v14047_v13 = vld [vmem:[#allocation83_spill] sm:$0xff] }
 0x246   :  { %14031 = vst [vmem:[#allocation66_spill] sm:$0xff] %v9124_v20  ;;  %5840 = vrot.lane.b32.xlu1 %v14034_v35, %s6908_s0  ;;  %v14035_v20 = vld [vmem:[#allocation86_spill] sm:$0xff]  ;;  %v1979_v42 = vsel %vm1919_vm6, %v1976_v24, %v14038_v48  ;;  %v9150_v35 = vpack.i.bf16 %v1949_v30, %v1947_v31  ;;  %v9160_v57 = vpack.i.bf16 %v1934_v50, %v9058_v29  ;;  %v14046_v31 = vrot.slane %v14045_v0, 2  ;;  %v14062_v0 = vld [vmem:[#allocation17_spill] sm:$0xff] }
 0x247   :  { %5835 = vrot.lane.b32.xlu0 %v14035_v20, %s6908_s0  ;;  %v1989_v15 = vsel %vm1919_vm6, %v1986_v27, %v14040_v2  ;;  %v1999_v24 = vsel %vm1919_vm6, %v1996_v10, %v14044_v37  ;;  %v9162_v48 = vpack.i.bf16 %v1959_v22, %v1957_v49  ;;  %v9164_v27 = vpack.i.bf16 %v1944_v5, %v1942_v26  ;;  %v14049_v10 = vld [vmem:[#allocation87_spill] sm:$0xff]  ;;  %v14050_v50 = vld [vmem:[#allocation14_spill] sm:$0xff]  ;;  %v9187_v22 = vld [vmem:[#allocation2 + $0x310] sm:$0x3] }
 0x248   :  { %v9152_v20 = vpop.permute.xlu1 %5560  ;;  %v1982_v11 = vsel %vm1919_vm6, %v1980_v51, %v1981_v56  ;;  %v1984_v30 = vsel %vm1919_vm6, %v1981_v56, %v14046_v31  ;;  %v1992_v14 = vsel %vm1919_vm6, %v1990_v59, %v1991_v43  ;;  %v14048_v2 = vrot.slane %v14047_v13, 2  ;;  %v14061_v37 = vld [vmem:[#allocation16_spill] sm:$0xff]  ;;  %v14071_v31 = vld [vmem:[#allocation31_spill] sm:$0xff] }
 0x249   :  { %14041 = vst [vmem:[#allocation22_spill] sm:$0xff] %v9152_v20  ;;  %v9154_v16 = vpop.permute.xlu0 %5555  ;;  %v9178_v29 = vpack.i.bf16 %v1969_v34, %v1967_v32  ;;  %v9182_v26 = vpack.i.bf16 %v9074_v1, %v9071_v17  ;;  %v9184_v5 = vpack.i.bf16 %v1979_v42, %v1977_v53  ;;  %v2675_v49 = vrot.slane %v9061_v55, 2  ;;  %v14072_v42 = vld [vmem:[#allocation32_spill] sm:$0xff]  ;;  %v14085_v20 = vld [vmem:[#allocation46_spill] sm:$0xff] }
 0x24a   :  { %14042 = vst [vmem:[#allocation25_spill] sm:$0xff] %v9154_v16  ;;  %v1994_v8 = vsel %vm1919_vm6, %v1991_v43, %v14048_v2  ;;  %5850 = vrot.lane.b32.xlu1 %v14049_v10, %s6908_s0  ;;  %v9190_v51 = vpack.i.bf16 %v1964_v39, %v9083_v9  ;;  %v9192_v56 = vpack.i.bf16 %v1989_v15, %v1987_v36  ;;  %v14055_v17 = vrot.slane %v13999_v23, 1  ;;  %v14060_v36 = vld [vmem:[#allocation19_spill] sm:$0xff]  ;;  %v14084_v16 = vld [vmem:[#allocation34_spill] sm:$0xff] }
 0x24b   :  { %5845 = vrot.lane.b32.xlu0 %v14050_v50, %s6908_s0  ;;  %v9194_v59 = vpack.i.bf16 %v1974_v63, %v1972_v45  ;;  %v9196_v43 = vpack.i.bf16 %v1999_v24, %v1997_v58  ;;  %v14056_v1 = vrot.slane %v13998_v28, 1  ;;  %v9209_v53 = vpack.i.bf16 %v1984_v30, %v1982_v11  ;;  %v14059_v63 = vld [vmem:[#allocation57_spill] sm:$0xff]  ;;  %v14063_v11 = vld [vmem:[#allocation12_spill] sm:$0xff]  ;;  %v14095_v10 = vld [vmem:[#allocation39_spill] sm:$0xff] }
 0x24c   :  { %14051 = vst [vmem:[#allocation24_spill] sm:$0xff] %v9192_v56  ;;  %v9198_v32 = vpop.permute.xlu1 %5570  ;;  %v9211_v9 = vpack.i.bf16 %v1994_v8, %v1992_v14  ;;  %v14057_v39 = vrot.slane %v9030_v7, 1  ;;  %v14058_v58 = vmov %v14055_v17  ;;  %v2010_v15 = vrot.slane %v14060_v36, 2  ;;  %v14091_v50 = vld [vmem:[#allocation13_spill] sm:$0xff]  ;;  %v14106_v56 = vld [vmem:[#allocation43_spill] sm:$0xff] }
 0x24d   :  { %14052 = vst [vmem:[#allocation26_spill] sm:$0xff] %v9196_v43  ;;  %14053 = vst [vmem:[#allocation67_spill] sm:$0xff] %v9198_v32  ;;  %v9200_v34 = vpop.permute.xlu0 %5565  ;;  %v9207_v55 = vsel %vm1566_vm5, %v14056_v1, %v14055_v17  ;;  %v2011_v24 = vrot.slane %v14061_v37, 2  ;;  %v14064_v14 = vrot.slane %v14019_v40, 2  ;;  %v14065_v13 = vrot.slane %v14021_v47, 2  ;;  %v14067_v1 = vld [vmem:[#allocation64_spill] sm:$0xff] }
 0x24e   :  { %14054 = vst [vmem:[#allocation3_spill] sm:$0xff] %v9200_v34  ;;  %v9218_v45 = vsel %vm1566_vm5, %v14058_v58, %v14057_v39  ;;  %5860 = vrot.lane.b32.xlu1 %v14062_v0, %s6908_s0  ;;  %v2020_v30 = vrot.slane %v14071_v31, 2  ;;  %v2021_v34 = vrot.slane %v14072_v42, 2  ;;  %v14073_v47 = vrot.slane %v14059_v63, 1  ;;  %v14074_v40 = vld [vmem:[#allocation65_spill] sm:$0xff]  ;;  %v14077_v39 = vld [vmem:[#allocation55_spill] sm:$0xff] }
 0x24f   :  { %5855 = vrot.lane.b32.xlu0 %v14063_v11, %s6908_s0  ;;  %v2674_v2 = vsel %vm1919_vm6, %v14065_v13, %v14064_v14  ;;  %v14066_v8 = vmov %v14064_v14  ;;  %v14078_v31 = vld [vmem:[#allocation88_spill] sm:$0xff]  ;;  %v14079_v42 = vld [vmem:[#allocation29_spill] sm:$0xff]  ;;  %v14094_v0 = vld [vmem:[#allocation42_spill] sm:$0xff] }
 0x250   :  { %v2676_v17 = vsel %vm1919_vm6, %v14066_v8, %v2675_v49  ;;  %v9240_v36 = vpop.permute.xlu1 %5580  ;;  %v9249_v14 = vsel %vm1566_vm5, %v1717_v38, %v14073_v47  ;;  %v2012_v49 = vsel %vm1919_vm6, %v2010_v15, %v2011_v24  ;;  %v14075_v8 = vld [vmem:[#allocation84_spill] sm:$0xff]  ;;  %v14083_v47 = vld [vmem:[#allocation33_spill] sm:$0xff]  ;;  %v2016_v15 = vrot.slane %v14084_v16, 2 }
 0x251   :  { %v9238_v58 = vpack.i.bf16 %v2676_v17, %v2674_v2  ;;  %14069 = vst [vmem:[#allocation7_spill] sm:$0xff] %v9240_v36  ;;  %v9242_v37 = vpop.permute.xlu0 %5575  ;;  %v14076_v2 = vrot.slane %v14075_v8, 2  ;;  %v14081_v36 = vld [vmem:[#allocation28_spill] sm:$0xff]  ;;  %v2015_v13 = vrot.slane %v14083_v47, 2  ;;  %v14086_v8 = vrot.slane %v14085_v20, 2  ;;  %v14093_v47 = vld [vmem:[#allocation38_spill] sm:$0xff] }
 0x252   :  { %14070 = vst [vmem:[#allocation9_spill] sm:$0xff] %v9242_v37  ;;  %5865 = vrot.lane.b32.xlu1 %v14077_v39, %s6908_s0  ;;  %v14080_v37 = vrot.slane %v14079_v42, 2  ;;  %v14082_v32 = vrot.slane %v14081_v36, 2  ;;  %v2022_v36 = vsel %vm1919_vm6, %v2020_v30, %v2021_v34  ;;  %v2031_v16 = vrot.slane %v14093_v47, 2  ;;  %v14096_v43 = vld [vmem:[#allocation40_spill] sm:$0xff] }
 0x253   :  { %14068 = vst [vmem:[#allocation5_spill] sm:$0xff] %v9238_v58  ;;  %v2014_v17 = vsel %vm1919_vm6, %v2011_v24, %v14076_v2  ;;  %5870 = vrot.lane.b32.xlu0 %v14078_v31, %s6908_s0  ;;  %v14088_v58 = vld [vmem:[#allocation37_spill] sm:$0xff]  ;;  %v2040_v20 = vrot.slane %v14094_v0, 2  ;;  %v2025_v42 = vrot.slane %v14095_v10, 2  ;;  %v2017_v30 = vsel %vm1919_vm6, %v2015_v13, %v2016_v15 }
 0x254   :  { %v2007_v38 = vsel %vm1919_vm6, %v14082_v32, %v14080_v37  ;;  %v14087_v24 = vmov %v14080_v37  ;;  %v2030_v11 = vrot.slane %v14088_v58, 2  ;;  %v9273_v39 = vpop.permute.xlu1 %5590  ;;  %v14092_v32 = vrot.slane %v14091_v50, 2  ;;  %v14097_v58 = vld [vmem:[#allocation89_spill] sm:$0xff] }
 0x255   :  { %v2009_v2 = vsel %vm1919_vm6, %v14087_v24, %v14086_v8  ;;  %14089 = vst [vmem:[#allocation70_spill] sm:$0xff] %v9273_v39  ;;  %v9275_v31 = vpop.permute.xlu0 %5585  ;;  %v2026_v8 = vrot.slane %v14096_v43, 2  ;;  %v14098_v24 = vld [vmem:[#allocation85_spill] sm:$0xff]  ;;  %v2041_v13 = vrot.slane %v14106_v56, 2 }
 0x256   :  { %14090 = vst [vmem:[#allocation8_spill] sm:$0xff] %v9275_v31  ;;  %v2024_v37 = vsel %vm1919_vm6, %v2021_v34, %v14092_v32  ;;  %5875 = vrot.lane.b32.xlu1 %v14097_v58, %s6908_s0  ;;  %v14099_v50 = vrot.slane %v14098_v24, 2  ;;  %v14100_v32 = vld [vmem:[#allocation44_spill] sm:$0xff]  ;;  %v14101_v31 = vld [vmem:[#allocation45_spill] sm:$0xff]  ;;  %v9299_v43 = vpack.i.bf16 %v2009_v2, %v2007_v38  ;;  %v9301_v58 = vpack.i.bf16 %v2014_v17, %v2012_v49  ;;  %v14110_v38 = vld [vmem:[#allocation50_spill] sm:$0xff] }
 0x257   :  { %5880 = vrot.lane.b32.xlu0 %v8970_v3, %s6908_s0  ;;  %v2035_v47 = vrot.slane %v14100_v32, 2  ;;  %v2036_v0 = vrot.slane %v14101_v31, 2  ;;  %v2032_v3 = vsel %vm1919_vm6, %v2030_v11, %v2031_v16  ;;  %v2027_v24 = vsel %vm1919_vm6, %v2025_v42, %v2026_v8  ;;  %v14109_v17 = vld [vmem:[#allocation49_spill] sm:$0xff]  ;;  %v9318_v2 = vld [vmem:[#allocation2 + $0x328] sm:$0x3] }
 0x258   :  { %v2019_v34 = vsel %vm1919_vm6, %v2016_v15, %v14099_v50  ;;  %v9295_v39 = vpop.permute.xlu1 %5600  ;;  %14104 = vst [vmem:[#allocation10_spill] sm:$0xff] %v9299_v43  ;;  %14105 = vst [vmem:[#allocation56_spill] sm:$0xff] %v9301_v58  ;;  %v14107_v15 = vrot.slane %v8893_v54, 2  ;;  %v14108_v31 = vrot.slane %v8903_v6, 2  ;;  %v2045_v11 = vrot.slane %v14109_v17, 2 }
 0x259   :  { %14102 = vst [vmem:[#allocation11_spill] sm:$0xff] %v9295_v39  ;;  %v9297_v10 = vpop.permute.xlu0 %5595  ;;  %v2046_v56 = vrot.slane %v14110_v38, 2  ;;  %v2037_v54 = vsel %vm1919_vm6, %v2035_v47, %v2036_v0  ;;  %v9321_v42 = vpack.i.bf16 %v2019_v34, %v2017_v30  ;;  %v14115_v6 = vrot.slane %v8922_v62, 2  ;;  %v14118_v30 = vld [vmem:[#allocation47_spill] sm:$0xff] }
 0x25a   :  { %14103 = vst [vmem:[#allocation6_spill] sm:$0xff] %v9297_v10  ;;  %v2029_v50 = vsel %vm1919_vm6, %v2026_v8, %v14107_v15  ;;  %5885 = vrot.lane.b32.xlu1 %v8973_v33, %s6908_s0  ;;  %v2034_v49 = vsel %vm1919_vm6, %v2031_v16, %v14108_v31  ;;  %v9323_v8 = vpack.i.bf16 %v2024_v37, %v2022_v36  ;;  %v14117_v38 = vrot.slane %v8930_v60, 2  ;;  %v14119_v36 = vld [vmem:[#allocation48_spill] sm:$0xff]  ;;  %v14121_v60 = vld [vmem:[#allocation53_spill] sm:$0xff] }
 0x25b   :  { %5890 = vrot.lane.b32.xlu0 %v8977_v41, %s6908_s0  ;;  %14111 = vst [vmem:[#allocation71_spill] sm:$0xff] %v9321_v42  ;;  %v2039_v16 = vsel %vm1919_vm6, %v2036_v0, %v14115_v6  ;;  %v9332_v31 = vpack.i.bf16 %v2029_v50, %v2027_v24  ;;  %v2042_v17 = vsel %vm1919_vm6, %v2040_v20, %v2041_v13  ;;  %v2050_v34 = vrot.slane %v14118_v30, 2  ;;  %v14122_v50 = vld [vmem:[#allocation54_spill] sm:$0xff] }
 0x25c   :  { %14112 = vst [vmem:[#allocation72_spill] sm:$0xff] %v9323_v8  ;;  %v9325_v32 = vpop.permute.xlu1 %5610  ;;  %v2044_v47 = vsel %vm1919_vm6, %v2041_v13, %v14117_v38  ;;  %v2051_v37 = vrot.slane %v14119_v36, 2  ;;  %v1725_v62 = vrot.slane %v9318_v2, 1  ;;  %v2060_v0 = vrot.slane %v13990_v4, 2 }
 0x25d   :  { %14113 = vst [vmem:[#allocation81_spill] sm:$0xff] %v9325_v32  ;;  %v9327_v15 = vpop.permute.xlu0 %5605  ;;  %14116 = vst [vmem:[#allocation83_spill] sm:$0xff] %v9332_v31  ;;  %v2061_v20 = vrot.slane %v13991_v44, 2  ;;  %v9347_v24 = vpack.i.bf16 %v2034_v49, %v2032_v3  ;;  %v2055_v13 = vrot.slane %v14121_v60, 2  ;;  %v2056_v6 = vrot.slane %v14122_v50, 2  ;;  %v14135_v50 = vld [vmem:[#allocation92_spill] sm:$0xff] }
 0x25e   :  { %14114 = vst [vmem:[#allocation73_spill] sm:$0xff] %v9327_v15  ;;  %5895 = vrot.lane.b32.xlu1 %v9001_v19, %s6908_s0  ;;  %v9351_v38 = vpack.i.bf16 %v2039_v16, %v2037_v54  ;;  %v2047_v15 = vsel %vm1919_vm6, %v2045_v11, %v2046_v56  ;;  %v14125_v32 = vrot.slane %v8936_v18, 2  ;;  %v9361_v10 = vpack.i.bf16 %v2044_v47, %v2042_v17 }
 0x25f   :  { %5900 = vrot.lane.b32.xlu0 %v9004_v21, %s6908_s0  ;;  %14120 = vst [vmem:[#allocation57_spill] sm:$0xff] %v9347_v24  ;;  %v2052_v3 = vsel %vm1919_vm6, %v2050_v34, %v2051_v37  ;;  %v14127_v44 = vrot.slane %v8948_v46, 2  ;;  %v2065_v54 = vrot.slane %v13998_v28, 2  ;;  %v2066_v16 = vrot.slane %v13999_v23, 2 }
 0x260   :  { %14123 = vst [vmem:[#allocation19_spill] sm:$0xff] %v9351_v38  ;;  %v9353_v30 = vpop.permute.xlu1 %5620  ;;  %v2049_v4 = vsel %vm1919_vm6, %v2046_v56, %v14125_v32  ;;  %14126 = vst [vmem:[#allocation64_spill] sm:$0xff] %v9361_v10  ;;  %v2078_v18 = vrot.slane %v9318_v2, 2  ;;  %v2070_v11 = vrot.slane %v14036_v12, 2  ;;  %v2071_v56 = vrot.slane %v14059_v63, 2  ;;  %v14128_v32 = vld [vmem:[#allocation4_spill] sm:$0xff] }
 0x261   :  { %14124 = vst [vmem:[#allocation16_spill] sm:$0xff] %v9353_v30  ;;  %v9355_v36 = vpop.permute.xlu0 %5615  ;;  %v2054_v49 = vsel %vm1919_vm6, %v2051_v37, %v14127_v44  ;;  %v2057_v46 = vsel %vm1919_vm6, %v2055_v13, %v2056_v6  ;;  %v14129_v17 = vrot.slane %v14128_v32, 2  ;;  %v9380_v47 = vpack.i.bf16 %v2049_v4, %v2047_v15  ;;  %v9395_v32 = vld [vmem:[#allocation2 + $0x340] sm:$0x3]  ;;  %v6870_v30 = vld [vmem:[#allocation2 + $0x138] sm:$0xff] }
 0x262   :  { %5905 = vrot.lane.b32.xlu1 %v9009_v61, %s6908_s0  ;;  %v14133_v37 = vrot.slane %v9187_v22, 1  ;;  %v14134_v2 = vrot.slane %v14059_v63, 1  ;;  %v2062_v60 = vsel %vm1919_vm6, %v2060_v0, %v2061_v20  ;;  %v14136_v13 = vrot.slane %v14135_v50, 2  ;;  %v14140_v50 = vld [vmem:[#allocation96_spill] sm:$0xff] }
 0x263   :  { %5910 = vrot.lane.b32.xlu0 %v9012_v25, %s6908_s0  ;;  %v2059_v28 = vsel %vm1919_vm6, %v2056_v6, %v14129_v17  ;;  %14130 = vst [vmem:[#allocation31_spill] sm:$0xff] %v9380_v47  ;;  %v9397_v15 = vpack.i.bf16 %v2054_v49, %v2052_v3  ;;  %v2067_v6 = vsel %vm1919_vm6, %v2065_v54, %v2066_v16  ;;  %v14138_v4 = vrot.slane %v9030_v7, 2 }
 0x264   :  { %v9382_v23 = vpop.permute.xlu1 %5630  ;;  %v1721_v12 = vsel %vm1566_vm5, %v14134_v2, %v14133_v37  ;;  %v2064_v44 = vsel %vm1919_vm6, %v2061_v20, %v14136_v13  ;;  %v2075_v63 = vrot.slane %v14067_v1, 2  ;;  %v2076_v37 = vrot.slane %v14074_v40, 2  ;;  %v14139_v2 = vld [vmem:[#allocation63_spill] sm:$0xff]  ;;  %v14141_v20 = vld [vmem:[#allocation18_spill] sm:$0xff] }
 0x265   :  { %14131 = vst [vmem:[#allocation32_spill] sm:$0xff] %v9382_v23  ;;  %v9384_v34 = vpop.permute.xlu0 %5625  ;;  %14137 = vst [vmem:[#allocation84_spill] sm:$0xff] %v9397_v15  ;;  %v2069_v17 = vsel %vm1919_vm6, %v2066_v16, %v14138_v4  ;;  %v2476_v0 = vrot.slane %v14139_v2, 1  ;;  %v2072_v3 = vsel %vm1919_vm6, %v2070_v11, %v2071_v56  ;;  %v9411_v49 = vpack.i.bf16 %v2059_v28, %v2057_v46 }
 0x266   :  { %14132 = vst [vmem:[#allocation65_spill] sm:$0xff] %v9384_v34  ;;  %5915 = vrot.lane.b32.xlu1 %v14140_v50, %s6908_s0  ;;  %v14143_v7 = vrot.slane %v9187_v22, 2  ;;  %v2478_v16 = vrot.slane %v9395_v32, 1  ;;  %v9417_v13 = vpack.i.bf16 %v2064_v44, %v2062_v60  ;;  %v9425_v34 = vpack.i.bf16 %v9218_v45, %v9207_v55 }
 0x267   :  { %5920 = vrot.lane.b32.xlu0 %v14141_v20, %s6908_s0  ;;  %14142 = vst [vmem:[#allocation29_spill] sm:$0xff] %v9411_v49  ;;  %v9428_v11 = vpack.i.bf16 %v1721_v12, %v9249_v14  ;;  %v9430_v46 = vpack.i.bf16 %v2069_v17, %v2067_v6  ;;  %v14150_v22 = vrot.slane %v14074_v40, 1  ;;  %v2079_v55 = vsel %vm1919_vm6, %v2076_v37, %v2078_v18  ;;  %v14154_v14 = vld [vmem:[#allocation62_spill] sm:$0xff] }
 0x268   :  { %v2074_v54 = vsel %vm1919_vm6, %v2071_v56, %v14143_v7  ;;  %14144 = vst [vmem:[#allocation28_spill] sm:$0xff] %v9417_v13  ;;  %v9419_v4 = vpop.permute.xlu1 %5640  ;;  %14147 = vst [vmem:[#allocation46_spill] sm:$0xff] %v9425_v34  ;;  %v14151_v56 = vrot.slane %v14067_v1, 1  ;;  %v2077_v7 = vsel %vm1919_vm6, %v2075_v63, %v2076_v37  ;;  %v14155_v1 = vrot.slane %v14154_v14, 1 }
 0x269   :  { %14145 = vst [vmem:[#allocation33_spill] sm:$0xff] %v9419_v4  ;;  %v9421_v2 = vpop.permute.xlu0 %5635  ;;  %14148 = vst [vmem:[#allocation37_spill] sm:$0xff] %v9428_v11  ;;  %v14152_v60 = vmov %v14150_v22  ;;  %v9446_v45 = vpack.i.bf16 %v2074_v54, %v2072_v3  ;;  %v2479_v40 = vsel %vm1566_vm5, %v2476_v0, %v2478_v16  ;;  %v9458_v18 = vpack.i.bf16 %v2079_v55, %v2077_v7 }
 0x26a   :  { %14146 = vst [vmem:[#allocation34_spill] sm:$0xff] %v9421_v2  ;;  %14149 = vst [vmem:[#allocation13_spill] sm:$0xff] %v9430_v46  ;;  %v1724_v28 = vsel %vm1566_vm5, %v14151_v56, %v14150_v22  ;;  %v1726_v44 = vsel %vm1566_vm5, %v14152_v60, %v1725_v62  ;;  %5925 = vrot.lane.b32.xlu1 %v9425_v34, %s6908_s0  ;;  %v2477_v12 = vsel %vm1566_vm5, %v14155_v1, %v2476_v0  ;;  %v14163_v0 = vld [vmem:[#allocation74_spill] sm:$0xff] }
 0x26b   :  { %5930 = vrot.lane.b32.xlu0 %v9428_v11, %s6908_s0  ;;  %14153 = vst [vmem:[#allocation38_spill] sm:$0xff] %v9446_v45  ;;  %v9456_v17 = vpack.i.bf16 %v1726_v44, %v1724_v28  ;;  %14159 = vst [vmem:[#allocation85_spill] sm:$0xff] %v9458_v18  ;;  %v9464_v63 = vpack.i.bf16 %v2479_v40, %v2477_v12  ;;  %v14176_v40 = vld [vmem:[#allocation24_spill] sm:$0xff] }
 0x26c   :  { %v9452_v6 = vpop.permute.xlu1 %5650 }
 0x26d   :  { %14156 = vst [vmem:[#allocation42_spill] sm:$0xff] %v9452_v6  ;;  %v9454_v62 = vpop.permute.xlu0 %5645  ;;  %14158 = vst [vmem:[#allocation40_spill] sm:$0xff] %v9456_v17 }
 0x26e   :  { %14157 = vst [vmem:[#allocation39_spill] sm:$0xff] %v9454_v62  ;;  %5935 = vrot.lane.b32.xlu1 %v9456_v17, %s6908_s0  ;;  %14160 = vst [vmem:[#allocation44_spill] sm:$0xff] %v9464_v63 }
 0x26f   :  { %5945 = vrot.lane.b32.xlu0 %v9160_v57, %s6910_s29 }
 0x270   :  { %v9466_v37 = vpop.permute.xlu1 %5660 }
 0x271   :  { %14161 = vst [vmem:[#allocation45_spill] sm:$0xff] %v9466_v37  ;;  %v9468_v3 = vpop.permute.xlu0 %5655 }
 0x272   :  { %14162 = vst [vmem:[#allocation43_spill] sm:$0xff] %v9468_v3  ;;  %5940 = vrot.lane.b32.xlu1 %v14163_v0, %s6910_s29 }
 0x273   :  { %5955 = vrot.lane.b32.xlu0 %v9164_v27, %s6910_s29 }
 0x274   :  { %v9474_v54 = vpop.permute.xlu1 %5670 }
 0x275   :  { %14164 = vst [vmem:[#allocation49_spill] sm:$0xff] %v9474_v54  ;;  %v9476_v16 = vpop.permute.xlu0 %5665 }
 0x276   :  { %14165 = vst [vmem:[#allocation50_spill] sm:$0xff] %v9476_v16  ;;  %5950 = vrot.lane.b32.xlu1 %v9148_v52, %s6910_s29 }
 0x277   :  { %5965 = vrot.lane.b32.xlu0 %v9182_v26, %s6910_s29 }
 0x278   :  { %v9482_v22 = vpop.permute.xlu1 %5680 }
 0x279   :  { %14166 = vst [vmem:[#allocation47_spill] sm:$0xff] %v9482_v22  ;;  %v9484_v56 = vpop.permute.xlu0 %5675 }
 0x27a   :  { %14167 = vst [vmem:[#allocation48_spill] sm:$0xff] %v9484_v56  ;;  %5960 = vrot.lane.b32.xlu1 %v9150_v35, %s6910_s29  ;;  %v14179_v56 = vld [vmem:[#allocation26_spill] sm:$0xff] }
 0x27b   :  { %5975 = vrot.lane.b32.xlu0 %v9190_v51, %s6910_s29 }
 0x27c   :  { %v9490_v28 = vpop.permute.xlu1 %5690 }
 0x27d   :  { %14168 = vst [vmem:[#allocation53_spill] sm:$0xff] %v9490_v28  ;;  %v9492_v60 = vpop.permute.xlu0 %5685 }
 0x27e   :  { %14169 = vst [vmem:[#allocation54_spill] sm:$0xff] %v9492_v60  ;;  %5970 = vrot.lane.b32.xlu1 %v9162_v48, %s6910_s29 }
 0x27f   :  { %5985 = vrot.lane.b32.xlu0 %v9194_v59, %s6910_s29 }
 0x280   :  { %v9498_v44 = vpop.permute.xlu1 %5700 }
 0x281   :  { %14170 = vst [vmem:[#allocation4_spill] sm:$0xff] %v9498_v44  ;;  %v9500_v7 = vpop.permute.xlu0 %5695 }
 0x282   :  { %14171 = vst [vmem:[#allocation92_spill] sm:$0xff] %v9500_v7  ;;  %5980 = vrot.lane.b32.xlu1 %v9178_v29, %s6910_s29  ;;  %v6864_v7 = vld [vmem:[#allocation2 + $0xc0] sm:$0xff] }
 0x283   :  { %5995 = vrot.lane.b32.xlu0 %v9209_v53, %s6910_s29 }
 0x284   :  { %v9506_v55 = vpop.permute.xlu1 %5710 }
 0x285   :  { %14172 = vst [vmem:[#allocation63_spill] sm:$0xff] %v9506_v55  ;;  %v9508_v14 = vpop.permute.xlu0 %5705 }
 0x286   :  { %14173 = vst [vmem:[#allocation62_spill] sm:$0xff] %v9508_v14  ;;  %5990 = vrot.lane.b32.xlu1 %v9184_v5, %s6910_s29  ;;  %v6857_v14 = vld [vmem:[#allocation2 + $0xb0] sm:$0xff] }
 0x287   :  { %6005 = vrot.lane.b32.xlu0 %v9211_v9, %s6910_s29 }
 0x288   :  { %v9514_v1 = vpop.permute.xlu1 %5720 }
 0x289   :  { %14174 = vst [vmem:[#allocation74_spill] sm:$0xff] %v9514_v1  ;;  %v9516_v12 = vpop.permute.xlu0 %5715 }
 0x28a   :  { %14175 = vst [vmem:[#allocation97_spill] sm:$0xff] %v9516_v12  ;;  %6000 = vrot.lane.b32.xlu1 %v14176_v40, %s6910_s29 }
 0x28b   :  { %6020 = vrot.lane.b32.xlu0 %v9301_v58, %s6910_s29 }
 0x28c   :  { %v9522_v60 = vpop.permute.xlu1 %5730 }
 0x28d   :  { %14177 = vst [vmem:[#allocation24_spill] sm:$0xff] %v9522_v60  ;;  %v9524_v28 = vpop.permute.xlu0 %5725 }
 0x28e   :  { %14178 = vst [vmem:[#allocation98_spill] sm:$0xff] %v9524_v28  ;;  %6010 = vrot.lane.b32.xlu1 %v14179_v56, %s6910_s29  ;;  %v14226_v28 = vld [vmem:[#allocation89_spill] sm:$0xff] }
 0x28f   :  { %6030 = vrot.lane.b32.xlu0 %v9323_v8, %s6910_s29 }
 0x290   :  { %v9530_v22 = vpop.permute.xlu1 %5740 }
 0x291   :  { %14180 = vst [vmem:[#allocation26_spill] sm:$0xff] %v9530_v22  ;;  %v9532_v16 = vpop.permute.xlu0 %5735 }
 0x292   :  { %14181 = vst [vmem:[#allocation99_spill] sm:$0xff] %v9532_v16  ;;  %6015 = vrot.lane.b32.xlu1 %v9299_v43, %s6910_s29  ;;  %v14222_v16 = vld [vmem:[#allocation55_spill] sm:$0xff] }
 0x293   :  { %6040 = vrot.lane.b32.xlu0 %v9347_v24, %s6910_s29 }
 0x294   :  { %v9538_v54 = vpop.permute.xlu1 %5750 }
 0x295   :  { %14182 = vst [vmem:[#allocation100_spill] sm:$0xff] %v9538_v54  ;;  %v9540_v3 = vpop.permute.xlu0 %5745 }
 0x296   :  { %14183 = vst [vmem:[#allocation101_spill] sm:$0xff] %v9540_v3  ;;  %6025 = vrot.lane.b32.xlu1 %v9321_v42, %s6910_s29  ;;  %v14218_v3 = vld [vmem:[#allocation17_spill] sm:$0xff] }
 0x297   :  { %6050 = vrot.lane.b32.xlu0 %v9361_v10, %s6910_s29 }
 0x298   :  { %v9546_v8 = vpop.permute.xlu1 %5760 }
 0x299   :  { %14184 = vst [vmem:[#allocation102_spill] sm:$0xff] %v9546_v8  ;;  %v9548_v58 = vpop.permute.xlu0 %5755 }
 0x29a   :  { %14185 = vst [vmem:[#allocation103_spill] sm:$0xff] %v9548_v58  ;;  %6035 = vrot.lane.b32.xlu1 %v9332_v31, %s6910_s29  ;;  %v14210_v58 = vld [vmem:[#allocation82_spill] sm:$0xff] }
 0x29b   :  { %6060 = vrot.lane.b32.xlu0 %v9397_v15, %s6910_s29 }
 0x29c   :  { %v9554_v24 = vpop.permute.xlu1 %5775 }
 0x29d   :  { %14186 = vst [vmem:[#allocation104_spill] sm:$0xff] %v9554_v24  ;;  %v9556_v43 = vpop.permute.xlu0 %5765 }
 0x29e   :  { %14187 = vst [vmem:[#allocation105_spill] sm:$0xff] %v9556_v43  ;;  %6045 = vrot.lane.b32.xlu1 %v9351_v38, %s6910_s29  ;;  %v14201_v43 = vld [vmem:[#allocation68_spill] sm:$0xff] }
 0x29f   :  { %6070 = vrot.lane.b32.xlu0 %v9417_v13, %s6910_s29  ;;  %v14192_v13 = vld [vmem:[#allocation15_spill] sm:$0xff] }
 0x2a0   :  { %v9562_v10 = vpop.permute.xlu1 %5785 }
 0x2a1   :  { %14188 = vst [vmem:[#allocation106_spill] sm:$0xff] %v9562_v10  ;;  %v9564_v42 = vpop.permute.xlu0 %5770 }
 0x2a2   :  { %14189 = vst [vmem:[#allocation107_spill] sm:$0xff] %v9564_v42  ;;  %6055 = vrot.lane.b32.xlu1 %v9380_v47, %s6910_s29 }
 0x2a3   :  { %6080 = vrot.lane.b32.xlu0 %v9446_v45, %s6910_s29  ;;  %v14195_v45 = vld [vmem:[#allocation69_spill] sm:$0xff] }
 0x2a4   :  { %v9570_v15 = vpop.permute.xlu1 %5795 }
 0x2a5   :  { %14190 = vst [vmem:[#allocation108_spill] sm:$0xff] %v9570_v15  ;;  %v9572_v31 = vpop.permute.xlu0 %5780  ;;  %v14214_v15 = vld [vmem:[#allocation87_spill] sm:$0xff] }
 0x2a6   :  { %14191 = vst [vmem:[#allocation109_spill] sm:$0xff] %v9572_v31  ;;  %6065 = vrot.lane.b32.xlu1 %v9411_v49, %s6910_s29  ;;  %v14198_v49 = vld [vmem:[#allocation75_spill] sm:$0xff] }
 0x2a7   :  { %6090 = vrot.lane.b32.xlu0 %v14192_v13, %s6914_s4 }
 0x2a8   :  { %v9578_v38 = vpop.permute.xlu1 %5800 }
 0x2a9   :  { %14193 = vst [vmem:[#allocation15_spill] sm:$0xff] %v9578_v38  ;;  %v9580_v42 = vpop.permute.xlu0 %5790 }
 0x2aa   :  { %14194 = vst [vmem:[#allocation110_spill] sm:$0xff] %v9580_v42  ;;  %6075 = vrot.lane.b32.xlu1 %v9430_v46, %s6910_s29  ;;  %v14202_v46 = vld [vmem:[#allocation77_spill] sm:$0xff] }
 0x2ab   :  { %6100 = vrot.lane.b32.xlu0 %v14195_v45, %s6914_s4 }
 0x2ac   :  { %v9586_v47 = vpop.permute.xlu1 %5810 }
 0x2ad   :  { %14196 = vst [vmem:[#allocation69_spill] sm:$0xff] %v9586_v47  ;;  %v9588_v31 = vpop.permute.xlu0 %5805 }
 0x2ae   :  { %14197 = vst [vmem:[#allocation111_spill] sm:$0xff] %v9588_v31  ;;  %6085 = vrot.lane.b32.xlu1 %v9458_v18, %s6910_s29  ;;  %v14205_v31 = vld [vmem:[#allocation76_spill] sm:$0xff]  ;;  %v14206_v18 = vld [vmem:[#allocation79_spill] sm:$0xff] }
 0x2af   :  { %6110 = vrot.lane.b32.xlu0 %v14198_v49, %s6914_s4 }
 0x2b0   :  { %v9594_v13 = vpop.permute.xlu1 %5820 }
 0x2b1   :  { %14199 = vst [vmem:[#allocation75_spill] sm:$0xff] %v9594_v13  ;;  %v9596_v10 = vpop.permute.xlu0 %5815 }
 0x2b2   :  { %14200 = vst [vmem:[#allocation112_spill] sm:$0xff] %v9596_v10  ;;  %6095 = vrot.lane.b32.xlu1 %v14201_v43, %s6914_s4  ;;  %v14209_v10 = vld [vmem:[#allocation78_spill] sm:$0xff] }
 0x2b3   :  { %6120 = vrot.lane.b32.xlu0 %v14202_v46, %s6914_s4 }
 0x2b4   :  { %v9602_v24 = vpop.permute.xlu1 %5830  ;;  %v14351_v60 = vld [vmem:[#allocation69_spill] sm:$0xff] }
 0x2b5   :  { %14203 = vst [vmem:[#allocation68_spill] sm:$0xff] %v9602_v24  ;;  %v9604_v47 = vpop.permute.xlu0 %5825 }
 0x2b6   :  { %14204 = vst [vmem:[#allocation77_spill] sm:$0xff] %v9604_v47  ;;  %6105 = vrot.lane.b32.xlu1 %v14205_v31, %s6914_s4  ;;  %v14213_v47 = vld [vmem:[#allocation80_spill] sm:$0xff] }
 0x2b7   :  { %6130 = vrot.lane.b32.xlu0 %v14206_v18, %s6914_s4 }
 0x2b8   :  { %v9610_v42 = vpop.permute.xlu1 %5840 }
 0x2b9   :  { %14207 = vst [vmem:[#allocation76_spill] sm:$0xff] %v9610_v42  ;;  %v9612_v13 = vpop.permute.xlu0 %5835  ;;  %v14356_v6 = vld [vmem:[#allocation112_spill] sm:$0xff] }
 0x2ba   :  { %14208 = vst [vmem:[#allocation79_spill] sm:$0xff] %v9612_v13  ;;  %6115 = vrot.lane.b32.xlu1 %v14209_v10, %s6914_s4  ;;  %v14217_v13 = vld [vmem:[#allocation86_spill] sm:$0xff]  ;;  %v5818_v1 = vunpack.i.h.bf16 %v14356_v6 }
 0x2bb   :  { %6140 = vrot.lane.b32.xlu0 %v14210_v58, %s6914_s4 }
 0x2bc   :  { %v9618_v38 = vpop.permute.xlu1 %5850 }
 0x2bd   :  { %14211 = vst [vmem:[#allocation78_spill] sm:$0xff] %v9618_v38  ;;  %v9620_v24 = vpop.permute.xlu0 %5845 }
 0x2be   :  { %14212 = vst [vmem:[#allocation82_spill] sm:$0xff] %v9620_v24  ;;  %6125 = vrot.lane.b32.xlu1 %v14213_v47, %s6914_s4  ;;  %v14221_v24 = vld [vmem:[#allocation14_spill] sm:$0xff] }
 0x2bf   :  { %6150 = vrot.lane.b32.xlu0 %v14214_v15, %s6914_s4 }
 0x2c0   :  { %v9626_v8 = vpop.permute.xlu1 %5860  ;;  %v14360_v55 = vld [vmem:[#allocation76_spill] sm:$0xff] }
 0x2c1   :  { %14215 = vst [vmem:[#allocation80_spill] sm:$0xff] %v9626_v8  ;;  %v9628_v42 = vpop.permute.xlu0 %5855 }
 0x2c2   :  { %14216 = vst [vmem:[#allocation87_spill] sm:$0xff] %v9628_v42  ;;  %6135 = vrot.lane.b32.xlu1 %v14217_v13, %s6914_s4  ;;  %v14225_v42 = vld [vmem:[#allocation12_spill] sm:$0xff] }
 0x2c3   :  { %6160 = vrot.lane.b32.xlu0 %v14218_v3, %s6914_s4 }
 0x2c4   :  { %v9634_v54 = vpop.permute.xlu1 %5865 }
 0x2c5   :  { %14219 = vst [vmem:[#allocation86_spill] sm:$0xff] %v9634_v54  ;;  %v9636_v38 = vpop.permute.xlu0 %5870 }
 0x2c6   :  { %14220 = vst [vmem:[#allocation113_spill] sm:$0xff] %v9636_v38  ;;  %6145 = vrot.lane.b32.xlu1 %v14221_v24, %s6914_s4  ;;  %v14229_v38 = vld [vmem:[#allocation61_spill] sm:$0xff] }
 0x2c7   :  { %6170 = vrot.lane.b32.xlu0 %v14222_v16, %s6914_s4 }
 0x2c8   :  { %v9642_v22 = vpop.permute.xlu1 %5875 }
 0x2c9   :  { %14223 = vst [vmem:[#allocation14_spill] sm:$0xff] %v9642_v22  ;;  %v9644_v8 = vpop.permute.xlu0 %5880 }
 0x2ca   :  { %14224 = vst [vmem:[#allocation55_spill] sm:$0xff] %v9644_v8  ;;  %6155 = vrot.lane.b32.xlu1 %v14225_v42, %s6914_s4  ;;  %v14232_v8 = vld [vmem:[#allocation88_spill] sm:$0xff] }
 0x2cb   :  { %6180 = vrot.lane.b32.xlu0 %v14226_v28, %s6914_s4 }
 0x2cc   :  { %v9650_v3 = vpop.permute.xlu1 %5885 }
 0x2cd   :  { %14227 = vst [vmem:[#allocation12_spill] sm:$0xff] %v9650_v3  ;;  %v9652_v54 = vpop.permute.xlu0 %5890 }
 0x2ce   :  { %14228 = vst [vmem:[#allocation114_spill] sm:$0xff] %v9652_v54  ;;  %6165 = vrot.lane.b32.xlu1 %v14229_v38, %s6914_s4  ;;  %v14235_v54 = vld [vmem:[#allocation30_spill] sm:$0xff] }
 0x2cf   :  { %6190 = vrot.lane.b32.xlu0 %v8973_v33, %s6914_s4 }
 0x2d0   :  { %v9658_v16 = vpop.permute.xlu1 %5895 }
 0x2d1   :  { %14230 = vst [vmem:[#allocation61_spill] sm:$0xff] %v9658_v16  ;;  %v9660_v22 = vpop.permute.xlu0 %5900 }
 0x2d2   :  { %14231 = vst [vmem:[#allocation115_spill] sm:$0xff] %v9660_v22  ;;  %6175 = vrot.lane.b32.xlu1 %v14232_v8, %s6914_s4 }
 0x2d3   :  { %6200 = vrot.lane.b32.xlu0 %v9001_v19, %s6914_s4 }
 0x2d4   :  { %v9666_v28 = vpop.permute.xlu1 %5905 }
 0x2d5   :  { %14233 = vst [vmem:[#allocation88_spill] sm:$0xff] %v9666_v28  ;;  %v9668_v3 = vpop.permute.xlu0 %5910 }
 0x2d6   :  { %14234 = vst [vmem:[#allocation116_spill] sm:$0xff] %v9668_v3  ;;  %6185 = vrot.lane.b32.xlu1 %v14235_v54, %s6914_s4  ;;  %v14287_v54 = vld [vmem:[#allocation66_spill] sm:$0xff] }
 0x2d7   :  { %6210 = vrot.lane.b32.xlu0 %v9009_v61, %s6914_s4 }
 0x2d8   :  { %v9674_v33 = vpop.permute.xlu1 %5915 }
 0x2d9   :  { %14236 = vst [vmem:[#allocation117_spill] sm:$0xff] %v9674_v33  ;;  %v9676_v16 = vpop.permute.xlu0 %5920 }
 0x2da   :  { %14237 = vst [vmem:[#allocation118_spill] sm:$0xff] %v9676_v16  ;;  %6195 = vrot.lane.b32.xlu1 %v8977_v41, %s6914_s4 }
 0x2db   :  { %6220 = vrot.lane.b32.xlu0 %v14140_v50, %s6914_s4 }
 0x2dc   :  { %v9682_v22 = vpop.permute.xlu1 %5925 }
 0x2dd   :  { %14238 = vst [vmem:[#allocation119_spill] sm:$0xff] %v9682_v22  ;;  %v9684_v28 = vpop.permute.xlu0 %5930 }
 0x2de   :  { %14239 = vst [vmem:[#allocation120_spill] sm:$0xff] %v9684_v28  ;;  %6205 = vrot.lane.b32.xlu1 %v9004_v21, %s6914_s4 }
 0x2df   :  { %6230 = vrot.lane.b32.xlu0 %v9425_v34, %s6914_s4 }
 0x2e0   :  { %v9690_v3 = vpop.permute.xlu1 %5935 }
 0x2e1   :  { %14240 = vst [vmem:[#allocation121_spill] sm:$0xff] %v9690_v3  ;;  %v9692_v33 = vpop.permute.xlu0 %5945 }
 0x2e2   :  { %6215 = vrot.lane.b32.xlu1 %v9012_v25, %s6914_s4 }
 0x2e3   :  { %6240 = vrot.lane.b32.xlu0 %v9456_v17, %s6914_s4 }
 0x2e4   :  { %v9698_v16 = vpop.permute.xlu1 %5940 }
 0x2e5   :  { %v9700_v22 = vpop.permute.xlu0 %5955 }
 0x2e6   :  { %6225 = vrot.lane.b32.xlu1 %v14141_v20, %s6914_s4 }
 0x2e7   :  { %6250 = vrot.lane.b32.xlu0 %v14163_v0, %s6915_s14 }
 0x2e8   :  { %v9706_v3 = vpop.permute.xlu1 %5950 }
 0x2e9   :  { %v9708_v28 = vpop.permute.xlu0 %5965 }
 0x2ea   :  { %14241 = vst [vmem:[#allocation122_spill] sm:$0xff] %v9708_v28  ;;  %6235 = vrot.lane.b32.xlu1 %v9428_v11, %s6914_s4 }
 0x2eb   :  { %6260 = vrot.lane.b32.xlu0 %v9148_v52, %s6915_s14 }
 0x2ec   :  { %v9714_v17 = vpop.permute.xlu1 %5960 }
 0x2ed   :  { %14242 = vst [vmem:[#allocation123_spill] sm:$0xff] %v9714_v17  ;;  %v9716_v34 = vpop.permute.xlu0 %5975 }
 0x2ee   :  { %14243 = vst [vmem:[#allocation124_spill] sm:$0xff] %v9716_v34  ;;  %6245 = vrot.lane.b32.xlu1 %v9464_v63, %s6914_s4 }
 0x2ef   :  { %6270 = vrot.lane.b32.xlu0 %v9150_v35, %s6915_s14 }
 0x2f0   :  { %v9722_v0 = vpop.permute.xlu1 %5970 }
 0x2f1   :  { %14244 = vst [vmem:[#allocation125_spill] sm:$0xff] %v9722_v0  ;;  %v9724_v20 = vpop.permute.xlu0 %5985 }
 0x2f2   :  { %14245 = vst [vmem:[#allocation126_spill] sm:$0xff] %v9724_v20  ;;  %6255 = vrot.lane.b32.xlu1 %v9160_v57, %s6915_s14 }
 0x2f3   :  { %6280 = vrot.lane.b32.xlu0 %v9162_v48, %s6915_s14 }
 0x2f4   :  { %v9730_v11 = vpop.permute.xlu1 %5980 }
 0x2f5   :  { %14246 = vst [vmem:[#allocation127_spill] sm:$0xff] %v9730_v11  ;;  %v9732_v50 = vpop.permute.xlu0 %5995 }
 0x2f6   :  { %14247 = vst [vmem:[#allocation128_spill] sm:$0xff] %v9732_v50  ;;  %6265 = vrot.lane.b32.xlu1 %v9164_v27, %s6915_s14 }
 0x2f7   :  { %6290 = vrot.lane.b32.xlu0 %v9178_v29, %s6915_s14 }
 0x2f8   :  { %v9738_v63 = vpop.permute.xlu1 %5990 }
 0x2f9   :  { %14248 = vst [vmem:[#allocation129_spill] sm:$0xff] %v9738_v63  ;;  %v9740_v25 = vpop.permute.xlu0 %6005 }
 0x2fa   :  { %14249 = vst [vmem:[#allocation130_spill] sm:$0xff] %v9740_v25  ;;  %6275 = vrot.lane.b32.xlu1 %v9182_v26, %s6915_s14 }
 0x2fb   :  { %6300 = vrot.lane.b32.xlu0 %v9184_v5, %s6915_s14 }
 0x2fc   :  { %v9746_v61 = vpop.permute.xlu1 %6000 }
 0x2fd   :  { %14250 = vst [vmem:[#allocation131_spill] sm:$0xff] %v9746_v61  ;;  %v9748_v21 = vpop.permute.xlu0 %6020 }
 0x2fe   :  { %14251 = vst [vmem:[#allocation132_spill] sm:$0xff] %v9748_v21  ;;  %6285 = vrot.lane.b32.xlu1 %v9190_v51, %s6915_s14  ;;  %v6814_v21 = vld [vmem:[%s13350_s5] sm:$0xff]  }
 0x2ff   :  { %6310 = vrot.lane.b32.xlu0 %v14176_v40, %s6915_s14  ;;  %5418 = vmatprep.subr.bf16.mxu1 %v6814_v21 }
 0x300   :  { %v9754_v19 = vpop.permute.xlu1 %6010  ;;  %5419 = vmatpush3.bf16.msra.mxu1 %v6814_v21  ;;  %v6816_v21 = vld [vmem:[%s13350_s5 + $0x10] ss:$0 sps:$4 sm:$0x33]  }
 0x301   :  { %14252 = vst [vmem:[#allocation133_spill] sm:$0xff] %v9754_v19  ;;  %v9756_v41 = vpop.permute.xlu0 %6030 }
 0x302   :  { %14253 = vst [vmem:[#allocation134_spill] sm:$0xff] %v9756_v41  ;;  %6295 = vrot.lane.b32.xlu1 %v9194_v59, %s6915_s14 }
 0x303   :  { %6320 = vrot.lane.b32.xlu0 %v14179_v56, %s6915_s14 }
 0x304   :  { %v9762_v25 = vpop.permute.xlu1 %6015 }
 0x305   :  { %14254 = vst [vmem:[#allocation135_spill] sm:$0xff] %v9762_v25  ;;  %v9764_v61 = vpop.permute.xlu0 %6040 }
 0x306   :  { %14255 = vst [vmem:[#allocation136_spill] sm:$0xff] %v9764_v61  ;;  %6305 = vrot.lane.b32.xlu1 %v9209_v53, %s6915_s14  ;;  %v6815_v61 = vld [vmem:[%s13350_s5 + $0x8] sm:$0xff]  }
 0x307   :  { %6330 = vrot.lane.b32.xlu0 %v14201_v43, %s6911_s30  ;;  %5420 = vmatprep.subr.bf16.mxu1 %v6815_v61 }
 0x308   :  { %v9773_v41 = vpop.permute.xlu1 %6025  ;;  %5421 = vmatpush3.bf16.msra.mxu1 %v6815_v61 }
 0x309   :  { %14256 = vst [vmem:[#allocation137_spill] sm:$0xff] %v9773_v41  ;;  %v9775_v19 = vpop.permute.xlu0 %6050  ;;  %v4144_v41 = vsel %vm371_vm1, %v6816_v21, 0  ;;  %5489 = vmatprep.subr.msk.bf16.mxu1 %vm371_vm1, %v6816_v21 }
 0x30a   :  { %14257 = vst [vmem:[#allocation138_spill] sm:$0xff] %v9775_v19  ;;  %6315 = vrot.lane.b32.xlu1 %v9211_v9, %s6915_s14  ;;  %v14260_v19 = vld [vmem:[#allocation5_spill] sm:$0xff] }
 0x30b   :  { %6340 = vrot.lane.b32.xlu0 %v9160_v57, %s6912_s9 }
 0x30c   :  { %v9784_v25 = vpop.permute.xlu1 %6035  ;;  %5423 = vmatpush3.bf16.msra.mxu1 %v4144_v41  ;;  %v14267_v41 = vld [vmem:[#allocation36_spill] sm:$0xff] }
 0x30d   :  { %14258 = vst [vmem:[#allocation139_spill] sm:$0xff] %v9784_v25  ;;  %v9786_v43 = vpop.permute.xlu0 %6060 }
 0x30e   :  { %14259 = vst [vmem:[#allocation140_spill] sm:$0xff] %v9786_v43  ;;  %6325 = vrot.lane.b32.xlu1 %v14260_v19, %s6915_s14 }
 0x30f   :  { %6350 = vrot.lane.b32.xlu0 %v14205_v31, %s6911_s30 }
 0x310   :  { %v9797_v57 = vpop.permute.xlu1 %6045 }
 0x311   :  { %14261 = vst [vmem:[#allocation5_spill] sm:$0xff] %v9797_v57  ;;  %v9799_v25 = vpop.permute.xlu0 %6070 }
 0x312   :  { %14262 = vst [vmem:[#allocation141_spill] sm:$0xff] %v9799_v25  ;;  %6335 = vrot.lane.b32.xlu1 %v14195_v45, %s6911_s30  ;;  %v5508_v25 = vunpack.i.h.bf16 %v14267_v41  ;;  %v5507_v45 = vunpack.i.l.bf16 %v14267_v41  ;;  %v6822_v41 = vld [vmem:[#allocation2] sm:$0xff] }
 0x313   :  { %6360 = vrot.lane.b32.xlu0 %v9164_v27, %s6912_s9  ;;  %v14268_v27 = vld [vmem:[#allocation93_spill] sm:$0xff] }
 0x314   :  { %v9805_v61 = vpop.permute.xlu1 %6055  ;;  %v3476_v11 = vsel %vm664_vm2, %v6822_v41, %v5507_v45  ;;  %v6825_v45 = vld [vmem:[#allocation2 + $0x1b8] sm:$0xff] }
 0x315   :  { %14263 = vst [vmem:[#allocation142_spill] sm:$0xff] %v9805_v61  ;;  %v9807_v43 = vpop.permute.xlu0 %6080 }
 0x316   :  { %14264 = vst [vmem:[#allocation143_spill] sm:$0xff] %v9807_v43  ;;  %6345 = vrot.lane.b32.xlu1 %v9148_v52, %s6912_s9  ;;  %v5513_v43 = vunpack.i.h.bf16 %v14268_v27  ;;  %v5512_v52 = vunpack.i.l.bf16 %v14268_v27  ;;  %v9838_v27 = vld [vmem:[#allocation2 + $0x338] sm:$0xff] }
 0x317   :  { %6370 = vrot.lane.b32.xlu0 %v14209_v10, %s6911_s30 }
 0x318   :  { %v9813_v31 = vpop.permute.xlu1 %6065  ;;  %v3509_v41 = vsel %vm664_vm2, %v6825_v45, %v5513_v43  ;;  %v14288_v45 = vld [vmem:[#allocation22_spill] sm:$0xff] }
 0x319   :  { %14265 = vst [vmem:[#allocation144_spill] sm:$0xff] %v9813_v31  ;;  %v9815_v21 = vpop.permute.xlu0 %6090  ;;  %v6821_v31 = vld [vmem:[#allocation2 + $0x8] sm:$0xff] }
 0x31a   :  { %14266 = vst [vmem:[#allocation145_spill] sm:$0xff] %v9815_v21  ;;  %6355 = vrot.lane.b32.xlu1 %v14198_v49, %s6911_s30  ;;  %v3477_v57 = vsel %vm664_vm2, %v6821_v31, %v5508_v25  ;;  %v14271_v21 = vld [vmem:[#allocation58_spill] sm:$0xff]  ;;  %v9841_v31 = vld [vmem:[#allocation2 + $0x330] sm:$0xff] }
 0x31b   :  { %6380 = vrot.lane.b32.xlu0 %v9182_v26, %s6912_s9  ;;  %v5517_v63 = vunpack.i.l.bf16 %v14271_v21  ;;  %v5518_v49 = vunpack.i.h.bf16 %v14271_v21  ;;  %v14272_v26 = vld [vmem:[#allocation21_spill] sm:$0xff]  ;;  %14273 = vst [vmem:[#allocation58_spill] sm:$0xff] %v9838_v27  ;;  %v14323_v23 = vrot.slane %v9841_v31, 2 }
 0x31c   :  { %v9825_v61 = vpop.permute.xlu1 %6075  ;;  %v5523_v50 = vunpack.i.h.bf16 %v14272_v26  ;;  %14274 = vst [vmem:[#allocation21_spill] sm:$0xff] %v9841_v31  ;;  %v5522_v21 = vunpack.i.l.bf16 %v14272_v26  ;;  %v14295_v25 = vld [vmem:[#allocation9_spill] sm:$0xff]  ;;  %v14341_v31 = vld [vmem:[#allocation108_spill] sm:$0xff] }
 0x31d   :  { %14269 = vst [vmem:[#allocation36_spill] sm:$0xff] %v9825_v61  ;;  %v9827_v10 = vpop.permute.xlu0 %6100  ;;  %v3541_v28 = vsel %vm3540_vm7, %v3476_v11, %v5517_v63  ;;  %v3542_v43 = vsel %vm3540_vm7, %v3477_v57, %v5518_v49  ;;  %v14281_v49 = vld [vmem:[#allocation60_spill] sm:$0xff]  ;;  %v14291_v57 = vld [vmem:[#allocation3_spill] sm:$0xff] }
 0x31e   :  { %14270 = vst [vmem:[#allocation93_spill] sm:$0xff] %v9827_v10  ;;  %6365 = vrot.lane.b32.xlu1 %v9150_v35, %s6912_s9  ;;  %v6826_v10 = vld [vmem:[#allocation2 + $0x1b0] sm:$0xff]  ;;  %v14275_v35 = vld [vmem:[#allocation23_spill] sm:$0xff]  ;;  %v9936_v63 = vld [vmem:[#allocation2 + $0x248] sm:$0xff] }
 0x31f   :  { %6390 = vrot.lane.b32.xlu0 %v14213_v47, %s6911_s30  ;;  %v3508_v20 = vsel %vm664_vm2, %v6826_v10, %v5512_v52  ;;  %v5538_v0 = vunpack.i.h.bf16 %v14275_v35  ;;  %v5537_v47 = vunpack.i.l.bf16 %v14275_v35  ;;  %v9860_v10 = vsel %vm3540_vm7, %v3509_v41, %v5523_v50  ;;  %v6874_v11 = vld [vmem:[#allocation2 + $0x168] sm:$0xff] }
 0x320   :  { %v9849_v34 = vpop.permute.xlu1 %6085  ;;  %v9867_v35 = vsel %vm3540_vm7, %v3508_v20, %v5522_v21  ;;  %v14286_v20 = vld [vmem:[#allocation20_spill] sm:$0xff]  ;;  %v5618_v52 = vunpack.i.h.bf16 %v9355_v36  ;;  %v9934_v21 = vld [vmem:[#allocation2 + $0x240] sm:$0xff] }
 0x321   :  { %14276 = vst [vmem:[#allocation23_spill] sm:$0xff] %v9849_v34  ;;  %v9851_v17 = vpop.permute.xlu0 %6110  ;;  %v9874_v50 = vsel %vm3605_vm8, %v3542_v43, %v5538_v0  ;;  %v9877_v41 = vsel %vm3605_vm8, %v3541_v28, %v5537_v47  ;;  %v14289_v43 = vld [vmem:[#allocation25_spill] sm:$0xff]  ;;  %v14290_v47 = vld [vmem:[#allocation67_spill] sm:$0xff]  ;;  %v5617_v0 = vunpack.i.l.bf16 %v9355_v36 }
 0x322   :  { %14277 = vst [vmem:[#allocation146_spill] sm:$0xff] %v9851_v17  ;;  %6375 = vrot.lane.b32.xlu1 %v14202_v46, %s6911_s30  ;;  %14282 = vst [vmem:[#allocation60_spill] sm:$0xff] %v9874_v50  ;;  %v14297_v50 = vld [vmem:[#allocation8_spill] sm:$0xff]  ;;  %v9951_v28 = vld [vmem:[#allocation2 + $0x270] sm:$0xff] }
 0x323   :  { %6400 = vrot.lane.b32.xlu0 %v9190_v51, %s6912_s9  ;;  %14283 = vst [vmem:[#allocation147_spill] sm:$0xff] %v9877_v41  ;;  %14305 = vst [vmem:[#allocation9_spill] sm:$0xff] %v9951_v28  ;;  %v9976_v36 = vld [vmem:[#allocation2 + $0x2a0] sm:$0xff]  ;;  %v9978_v28 = vld [vmem:[#allocation2 + $0x2a8] sm:$0xff] }
 0x324   :  { %v9879_v46 = vpop.permute.xlu1 %6095  ;;  %14311 = vst [vmem:[#allocation153_spill] sm:$0xff] %v9976_v36  ;;  %14312 = vst [vmem:[#allocation154_spill] sm:$0xff] %v9978_v28  ;;  %v9984_v34 = vld [vmem:[#allocation2 + $0x2c0] sm:$0xff]  ;;  %v9998_v36 = vld [vmem:[#allocation2 + $0x2d8] sm:$0xff] }
 0x325   :  { %14284 = vst [vmem:[#allocation148_spill] sm:$0xff] %v9879_v46  ;;  %v9881_v51 = vpop.permute.xlu0 %6120  ;;  %v9959_v46 = vld [vmem:[#allocation2 + $0x290] sm:$0xff]  ;;  %14314 = vst [vmem:[#allocation156_spill] sm:$0xff] %v9984_v34  ;;  %v14324_v34 = vrot.slane %v9395_v32, 2  ;;  %v6872_v41 = vld [vmem:[#allocation2 + $0x120] sm:$0xff] }
 0x326   :  { %14285 = vst [vmem:[#allocation149_spill] sm:$0xff] %v9881_v51  ;;  %6385 = vrot.lane.b32.xlu1 %v9162_v48, %s6912_s9  ;;  %14308 = vst [vmem:[#allocation150_spill] sm:$0xff] %v9959_v46  ;;  %v14370_v46 = vld [vmem:[#allocation87_spill] sm:$0xff]  ;;  %v6873_v51 = vld [vmem:[#allocation2 + $0x170] sm:$0xff] }
 0x327   :  { %6410 = vrot.lane.b32.xlu0 %v14217_v13, %s6911_s30  ;;  %v14298_v13 = vld [vmem:[#allocation6_spill] sm:$0xff]  ;;  %14319 = vst [vmem:[#allocation160_spill] sm:$0xff] %v9998_v36 }
 0x328   :  { %v9902_v26 = vpop.permute.xlu1 %6105 }
 0x329   :  { %14293 = vst [vmem:[#allocation20_spill] sm:$0xff] %v9902_v26  ;;  %v9904_v48 = vpop.permute.xlu0 %6130  ;;  %v9940_v26 = vld [vmem:[#allocation2 + $0x258] sm:$0xff] }
 0x32a   :  { %14294 = vst [vmem:[#allocation66_spill] sm:$0xff] %v9904_v48  ;;  %6395 = vrot.lane.b32.xlu1 %v14206_v18, %s6911_s30  ;;  %v9957_v18 = vld [vmem:[#allocation2 + $0x288] sm:$0xff] }
 0x32b   :  { %6420 = vrot.lane.b32.xlu0 %v9194_v59, %s6912_s9  ;;  %v9942_v59 = vld [vmem:[#allocation2 + $0x260] sm:$0xff]  ;;  %14307 = vst [vmem:[#allocation6_spill] sm:$0xff] %v9957_v18 }
 0x32c   :  { %v9920_v48 = vpop.permute.xlu1 %6115 }
 0x32d   :  { %14299 = vst [vmem:[#allocation22_spill] sm:$0xff] %v9920_v48  ;;  %v9922_v61 = vpop.permute.xlu0 %6140  ;;  %v9953_v48 = vld [vmem:[#allocation2 + $0x278] sm:$0xff] }
 0x32e   :  { %14300 = vst [vmem:[#allocation25_spill] sm:$0xff] %v9922_v61  ;;  %6405 = vrot.lane.b32.xlu1 %v9178_v29, %s6912_s9  ;;  %14306 = vst [vmem:[#allocation8_spill] sm:$0xff] %v9953_v48  ;;  %v9965_v29 = vsel %vm3605_vm8, %v9860_v10, %v5618_v52  ;;  %v9982_v10 = vld [vmem:[#allocation2 + $0x2b8] sm:$0xff]  ;;  %v9996_v52 = vld [vmem:[#allocation2 + $0x2d0] sm:$0xff]  ;;  %v5858_v48 = vunpack.i.h.bf16 %v14370_v46 }
 0x32f   :  { %6430 = vrot.lane.b32.xlu0 %v14221_v24, %s6911_s30  ;;  %14309 = vst [vmem:[#allocation151_spill] sm:$0xff] %v9965_v29  ;;  %14313 = vst [vmem:[#allocation155_spill] sm:$0xff] %v9982_v10 }
 0x330   :  { %v9947_v61 = vpop.permute.xlu1 %6125  ;;  %14318 = vst [vmem:[#allocation159_spill] sm:$0xff] %v9996_v52  ;;  %v5813_v52 = vunpack.i.h.bf16 %v14351_v60 }
 0x331   :  { %14303 = vst [vmem:[#allocation67_spill] sm:$0xff] %v9947_v61  ;;  %v9949_v24 = vpop.permute.xlu0 %6150  ;;  %v14373_v61 = vld [vmem:[#allocation113_spill] sm:$0xff] }
 0x332   :  { %14304 = vst [vmem:[#allocation3_spill] sm:$0xff] %v9949_v24  ;;  %v9969_v24 = vsel %vm3605_vm8, %v9867_v35, %v5617_v0  ;;  %6415 = vrot.lane.b32.xlu1 %v14210_v58, %s6911_s30  ;;  %v10002_v35 = vld [vmem:[#allocation2 + $0x2e8] sm:$0xff]  ;;  %v10004_v0 = vld [vmem:[#allocation2 + $0x2f0] sm:$0xff]  ;;  %v5873_v17 = vunpack.i.h.bf16 %v14373_v61 }
 0x333   :  { %14310 = vst [vmem:[#allocation152_spill] sm:$0xff] %v9969_v24  ;;  %6440 = vrot.lane.b32.xlu0 %v9209_v53, %s6912_s9  ;;  %14320 = vst [vmem:[#allocation161_spill] sm:$0xff] %v10002_v35  ;;  %v14322_v24 = vrot.slane %v9838_v27, 2  ;;  %v10026_v53 = vld [vmem:[#allocation2 + $0x300] sm:$0xff]  ;;  %v6854_v35 = vld [vmem:[#allocation2 + $0x78] sm:$0xff] }
 0x334   :  { %v9992_v29 = vpop.permute.xlu1 %6135  ;;  %14321 = vst [vmem:[#allocation162_spill] sm:$0xff] %v10004_v0  ;;  %14326 = vst [vmem:[#allocation163_spill] sm:$0xff] %v10026_v53  ;;  %v14342_v27 = vld [vmem:[#allocation15_spill] sm:$0xff]  ;;  %v14359_v0 = vld [vmem:[#allocation77_spill] sm:$0xff] }
 0x335   :  { %14316 = vst [vmem:[#allocation157_spill] sm:$0xff] %v9992_v29  ;;  %v9994_v18 = vpop.permute.xlu0 %6160  ;;  %v2679_v10 = vsel %vm1919_vm6, %v14323_v23, %v14322_v24  ;;  %v10028_v23 = vld [vmem:[#allocation2 + $0x308] sm:$0xff]  ;;  %v5802_v2 = vunpack.i.l.bf16 %v14342_v27 }
 0x336   :  { %14317 = vst [vmem:[#allocation158_spill] sm:$0xff] %v9994_v18  ;;  %v14325_v18 = vmov %v14322_v24  ;;  %6425 = vrot.lane.b32.xlu1 %v9184_v5, %s6912_s9  ;;  %14327 = vst [vmem:[#allocation164_spill] sm:$0xff] %v10028_v23  ;;  %v10035_v24 = vld [vmem:[#allocation2 + $0x320] sm:$0xff]  ;;  %v5798_v5 = vunpack.i.h.bf16 %v14341_v31  ;;  %v14348_v23 = vld [vmem:[#allocation17_spill] sm:$0xff] }
 0x337   :  { %v2681_v28 = vsel %vm1919_vm6, %v14325_v18, %v14324_v34  ;;  %6450 = vrot.lane.b32.xlu0 %v14225_v42, %s6911_s30  ;;  %v10033_v18 = vld [vmem:[#allocation2 + $0x318] sm:$0xff]  ;;  %14329 = vst [vmem:[#allocation166_spill] sm:$0xff] %v10035_v24  ;;  %v5797_v42 = vunpack.i.l.bf16 %v14341_v31  ;;  %v6848_v31 = vld [vmem:[#allocation2 + $0x30] sm:$0xff] }
 0x338   :  { %14328 = vst [vmem:[#allocation165_spill] sm:$0xff] %v10033_v18  ;;  %v10042_v58 = vpop.permute.xlu1 %6145  ;;  %v10046_v32 = vpack.i.bf16 %v2681_v28, %v2679_v10  ;;  %v6847_v28 = vld [vmem:[#allocation2 + $0x38] sm:$0xff]  ;;  %v5828_v10 = vunpack.i.h.bf16 %v14359_v0 }
 0x339   :  { %14330 = vst [vmem:[#allocation167_spill] sm:$0xff] %v10042_v58  ;;  %v10044_v4 = vpop.permute.xlu0 %6170  ;;  %v10113_v24 = vsel %vm664_vm2, %v6847_v28, %v5798_v5  ;;  %v6851_v5 = vld [vmem:[#allocation2 + $0x20] sm:$0xff] }
 0x33a   :  { %14331 = vst [vmem:[#allocation168_spill] sm:$0xff] %v10044_v4  ;;  %14332 = vst [vmem:[#allocation169_spill] sm:$0xff] %v10046_v32  ;;  %6435 = vrot.lane.b32.xlu1 %v14214_v15, %s6911_s30  ;;  %v5803_v32 = vunpack.i.h.bf16 %v14342_v27  ;;  %v6858_v4 = vld [vmem:[#allocation2 + $0xa8] sm:$0xff] }
 0x33b   :  { %6460 = vrot.lane.b32.xlu0 %v9211_v9, %s6912_s9  ;;  %v14346_v9 = vld [vmem:[#allocation110_spill] sm:$0xff] }
 0x33c   :  { %v10068_v15 = vpop.permute.xlu1 %6155  ;;  %v5793_v53 = vunpack.i.h.bf16 %v14346_v9  ;;  %v5792_v62 = vunpack.i.l.bf16 %v14346_v9  ;;  %v10116_v9 = vsel %vm664_vm2, %v6848_v31, %v5797_v42  ;;  %v14354_v42 = vld [vmem:[#allocation111_spill] sm:$0xff] }
 0x33d   :  { %14333 = vst [vmem:[#allocation170_spill] sm:$0xff] %v10068_v15  ;;  %v10070_v36 = vpop.permute.xlu0 %6180  ;;  %v5808_v31 = vunpack.i.h.bf16 %v14354_v42 }
 0x33e   :  { %14334 = vst [vmem:[#allocation171_spill] sm:$0xff] %v10070_v36  ;;  %6445 = vrot.lane.b32.xlu1 %v14176_v40, %s6912_s9  ;;  %v6850_v36 = vld [vmem:[#allocation2 + $0x48] sm:$0xff]  ;;  %v10130_v28 = vsel %vm664_vm2, %v6851_v5, %v5793_v53  ;;  %v5817_v5 = vunpack.i.l.bf16 %v14356_v6 }
 0x33f   :  { %6470 = vrot.lane.b32.xlu0 %v14229_v38, %s6911_s30  ;;  %v5807_v38 = vunpack.i.l.bf16 %v14354_v42 }
 0x340   :  { %v10092_v40 = vpop.permute.xlu1 %6165 }
 0x341   :  { %14343 = vst [vmem:[#allocation108_spill] sm:$0xff] %v10092_v40  ;;  %v10094_v37 = vpop.permute.xlu0 %6190  ;;  %v6856_v40 = vld [vmem:[#allocation2 + $0x60] sm:$0xff] }
 0x342   :  { %14344 = vst [vmem:[#allocation15_spill] sm:$0xff] %v10094_v37  ;;  %6455 = vrot.lane.b32.xlu1 %v14348_v23, %s6911_s30  ;;  %v6849_v23 = vld [vmem:[#allocation2 + $0x50] sm:$0xff]  ;;  %v10127_v37 = vsel %vm664_vm2, %v6850_v36, %v5802_v2  ;;  %v14357_v2 = vld [vmem:[#allocation10_spill] sm:$0xff]  ;;  %v6853_v36 = vld [vmem:[#allocation2 + $0x80] sm:$0xff] }
 0x343   :  { %6475 = vrot.lane.b32.xlu0 %v14260_v19, %s6912_s9  ;;  %v10119_v18 = vsel %vm664_vm2, %v6849_v23, %v5803_v32  ;;  %v5812_v19 = vunpack.i.l.bf16 %v14351_v60  ;;  %v6852_v32 = vld [vmem:[#allocation2 + $0x18] sm:$0xff]  ;;  %v14355_v60 = vld [vmem:[#allocation75_spill] sm:$0xff]  ;;  %v10145_v53 = vsel %vm664_vm2, %v6853_v36, %v5813_v52  ;;  %v6855_v36 = vld [vmem:[#allocation2 + $0x68] sm:$0xff] }
 0x344   :  { %v10122_v34 = vpop.permute.xlu1 %6175  ;;  %v10135_v23 = vsel %vm664_vm2, %v6852_v32, %v5792_v62  ;;  %v14358_v62 = vld [vmem:[#allocation68_spill] sm:$0xff]  ;;  %v10161_v6 = vsel %vm664_vm2, %v6855_v36, %v5808_v31 }
 0x345   :  { %14352 = vst [vmem:[#allocation110_spill] sm:$0xff] %v10122_v34  ;;  %v10124_v27 = vpop.permute.xlu0 %6200  ;;  %v5823_v34 = vunpack.i.h.bf16 %v14355_v60  ;;  %v5833_v42 = vunpack.i.h.bf16 %v14358_v62  ;;  %v5832_v32 = vunpack.i.l.bf16 %v14358_v62  ;;  %v10164_v62 = vsel %vm664_vm2, %v6856_v40, %v5807_v38  ;;  %v14364_v40 = vld [vmem:[#allocation56_spill] sm:$0xff]  ;;  %v6862_v38 = vld [vmem:[#allocation2 + $0xd8] sm:$0xff] }
 0x346   :  { %14353 = vst [vmem:[#allocation17_spill] sm:$0xff] %v10124_v27  ;;  %v5822_v27 = vunpack.i.l.bf16 %v14355_v60  ;;  %6465 = vrot.lane.b32.xlu1 %v14179_v56, %s6912_s9  ;;  %v10151_v60 = vsel %vm664_vm2, %v6854_v35, %v5812_v19  ;;  %v5827_v56 = vunpack.i.l.bf16 %v14359_v0  ;;  %v5842_v35 = vunpack.i.l.bf16 %v14360_v55  ;;  %v14363_v19 = vld [vmem:[#allocation79_spill] sm:$0xff] }
 0x347   :  { %6480 = vrot.lane.b32.xlu0 %v14357_v2, %s6915_s14  ;;  %v5843_v2 = vunpack.i.h.bf16 %v14360_v55  ;;  %v5838_v44 = vunpack.i.h.bf16 %v14363_v19  ;;  %v10169_v0 = vsel %vm664_vm2, %v6857_v14, %v5823_v34  ;;  %v5837_v36 = vunpack.i.l.bf16 %v14363_v19  ;;  %v6860_v55 = vld [vmem:[#allocation2 + $0x90] sm:$0xff]  ;;  %v6861_v34 = vld [vmem:[#allocation2 + $0xe0] sm:$0xff]  ;;  %v6863_v19 = vld [vmem:[#allocation2 + $0xc8] sm:$0xff] }
 0x348   :  { %v10156_v12 = vpop.permute.xlu1 %6185  ;;  %v10183_v14 = vsel %vm664_vm2, %v6860_v55, %v5817_v5  ;;  %v10193_v15 = vsel %vm664_vm2, %v6863_v19, %v5828_v10  ;;  %v6865_v5 = vld [vmem:[#allocation2 + $0x110] sm:$0xff]  ;;  %v6867_v10 = vld [vmem:[#allocation2 + $0xf8] sm:$0xff] }
 0x349   :  { %14361 = vst [vmem:[#allocation69_spill] sm:$0xff] %v10156_v12  ;;  %v10158_v52 = vpop.permute.xlu0 %6210  ;;  %v10172_v12 = vsel %vm664_vm2, %v6858_v4, %v5822_v27  ;;  %v10186_v4 = vsel %vm664_vm2, %v6861_v34, %v5833_v42  ;;  %v14365_v27 = vld [vmem:[#allocation78_spill] sm:$0xff]  ;;  %v10199_v55 = vsel %vm664_vm2, %v6865_v5, %v5843_v2  ;;  %v10210_v19 = vsel %vm664_vm2, %v6867_v10, %v5838_v44  ;;  %v6868_v2 = vld [vmem:[#allocation2 + $0xf0] sm:$0xff]  ;;  %v6869_v44 = vld [vmem:[#allocation2 + $0x140] sm:$0xff] }
 0x34a   :  { %14362 = vst [vmem:[#allocation111_spill] sm:$0xff] %v10158_v52  ;;  %v6859_v52 = vld [vmem:[#allocation2 + $0x98] sm:$0xff]  ;;  %6485 = vrot.lane.b32.xlu1 %v14364_v40, %s6915_s14  ;;  %v5852_v42 = vunpack.i.l.bf16 %v14365_v27  ;;  %v10215_v5 = vsel %vm664_vm2, %v6868_v2, %v5837_v36  ;;  %v5857_v10 = vunpack.i.l.bf16 %v14370_v46 }
 0x34b   :  { %v10175_v31 = vsel %vm664_vm2, %v6859_v52, %v5818_v1  ;;  %6490 = vrot.lane.b32.xlu0 %v14232_v8, %s6911_s30  ;;  %v10189_v1 = vsel %vm664_vm2, %v6862_v38, %v5832_v32  ;;  %v5853_v52 = vunpack.i.h.bf16 %v14365_v27  ;;  %v10196_v8 = vsel %vm664_vm2, %v6864_v7, %v5827_v56  ;;  %v6866_v38 = vld [vmem:[#allocation2 + $0x108] sm:$0xff]  ;;  %v14368_v7 = vld [vmem:[#allocation82_spill] sm:$0xff] }
 0x34c   :  { %v10202_v34 = vpop.permute.xlu1 %6195  ;;  %v10207_v58 = vsel %vm664_vm2, %v6866_v38, %v5842_v35  ;;  %v5848_v56 = vunpack.i.h.bf16 %v14368_v7  ;;  %v5847_v29 = vunpack.i.l.bf16 %v14368_v7  ;;  %v14369_v27 = vld [vmem:[#allocation80_spill] sm:$0xff]  ;;  %v14371_v35 = vld [vmem:[#allocation89_spill] sm:$0xff]  ;;  %v14372_v36 = vld [vmem:[#allocation86_spill] sm:$0xff] }
 0x34d   :  { %14366 = vst [vmem:[#allocation75_spill] sm:$0xff] %v10202_v34  ;;  %v10204_v32 = vpop.permute.xlu0 %6220  ;;  %v5863_v34 = vunpack.i.h.bf16 %v14369_v27  ;;  %v10225_v38 = vsel %vm664_vm2, %v6869_v44, %v5853_v52  ;;  %v5868_v7 = vunpack.i.h.bf16 %v14372_v36  ;;  %v5867_v2 = vunpack.i.l.bf16 %v14372_v36  ;;  %v6871_v44 = vld [vmem:[#allocation2 + $0x128] sm:$0xff] }
 0x34e   :  { %14367 = vst [vmem:[#allocation112_spill] sm:$0xff] %v10204_v32  ;;  %v5862_v32 = vunpack.i.l.bf16 %v14369_v27  ;;  %6495 = vrot.lane.b32.xlu1 %v14371_v35, %s6911_s30  ;;  %v10231_v27 = vsel %vm664_vm2, %v6870_v30, %v5852_v42  ;;  %v5872_v35 = vunpack.i.l.bf16 %v14373_v61  ;;  %v10241_v46 = vsel %vm664_vm2, %v6871_v44, %v5848_v56 }
 0x34f   :  { %6500 = vrot.lane.b32.xlu0 %v14364_v40, %s6912_s9  ;;  %v5948_v40 = vunpack.i.h.bf16 %v9692_v33  ;;  %v10244_v36 = vsel %vm664_vm2, %v6872_v41, %v5847_v29  ;;  %v5947_v30 = vunpack.i.l.bf16 %v9692_v33  ;;  %v5957_v42 = vunpack.i.l.bf16 %v9700_v22  ;;  %v14378_v41 = vld [vmem:[#allocation71_spill] sm:$0xff]  ;;  %v6876_v33 = vld [vmem:[#allocation2 + $0x150] sm:$0xff] }
 0x350   :  { %v10236_v39 = vpop.permute.xlu1 %6205  ;;  %v10249_v61 = vsel %vm664_vm2, %v6873_v51, %v5863_v34  ;;  %v5958_v44 = vunpack.i.h.bf16 %v9700_v22  ;;  %v10263_v51 = vsel %vm664_vm2, %v6876_v33, %v5857_v10  ;;  %v6877_v29 = vld [vmem:[#allocation2 + $0x1d0] sm:$0xff]  ;;  %v6878_v34 = vld [vmem:[#allocation2 + $0x1c8] sm:$0xff] }
 0x351   :  { %14374 = vst [vmem:[#allocation10_spill] sm:$0xff] %v10236_v39  ;;  %v10238_v52 = vpop.permute.xlu0 %6230  ;;  %14376 = vst [vmem:[#allocation77_spill] sm:$0xff] %v10249_v61  ;;  %v10252_v39 = vsel %vm664_vm2, %v6874_v11, %v5862_v32  ;;  %v10266_v11 = vsel %vm664_vm2, %v6877_v29, %v5868_v7  ;;  %v14381_v32 = vld [vmem:[#allocation14_spill] sm:$0xff]  ;;  %v6880_v61 = vld [vmem:[#allocation2 + $0x1e0] sm:$0xff]  ;;  %v3546_v7 = vsel %vm3540_vm7, %v10113_v24, %v5948_v40  ;;  %v5952_v24 = vunpack.i.l.bf16 %v9706_v3 }
 0x352   :  { %14375 = vst [vmem:[#allocation68_spill] sm:$0xff] %v10238_v52  ;;  %14377 = vst [vmem:[#allocation76_spill] sm:$0xff] %v10252_v39  ;;  %v6875_v52 = vld [vmem:[#allocation2 + $0x158] sm:$0xff]  ;;  %6505 = vrot.lane.b32.xlu1 %v14378_v41, %s6912_s9  ;;  %v5878_v22 = vunpack.i.h.bf16 %v14381_v32  ;;  %v5877_v10 = vunpack.i.l.bf16 %v14381_v32  ;;  %v5953_v32 = vunpack.i.h.bf16 %v9706_v3 }
 0x353   :  { %v10255_v56 = vsel %vm664_vm2, %v6875_v52, %v5858_v48  ;;  %6510 = vrot.lane.b32.xlu0 %v14378_v41, %s6915_s14  ;;  %14379 = vst [vmem:[#allocation79_spill] sm:$0xff] %v10266_v11  ;;  %v10269_v48 = vsel %vm664_vm2, %v6878_v34, %v5867_v2  ;;  %v6879_v52 = vld [vmem:[#allocation2 + $0x1e8] sm:$0xff]  ;;  %v10276_v41 = vsel %vm664_vm2, %v6880_v61, %v5872_v35  ;;  %v5943_v34 = vunpack.i.h.bf16 %v9698_v16  ;;  %v14385_v40 = vld [vmem:[#allocation122_spill] sm:$0xff] }
 0x354   :  { %14380 = vst [vmem:[#allocation56_spill] sm:$0xff] %v10269_v48  ;;  %v10273_v39 = vsel %vm664_vm2, %v6879_v52, %v5873_v17  ;;  %v10281_v33 = vpop.permute.xlu1 %6215  ;;  %v3545_v2 = vsel %vm3540_vm7, %v10116_v9, %v5947_v30  ;;  %v5942_v17 = vunpack.i.l.bf16 %v9698_v16  ;;  %v3549_v35 = vsel %vm3540_vm7, %v10164_v62, %v5957_v42  ;;  %v14387_v9 = vld [vmem:[#allocation30_spill] sm:$0xff]  ;;  %v6881_v30 = vld [vmem:[#allocation2 + $0x200] sm:$0xff] }
 0x355   :  { %14382 = vst [vmem:[#allocation78_spill] sm:$0xff] %v10273_v39  ;;  %14383 = vst [vmem:[#allocation82_spill] sm:$0xff] %v10281_v33  ;;  %v10283_v29 = vpop.permute.xlu0 %6240  ;;  %v3550_v61 = vsel %vm3540_vm7, %v10161_v6, %v5958_v44  ;;  %v5967_v52 = vunpack.i.l.bf16 %v14385_v40  ;;  %v10301_v16 = vsel %vm664_vm2, %v6881_v30, %v5878_v22  ;;  %v5968_v62 = vunpack.i.h.bf16 %v14385_v40  ;;  %v14389_v42 = vld [vmem:[#allocation123_spill] sm:$0xff]  ;;  %v14390_v44 = vld [vmem:[#allocation124_spill] sm:$0xff] }
 0x356   :  { %14384 = vst [vmem:[#allocation80_spill] sm:$0xff] %v10283_v29  ;;  %v14386_v29 = vld [vmem:[#allocation72_spill] sm:$0xff]  ;;  %14388 = vst [vmem:[#allocation87_spill] sm:$0xff] %v10301_v16  ;;  %v5962_v6 = vunpack.i.l.bf16 %v14389_v42  ;;  %v5977_v33 = vunpack.i.l.bf16 %v14390_v44  ;;  %v6882_v11 = vld [vmem:[#allocation2 + $0x1f8] sm:$0xff]  ;;  %v5978_v48 = vunpack.i.h.bf16 %v14390_v44  ;;  %v14392_v39 = vunpack.i.l.bf16 %v14287_v54 }
 0x357   :  { %6515 = vrot.lane.b32.xlu1 %v14386_v29, %s6915_s14  ;;  %6520 = vrot.lane.b32.xlu0 %v14387_v9, %s6911_s30  ;;  %v10307_v3 = vsel %vm664_vm2, %v6882_v11, %v5877_v10  ;;  %v14393_v22 = vunpack.i.h.bf16 %v14287_v54  ;;  %v3543_v11 = vsel %vm3540_vm7, %v10135_v23, %v5942_v17  ;;  %v3544_v10 = vsel %vm3540_vm7, %v10130_v28, %v5943_v34  ;;  %v14398_v34 = vld [vmem:[#allocation90_spill] sm:$0xff] }
 0x358   :  { %14391 = vst [vmem:[#allocation89_spill] sm:$0xff] %v10307_v3  ;;  %v10313_v9 = vsel %vm3605_vm8, %v3545_v2, %v14392_v39  ;;  %v10320_v40 = vpop.permute.xlu1 %6225  ;;  %v14395_v44 = vunpack.i.l.bf16 %v14289_v43  ;;  %v14396_v54 = vunpack.i.h.bf16 %v14289_v43  ;;  %v3547_v23 = vsel %vm3540_vm7, %v10127_v37, %v5952_v24  ;;  %v14469_v2 = vld [vmem:[#allocation16_spill] sm:$0xff] }
 0x359   :  { %v10318_v30 = vsel %vm3605_vm8, %v3546_v7, %v14393_v22  ;;  %14394 = vst [vmem:[#allocation86_spill] sm:$0xff] %v10320_v40  ;;  %v10322_v16 = vpop.permute.xlu0 %6250  ;;  %v3548_v40 = vsel %vm3540_vm7, %v10119_v18, %v5953_v32  ;;  %v3553_v28 = vsel %vm3540_vm7, %v10183_v14, %v5967_v52  ;;  %v3554_v43 = vsel %vm3540_vm7, %v10175_v31, %v5968_v62  ;;  %v14400_v32 = vld [vmem:[#allocation126_spill] sm:$0xff] }
 0x35a   :  { %v10331_v39 = vsel %vm3605_vm8, %v3549_v35, %v14395_v44  ;;  %v10336_v7 = vsel %vm3605_vm8, %v3550_v61, %v14396_v54  ;;  %v5963_v17 = vunpack.i.h.bf16 %v14389_v42  ;;  %v3551_v18 = vsel %vm3540_vm7, %v10151_v60, %v5962_v6  ;;  %v14399_v35 = vld [vmem:[#allocation125_spill] sm:$0xff]  ;;  %v14405_v6 = vld [vmem:[#allocation128_spill] sm:$0xff] }
 0x35b   :  { %6525 = vrot.lane.b32.xlu1 %v14398_v34, %s6911_s30  ;;  %6530 = vrot.lane.b32.xlu0 %v14386_v29, %s6912_s9  ;;  %v3557_v37 = vsel %vm3540_vm7, %v10196_v8, %v5977_v33  ;;  %v3558_v14 = vsel %vm3540_vm7, %v10193_v15, %v5978_v48  ;;  %v5972_v61 = vunpack.i.l.bf16 %v14399_v35  ;;  %v5988_v24 = vunpack.i.h.bf16 %v14400_v32 }
 0x35c   :  { %v5987_v29 = vunpack.i.l.bf16 %v14400_v32  ;;  %v10361_v52 = vpop.permute.xlu1 %6235  ;;  %v5973_v62 = vunpack.i.h.bf16 %v14399_v35  ;;  %v14402_v60 = vunpack.i.l.bf16 %v14281_v49  ;;  %v14403_v8 = vunpack.i.h.bf16 %v14281_v49 }
 0x35d   :  { %14401 = vst [vmem:[#allocation113_spill] sm:$0xff] %v10361_v52  ;;  %v10363_v31 = vpop.permute.xlu0 %6260  ;;  %v14404_v48 = vunpack.i.l.bf16 %v14291_v57  ;;  %v5997_v44 = vunpack.i.l.bf16 %v14405_v6  ;;  %v14406_v54 = vunpack.i.h.bf16 %v14291_v57  ;;  %v14408_v49 = vunpack.i.h.bf16 %v14286_v20  ;;  %v14462_v52 = vld [vmem:[#allocation20_spill] sm:$0xff] }
 0x35e   :  { %v10369_v42 = vsel %vm3605_vm8, %v3543_v11, %v14402_v60  ;;  %v10374_v15 = vsel %vm3605_vm8, %v3544_v10, %v14403_v8  ;;  %v14407_v11 = vunpack.i.l.bf16 %v14286_v20  ;;  %v3552_v57 = vsel %vm3540_vm7, %v10145_v53, %v5963_v17 }
 0x35f   :  { %v10379_v33 = vsel %vm3605_vm8, %v3553_v28, %v14404_v48  ;;  %v10385_v34 = vsel %vm3605_vm8, %v3554_v43, %v14406_v54  ;;  %v10395_v10 = vsel %vm3605_vm8, %v3548_v40, %v14408_v49  ;;  %v14409_v28 = vld [vmem:[#allocation83_spill] sm:$0xff]  ;;  %v14410_v43 = vunpack.i.l.bf16 %v14295_v25 }
 0x360   :  { %v10390_v35 = vsel %vm3605_vm8, %v3547_v23, %v14407_v11  ;;  %6535 = vrot.lane.b32.xlu1 %v14409_v28, %s6912_s9  ;;  %6540 = vrot.lane.b32.xlu0 %v14409_v28, %s6915_s14  ;;  %v14411_v23 = vunpack.i.h.bf16 %v14295_v25  ;;  %v14412_v40 = vunpack.i.l.bf16 %v14288_v45  ;;  %v3555_v8 = vsel %vm3540_vm7, %v10172_v12, %v5972_v61  ;;  %v10425_v25 = vpop.permute.xlu1 %6245  ;;  %v14415_v12 = vld [vmem:[#allocation129_spill] sm:$0xff] }
 0x361   :  { %v10406_v32 = vsel %vm3605_vm8, %v3557_v37, %v14410_v43  ;;  %v3561_v53 = vsel %vm3540_vm7, %v10215_v5, %v5987_v29  ;;  %v3562_v17 = vsel %vm3540_vm7, %v10210_v19, %v5988_v24  ;;  %v5998_v37 = vunpack.i.h.bf16 %v14405_v6  ;;  %14413 = vst [vmem:[#allocation71_spill] sm:$0xff] %v10425_v25  ;;  %v14416_v29 = vld [vmem:[#allocation130_spill] sm:$0xff] }
 0x362   :  { %v10411_v20 = vsel %vm3605_vm8, %v3558_v14, %v14411_v23  ;;  %v10416_v60 = vsel %vm3605_vm8, %v3551_v18, %v14412_v40  ;;  %v10427_v14 = vpop.permute.xlu0 %6270  ;;  %v3556_v48 = vsel %vm3540_vm7, %v10169_v0, %v5973_v62  ;;  %v14414_v18 = vld [vmem:[#allocation127_spill] sm:$0xff]  ;;  %v5992_v61 = vunpack.i.l.bf16 %v14415_v12  ;;  %v14418_v0 = vld [vmem:[#allocation57_spill] sm:$0xff] }
 0x363   :  { %v5983_v54 = vunpack.i.h.bf16 %v14414_v18  ;;  %v5982_v11 = vunpack.i.l.bf16 %v14414_v18  ;;  %v3565_v5 = vsel %vm3540_vm7, %v10244_v36, %v5997_v44  ;;  %v6008_v19 = vunpack.i.h.bf16 %v14416_v29 }
 0x364   :  { %v6007_v24 = vunpack.i.l.bf16 %v14416_v29  ;;  %v14417_v6 = vunpack.i.h.bf16 %v14288_v45  ;;  %6545 = vrot.lane.b32.xlu1 %v14418_v0, %s6915_s14  ;;  %v14419_v62 = vpack.i.bf16 %v9936_v63, %v9934_v21  ;;  %v5993_v28 = vunpack.i.h.bf16 %v14415_v12  ;;  %v14423_v21 = vld [vmem:[#allocation131_spill] sm:$0xff] }
 0x365   :  { %v14420_v36 = vunpack.i.l.bf16 %v14297_v50  ;;  %v14421_v45 = vunpack.i.h.bf16 %v14297_v50  ;;  %v14422_v43 = vunpack.i.l.bf16 %v14290_v47  ;;  %v3566_v63 = vsel %vm3540_vm7, %v10241_v46, %v5998_v37  ;;  %v10474_v50 = vpop.permute.xlu1 %6255 }
 0x366   :  { %v10441_v49 = vsel %vm3605_vm8, %v3552_v57, %v14417_v6  ;;  %6550 = vrot.lane.b32.xlu0 %v14419_v62, %s6909_s28  ;;  %v6003_v40 = vunpack.i.h.bf16 %v14423_v21  ;;  %v6002_v18 = vunpack.i.l.bf16 %v14423_v21  ;;  %v3559_v29 = vsel %vm3540_vm7, %v10189_v1, %v5982_v11  ;;  %v14426_v62 = vld [vmem:[#allocation132_spill] sm:$0xff]  ;;  %v14428_v1 = vld [vmem:[#allocation91_spill] sm:$0xff] }
 0x367   :  { %v10453_v44 = vsel %vm3605_vm8, %v3561_v53, %v14420_v36  ;;  %v10458_v57 = vsel %vm3605_vm8, %v3562_v17, %v14421_v45  ;;  %v10463_v23 = vsel %vm3605_vm8, %v3555_v8, %v14422_v43  ;;  %v14424_v53 = vunpack.i.h.bf16 %v14290_v47  ;;  %v10476_v17 = vpop.permute.xlu0 %6280  ;;  %v14432_v45 = vld [vmem:[#allocation7_spill] sm:$0xff] }
 0x368   :  { %v3560_v8 = vsel %vm3540_vm7, %v10186_v4, %v5983_v54  ;;  %v3563_v46 = vsel %vm3540_vm7, %v10207_v58, %v5992_v61  ;;  %v14425_v37 = vunpack.i.l.bf16 %v14298_v13  ;;  %v3570_v6 = vsel %vm3540_vm7, %v10255_v56, %v6008_v19  ;;  %v14429_v61 = vld [vmem:[#allocation133_spill] sm:$0xff] }
 0x369   :  { %v10472_v12 = vsel %vm3605_vm8, %v3556_v48, %v14424_v53  ;;  %v3569_v48 = vsel %vm3540_vm7, %v10263_v51, %v6007_v24  ;;  %v6023_v4 = vunpack.i.h.bf16 %v14426_v62  ;;  %v6022_v54 = vunpack.i.l.bf16 %v14426_v62 }
 0x36a   :  { %v10487_v47 = vsel %vm3605_vm8, %v3565_v5, %v14425_v37  ;;  %v14427_v58 = vpack.i.bf16 %v9942_v59, %v9940_v26  ;;  %6560 = vrot.lane.b32.xlu0 %v14428_v1, %s6911_s30  ;;  %v3564_v11 = vsel %vm3540_vm7, %v10199_v55, %v5993_v28  ;;  %v6013_v51 = vunpack.i.h.bf16 %v14429_v61  ;;  %v14431_v59 = vld [vmem:[#allocation135_spill] sm:$0xff]  ;;  %v10520_v28 = vpop.permute.xlu1 %6265  ;;  %v14440_v1 = vld [vmem:[#allocation78_spill] sm:$0xff] }
 0x36b   :  { %v6012_v5 = vunpack.i.l.bf16 %v14429_v61  ;;  %v14430_v56 = vunpack.i.h.bf16 %v14298_v13  ;;  %v3568_v24 = vsel %vm3540_vm7, %v10225_v38, %v6003_v40  ;;  %v3567_v26 = vsel %vm3540_vm7, %v10231_v27, %v6002_v18  ;;  %v10522_v21 = vpop.permute.xlu0 %6290  ;;  %v14435_v38 = vld [vmem:[#allocation73_spill] sm:$0xff] }
 0x36c   :  { %6555 = vrot.lane.b32.xlu1 %v14427_v58, %s6909_s28  ;;  %v6017_v36 = vunpack.i.l.bf16 %v14431_v59  ;;  %v14433_v43 = vunpack.i.l.bf16 %v14432_v45  ;;  %v14434_v13 = vunpack.i.h.bf16 %v14432_v45  ;;  %v14436_v40 = vunpack.i.l.bf16 %v14435_v38 }
 0x36d   :  { %v10508_v19 = vsel %vm3605_vm8, %v3566_v63, %v14430_v56  ;;  %v14437_v18 = vunpack.i.h.bf16 %v14435_v38  ;;  %v10549_v61 = vsel %vm3540_vm7, %v14440_v1, %v6023_v4  ;;  %v6107_v3 = vunpack.i.l.bf16 %v14462_v52 }
 0x36e   :  { %v10518_v55 = vsel %vm3605_vm8, %v3559_v29, %v14433_v43  ;;  %v10527_v63 = vsel %vm3605_vm8, %v3560_v8, %v14434_v13  ;;  %v10532_v27 = vsel %vm3605_vm8, %v3569_v48, %v14436_v40  ;;  %v14438_v29 = vld [vmem:[#allocation70_spill] sm:$0xff]  ;;  %v3577_v8 = vsel %vm3540_vm7, %v10276_v41, %v6022_v54  ;;  %14441 = vst [vmem:[#allocation14_spill] sm:$0xff] %v10549_v61  ;;  %v14445_v43 = vld [vmem:[#allocation76_spill] sm:$0xff]  ;;  %v14446_v54 = vld [vmem:[#allocation11_spill] sm:$0xff] }
 0x36f   :  { %v10537_v53 = vsel %vm3605_vm8, %v3570_v6, %v14437_v18  ;;  %v14439_v37 = vunpack.i.l.bf16 %v14438_v29  ;;  %v14442_v48 = vunpack.i.h.bf16 %v14438_v29  ;;  %v14443_v6 = vld [vmem:[#allocation35_spill] sm:$0xff]  ;;  %6570 = vrot.lane.b32.xlu0 %v14418_v0, %s6912_s9  ;;  %v3571_v41 = vsel %vm3540_vm7, %v14445_v43, %v6012_v5  ;;  %v14449_v18 = vld [vmem:[#allocation56_spill] sm:$0xff]  ;;  %v14450_v29 = vld [vmem:[#allocation145_spill] sm:$0xff]  ;;  %v10579_v5 = vpop.permute.xlu1 %6275  ;;  %v10581_v1 = vpop.permute.xlu0 %6300 }
 0x370   :  { %6565 = vrot.lane.b32.xlu1 %v14443_v6, %s6911_s30  ;;  %v14447_v4 = vunpack.i.l.bf16 %v14446_v54  ;;  %v6018_v40 = vunpack.i.h.bf16 %v14431_v59  ;;  %v3575_v0 = vsel %vm3540_vm7, %v14449_v18, %v6017_v36  ;;  %v14453_v59 = vld [vmem:[#allocation148_spill] sm:$0xff] }
 0x371   :  { %v10542_v62 = vsel %vm3605_vm8, %v3563_v46, %v14439_v37  ;;  %v10554_v56 = vsel %vm3605_vm8, %v3564_v11, %v14442_v48  ;;  %v14444_v46 = vld [vmem:[#allocation77_spill] sm:$0xff]  ;;  %v14448_v11 = vunpack.i.h.bf16 %v14446_v54  ;;  %v6092_v37 = vunpack.i.l.bf16 %v14450_v29 }
 0x372   :  { %v3572_v45 = vsel %vm3540_vm7, %v14444_v46, %v6013_v51  ;;  %v10567_v13 = vsel %vm3605_vm8, %v3567_v26, %v14447_v4  ;;  %v6093_v51 = vunpack.i.h.bf16 %v14450_v29  ;;  %v14451_v26 = vld [vmem:[#allocation93_spill] sm:$0xff]  ;;  %v14452_v46 = vld [vmem:[#allocation146_spill] sm:$0xff]  ;;  %v6098_v54 = vunpack.i.h.bf16 %v14453_v59 }
 0x373   :  { %v10572_v38 = vsel %vm3605_vm8, %v3568_v24, %v14448_v11  ;;  %v6103_v48 = vunpack.i.h.bf16 %v14451_v26  ;;  %v6102_v6 = vunpack.i.l.bf16 %v14451_v26  ;;  %v6113_v24 = vunpack.i.h.bf16 %v14452_v46  ;;  %v14454_v4 = vld [vmem:[#allocation65_spill] sm:$0xff]  ;;  %v14460_v26 = vld [vmem:[#allocation19_spill] sm:$0xff] }
 0x374   :  { %v6112_v43 = vunpack.i.l.bf16 %v14452_v46  ;;  %v6097_v36 = vunpack.i.l.bf16 %v14453_v59  ;;  %v14455_v11 = vunpack.i.l.bf16 %v14454_v4  ;;  %v14457_v29 = vld [vmem:[#allocation81_spill] sm:$0xff]  ;;  %6575 = vrot.lane.b32.xlu1 %v14460_v26, %s6912_s9  ;;  %6580 = vrot.lane.b32.xlu0 %v14460_v26, %s6915_s14  ;;  %v14468_v26 = vld [vmem:[#allocation147_spill] sm:$0xff] }
 0x375   :  { %v14458_v22 = vunpack.i.l.bf16 %v14457_v29  ;;  %v14461_v46 = vld [vmem:[#allocation149_spill] sm:$0xff]  ;;  %v3671_v4 = vsel %vm3670_vm9, %v14468_v26, %v6092_v37 }
 0x376   :  { %v10592_v18 = vsel %vm3605_vm8, %v3577_v8, %v14455_v11  ;;  %v6123_v25 = vunpack.i.h.bf16 %v14461_v46  ;;  %v6122_v59 = vunpack.i.l.bf16 %v14461_v46  ;;  %v14463_v8 = vunpack.i.h.bf16 %v14457_v29  ;;  %v10624_v29 = vpop.permute.xlu1 %6285  ;;  %v14478_v26 = vld [vmem:[#allocation25_spill] sm:$0xff] }
 0x377   :  { %14456 = vst [vmem:[#allocation122_spill] sm:$0xff] %v10592_v18  ;;  %v10597_v58 = vsel %vm3605_vm8, %v3571_v41, %v14458_v22  ;;  %v14465_v22 = vld [vmem:[#allocation79_spill] sm:$0xff]  ;;  %v14467_v18 = vld [vmem:[#allocation60_spill] sm:$0xff]  ;;  %v14470_v46 = vunpack.i.l.bf16 %v14469_v2  ;;  %v10646_v37 = vsel %vm3670_vm9, %v10369_v42, %v6097_v36  ;;  %v14483_v2 = vld [vmem:[#allocation6_spill] sm:$0xff] }
 0x378   :  { %14459 = vst [vmem:[#allocation72_spill] sm:$0xff] %v10597_v58  ;;  %v10609_v11 = vsel %vm3605_vm8, %v3572_v45, %v14463_v8  ;;  %v10613_v41 = vsel %vm3540_vm7, %v14465_v22, %v6018_v40  ;;  %v3672_v61 = vsel %vm3670_vm9, %v14467_v18, %v6093_v51  ;;  %v10626_v45 = vpop.permute.xlu0 %6310  ;;  %v10630_v8 = vsel %vm3670_vm9, %v10313_v9, %v6102_v6  ;;  %v14473_v18 = vld [vmem:[#allocation64_spill] sm:$0xff] }
 0x379   :  { %14464 = vst [vmem:[#allocation30_spill] sm:$0xff] %v10609_v11  ;;  %14466 = vst [vmem:[#allocation123_spill] sm:$0xff] %v10613_v41  ;;  %v10622_v58 = vsel %vm3605_vm8, %v3575_v0, %v14470_v46  ;;  %v10634_v40 = vsel %vm3670_vm9, %v10318_v30, %v6103_v48  ;;  %v10638_v51 = vsel %vm3670_vm9, %v10331_v39, %v6112_v43  ;;  %v6108_v6 = vunpack.i.h.bf16 %v14462_v52  ;;  %v14472_v30 = vld [vmem:[#allocation66_spill] sm:$0xff]  ;;  %v14474_v39 = vld [vmem:[#allocation8_spill] sm:$0xff] }
 0x37a   :  { %14471 = vst [vmem:[#allocation124_spill] sm:$0xff] %v10622_v58  ;;  %v10642_v0 = vsel %vm3670_vm9, %v10336_v7, %v6113_v24  ;;  %v10650_v9 = vsel %vm3670_vm9, %v10374_v15, %v6098_v54  ;;  %v6132_v48 = vunpack.i.l.bf16 %v14472_v30  ;;  %6585 = vrot.lane.b32.xlu1 %v14473_v18, %s6915_s14  ;;  %v14475_v43 = vld [vmem:[#allocation9_spill] sm:$0xff]  ;;  %v10662_v42 = vsel %vm3670_vm9, %v10379_v33, %v6122_v59  ;;  %v14477_v54 = vld [vmem:[#allocation22_spill] sm:$0xff]  ;;  %v10677_v59 = vpop.permute.xlu1 %6295 }
 0x37b   :  { %v14476_v7 = vpack.i.bf16 %v14474_v39, %v14475_v43  ;;  %v10666_v15 = vsel %vm3670_vm9, %v10385_v34, %v6123_v25  ;;  %v10670_v52 = vsel %vm3670_vm9, %v10390_v35, %v6107_v3  ;;  %v6133_v24 = vunpack.i.h.bf16 %v14472_v30  ;;  %v14480_v34 = vld [vmem:[#allocation67_spill] sm:$0xff]  ;;  %v14482_v41 = vld [vmem:[#allocation150_spill] sm:$0xff] }
 0x37c   :  { %v6118_v36 = vunpack.i.h.bf16 %v14477_v54  ;;  %v6117_v22 = vunpack.i.l.bf16 %v14477_v54  ;;  %v6143_v46 = vunpack.i.h.bf16 %v14478_v26  ;;  %v6142_v33 = vunpack.i.l.bf16 %v14478_v26  ;;  %v10679_v39 = vpop.permute.xlu0 %6320  ;;  %v14481_v35 = vld [vmem:[#allocation3_spill] sm:$0xff] }
 0x37d   :  { %6590 = vrot.lane.b32.xlu0 %v14476_v7, %s6909_s28  ;;  %14479 = vst [vmem:[#allocation90_spill] sm:$0xff] %v10679_v39  ;;  %v6128_v25 = vunpack.i.h.bf16 %v14480_v34  ;;  %v6127_v3 = vunpack.i.l.bf16 %v14480_v34  ;;  %v6153_v30 = vunpack.i.h.bf16 %v14481_v35  ;;  %v6152_v43 = vunpack.i.l.bf16 %v14481_v35  ;;  %v14485_v39 = vld [vmem:[#allocation51_spill] sm:$0xff] }
 0x37e   :  { %v10687_v7 = vsel %vm3670_vm9, %v10395_v10, %v6108_v6  ;;  %v10691_v54 = vsel %vm3670_vm9, %v10406_v32, %v6132_v48  ;;  %v6253_v26 = vunpack.i.h.bf16 %v10322_v16  ;;  %v6252_v58 = vunpack.i.l.bf16 %v10322_v16  ;;  %v14486_v6 = vld [vmem:[#allocation157_spill] sm:$0xff]  ;;  %v14487_v48 = vld [vmem:[#allocation158_spill] sm:$0xff] }
 0x37f   :  { %v14484_v34 = vpack.i.bf16 %v14482_v41, %v14483_v2  ;;  %v10703_v10 = vsel %vm3670_vm9, %v10411_v20, %v6133_v24  ;;  %v6138_v35 = vunpack.i.h.bf16 %v14486_v6  ;;  %v6137_v32 = vunpack.i.l.bf16 %v14486_v6  ;;  %v10724_v24 = vpop.permute.xlu1 %6305  ;;  %v14494_v6 = vld [vmem:[#allocation92_spill] sm:$0xff] }
 0x380   :  { %v6162_v11 = vunpack.i.l.bf16 %v14487_v48  ;;  %v10710_v16 = vsel %vm3670_vm9, %v10416_v60, %v6117_v22  ;;  %v10714_v2 = vsel %vm3670_vm9, %v10441_v49, %v6118_v36  ;;  %v10718_v41 = vsel %vm3670_vm9, %v10453_v44, %v6142_v33  ;;  %14488 = vst [vmem:[#allocation125_spill] sm:$0xff] %v10724_v24  ;;  %v14489_v33 = vld [vmem:[#allocation94_spill] sm:$0xff] }
 0x381   :  { %6595 = vrot.lane.b32.xlu1 %v14484_v34, %s6909_s28  ;;  %6600 = vrot.lane.b32.xlu0 %v14485_v39, %s6911_s30  ;;  %v10722_v20 = vsel %vm3670_vm9, %v10458_v57, %v6143_v46  ;;  %v6331_v39 = vpop.permute.xlu0 %6330  ;;  %v10728_v34 = vsel %vm3670_vm9, %v10463_v23, %v6127_v3  ;;  %v10732_v60 = vsel %vm3670_vm9, %v10472_v12, %v6128_v25  ;;  %v10742_v57 = vld [vmem:[#allocation2 + $0x350] sm:$0xff] }
 0x382   :  { %v10736_v49 = vsel %vm3670_vm9, %v10487_v47, %v6152_v43  ;;  %v10740_v44 = vsel %vm3670_vm9, %v10508_v19, %v6153_v30  ;;  %v3736_v36 = vsel %vm3735_vm10, %v3671_v4, %v6252_v58  ;;  %v3737_v22 = vsel %vm3735_vm10, %v3672_v61, %v6253_v26  ;;  %v10763_v61 = vld [vmem:[#allocation2 + $0x348] sm:$0xff]  ;;  %v14492_v4 = vld [vmem:[#allocation167_spill] sm:$0xff] }
 0x383   :  { %v6333_v23 = vunpack.i.h.bf16 %v6331_v39  ;;  %v6332_v46 = vunpack.i.l.bf16 %v6331_v39  ;;  %v10752_v12 = vsel %vm3670_vm9, %v10518_v55, %v6137_v32  ;;  %v10756_v47 = vsel %vm3670_vm9, %v10527_v63, %v6138_v35  ;;  %14491 = vst [vmem:[#allocation128_spill] sm:$0xff] %v10763_v61  ;;  %v10767_v3 = vpop.permute.xlu1 %6315  ;;  %v14498_v63 = vld [vmem:[#allocation170_spill] sm:$0xff] }
 0x384   :  { %v6163_v19 = vunpack.i.h.bf16 %v14487_v48  ;;  %v10761_v58 = vsel %vm3670_vm9, %v10532_v27, %v6162_v11  ;;  %v6148_v25 = vunpack.i.h.bf16 %v14492_v4  ;;  %14493 = vst [vmem:[#allocation83_spill] sm:$0xff] %v10767_v3  ;;  %v3078_v30 = vrot.slane %v10742_v57, 1  ;;  %v10777_v48 = vld [vmem:[#allocation2 + $0x358] sm:$0x3] }
 0x385   :  { %6605 = vrot.lane.b32.xlu1 %v14489_v33, %s6911_s30  ;;  %6610 = vrot.lane.b32.xlu0 %v14473_v18, %s6912_s9  ;;  %14490 = vst [vmem:[#allocation126_spill] sm:$0xff] %v10761_v58  ;;  %v6147_v18 = vunpack.i.l.bf16 %v14492_v4  ;;  %v6341_v55 = vpop.permute.xlu0 %6340  ;;  %v14495_v35 = vunpack.i.l.bf16 %v14494_v6  ;;  %v14496_v11 = vunpack.i.h.bf16 %v14494_v6  ;;  %v6262_v39 = vunpack.i.l.bf16 %v10363_v31  ;;  %v14497_v33 = vld [vmem:[#allocation31_spill] sm:$0xff] }
 0x386   :  { %v6343_v43 = vunpack.i.h.bf16 %v6341_v55  ;;  %v6342_v26 = vunpack.i.l.bf16 %v6341_v55  ;;  %v6263_v6 = vunpack.i.h.bf16 %v10363_v31  ;;  %v6158_v58 = vunpack.i.h.bf16 %v14498_v63 }
 0x387   :  { %v3801_v27 = vsel %vm3800_vm11, %v3736_v36, %v14495_v35  ;;  %v3802_v32 = vsel %vm3800_vm11, %v3737_v22, %v14496_v11  ;;  %v3077_v36 = vrot.slane %v10763_v61, 1  ;;  %v3279_v11 = vrot.slane %v10763_v61, 2  ;;  %v10793_v24 = vpop.permute.xlu1 %6325 }
 0x388   :  { %v3866_v4 = vsel %vm3865_vm12, %v3801_v27, %v6332_v46  ;;  %v3867_v55 = vsel %vm3865_vm12, %v3802_v32, %v6333_v23  ;;  %v6157_v3 = vunpack.i.l.bf16 %v14498_v63  ;;  %v3080_v23 = vrot.slane %v10777_v48, 1 }
 0x389   :  { %6615 = vrot.lane.b32.xlu1 %v14497_v33, %s6912_s9  ;;  %6620 = vrot.lane.b32.xlu0 %v14497_v33, %s6915_s14  ;;  %v3931_v22 = vsel %vm3930_vm13, %v3866_v4, %v6342_v26  ;;  %v3932_v35 = vsel %vm3930_vm13, %v3867_v55, %v6343_v43  ;;  %v6351_v33 = vpop.permute.xlu0 %6350  ;;  %v10798_v27 = vsel %vm3670_vm9, %v10537_v53, %v6163_v19  ;;  %v6258_v31 = vunpack.i.h.bf16 %v10474_v50  ;;  %v14499_v4 = vld [vmem:[#allocation168_spill] sm:$0xff] }
 0x38a   :  { %v3995_v46 = vpack.c.bf16 %v3932_v35, %v3931_v22  ;;  %v6257_v43 = vunpack.i.l.bf16 %v10474_v50  ;;  %v10806_v63 = vsel %vm3670_vm9, %v10542_v62, %v6147_v18  ;;  %v10810_v32 = vsel %vm3670_vm9, %v10554_v56, %v6148_v25  ;;  %v14500_v19 = vld [vmem:[#allocation84_spill] sm:$0xff]  ;;  %v14501_v50 = vld [vmem:[#allocation154_spill] sm:$0xff]  ;;  %v14502_v22 = vld [vmem:[#allocation153_spill] sm:$0xff] }
 0x38b   :  { %v3740_v53 = vsel %vm3735_vm10, %v10630_v8, %v6262_v39  ;;  %v14503_v35 = vpack.i.bf16 %v14501_v50, %v14502_v22  ;;  %v3741_v62 = vsel %vm3735_vm10, %v10634_v40, %v6263_v6  ;;  %v6273_v18 = vunpack.i.h.bf16 %v10427_v14  ;;  %v6336_v50 = vpop.permute.xlu1 %6335 }
 0x38c   :  { %v6272_v56 = vunpack.i.l.bf16 %v10427_v14  ;;  %5424 = vmatprep.mubr.msk.bf16.mxu1 %vm274_vm0, %v3995_v46  ;;  %v10827_v25 = vsel %vm1566_vm5, %v3077_v36, %v3078_v30  ;;  %v10831_v8 = vsel %vm3670_vm9, %v10567_v13, %v6157_v3  ;;  %v10835_v39 = vsel %vm3670_vm9, %v10572_v38, %v6158_v58  ;;  %v14506_v46 = vld [vmem:[#allocation62_spill] sm:$0xff] }
 0x38d   :  { %6625 = vrot.lane.b32.xlu1 %v14500_v19, %s6915_s14  ;;  %6630 = vrot.lane.b32.xlu0 %v14503_v35, %s6909_s28  ;;  %v6361_v22 = vpop.permute.xlu0 %6360  ;;  %v10838_v40 = vsel %vm1566_vm5, %v3078_v30, %v3080_v23  ;;  %v14504_v14 = vrot.slane %v10742_v57, 2  ;;  %v3738_v36 = vsel %vm3735_vm10, %v10646_v37, %v6257_v43  ;;  %v3739_v13 = vsel %vm3735_vm10, %v10650_v9, %v6258_v31  ;;  %v14512_v37 = vld [vmem:[#allocation95_spill] sm:$0xff] }
 0x38e   :  { %v6352_v3 = vunpack.i.l.bf16 %v6351_v33  ;;  %v14507_v38 = vunpack.i.l.bf16 %v14506_v46  ;;  %v6353_v35 = vunpack.i.h.bf16 %v6351_v33  ;;  %v14508_v30 = vunpack.i.h.bf16 %v14506_v46 }
 0x38f   :  { %v10843_v6 = vsel %vm1919_vm6, %v3279_v11, %v14504_v14  ;;  %v6338_v55 = vunpack.i.h.bf16 %v6336_v50  ;;  %v6337_v26 = vunpack.i.l.bf16 %v6336_v50  ;;  %v14509_v11 = vld [vmem:[#allocation156_spill] sm:$0xff]  ;;  %v14510_v14 = vld [vmem:[#allocation155_spill] sm:$0xff]  ;;  %v3744_v9 = vsel %vm3735_vm10, %v10638_v51, %v6272_v56 }
 0x390   :  { %14505 = vst [vmem:[#allocation127_spill] sm:$0xff] %v10843_v6  ;;  %v3805_v58 = vsel %vm3800_vm11, %v3740_v53, %v14507_v38  ;;  %v3806_v23 = vsel %vm3800_vm11, %v3741_v62, %v14508_v30  ;;  %v14511_v61 = vpack.i.bf16 %v14509_v11, %v14510_v14  ;;  %v3745_v33 = vsel %vm3735_vm10, %v10642_v0, %v6273_v18  ;;  %v14513_v50 = vld [vmem:[#allocation4_spill] sm:$0xff]  ;;  %v6346_v11 = vpop.permute.xlu1 %6345 }
 0x391   :  { %6640 = vrot.lane.b32.xlu0 %v14512_v37, %s6911_s30  ;;  %v6363_v31 = vunpack.i.h.bf16 %v6361_v22  ;;  %v6362_v43 = vunpack.i.l.bf16 %v6361_v22  ;;  %v6283_v53 = vunpack.i.h.bf16 %v10476_v17  ;;  %v6268_v62 = vunpack.i.h.bf16 %v10520_v28  ;;  %v6371_v14 = vpop.permute.xlu0 %6370 }
 0x392   :  { %6635 = vrot.lane.b32.xlu1 %v14511_v61, %s6909_s28  ;;  %v14514_v46 = vunpack.i.l.bf16 %v14513_v50  ;;  %v14515_v61 = vunpack.i.h.bf16 %v14513_v50  ;;  %v6267_v51 = vunpack.i.l.bf16 %v10520_v28  ;;  %v3870_v0 = vsel %vm3865_vm12, %v3805_v58, %v6352_v3  ;;  %v14516_v50 = vld [vmem:[#allocation96_spill] sm:$0xff] }
 0x393   :  { %v6348_v18 = vunpack.i.h.bf16 %v6346_v11  ;;  %v6347_v56 = vunpack.i.l.bf16 %v6346_v11  ;;  %v6282_v22 = vunpack.i.l.bf16 %v10476_v17  ;;  %v3871_v37 = vsel %vm3865_vm12, %v3806_v23, %v6353_v35  ;;  %v14517_v58 = vld [vmem:[#allocation108_spill] sm:$0xff] }
 0x394   :  { %v3803_v38 = vsel %vm3800_vm11, %v3738_v36, %v14514_v46  ;;  %v3804_v30 = vsel %vm3800_vm11, %v3739_v13, %v14515_v61  ;;  %v3935_v28 = vsel %vm3930_vm13, %v3870_v0, %v6362_v43  ;;  %v3936_v13 = vsel %vm3930_vm13, %v3871_v37, %v6363_v31 }
 0x395   :  { %v3868_v6 = vsel %vm3865_vm12, %v3803_v38, %v6337_v26  ;;  %v3869_v36 = vsel %vm3865_vm12, %v3804_v30, %v6338_v55  ;;  %6650 = vrot.lane.b32.xlu0 %v14500_v19, %s6912_s9  ;;  %v6168_v35 = vunpack.i.h.bf16 %v14517_v58  ;;  %v14518_v26 = vld [vmem:[#allocation97_spill] sm:$0xff]  ;;  %v6356_v38 = vpop.permute.xlu1 %6355  ;;  %v6381_v61 = vpop.permute.xlu0 %6380  ;;  %v3282_v30 = vrot.slane %v10777_v48, 2 }
 0x396   :  { %6645 = vrot.lane.b32.xlu1 %v14516_v50, %s6911_s30  ;;  %v3933_v3 = vsel %vm3930_vm13, %v3868_v6, %v6347_v56  ;;  %v3934_v17 = vsel %vm3930_vm13, %v3869_v36, %v6348_v18  ;;  %v14519_v46 = vunpack.i.l.bf16 %v14518_v26  ;;  %v3742_v19 = vsel %vm3735_vm10, %v10670_v52, %v6267_v51  ;;  %v14522_v36 = vld [vmem:[#allocation63_spill] sm:$0xff] }
 0x397   :  { %v3996_v23 = vpack.c.bf16 %v3934_v17, %v3933_v3  ;;  %v3743_v31 = vsel %vm3735_vm10, %v10687_v7, %v6268_v62  ;;  %v6372_v6 = vunpack.i.l.bf16 %v6371_v14  ;;  %v14520_v43 = vunpack.i.h.bf16 %v14518_v26 }
 0x398   :  { %v3809_v55 = vsel %vm3800_vm11, %v3744_v9, %v14519_v46  ;;  %v3997_v0 = vpack.c.bf16 %v3936_v13, %v3935_v28  ;;  %v6373_v18 = vunpack.i.h.bf16 %v6371_v14  ;;  %v6358_v56 = vunpack.i.h.bf16 %v6356_v38  ;;  %v14521_v9 = vld [vmem:[#allocation29_spill] sm:$0xff] }
 0x399   :  { %v3810_v11 = vsel %vm3800_vm11, %v3745_v33, %v14520_v43  ;;  %v6357_v37 = vunpack.i.l.bf16 %v6356_v38  ;;  %6660 = vrot.lane.b32.xlu0 %v14521_v9, %s6915_s14  ;;  %v3748_v52 = vsel %vm3735_vm10, %v10662_v42, %v6282_v22  ;;  %v3749_v7 = vsel %vm3735_vm10, %v10666_v15, %v6283_v53  ;;  %5425 = vmatmul.mubr.msk.bf16.vlgmr.msra.gmra.mrb[0].mxu1 %vm274_vm0, %v3996_v23  ;;  %v6366_v42 = vpop.permute.xlu1 %6365  ;;  %v6391_v15 = vpop.permute.xlu0 %6390  ;;  %v14527_v43 = vld [vmem:[#allocation159_spill] sm:$0xff] }
 0x39a   :  { %6655 = vrot.lane.b32.xlu1 %v14521_v9, %s6912_s9  ;;  %v6383_v62 = vunpack.i.h.bf16 %v6381_v61  ;;  %v6382_v51 = vunpack.i.l.bf16 %v6381_v61  ;;  %v6293_v33 = vunpack.i.h.bf16 %v10522_v21  ;;  %v6278_v14 = vunpack.i.h.bf16 %v10579_v5  ;;  %5428 = vmatprep.mubr.msk.bf16.mxu1 %vm274_vm0, %v3997_v0 }
 0x39b   :  { %v14523_v50 = vunpack.i.l.bf16 %v14522_v36  ;;  %v14524_v13 = vunpack.i.h.bf16 %v14522_v36  ;;  %v6277_v53 = vunpack.i.l.bf16 %v10579_v5  ;;  %v3874_v22 = vsel %vm3865_vm12, %v3809_v55, %v6372_v6 }
 0x39c   :  { %v6368_v17 = vunpack.i.h.bf16 %v6366_v42  ;;  %v6367_v23 = vunpack.i.l.bf16 %v6366_v42  ;;  %v6292_v26 = vunpack.i.l.bf16 %v10522_v21  ;;  %v3875_v46 = vsel %vm3865_vm12, %v3810_v11, %v6373_v18 }
 0x39d   :  { %v3807_v28 = vsel %vm3800_vm11, %v3742_v19, %v14523_v50  ;;  %v3808_v3 = vsel %vm3800_vm11, %v3743_v31, %v14524_v13  ;;  %v14525_v19 = vld [vmem:[#allocation28_spill] sm:$0xff]  ;;  %v3939_v5 = vsel %vm3930_vm13, %v3874_v22, %v6382_v51  ;;  %v3940_v55 = vsel %vm3930_vm13, %v3875_v46, %v6383_v62  ;;  %v6376_v36 = vpop.permute.xlu1 %6375  ;;  %v6401_v50 = vpop.permute.xlu0 %6400  ;;  %v14532_v46 = vld [vmem:[#allocation162_spill] sm:$0xff] }
 0x39e   :  { %v3872_v38 = vsel %vm3865_vm12, %v3807_v28, %v6357_v37  ;;  %v3873_v61 = vsel %vm3865_vm12, %v3808_v3, %v6358_v56  ;;  %6665 = vrot.lane.b32.xlu1 %v14525_v19, %s6915_s14  ;;  %v14526_v31 = vld [vmem:[#allocation160_spill] sm:$0xff]  ;;  %v6167_v11 = vunpack.i.l.bf16 %v14517_v58  ;;  %v14529_v56 = vld [vmem:[#allocation98_spill] sm:$0xff]  ;;  %v6764_v28 = vpack.i.bf16 %v10838_v40, %v10827_v25 }
 0x39f   :  { %v14528_v0 = vpack.i.bf16 %v14526_v31, %v14527_v43  ;;  %v3937_v21 = vsel %vm3930_vm13, %v3872_v38, %v6367_v23  ;;  %v3938_v6 = vsel %vm3930_vm13, %v3873_v61, %v6368_v17  ;;  %v14530_v37 = vunpack.i.l.bf16 %v14529_v56  ;;  %v14533_v38 = vld [vmem:[#allocation161_spill] sm:$0xff]  ;;  %v14535_v31 = vld [vmem:[#allocation18_spill] sm:$0xff] }
 0x3a0   :  { %v3998_v18 = vpack.c.bf16 %v3938_v6, %v3937_v21  ;;  %v3746_v51 = vsel %vm3735_vm10, %v10710_v16, %v6277_v53  ;;  %v3747_v62 = vsel %vm3735_vm10, %v10714_v2, %v6278_v14  ;;  %v6392_v13 = vunpack.i.l.bf16 %v6391_v15  ;;  %v14536_v43 = vld [vmem:[#allocation74_spill] sm:$0xff] }
 0x3a1   :  { %6670 = vrot.lane.b32.xlu0 %v14528_v0, %s6909_s28  ;;  %v3813_v9 = vsel %vm3800_vm11, %v3748_v52, %v14530_v37  ;;  %v14531_v3 = vunpack.i.h.bf16 %v14529_v56  ;;  %v3999_v22 = vpack.c.bf16 %v3940_v55, %v3939_v5  ;;  %v6393_v17 = vunpack.i.h.bf16 %v6391_v15 }
 0x3a2   :  { %v6378_v23 = vunpack.i.h.bf16 %v6376_v36  ;;  %v6377_v52 = vunpack.i.l.bf16 %v6376_v36  ;;  %v14534_v61 = vpack.i.bf16 %v14532_v46, %v14533_v38  ;;  %v3752_v16 = vsel %vm3735_vm10, %v10691_v54, %v6292_v26  ;;  %5429 = vmatmul.mubr.msk.bf16.gmra.mrb[4].mxu1 %vm274_vm0, %v3998_v18  ;;  %v6386_v54 = vpop.permute.xlu1 %6385 }
 0x3a3   :  { %v3814_v42 = vsel %vm3800_vm11, %v3749_v7, %v14531_v3  ;;  %v3753_v2 = vsel %vm3735_vm10, %v10703_v10, %v6293_v33  ;;  %v6403_v14 = vunpack.i.h.bf16 %v6401_v50  ;;  %v6402_v7 = vunpack.i.l.bf16 %v6401_v50  ;;  %5432 = vmatprep.mubr.msk.bf16.mxu1 %vm274_vm0, %v3999_v22  ;;  %v6411_v10 = vpop.permute.xlu0 %6410  ;;  %v14541_v22 = vld [vmem:[#allocation99_spill] sm:$0xff] }
 0x3a4   :  { %6675 = vrot.lane.b32.xlu1 %v14534_v61, %s6909_s28  ;;  %v6303_v15 = vunpack.i.h.bf16 %v10581_v1  ;;  %v6288_v53 = vunpack.i.h.bf16 %v10624_v29  ;;  %v14537_v0 = vunpack.i.l.bf16 %v14536_v43  ;;  %v14538_v55 = vunpack.i.h.bf16 %v14536_v43 }
 0x3a5   :  { %6680 = vrot.lane.b32.xlu0 %v14535_v31, %s6911_s30  ;;  %v6287_v33 = vunpack.i.l.bf16 %v10624_v29  ;;  %v3878_v26 = vsel %vm3865_vm12, %v3813_v9, %v6392_v13  ;;  %v6388_v6 = vunpack.i.h.bf16 %v6386_v54  ;;  %v6387_v18 = vunpack.i.l.bf16 %v6386_v54  ;;  %v14540_v13 = vld [vmem:[#allocation72_spill] sm:$0xff] }
 0x3a6   :  { %v3811_v5 = vsel %vm3800_vm11, %v3746_v51, %v14537_v0  ;;  %v3812_v21 = vsel %vm3800_vm11, %v3747_v62, %v14538_v55  ;;  %v6302_v56 = vunpack.i.l.bf16 %v10581_v1  ;;  %v3879_v37 = vsel %vm3865_vm12, %v3814_v42, %v6393_v17  ;;  %v14539_v51 = vld [vmem:[#allocation46_spill] sm:$0xff] }
 0x3a7   :  { %v3876_v36 = vsel %vm3865_vm12, %v3811_v5, %v6377_v52  ;;  %v3877_v50 = vsel %vm3865_vm12, %v3812_v21, %v6378_v23  ;;  %v3943_v29 = vsel %vm3930_vm13, %v3878_v26, %v6402_v7  ;;  %v3944_v9 = vsel %vm3930_vm13, %v3879_v37, %v6403_v14  ;;  %v6396_v52 = vpop.permute.xlu1 %6395  ;;  %v6421_v46 = vpop.permute.xlu0 %6420  ;;  %v14545_v5 = vld [vmem:[#allocation13_spill] sm:$0xff]  ;;  %v14546_v21 = vld [vmem:[#allocation24_spill] sm:$0xff] }
 0x3a8   :  { %6685 = vrot.lane.b32.xlu1 %v14539_v51, %s6911_s30  ;;  %v3941_v62 = vsel %vm3930_vm13, %v3876_v36, %v6387_v18  ;;  %v3942_v1 = vsel %vm3930_vm13, %v3877_v50, %v6388_v6  ;;  %v10982_v3 = vsel %vm3670_vm9, %v14540_v13, %v6167_v11  ;;  %v14542_v17 = vunpack.i.l.bf16 %v14541_v22 }
 0x3a9   :  { %6690 = vrot.lane.b32.xlu0 %v14525_v19, %s6912_s9  ;;  %v4000_v42 = vpack.c.bf16 %v3942_v1, %v3941_v62  ;;  %v14543_v19 = vrot.slane %v10742_v57, 2  ;;  %v3750_v61 = vsel %vm3735_vm10, %v10728_v34, %v6287_v33  ;;  %v3751_v11 = vsel %vm3735_vm10, %v10732_v60, %v6288_v53  ;;  %v14551_v62 = vld [vmem:[#allocation163_spill] sm:$0xff] }
 0x3aa   :  { %v3817_v23 = vsel %vm3800_vm11, %v3752_v16, %v14542_v17  ;;  %v6412_v31 = vunpack.i.l.bf16 %v6411_v10  ;;  %v14544_v14 = vunpack.i.h.bf16 %v14541_v22  ;;  %v4001_v7 = vpack.c.bf16 %v3944_v9, %v3943_v29  ;;  %v14549_v29 = vld [vmem:[#allocation38_spill] sm:$0xff]  ;;  %v14550_v9 = vld [vmem:[#allocation164_spill] sm:$0xff] }
 0x3ab   :  { %v10992_v38 = vsel %vm1919_vm6, %v14543_v19, %v3282_v30  ;;  %v6413_v43 = vunpack.i.h.bf16 %v6411_v10  ;;  %v6398_v0 = vunpack.i.h.bf16 %v6396_v52  ;;  %v6397_v48 = vunpack.i.l.bf16 %v6396_v52  ;;  %5433 = vmatmul.mubr.msk.bf16.gmra.mrb[8].mxu1 %vm274_vm0, %v4000_v42  ;;  %v14553_v22 = vld [vmem:[#allocation30_spill] sm:$0xff] }
 0x3ac   :  { %v3818_v16 = vsel %vm3800_vm11, %v3753_v2, %v14544_v14  ;;  %6695 = vrot.lane.b32.xlu1 %v14545_v5, %s6912_s9  ;;  %v3756_v34 = vsel %vm3735_vm10, %v10718_v41, %v6302_v56  ;;  %v3757_v60 = vsel %vm3735_vm10, %v10722_v20, %v6303_v15  ;;  %v6423_v30 = vunpack.i.h.bf16 %v6421_v46  ;;  %5436 = vmatprep.mubr.msk.bf16.mxu1 %vm274_vm0, %v4001_v7  ;;  %v6406_v41 = vpop.permute.xlu1 %6405  ;;  %v6431_v20 = vpop.permute.xlu0 %6430 }
 0x3ad   :  { %6700 = vrot.lane.b32.xlu0 %v14545_v5, %s6915_s14  ;;  %v6422_v53 = vunpack.i.l.bf16 %v6421_v46  ;;  %v6312_v2 = vunpack.i.l.bf16 %v10626_v45  ;;  %v6298_v55 = vunpack.i.h.bf16 %v10677_v59  ;;  %v14547_v54 = vunpack.i.l.bf16 %v14546_v21  ;;  %v14554_v46 = vld [vmem:[#allocation101_spill] sm:$0xff]  ;;  %v14557_v5 = vld [vmem:[#allocation166_spill] sm:$0xff] }
 0x3ae   :  { %v14548_v33 = vunpack.i.h.bf16 %v14546_v21  ;;  %v6297_v15 = vunpack.i.l.bf16 %v10677_v59  ;;  %v3882_v6 = vsel %vm3865_vm12, %v3817_v23, %v6412_v31  ;;  %v6408_v18 = vunpack.i.h.bf16 %v6406_v41 }
 0x3af   :  { %v3815_v10 = vsel %vm3800_vm11, %v3750_v61, %v14547_v54  ;;  %v6407_v56 = vunpack.i.l.bf16 %v6406_v41  ;;  %v6313_v37 = vunpack.i.h.bf16 %v10626_v45  ;;  %v3883_v36 = vsel %vm3865_vm12, %v3818_v16, %v6413_v43  ;;  %v14563_v54 = vld [vmem:[#allocation90_spill] sm:$0xff] }
 0x3b0   :  { %v3816_v26 = vsel %vm3800_vm11, %v3751_v11, %v14548_v33  ;;  %v3880_v50 = vsel %vm3865_vm12, %v3815_v10, %v6397_v48  ;;  %6705 = vrot.lane.b32.xlu1 %v14549_v29, %s6915_s14  ;;  %v14552_v1 = vpack.i.bf16 %v14550_v9, %v14551_v62  ;;  %v3947_v59 = vsel %vm3930_vm13, %v3882_v6, %v6422_v53  ;;  %v6416_v11 = vpop.permute.xlu1 %6415  ;;  %v6441_v31 = vpop.permute.xlu0 %6440  ;;  %v14560_v53 = vld [vmem:[#allocation37_spill] sm:$0xff]  ;;  %v14565_v41 = vld [vmem:[#allocation26_spill] sm:$0xff] }
 0x3b1   :  { %v3881_v51 = vsel %vm3865_vm12, %v3816_v26, %v6398_v0  ;;  %v3948_v13 = vsel %vm3930_vm13, %v3883_v36, %v6423_v30  ;;  %v3945_v45 = vsel %vm3930_vm13, %v3880_v50, %v6407_v56  ;;  %v11039_v17 = vsel %vm3670_vm9, %v14553_v22, %v6168_v35  ;;  %v14564_v33 = vld [vmem:[#allocation125_spill] sm:$0xff] }
 0x3b2   :  { %6710 = vrot.lane.b32.xlu0 %v14552_v1, %s6909_s28  ;;  %v3946_v42 = vsel %vm3930_vm13, %v3881_v51, %v6408_v18  ;;  %v3760_v23 = vsel %vm3735_vm10, %v10736_v49, %v6312_v2  ;;  %v14555_v19 = vunpack.i.l.bf16 %v14554_v46  ;;  %v3754_v14 = vsel %vm3735_vm10, %v10752_v12, %v6297_v15 }
 0x3b3   :  { %v4002_v52 = vpack.c.bf16 %v3946_v42, %v3945_v45  ;;  %v3755_v58 = vsel %vm3735_vm10, %v10756_v47, %v6298_v55  ;;  %v6432_v16 = vunpack.i.l.bf16 %v6431_v20  ;;  %v14556_v35 = vunpack.i.h.bf16 %v14554_v46  ;;  %v14569_v46 = vld [vmem:[#allocation83_spill] sm:$0xff] }
 0x3b4   :  { %v3821_v61 = vsel %vm3800_vm11, %v3756_v34, %v14555_v19  ;;  %v4003_v43 = vpack.c.bf16 %v3948_v13, %v3947_v59  ;;  %v6433_v49 = vunpack.i.h.bf16 %v6431_v20  ;;  %v6418_v0 = vunpack.i.h.bf16 %v6416_v11  ;;  %v14558_v34 = vld [vmem:[#allocation165_spill] sm:$0xff]  ;;  %v6426_v18 = vpop.permute.xlu1 %6425  ;;  %v6451_v56 = vpop.permute.xlu0 %6450  ;;  %v14568_v13 = vld [vmem:[#allocation40_spill] sm:$0xff] }
 0x3b5   :  { %v3822_v7 = vsel %vm3800_vm11, %v3757_v60, %v14556_v35  ;;  %v6417_v48 = vunpack.i.l.bf16 %v6416_v11  ;;  %v14559_v30 = vpack.i.bf16 %v14557_v5, %v14558_v34  ;;  %v3761_v12 = vsel %vm3735_vm10, %v10740_v44, %v6313_v37  ;;  %5437 = vmatmul.mubr.msk.bf16.gmra.mrb[12].mxu1 %vm274_vm0, %v4002_v52  ;;  %v14561_v60 = vld [vmem:[#allocation103_spill] sm:$0xff]  ;;  %v14572_v5 = vld [vmem:[#allocation85_spill] sm:$0xff] }
 0x3b6   :  { %6720 = vrot.lane.b32.xlu0 %v14560_v53, %s6911_s30  ;;  %v6443_v47 = vunpack.i.h.bf16 %v6441_v31  ;;  %v6442_v2 = vunpack.i.l.bf16 %v6441_v31  ;;  %v14562_v55 = vunpack.i.l.bf16 %v14561_v60  ;;  %v6322_v10 = vunpack.i.l.bf16 %v14563_v54  ;;  %5440 = vmatprep.mubr.msk.bf16.mxu1 %vm274_vm0, %v4003_v43 }
 0x3b7   :  { %6715 = vrot.lane.b32.xlu1 %v14559_v30, %s6909_s28  ;;  %v6307_v26 = vunpack.i.l.bf16 %v14564_v33  ;;  %v14566_v20 = vunpack.i.l.bf16 %v14565_v41  ;;  %v14567_v6 = vunpack.i.h.bf16 %v14565_v41  ;;  %v6308_v37 = vunpack.i.h.bf16 %v14564_v33  ;;  %v14573_v30 = vld [vmem:[#allocation100_spill] sm:$0xff] }
 0x3b8   :  { %v3825_v21 = vsel %vm3800_vm11, %v3760_v23, %v14562_v55  ;;  %v3886_v36 = vsel %vm3865_vm12, %v3821_v61, %v6432_v16  ;;  %v6428_v50 = vunpack.i.h.bf16 %v6426_v18  ;;  %v6427_v51 = vunpack.i.l.bf16 %v6426_v18  ;;  %v6436_v31 = vpop.permute.xlu1 %6435  ;;  %v14576_v18 = vld [vmem:[#allocation169_spill] sm:$0xff] }
 0x3b9   :  { %v3819_v15 = vsel %vm3800_vm11, %v3754_v14, %v14566_v20  ;;  %v3820_v44 = vsel %vm3800_vm11, %v3755_v58, %v14567_v6  ;;  %v6323_v9 = vunpack.i.h.bf16 %v14563_v54  ;;  %v3887_v62 = vsel %vm3865_vm12, %v3822_v7, %v6433_v49  ;;  %v6461_v14 = vpop.permute.xlu0 %6460  ;;  %v14570_v58 = vld [vmem:[#allocation126_spill] sm:$0xff] }
 0x3ba   :  { %v3884_v1 = vsel %vm3865_vm12, %v3819_v15, %v6417_v48  ;;  %v3885_v59 = vsel %vm3865_vm12, %v3820_v44, %v6418_v0  ;;  %6730 = vrot.lane.b32.xlu0 %v14549_v29, %s6912_s9  ;;  %v3951_v45 = vsel %vm3930_vm13, %v3886_v36, %v6442_v2  ;;  %v3952_v42 = vsel %vm3930_vm13, %v3887_v62, %v6443_v47 }
 0x3bb   :  { %6725 = vrot.lane.b32.xlu1 %v14568_v13, %s6911_s30  ;;  %v3949_v22 = vsel %vm3930_vm13, %v3884_v1, %v6427_v51  ;;  %v3950_v23 = vsel %vm3930_vm13, %v3885_v59, %v6428_v50  ;;  %v3758_v52 = vsel %vm3735_vm10, %v10806_v63, %v6307_v26  ;;  %v6318_v19 = vunpack.i.h.bf16 %v14569_v46 }
 0x3bc   :  { %v6317_v61 = vunpack.i.l.bf16 %v14569_v46  ;;  %v4004_v11 = vpack.c.bf16 %v3950_v23, %v3949_v22  ;;  %v3764_v29 = vsel %vm3735_vm10, %v14570_v58, %v6322_v10  ;;  %v3759_v16 = vsel %vm3735_vm10, %v10810_v32, %v6308_v37  ;;  %v6446_v10 = vpop.permute.xlu1 %6445  ;;  %v14578_v37 = vld [vmem:[#allocation21_spill] sm:$0xff]  ;;  %v14583_v58 = vld [vmem:[#allocation128_spill] sm:$0xff] }
 0x3bd   :  { %v6452_v35 = vunpack.i.l.bf16 %v6451_v56  ;;  %v14571_v7 = vunpack.i.h.bf16 %v14561_v60  ;;  %v4005_v49 = vpack.c.bf16 %v3952_v42, %v3951_v45  ;;  %v6453_v63 = vunpack.i.h.bf16 %v6451_v56  ;;  %v6471_v33 = vpop.permute.xlu0 %6470  ;;  %v14577_v56 = vld [vmem:[#allocation58_spill] sm:$0xff]  ;;  %v14580_v22 = vld [vmem:[#allocation105_spill] sm:$0xff] }
 0x3be   :  { %v6438_v0 = vunpack.i.h.bf16 %v6436_v31  ;;  %v6437_v48 = vunpack.i.l.bf16 %v6436_v31  ;;  %6740 = vrot.lane.b32.xlu0 %v14572_v5, %s6915_s14  ;;  %v3765_v34 = vsel %vm3735_vm10, %v10798_v27, %v6323_v9  ;;  %v14574_v32 = vunpack.i.l.bf16 %v14573_v30  ;;  %5441 = vmatmul.mubr.msk.bf16.gmra.mrb[16].mxu1 %vm274_vm0, %v4004_v11 }
 0x3bf   :  { %v3826_v43 = vsel %vm3800_vm11, %v3761_v12, %v14571_v7  ;;  %6735 = vrot.lane.b32.xlu1 %v14572_v5, %s6912_s9  ;;  %v6463_v47 = vunpack.i.h.bf16 %v6461_v14  ;;  %v6462_v2 = vunpack.i.l.bf16 %v6461_v14  ;;  %v3762_v12 = vsel %vm3735_vm10, %v10831_v8, %v6317_v61  ;;  %5444 = vmatprep.mubr.msk.bf16.mxu1 %vm274_vm0, %v4005_v49  ;;  %v14589_v49 = vld [vmem:[#allocation102_spill] sm:$0xff] }
 0x3c0   :  { %v3823_v53 = vsel %vm3800_vm11, %v3758_v52, %v14574_v32  ;;  %v3763_v60 = vsel %vm3735_vm10, %v10835_v39, %v6318_v19  ;;  %v6327_v55 = vunpack.i.l.bf16 %v10793_v24  ;;  %v14575_v54 = vunpack.i.h.bf16 %v14573_v30  ;;  %v6456_v13 = vpop.permute.xlu1 %6455  ;;  %v14582_v19 = vld [vmem:[#allocation127_spill] sm:$0xff] }
 0x3c1   :  { %v6328_v26 = vunpack.i.h.bf16 %v10793_v24  ;;  %v3890_v41 = vsel %vm3865_vm12, %v3825_v21, %v6452_v35  ;;  %v6448_v20 = vunpack.i.h.bf16 %v6446_v10  ;;  %v6447_v15 = vunpack.i.l.bf16 %v6446_v10  ;;  %v6476_v45 = vpop.permute.xlu0 %6475  ;;  %v14585_v35 = vld [vmem:[#allocation44_spill] sm:$0xff] }
 0x3c2   :  { %v3824_v27 = vsel %vm3800_vm11, %v3759_v16, %v14575_v54  ;;  %v6172_v8 = vunpack.i.l.bf16 %v14499_v4  ;;  %v3891_v39 = vsel %vm3865_vm12, %v3826_v43, %v6453_v63  ;;  %v3888_v6 = vsel %vm3865_vm12, %v3823_v53, %v6437_v48 }
 0x3c3   :  { %v3889_v44 = vsel %vm3865_vm12, %v3824_v27, %v6438_v0  ;;  %6745 = vrot.lane.b32.xlu1 %v14576_v18, %s6915_s14  ;;  %v14579_v36 = vpack.i.bf16 %v14577_v56, %v14578_v37  ;;  %v3955_v24 = vsel %vm3930_vm13, %v3890_v41, %v6462_v2  ;;  %v3956_v21 = vsel %vm3930_vm13, %v3891_v39, %v6463_v47  ;;  %v14593_v27 = vld [vmem:[#allocation109_spill] sm:$0xff] }
 0x3c4   :  { %v3953_v50 = vsel %vm3930_vm13, %v3888_v6, %v6447_v15  ;;  %v3954_v51 = vsel %vm3930_vm13, %v3889_v44, %v6448_v20  ;;  %v3766_v9 = vsel %vm3735_vm10, %v10982_v3, %v6327_v55  ;;  %v6473_v1 = vunpack.i.h.bf16 %v6471_v33  ;;  %v6466_v47 = vpop.permute.xlu1 %6465  ;;  %v14595_v15 = vld [vmem:[#allocation151_spill] sm:$0xff]  ;;  %v14596_v6 = vld [vmem:[#allocation152_spill] sm:$0xff] }
 0x3c5   :  { %6750 = vrot.lane.b32.xlu0 %v14579_v36, %s6909_s28  ;;  %v4006_v62 = vpack.c.bf16 %v3954_v51, %v3953_v50  ;;  %v6472_v59 = vunpack.i.l.bf16 %v6471_v33  ;;  %v3767_v42 = vsel %vm3735_vm10, %v11039_v17, %v6328_v26  ;;  %v14581_v23 = vunpack.i.l.bf16 %v14580_v22  ;;  %v14586_v17 = vld [vmem:[#allocation41_spill] sm:$0xff]  ;;  %v6481_v2 = vpop.permute.xlu0 %6480  ;;  %v14597_v36 = vld [vmem:[#allocation110_spill] sm:$0xff] }
 0x3c6   :  { %v6457_v46 = vunpack.i.l.bf16 %v6456_v13  ;;  %v6774_v61 = vpack.i.bf16 %v10992_v38, %v14582_v19  ;;  %v4007_v11 = vpack.c.bf16 %v3956_v21, %v3955_v24  ;;  %v6458_v31 = vunpack.i.h.bf16 %v6456_v13 }
 0x3c7   :  { %v3829_v52 = vsel %vm3800_vm11, %v3764_v29, %v14581_v23  ;;  %v6478_v14 = vunpack.i.h.bf16 %v6476_v45  ;;  %v6477_v3 = vunpack.i.l.bf16 %v6476_v45  ;;  %v14584_v16 = vpack.i.bf16 %v10742_v57, %v14583_v58  ;;  %5445 = vmatmul.mubr.msk.bf16.gmra.mrb[20].mxu1 %vm274_vm0, %v4006_v62  ;;  %v14606_v58 = vld [vmem:[#allocation124_spill] sm:$0xff] }
 0x3c8   :  { %v14587_v7 = vunpack.i.l.bf16 %v14586_v17  ;;  %v14588_v43 = vunpack.i.h.bf16 %v14580_v22  ;;  %v14590_v63 = vunpack.i.l.bf16 %v14589_v49  ;;  %v14591_v48 = vunpack.i.h.bf16 %v14589_v49  ;;  %5448 = vmatprep.mubr.msk.bf16.mxu1 %vm274_vm0, %v4007_v11  ;;  %v14601_v22 = vld [vmem:[#allocation137_spill] sm:$0xff]  ;;  %v14603_v11 = vld [vmem:[#allocation16_spill] sm:$0xff] }
 0x3c9   :  { %6755 = vrot.lane.b32.xlu1 %v14584_v16, %s6909_s28  ;;  %6760 = vrot.lane.b32.xlu0 %v14585_v35, %s6911_s30  ;;  %v14592_v5 = vunpack.i.h.bf16 %v14586_v17  ;;  %v3894_v32 = vsel %vm3865_vm12, %v3829_v52, %v6472_v59  ;;  %v6467_v55 = vunpack.i.l.bf16 %v6466_v47  ;;  %v6483_v54 = vunpack.i.h.bf16 %v6481_v2  ;;  %v6491_v21 = vpop.permute.xlu0 %6490 }
 0x3ca   :  { %v3831_v29 = vsel %vm3800_vm11, %v3766_v9, %v14587_v7  ;;  %v3830_v38 = vsel %vm3800_vm11, %v3765_v34, %v14588_v43  ;;  %v3827_v0 = vsel %vm3800_vm11, %v3762_v12, %v14590_v63  ;;  %v3828_v57 = vsel %vm3800_vm11, %v3763_v60, %v14591_v48  ;;  %v14607_v7 = vld [vmem:[#allocation59_spill] sm:$0xff] }
 0x3cb   :  { %v3832_v30 = vsel %vm3800_vm11, %v3767_v42, %v14592_v5  ;;  %v3895_v53 = vsel %vm3865_vm12, %v3830_v38, %v6473_v1  ;;  %v3892_v34 = vsel %vm3865_vm12, %v3827_v0, %v6457_v46  ;;  %v6468_v12 = vunpack.i.h.bf16 %v6466_v47  ;;  %v14602_v46 = vld [vmem:[#allocation171_spill] sm:$0xff] }
 0x3cc   :  { %v6482_v60 = vunpack.i.l.bf16 %v6481_v2  ;;  %v5783_v10 = vunpack.i.h.bf16 %v14593_v27  ;;  %v3893_v33 = vsel %vm3865_vm12, %v3828_v57, %v6458_v31  ;;  %v3959_v26 = vsel %vm3930_vm13, %v3894_v32, %v6477_v3  ;;  %v14610_v63 = vld [vmem:[#allocation107_spill] sm:$0xff] }
 0x3cd   :  { %v3960_v41 = vsel %vm3930_vm13, %v3895_v53, %v6478_v14  ;;  %6765 = vrot.lane.b32.xlu1 %v6764_v28, %s6911_s30  ;;  %6770 = vrot.lane.b32.xlu0 %v14576_v18, %s6912_s9  ;;  %v14594_v20 = vunpack.i.h.bf16 %v14499_v4  ;;  %v3703_v44 = vsel %vm3670_vm9, %v14596_v6, %v6172_v8  ;;  %v3957_v56 = vsel %vm3930_vm13, %v3892_v34, %v6467_v55  ;;  %v6486_v28 = vpop.permute.xlu1 %6485  ;;  %v14598_v18 = vld [vmem:[#allocation52_spill] sm:$0xff]  ;;  %v14605_v14 = vld [vmem:[#allocation123_spill] sm:$0xff]  ;;  %v6501_v17 = vpop.permute.xlu0 %6500 }
 0x3ce   :  { %v3958_v37 = vsel %vm3930_vm13, %v3893_v33, %v6468_v12  ;;  %v6178_v24 = vunpack.i.h.bf16 %v14597_v36  ;;  %v6177_v25 = vunpack.i.l.bf16 %v14597_v36  ;;  %v14599_v50 = vunpack.i.l.bf16 %v14598_v18 }
 0x3cf   :  { %v3704_v39 = vsel %vm3670_vm9, %v14595_v15, %v14594_v20  ;;  %v4008_v40 = vpack.c.bf16 %v3958_v37, %v3957_v56  ;;  %v4009_v51 = vpack.c.bf16 %v3960_v41, %v3959_v26  ;;  %v3768_v9 = vsel %vm3735_vm10, %v3703_v44, %v6482_v60  ;;  %v14613_v26 = vld [vmem:[#allocation65_spill] sm:$0xff]  ;;  %v14615_v20 = vld [vmem:[#allocation14_spill] sm:$0xff] }
 0x3d0   :  { %v3896_v4 = vsel %vm3865_vm12, %v3831_v29, %v14599_v50  ;;  %v3769_v8 = vsel %vm3735_vm10, %v3704_v39, %v6483_v54  ;;  %v14600_v62 = vunpack.i.h.bf16 %v14598_v18  ;;  %v6488_v59 = vunpack.i.h.bf16 %v6486_v28  ;;  %v14618_v50 = vld [vmem:[#allocation104_spill] sm:$0xff] }
 0x3d1   :  { %v6487_v13 = vunpack.i.l.bf16 %v6486_v28  ;;  %v6493_v45 = vunpack.i.h.bf16 %v6491_v21  ;;  %v6492_v42 = vunpack.i.l.bf16 %v6491_v21  ;;  %6775 = vrot.lane.b32.xlu1 %v6774_v61, %s6912_s9  ;;  %v6028_v23 = vunpack.i.h.bf16 %v14601_v22  ;;  %5449 = vmatmul.mubr.msk.bf16.gmra.mrb[24].mxu1 %vm274_vm0, %v4008_v40  ;;  %v6496_v61 = vpop.permute.xlu1 %6495  ;;  %v6511_v44 = vpop.permute.xlu0 %6510  ;;  %v14616_v40 = vld [vmem:[#allocation87_spill] sm:$0xff]  ;;  %v14617_v21 = vld [vmem:[#allocation89_spill] sm:$0xff] }
 0x3d2   :  { %v3897_v1 = vsel %vm3865_vm12, %v3832_v30, %v14600_v62  ;;  %v6027_v52 = vunpack.i.l.bf16 %v14601_v22  ;;  %v6182_v19 = vunpack.i.l.bf16 %v14602_v46  ;;  %v14604_v31 = vunpack.i.h.bf16 %v14603_v11  ;;  %5452 = vmatprep.mubr.msk.bf16.mxu1 %vm274_vm0, %v4009_v51  ;;  %v14621_v62 = vld [vmem:[#allocation122_spill] sm:$0xff] }
 0x3d3   :  { %v3705_v16 = vsel %vm3670_vm9, %v14606_v58, %v6177_v25  ;;  %v14608_v29 = vunpack.i.l.bf16 %v14607_v7  ;;  %v14609_v38 = vunpack.i.h.bf16 %v14607_v7  ;;  %v14611_v0 = vunpack.i.l.bf16 %v14610_v63 }
 0x3d4   :  { %v3641_v3 = vsel %vm3605_vm8, %v14605_v14, %v14604_v31  ;;  %v14612_v57 = vunpack.i.h.bf16 %v14610_v63  ;;  %v6503_v30 = vunpack.i.h.bf16 %v6501_v17  ;;  %v6502_v32 = vunpack.i.l.bf16 %v6501_v17 }
 0x3d5   :  { %v3706_v35 = vsel %vm3670_vm9, %v3641_v3, %v6178_v24  ;;  %v3961_v43 = vsel %vm3930_vm13, %v3896_v4, %v14608_v29  ;;  %v3962_v49 = vsel %vm3930_vm13, %v3897_v1, %v14609_v38  ;;  %v3833_v48 = vsel %vm3800_vm11, %v3768_v9, %v14611_v0  ;;  %v6506_v6 = vpop.permute.xlu1 %6505 }
 0x3d6   :  { %v3834_v5 = vsel %vm3800_vm11, %v3769_v8, %v14612_v57  ;;  %v3770_v53 = vsel %vm3735_vm10, %v3705_v16, %v6487_v13  ;;  %v3771_v34 = vsel %vm3735_vm10, %v3706_v35, %v6488_v59  ;;  %v3898_v47 = vsel %vm3865_vm12, %v3833_v48, %v6492_v42  ;;  %v14622_v59 = vld [vmem:[#allocation69_spill] sm:$0xff]  ;;  %v14623_v35 = vld [vmem:[#allocation32_spill] sm:$0xff] }
 0x3d7   :  { %v3899_v2 = vsel %vm3865_vm12, %v3834_v5, %v6493_v45  ;;  %v6498_v12 = vunpack.i.h.bf16 %v6496_v61  ;;  %v6497_v55 = vunpack.i.l.bf16 %v6496_v61  ;;  %v3963_v54 = vsel %vm3930_vm13, %v3898_v47, %v6502_v32 }
 0x3d8   :  { %v3964_v60 = vsel %vm3930_vm13, %v3899_v2, %v6503_v30  ;;  %v6183_v33 = vunpack.i.h.bf16 %v14602_v46  ;;  %v14614_v41 = vunpack.i.h.bf16 %v14613_v26  ;;  %v4010_v56 = vpack.c.bf16 %v3962_v49, %v3961_v43  ;;  %v14625_v43 = vld [vmem:[#allocation106_spill] sm:$0xff]  ;;  %v14626_v49 = vld [vmem:[#allocation55_spill] sm:$0xff] }
 0x3d9   :  { %v4011_v39 = vpack.c.bf16 %v3964_v60, %v3963_v54  ;;  %v6508_v37 = vunpack.i.h.bf16 %v6506_v6  ;;  %v6507_v36 = vunpack.i.l.bf16 %v6506_v6  ;;  %v6513_v24 = vunpack.i.h.bf16 %v6511_v44  ;;  %v6516_v11 = vpop.permute.xlu1 %6515 }
 0x3da   :  { %v3643_v15 = vsel %vm3605_vm8, %v14615_v20, %v14614_v41  ;;  %v6512_v25 = vunpack.i.l.bf16 %v6511_v44  ;;  %v3580_v28 = vsel %vm3540_vm7, %v14616_v40, %v6028_v23  ;;  %v3579_v18 = vsel %vm3540_vm7, %v14617_v21, %v6027_v52  ;;  %5453 = vmatmul.mubr.msk.bf16.gmra.mrb[28].mxu1 %vm274_vm0, %v4010_v56  ;;  %v14629_v44 = vld [vmem:[#allocation134_spill] sm:$0xff] }
 0x3db   :  { %v14619_v4 = vunpack.i.l.bf16 %v14618_v50  ;;  %v14620_v9 = vunpack.i.h.bf16 %v14618_v50  ;;  %v3707_v1 = vsel %vm3670_vm9, %v14621_v62, %v6182_v19  ;;  %v6187_v13 = vunpack.i.l.bf16 %v14622_v59  ;;  %5456 = vmatprep.mubr.msk.bf16.mxu1 %vm274_vm0, %v4011_v39  ;;  %v6521_v19 = vpop.permute.xlu0 %6520 }
 0x3dc   :  { %v3708_v22 = vsel %vm3670_vm9, %v3643_v15, %v6183_v33  ;;  %v6188_v23 = vunpack.i.h.bf16 %v14622_v59  ;;  %v3772_v31 = vsel %vm3735_vm10, %v3707_v1, %v6512_v25  ;;  %v6518_v3 = vunpack.i.h.bf16 %v6516_v11  ;;  %v14628_v15 = vld [vmem:[#allocation12_spill] sm:$0xff]  ;;  %v14632_v1 = vld [vmem:[#allocation43_spill] sm:$0xff] }
 0x3dd   :  { %v3835_v51 = vsel %vm3800_vm11, %v3770_v53, %v14619_v4  ;;  %v3836_v8 = vsel %vm3800_vm11, %v3771_v34, %v14620_v9  ;;  %v3773_v14 = vsel %vm3735_vm10, %v3708_v22, %v6513_v24  ;;  %v6517_v58 = vunpack.i.l.bf16 %v6516_v11  ;;  %v6526_v34 = vpop.permute.xlu1 %6525  ;;  %v14631_v4 = vld [vmem:[#allocation139_spill] sm:$0xff]  ;;  %v6883_v22 = vld [vmem:[#allocation2 + $0x218] sm:$0xff] }
 0x3de   :  { %v3900_v45 = vsel %vm3865_vm12, %v3835_v51, %v6497_v55  ;;  %v3901_v42 = vsel %vm3865_vm12, %v3836_v8, %v6498_v12  ;;  %v5782_v16 = vunpack.i.l.bf16 %v14593_v27  ;;  %v14624_v61 = vunpack.i.l.bf16 %v14623_v35  ;;  %v14633_v11 = vld [vmem:[#allocation114_spill] sm:$0xff] }
 0x3df   :  { %v3965_v52 = vsel %vm3930_vm13, %v3900_v45, %v6507_v36  ;;  %v3966_v46 = vsel %vm3930_vm13, %v3901_v42, %v6508_v37  ;;  %v6523_v7 = vunpack.i.h.bf16 %v6521_v19  ;;  %v6522_v29 = vunpack.i.l.bf16 %v6521_v19  ;;  %v6531_v47 = vpop.permute.xlu0 %6530 }
 0x3e0   :  { %v3644_v17 = vsel %vm3605_vm8, %v3579_v18, %v14624_v61  ;;  %v5787_v38 = vunpack.i.l.bf16 %v14625_v43  ;;  %v5883_v63 = vunpack.i.h.bf16 %v14626_v49  ;;  %v14627_v0 = vunpack.i.h.bf16 %v14623_v35  ;;  %v6886_v35 = vld [vmem:[#allocation2 + $0x228] sm:$0xff] }
 0x3e1   :  { %v3709_v57 = vsel %vm3670_vm9, %v3644_v17, %v6187_v13  ;;  %v4012_v30 = vpack.c.bf16 %v3966_v46, %v3965_v52  ;;  %v3837_v32 = vsel %vm3800_vm11, %v3772_v31, %v5782_v16  ;;  %v3838_v53 = vsel %vm3800_vm11, %v3773_v14, %v5783_v10  ;;  %v6536_v24 = vpop.permute.xlu1 %6535  ;;  %v6884_v52 = vld [vmem:[#allocation2 + $0x210] sm:$0xff] }
 0x3e2   :  { %v3645_v48 = vsel %vm3605_vm8, %v3580_v28, %v14627_v0  ;;  %v3774_v2 = vsel %vm3735_vm10, %v3709_v57, %v6517_v58  ;;  %v6533_v55 = vunpack.i.h.bf16 %v6531_v47  ;;  %v6532_v54 = vunpack.i.l.bf16 %v6531_v47  ;;  %v6885_v58 = vld [vmem:[#allocation2 + $0x230] sm:$0xff] }
 0x3e3   :  { %v3710_v5 = vsel %vm3670_vm9, %v3645_v48, %v6188_v23  ;;  %v3902_v60 = vsel %vm3865_vm12, %v3837_v32, %v6522_v29  ;;  %v3903_v33 = vsel %vm3865_vm12, %v3838_v53, %v6523_v7  ;;  %v6528_v26 = vunpack.i.h.bf16 %v6526_v34  ;;  %5457 = vmatmul.mubr.msk.bf16.gmra.mrb[32].mxu1 %vm274_vm0, %v4012_v30  ;;  %v6541_v25 = vpop.permute.xlu0 %6540  ;;  %v14635_v48 = vld [vmem:[#allocation61_spill] sm:$0xff]  ;;  %v14636_v53 = vld [vmem:[#allocation34_spill] sm:$0xff] }
 0x3e4   :  { %v3775_v12 = vsel %vm3735_vm10, %v3710_v5, %v6518_v3  ;;  %v6527_v41 = vunpack.i.l.bf16 %v6526_v34  ;;  %v5882_v20 = vunpack.i.l.bf16 %v14626_v49  ;;  %v5888_v27 = vunpack.i.h.bf16 %v14628_v15 }
 0x3e5   :  { %v3967_v10 = vsel %vm3930_vm13, %v3902_v60, %v6532_v54  ;;  %v3968_v39 = vsel %vm3930_vm13, %v3903_v33, %v6533_v55  ;;  %v5887_v6 = vunpack.i.l.bf16 %v14628_v15  ;;  %v6033_v56 = vunpack.i.h.bf16 %v14629_v44  ;;  %v6546_v14 = vpop.permute.xlu1 %6545  ;;  %v14638_v60 = vld [vmem:[#allocation136_spill] sm:$0xff] }
 0x3e6   :  { %v6032_v37 = vunpack.i.l.bf16 %v14629_v44  ;;  %v4013_v36 = vpack.c.bf16 %v3968_v39, %v3967_v10  ;;  %v3839_v40 = vsel %vm3800_vm11, %v3774_v2, %v5787_v38  ;;  %v14630_v28 = vunpack.i.h.bf16 %v14625_v43  ;;  %v14634_v38 = vld [vmem:[#allocation15_spill] sm:$0xff] }
 0x3e7   :  { %v6538_v18 = vunpack.i.h.bf16 %v6536_v24  ;;  %v6537_v50 = vunpack.i.l.bf16 %v6536_v24  ;;  %v6038_v51 = vunpack.i.h.bf16 %v14631_v4  ;;  %v6037_v9 = vunpack.i.l.bf16 %v14631_v4  ;;  %v6551_v3 = vpop.permute.xlu0 %6550 }
 0x3e8   :  { %v3840_v21 = vsel %vm3800_vm11, %v3775_v12, %v14630_v28  ;;  %v3904_v8 = vsel %vm3865_vm12, %v3839_v40, %v6527_v41  ;;  %5460 = vmatprep.mubr.msk.bf16.mxu1 %vm274_vm0, %v4013_v36  ;;  %v5658_v59 = vunpack.i.h.bf16 %v14632_v1  ;;  %v5657_v13 = vunpack.i.l.bf16 %v14632_v1  ;;  %v14643_v36 = vld [vmem:[#allocation75_spill] sm:$0xff] }
 0x3e9   :  { %v3905_v62 = vsel %vm3865_vm12, %v3840_v21, %v6528_v26  ;;  %v3969_v45 = vsel %vm3930_vm13, %v3904_v8, %v6537_v50  ;;  %v3517_v23 = vsel %vm664_vm2, %v6883_v22, %v5883_v63  ;;  %v3516_v46 = vsel %vm664_vm2, %v6884_v52, %v5882_v20  ;;  %v6556_v55 = vpop.permute.xlu1 %6555  ;;  %v14640_v20 = vld [vmem:[#allocation33_spill] sm:$0xff] }
 0x3ea   :  { %v3970_v42 = vsel %vm3930_vm13, %v3905_v62, %v6538_v18  ;;  %v5893_v19 = vunpack.i.h.bf16 %v14633_v11  ;;  %v3519_v16 = vsel %vm664_vm2, %v6885_v58, %v5888_v27  ;;  %v3518_v61 = vsel %vm664_vm2, %v6886_v35, %v5887_v6 }
 0x3eb   :  { %v4014_v31 = vpack.c.bf16 %v3970_v42, %v3969_v45  ;;  %v3581_v17 = vsel %vm3540_vm7, %v3516_v46, %v6032_v37  ;;  %v3582_v7 = vsel %vm3540_vm7, %v3517_v23, %v6033_v56  ;;  %v3584_v29 = vsel %vm3540_vm7, %v3519_v16, %v6038_v51  ;;  %v6561_v54 = vpop.permute.xlu0 %6560 }
 0x3ec   :  { %v3583_v43 = vsel %vm3540_vm7, %v3518_v61, %v6037_v9  ;;  %v6193_v49 = vunpack.i.h.bf16 %v14634_v38  ;;  %v6192_v63 = vunpack.i.l.bf16 %v14634_v38  ;;  %v5892_v0 = vunpack.i.l.bf16 %v14633_v11 }
 0x3ed   :  { %v5898_v57 = vunpack.i.h.bf16 %v14635_v48  ;;  %v6543_v5 = vunpack.i.h.bf16 %v6541_v25  ;;  %v6542_v30 = vunpack.i.l.bf16 %v6541_v25  ;;  %5461 = vmatmul.mubr.msk.bf16.gmra.mrb[36].mxu1 %vm274_vm0, %v4014_v31  ;;  %v5897_v32 = vunpack.i.l.bf16 %v14635_v48  ;;  %v6566_v51 = vpop.permute.xlu1 %6565 }
 0x3ee   :  { %v14637_v34 = vunpack.i.l.bf16 %v14636_v53  ;;  %v6553_v2 = vunpack.i.h.bf16 %v6551_v3  ;;  %v6552_v12 = vunpack.i.l.bf16 %v6551_v3  ;;  %v6043_v33 = vunpack.i.h.bf16 %v14638_v60 }
 0x3ef   :  { %v14639_v26 = vunpack.i.h.bf16 %v14636_v53  ;;  %v14641_v15 = vunpack.i.l.bf16 %v14640_v20  ;;  %v14642_v10 = vunpack.i.h.bf16 %v14640_v20  ;;  %v6563_v56 = vunpack.i.h.bf16 %v6561_v54  ;;  %v6571_v9 = vpop.permute.xlu0 %6570 }
 0x3f0   :  { %v3646_v47 = vsel %vm3605_vm8, %v3581_v17, %v14637_v34  ;;  %v6562_v37 = vunpack.i.l.bf16 %v6561_v54  ;;  %v6198_v24 = vunpack.i.h.bf16 %v14643_v36  ;;  %v6197_v25 = vunpack.i.l.bf16 %v14643_v36 }
 0x3f1   :  { %v3647_v41 = vsel %vm3605_vm8, %v3582_v7, %v14639_v26  ;;  %v3648_v27 = vsel %vm3605_vm8, %v3583_v43, %v14641_v15  ;;  %v3649_v39 = vsel %vm3605_vm8, %v3584_v29, %v14642_v10  ;;  %v3711_v6 = vsel %vm3670_vm9, %v3646_v47, %v6192_v63  ;;  %v6576_v7 = vpop.permute.xlu1 %6575  ;;  %v6888_v15 = vld [vmem:[#allocation2 + $0x240] sm:$0xff] }
 0x3f2   :  { %v3712_v44 = vsel %vm3670_vm9, %v3647_v41, %v6193_v49  ;;  %v3776_v40 = vsel %vm3735_vm10, %v3711_v6, %v6542_v30  ;;  %v6548_v21 = vunpack.i.h.bf16 %v6546_v14  ;;  %v6547_v18 = vunpack.i.l.bf16 %v6546_v14  ;;  %v6887_v41 = vld [vmem:[#allocation2 + $0x248] sm:$0xff]  ;;  %v14646_v10 = vld [vmem:[#allocation115_spill] sm:$0xff] }
 0x3f3   :  { %v3777_v28 = vsel %vm3735_vm10, %v3712_v44, %v6543_v5  ;;  %v3841_v50 = vsel %vm3800_vm11, %v3776_v40, %v6552_v12  ;;  %v6558_v8 = vunpack.i.h.bf16 %v6556_v55  ;;  %v6557_v62 = vunpack.i.l.bf16 %v6556_v55  ;;  %v6581_v29 = vpop.permute.xlu0 %6580  ;;  %v14644_v5 = vld [vmem:[#allocation5_spill] sm:$0xff] }
 0x3f4   :  { %v3842_v4 = vsel %vm3800_vm11, %v3777_v28, %v6553_v2  ;;  %v6573_v45 = vunpack.i.h.bf16 %v6571_v9  ;;  %v6572_v42 = vunpack.i.l.bf16 %v6571_v9  ;;  %v3906_v22 = vsel %vm3865_vm12, %v3841_v50, %v6562_v37  ;;  %v14645_v2 = vld [vmem:[#allocation49_spill] sm:$0xff]  ;;  %v6889_v37 = vld [vmem:[#allocation2 + $0x260] sm:$0xff] }
 0x3f5   :  { %v3907_v23 = vsel %vm3865_vm12, %v3842_v4, %v6563_v56  ;;  %v6568_v52 = vunpack.i.h.bf16 %v6566_v51  ;;  %v6567_v46 = vunpack.i.l.bf16 %v6566_v51  ;;  %v3713_v31 = vsel %vm3670_vm9, %v3648_v27, %v6197_v25  ;;  %v6586_v44 = vpop.permute.xlu1 %6585  ;;  %v14647_v28 = vld [vmem:[#allocation17_spill] sm:$0xff]  ;;  %v14649_v51 = vld [vmem:[#allocation39_spill] sm:$0xff] }
 0x3f6   :  { %v3714_v14 = vsel %vm3670_vm9, %v3649_v39, %v6198_v24  ;;  %v3971_v3 = vsel %vm3930_vm13, %v3906_v22, %v6572_v42  ;;  %v3972_v58 = vsel %vm3930_vm13, %v3907_v23, %v6573_v45  ;;  %v6042_v16 = vunpack.i.l.bf16 %v14638_v60  ;;  %v6890_v24 = vld [vmem:[#allocation2 + $0x258] sm:$0xff] }
 0x3f7   :  { %v3778_v35 = vsel %vm3735_vm10, %v3713_v31, %v6547_v18  ;;  %v3779_v61 = vsel %vm3735_vm10, %v3714_v14, %v6548_v21  ;;  %v4015_v17 = vpack.c.bf16 %v3972_v58, %v3971_v3  ;;  %v6578_v49 = vunpack.i.h.bf16 %v6576_v7  ;;  %v6591_v56 = vpop.permute.xlu0 %6590  ;;  %v14651_v22 = vld [vmem:[#allocation138_spill] sm:$0xff] }
 0x3f8   :  { %v3843_v43 = vsel %vm3800_vm11, %v3778_v35, %v6557_v62  ;;  %v3844_v38 = vsel %vm3800_vm11, %v3779_v61, %v6558_v8  ;;  %v6577_v63 = vunpack.i.l.bf16 %v6576_v7  ;;  %v6048_v30 = vunpack.i.h.bf16 %v14644_v5  ;;  %v14653_v31 = vld [vmem:[#allocation42_spill] sm:$0xff] }
 0x3f9   :  { %v6047_v53 = vunpack.i.l.bf16 %v14644_v5  ;;  %v3908_v34 = vsel %vm3865_vm12, %v3843_v43, %v6567_v46  ;;  %v3909_v47 = vsel %vm3865_vm12, %v3844_v38, %v6568_v52  ;;  %5464 = vmatprep.mubr.msk.bf16.mxu1 %vm274_vm0, %v4015_v17  ;;  %v5673_v12 = vunpack.i.h.bf16 %v14645_v2  ;;  %v6596_v45 = vpop.permute.xlu1 %6595 }
 0x3fa   :  { %v5672_v55 = vunpack.i.l.bf16 %v14645_v2  ;;  %v3973_v54 = vsel %vm3930_vm13, %v3908_v34, %v6577_v63  ;;  %v3974_v26 = vsel %vm3930_vm13, %v3909_v47, %v6578_v49  ;;  %v3521_v20 = vsel %vm664_vm2, %v6887_v41, %v5893_v19 }
 0x3fb   :  { %v3520_v27 = vsel %vm664_vm2, %v6888_v15, %v5892_v0  ;;  %v5903_v39 = vunpack.i.h.bf16 %v14646_v10  ;;  %v4016_v6 = vpack.c.bf16 %v3974_v26, %v3973_v54  ;;  %v3523_v36 = vsel %vm664_vm2, %v6889_v37, %v5898_v57  ;;  %v14648_v57 = vld [vmem:[#allocation88_spill] sm:$0xff]  ;;  %v6601_v42 = vpop.permute.xlu0 %6600 }
 0x3fc   :  { %v3522_v19 = vsel %vm664_vm2, %v6890_v24, %v5897_v32  ;;  %v3585_v25 = vsel %vm3540_vm7, %v3520_v27, %v6042_v16  ;;  %v3586_v11 = vsel %vm3540_vm7, %v3521_v20, %v6043_v33  ;;  %v3588_v0 = vsel %vm3540_vm7, %v3523_v36, %v6048_v30 }
 0x3fd   :  { %v3587_v40 = vsel %vm3540_vm7, %v3522_v19, %v6047_v53  ;;  %v6203_v21 = vunpack.i.h.bf16 %v14647_v28  ;;  %v6202_v18 = vunpack.i.l.bf16 %v14647_v28  ;;  %5465 = vmatmul.mubr.msk.bf16.gmra.mrb[40].mxu1 %vm274_vm0, %v4016_v6  ;;  %v5902_v48 = vunpack.i.l.bf16 %v14646_v10  ;;  %v6606_v47 = vpop.permute.xlu1 %6605 }
 0x3fe   :  { %v5908_v32 = vunpack.i.h.bf16 %v14648_v57  ;;  %v6583_v50 = vunpack.i.h.bf16 %v6581_v29  ;;  %v6582_v4 = vunpack.i.l.bf16 %v6581_v29  ;;  %v5907_v60 = vunpack.i.l.bf16 %v14648_v57  ;;  %v14656_v29 = vld [vmem:[#allocation10_spill] sm:$0xff] }
 0x3ff   :  { %v14650_v33 = vunpack.i.l.bf16 %v14649_v51  ;;  %v6593_v8 = vunpack.i.h.bf16 %v6591_v56  ;;  %v6592_v62 = vunpack.i.l.bf16 %v6591_v56  ;;  %v6053_v23 = vunpack.i.h.bf16 %v14651_v22  ;;  %v6611_v54 = vpop.permute.xlu0 %6610 }
 0x400   :  { %v14652_v52 = vunpack.i.h.bf16 %v14649_v51  ;;  %v14654_v14 = vunpack.i.l.bf16 %v14653_v31  ;;  %v14655_v58 = vunpack.i.h.bf16 %v14653_v31  ;;  %v6603_v17 = vunpack.i.h.bf16 %v6601_v42 }
 0x401   :  { %v3650_v9 = vsel %vm3605_vm8, %v3585_v25, %v14650_v33  ;;  %v6602_v7 = vunpack.i.l.bf16 %v6601_v42  ;;  %v6208_v43 = vunpack.i.h.bf16 %v14656_v29  ;;  %v6207_v38 = vunpack.i.l.bf16 %v14656_v29  ;;  %v6616_v28 = vpop.permute.xlu1 %6615  ;;  %v14657_v33 = vld [vmem:[#allocation142_spill] sm:$0xff] }
 0x402   :  { %v3651_v46 = vsel %vm3605_vm8, %v3586_v11, %v14652_v52  ;;  %v3652_v3 = vsel %vm3605_vm8, %v3587_v40, %v14654_v14  ;;  %v3653_v16 = vsel %vm3605_vm8, %v3588_v0, %v14655_v58  ;;  %v3715_v35 = vsel %vm3670_vm9, %v3650_v9, %v6202_v18  ;;  %v14658_v42 = vld [vmem:[#allocation50_spill] sm:$0xff] }
 0x403   :  { %v3716_v61 = vsel %vm3670_vm9, %v3651_v46, %v6203_v21  ;;  %v3780_v49 = vsel %vm3735_vm10, %v3715_v35, %v6582_v4  ;;  %v6588_v5 = vunpack.i.h.bf16 %v6586_v44  ;;  %v6587_v30 = vunpack.i.l.bf16 %v6586_v44  ;;  %v6621_v21 = vpop.permute.xlu0 %6620 }
 0x404   :  { %v3781_v63 = vsel %vm3735_vm10, %v3716_v61, %v6583_v50  ;;  %v3845_v53 = vsel %vm3800_vm11, %v3780_v49, %v6592_v62  ;;  %v6598_v26 = vunpack.i.h.bf16 %v6596_v45  ;;  %v6597_v41 = vunpack.i.l.bf16 %v6596_v45  ;;  %v14659_v61 = vld [vmem:[#allocation116_spill] sm:$0xff] }
 0x405   :  { %v3846_v34 = vsel %vm3800_vm11, %v3781_v63, %v6593_v8  ;;  %v6613_v20 = vunpack.i.h.bf16 %v6611_v54  ;;  %v6612_v15 = vunpack.i.l.bf16 %v6611_v54  ;;  %v3910_v27 = vsel %vm3865_vm12, %v3845_v53, %v6602_v7  ;;  %v6626_v29 = vpop.permute.xlu1 %6625  ;;  %v6894_v63 = vld [vmem:[#allocation2 + $0x288] sm:$0xff]  ;;  %v14660_v53 = vld [vmem:[#allocation111_spill] sm:$0xff] }
 0x406   :  { %v3911_v6 = vsel %vm3865_vm12, %v3846_v34, %v6603_v17  ;;  %v6608_v56 = vunpack.i.h.bf16 %v6606_v47  ;;  %v6607_v37 = vunpack.i.l.bf16 %v6606_v47  ;;  %v3717_v36 = vsel %vm3670_vm9, %v3652_v3, %v6207_v38  ;;  %v6891_v3 = vld [vmem:[#allocation2 + $0x278] sm:$0xff]  ;;  %v6893_v38 = vld [vmem:[#allocation2 + $0x290] sm:$0xff] }
 0x407   :  { %v3718_v44 = vsel %vm3670_vm9, %v3653_v16, %v6208_v43  ;;  %v3975_v24 = vsel %vm3930_vm13, %v3910_v27, %v6612_v15  ;;  %v3976_v19 = vsel %vm3930_vm13, %v3911_v6, %v6613_v20  ;;  %v6052_v25 = vunpack.i.l.bf16 %v14651_v22  ;;  %v6892_v16 = vld [vmem:[#allocation2 + $0x270] sm:$0xff]  ;;  %v6631_v43 = vpop.permute.xlu0 %6630  ;;  %v14662_v6 = vld [vmem:[#allocation140_spill] sm:$0xff] }
 0x408   :  { %v3782_v11 = vsel %vm3735_vm10, %v3717_v36, %v6587_v30  ;;  %v3783_v0 = vsel %vm3735_vm10, %v3718_v44, %v6588_v5  ;;  %v4017_v40 = vpack.c.bf16 %v3976_v19, %v3975_v24  ;;  %v6618_v4 = vunpack.i.h.bf16 %v6616_v28  ;;  %v14663_v36 = vld [vmem:[#allocation45_spill] sm:$0xff] }
 0x409   :  { %v3847_v18 = vsel %vm3800_vm11, %v3782_v11, %v6597_v41  ;;  %v3848_v50 = vsel %vm3800_vm11, %v3783_v0, %v6598_v26  ;;  %v6617_v51 = vunpack.i.l.bf16 %v6616_v28  ;;  %v6058_v9 = vunpack.i.h.bf16 %v14657_v33  ;;  %v6636_v15 = vpop.permute.xlu1 %6635  ;;  %v14666_v28 = vld [vmem:[#allocation82_spill] sm:$0xff] }
 0x40a   :  { %v6057_v8 = vunpack.i.l.bf16 %v14657_v33  ;;  %v3912_v62 = vsel %vm3865_vm12, %v3847_v18, %v6607_v37  ;;  %v3913_v45 = vsel %vm3865_vm12, %v3848_v50, %v6608_v56  ;;  %5468 = vmatprep.mubr.msk.bf16.mxu1 %vm274_vm0, %v4017_v40  ;;  %v5668_v52 = vunpack.i.h.bf16 %v14658_v42 }
 0x40b   :  { %v5667_v46 = vunpack.i.l.bf16 %v14658_v42  ;;  %v3977_v31 = vsel %vm3930_vm13, %v3912_v62, %v6617_v51  ;;  %v3978_v14 = vsel %vm3930_vm13, %v3913_v45, %v6618_v4  ;;  %v3525_v58 = vsel %vm664_vm2, %v6891_v3, %v5903_v39  ;;  %v6641_v27 = vpop.permute.xlu0 %6640 }
 0x40c   :  { %v3524_v35 = vsel %vm664_vm2, %v6892_v16, %v5902_v48  ;;  %v5913_v17 = vunpack.i.h.bf16 %v14659_v61  ;;  %v4018_v7 = vpack.c.bf16 %v3978_v14, %v3977_v31  ;;  %v3527_v49 = vsel %vm664_vm2, %v6893_v38, %v5908_v32  ;;  %v14661_v32 = vld [vmem:[#allocation117_spill] sm:$0xff] }
 0x40d   :  { %v3526_v39 = vsel %vm664_vm2, %v6894_v63, %v5907_v60  ;;  %v3589_v5 = vsel %vm3540_vm7, %v3524_v35, %v6052_v25  ;;  %v3590_v10 = vsel %vm3540_vm7, %v3525_v58, %v6053_v23  ;;  %v3592_v48 = vsel %vm3540_vm7, %v3527_v49, %v6058_v9  ;;  %v6646_v9 = vpop.permute.xlu1 %6645 }
 0x40e   :  { %v3591_v30 = vsel %vm3540_vm7, %v3526_v39, %v6057_v8  ;;  %v6213_v34 = vunpack.i.h.bf16 %v14660_v53  ;;  %v6212_v47 = vunpack.i.l.bf16 %v14660_v53  ;;  %5469 = vmatmul.mubr.msk.bf16.gmra.mrb[44].mxu1 %vm274_vm0, %v4018_v7  ;;  %v5912_v57 = vunpack.i.l.bf16 %v14659_v61 }
 0x40f   :  { %v5918_v60 = vunpack.i.h.bf16 %v14661_v32  ;;  %v6623_v54 = vunpack.i.h.bf16 %v6621_v21  ;;  %v6622_v26 = vunpack.i.l.bf16 %v6621_v21  ;;  %v5917_v22 = vunpack.i.l.bf16 %v14661_v32  ;;  %v6651_v8 = vpop.permute.xlu0 %6650 }
 0x410   :  { %v3654_v23 = vsel %vm3605_vm8, %v3589_v5, %v5657_v13  ;;  %v6633_v41 = vunpack.i.h.bf16 %v6631_v43  ;;  %v6632_v20 = vunpack.i.l.bf16 %v6631_v43  ;;  %v6063_v56 = vunpack.i.h.bf16 %v14662_v6 }
 0x411   :  { %v3655_v37 = vsel %vm3605_vm8, %v3590_v10, %v5658_v59  ;;  %v14664_v44 = vunpack.i.l.bf16 %v14663_v36  ;;  %v14665_v19 = vunpack.i.h.bf16 %v14663_v36  ;;  %v3719_v13 = vsel %vm3670_vm9, %v3654_v23, %v6212_v47  ;;  %v6656_v10 = vpop.permute.xlu1 %6655 }
 0x412   :  { %v3720_v11 = vsel %vm3670_vm9, %v3655_v37, %v6213_v34  ;;  %v6643_v0 = vunpack.i.h.bf16 %v6641_v27  ;;  %v6642_v40 = vunpack.i.l.bf16 %v6641_v27  ;;  %v6218_v21 = vunpack.i.h.bf16 %v14666_v28 }
 0x413   :  { %v3656_v24 = vsel %vm3605_vm8, %v3591_v30, %v14664_v44  ;;  %v3657_v25 = vsel %vm3605_vm8, %v3592_v48, %v14665_v19  ;;  %v6217_v1 = vunpack.i.l.bf16 %v14666_v28  ;;  %v3784_v59 = vsel %vm3735_vm10, %v3719_v13, %v6622_v26  ;;  %v6661_v48 = vpop.permute.xlu0 %6660 }
 0x414   :  { %v3785_v18 = vsel %vm3735_vm10, %v3720_v11, %v6623_v54  ;;  %v6628_v50 = vunpack.i.h.bf16 %v6626_v29  ;;  %v6627_v4 = vunpack.i.l.bf16 %v6626_v29  ;;  %v3849_v51 = vsel %vm3800_vm11, %v3784_v59, %v6632_v20  ;;  %v14667_v54 = vld [vmem:[#allocation144_spill] sm:$0xff]  ;;  %v14669_v11 = vld [vmem:[#allocation118_spill] sm:$0xff] }
 0x415   :  { %v3850_v33 = vsel %vm3800_vm11, %v3785_v18, %v6633_v41  ;;  %v6638_v62 = vunpack.i.h.bf16 %v6636_v15  ;;  %v6637_v45 = vunpack.i.l.bf16 %v6636_v15  ;;  %v6653_v31 = vunpack.i.h.bf16 %v6651_v8  ;;  %v14668_v15 = vld [vmem:[#allocation47_spill] sm:$0xff]  ;;  %v6666_v28 = vpop.permute.xlu1 %6665  ;;  %v6898_v18 = vld [vmem:[#allocation2 + $0x2b8] sm:$0xff] }
 0x416   :  { %v6652_v14 = vunpack.i.l.bf16 %v6651_v8  ;;  %v3914_v3 = vsel %vm3865_vm12, %v3849_v51, %v6642_v40  ;;  %v3915_v58 = vsel %vm3865_vm12, %v3850_v33, %v6643_v0  ;;  %v6648_v16 = vunpack.i.h.bf16 %v6646_v9  ;;  %v14670_v51 = vld [vmem:[#allocation112_spill] sm:$0xff] }
 0x417   :  { %v6647_v35 = vunpack.i.l.bf16 %v6646_v9  ;;  %v3721_v7 = vsel %vm3670_vm9, %v3656_v24, %v6217_v1  ;;  %v3722_v29 = vsel %vm3670_vm9, %v3657_v25, %v6218_v21  ;;  %v3980_v38 = vsel %vm3930_vm13, %v3915_v58, %v6653_v31  ;;  %v6895_v24 = vld [vmem:[#allocation2 + $0x2a8] sm:$0xff]  ;;  %v6896_v25 = vld [vmem:[#allocation2 + $0x2a0] sm:$0xff]  ;;  %v6671_v21 = vpop.permute.xlu0 %6670  ;;  %v14672_v58 = vld [vmem:[#allocation141_spill] sm:$0xff] }
 0x418   :  { %v3979_v43 = vsel %vm3930_vm13, %v3914_v3, %v6652_v14  ;;  %v6062_v49 = vunpack.i.l.bf16 %v14662_v6  ;;  %v3786_v63 = vsel %vm3735_vm10, %v3721_v7, %v6627_v4  ;;  %v3787_v39 = vsel %vm3735_vm10, %v3722_v29, %v6628_v50  ;;  %v6897_v1 = vld [vmem:[#allocation2 + $0x2c0] sm:$0xff] }
 0x419   :  { %v4019_v5 = vpack.c.bf16 %v3980_v38, %v3979_v43  ;;  %v3851_v30 = vsel %vm3800_vm11, %v3786_v63, %v6637_v45  ;;  %v3852_v53 = vsel %vm3800_vm11, %v3787_v39, %v6638_v62  ;;  %v6658_v34 = vunpack.i.h.bf16 %v6656_v10  ;;  %v6676_v14 = vpop.permute.xlu1 %6675  ;;  %v14673_v63 = vld [vmem:[#allocation86_spill] sm:$0xff] }
 0x41a   :  { %v6657_v47 = vunpack.i.l.bf16 %v6656_v10  ;;  %v6068_v26 = vunpack.i.h.bf16 %v14667_v54  ;;  %v6067_v23 = vunpack.i.l.bf16 %v14667_v54  ;;  %v3916_v41 = vsel %vm3865_vm12, %v3851_v30, %v6647_v35 }
 0x41b   :  { %v3917_v20 = vsel %vm3865_vm12, %v3852_v53, %v6648_v16  ;;  %5472 = vmatprep.mubr.msk.bf16.mxu1 %vm274_vm0, %v4019_v5  ;;  %v5683_v27 = vunpack.i.h.bf16 %v14668_v15  ;;  %v5682_v37 = vunpack.i.l.bf16 %v14668_v15  ;;  %v3529_v19 = vsel %vm664_vm2, %v6895_v24, %v5913_v17  ;;  %v6681_v3 = vpop.permute.xlu0 %6680 }
 0x41c   :  { %v3981_v36 = vsel %vm3930_vm13, %v3916_v41, %v6657_v47  ;;  %v3982_v44 = vsel %vm3930_vm13, %v3917_v20, %v6658_v34  ;;  %v3528_v13 = vsel %vm664_vm2, %v6896_v25, %v5912_v57  ;;  %v5923_v0 = vunpack.i.h.bf16 %v14669_v11 }
 0x41d   :  { %v4020_v40 = vpack.c.bf16 %v3982_v44, %v3981_v36  ;;  %v3531_v59 = vsel %vm664_vm2, %v6897_v1, %v5918_v60  ;;  %v3530_v17 = vsel %vm664_vm2, %v6898_v18, %v5917_v22  ;;  %v3593_v50 = vsel %vm3540_vm7, %v3528_v13, %v6062_v49  ;;  %v14671_v60 = vld [vmem:[#allocation119_spill] sm:$0xff] }
 0x41e   :  { %v3594_v61 = vsel %vm3540_vm7, %v3529_v19, %v6063_v56  ;;  %v3596_v57 = vsel %vm3540_vm7, %v3531_v59, %v6068_v26  ;;  %v3595_v4 = vsel %vm3540_vm7, %v3530_v17, %v6067_v23  ;;  %v6223_v33 = vunpack.i.h.bf16 %v14670_v51 }
 0x41f   :  { %v6222_v9 = vunpack.i.l.bf16 %v14670_v51  ;;  %5473 = vmatmul.mubr.msk.bf16.gmra.mrb[48].mxu1 %vm274_vm0, %v4020_v40  ;;  %v5922_v32 = vunpack.i.l.bf16 %v14669_v11  ;;  %v5928_v22 = vunpack.i.h.bf16 %v14671_v60  ;;  %v6663_v8 = vunpack.i.h.bf16 %v6661_v48  ;;  %v6691_v30 = vpop.permute.xlu0 %6690 }
 0x420   :  { %v6662_v62 = vunpack.i.l.bf16 %v6661_v48  ;;  %v5927_v6 = vunpack.i.l.bf16 %v14671_v60  ;;  %v3658_v56 = vsel %vm3605_vm8, %v3593_v50, %v5667_v46  ;;  %v6673_v45 = vunpack.i.h.bf16 %v6671_v21  ;;  %v6686_v48 = vpop.permute.xlu1 %6685 }
 0x421   :  { %v6672_v31 = vunpack.i.l.bf16 %v6671_v21  ;;  %v6073_v16 = vunpack.i.h.bf16 %v14672_v58  ;;  %v3659_v35 = vsel %vm3605_vm8, %v3594_v61, %v5668_v52  ;;  %v3660_v7 = vsel %vm3605_vm8, %v3595_v4, %v5672_v55  ;;  %v14674_v61 = vld [vmem:[#allocation36_spill] sm:$0xff] }
 0x422   :  { %v3661_v29 = vsel %vm3605_vm8, %v3596_v57, %v5673_v12  ;;  %v3723_v46 = vsel %vm3670_vm9, %v3658_v56, %v6222_v9  ;;  %v3724_v43 = vsel %vm3670_vm9, %v3659_v35, %v6223_v33  ;;  %v6683_v38 = vunpack.i.h.bf16 %v6681_v3  ;;  %v14675_v9 = vld [vmem:[#allocation48_spill] sm:$0xff] }
 0x423   :  { %v6682_v49 = vunpack.i.l.bf16 %v6681_v3  ;;  %v6228_v39 = vunpack.i.h.bf16 %v14673_v63  ;;  %v6227_v42 = vunpack.i.l.bf16 %v14673_v63  ;;  %v3788_v52 = vsel %vm3735_vm10, %v3723_v46, %v6662_v62  ;;  %v6701_v1 = vpop.permute.xlu0 %6700  ;;  %v6900_v3 = vld [vmem:[#allocation2 + $0x2d0] sm:$0xff] }
 0x424   :  { %v3789_v5 = vsel %vm3735_vm10, %v3724_v43, %v6663_v8  ;;  %v6668_v10 = vunpack.i.h.bf16 %v6666_v28  ;;  %v6667_v55 = vunpack.i.l.bf16 %v6666_v28  ;;  %v3853_v2 = vsel %vm3800_vm11, %v3788_v52, %v6672_v31  ;;  %v6696_v21 = vpop.permute.xlu1 %6695  ;;  %v6899_v31 = vld [vmem:[#allocation2 + $0x2d8] sm:$0xff] }
 0x425   :  { %v3854_v12 = vsel %vm3800_vm11, %v3789_v5, %v6673_v45  ;;  %v6678_v53 = vunpack.i.h.bf16 %v6676_v14  ;;  %v6677_v34 = vunpack.i.l.bf16 %v6676_v14  ;;  %v6693_v47 = vunpack.i.h.bf16 %v6691_v30  ;;  %v14677_v5 = vld [vmem:[#allocation68_spill] sm:$0xff] }
 0x426   :  { %v6692_v54 = vunpack.i.l.bf16 %v6691_v30  ;;  %v3918_v26 = vsel %vm3865_vm12, %v3853_v2, %v6682_v49  ;;  %v3919_v23 = vsel %vm3865_vm12, %v3854_v12, %v6683_v38  ;;  %v6688_v41 = vunpack.i.h.bf16 %v6686_v48  ;;  %v6901_v49 = vld [vmem:[#allocation2 + $0x2f0] sm:$0xff] }
 0x427   :  { %v6687_v20 = vunpack.i.l.bf16 %v6686_v48  ;;  %v3725_v36 = vsel %vm3670_vm9, %v3660_v7, %v6227_v42  ;;  %v3726_v44 = vsel %vm3670_vm9, %v3661_v29, %v6228_v39  ;;  %v3984_v19 = vsel %vm3930_vm13, %v3919_v23, %v6693_v47  ;;  %v14676_v7 = vld [vmem:[#allocation120_spill] sm:$0xff]  ;;  %v6711_v38 = vpop.permute.xlu0 %6710  ;;  %v14679_v47 = vld [vmem:[#allocation143_spill] sm:$0xff] }
 0x428   :  { %v3983_v24 = vsel %vm3930_vm13, %v3918_v26, %v6692_v54  ;;  %v6072_v25 = vunpack.i.l.bf16 %v14672_v58  ;;  %v3790_v13 = vsel %vm3735_vm10, %v3725_v36, %v6667_v55  ;;  %v3791_v40 = vsel %vm3735_vm10, %v3726_v44, %v6668_v10  ;;  %v6706_v43 = vpop.permute.xlu1 %6705  ;;  %v6902_v39 = vld [vmem:[#allocation2 + $0x2e8] sm:$0xff] }
 0x429   :  { %v4021_v28 = vpack.c.bf16 %v3984_v19, %v3983_v24  ;;  %v3855_v59 = vsel %vm3800_vm11, %v3790_v13, %v6677_v34  ;;  %v3856_v18 = vsel %vm3800_vm11, %v3791_v40, %v6678_v53  ;;  %v6698_v17 = vunpack.i.h.bf16 %v6696_v21  ;;  %v14680_v19 = vld [vmem:[#allocation113_spill] sm:$0xff] }
 0x42a   :  { %v6697_v50 = vunpack.i.l.bf16 %v6696_v21  ;;  %v6078_v57 = vunpack.i.h.bf16 %v14674_v61  ;;  %v6077_v4 = vunpack.i.l.bf16 %v14674_v61  ;;  %v3920_v51 = vsel %vm3865_vm12, %v3855_v59, %v6687_v20 }
 0x42b   :  { %v3921_v33 = vsel %vm3865_vm12, %v3856_v18, %v6688_v41  ;;  %5476 = vmatprep.mubr.msk.bf16.mxu1 %vm274_vm0, %v4021_v28  ;;  %v5678_v8 = vunpack.i.h.bf16 %v14675_v9  ;;  %v5677_v62 = vunpack.i.l.bf16 %v14675_v9  ;;  %v3533_v14 = vsel %vm664_vm2, %v6899_v31, %v5923_v0  ;;  %v6721_v34 = vpop.permute.xlu0 %6720 }
 0x42c   :  { %v3985_v56 = vsel %vm3930_vm13, %v3920_v51, %v6697_v50  ;;  %v3986_v45 = vsel %vm3930_vm13, %v3921_v33, %v6698_v17  ;;  %v3532_v35 = vsel %vm664_vm2, %v6900_v3, %v5922_v32  ;;  %v5933_v29 = vunpack.i.h.bf16 %v14676_v7  ;;  %v6716_v53 = vpop.permute.xlu1 %6715 }
 0x42d   :  { %v4022_v46 = vpack.c.bf16 %v3986_v45, %v3985_v56  ;;  %v3535_v63 = vsel %vm664_vm2, %v6901_v49, %v5928_v22  ;;  %v3534_v0 = vsel %vm664_vm2, %v6902_v39, %v5927_v6  ;;  %v3597_v42 = vsel %vm3540_vm7, %v3532_v35, %v6072_v25  ;;  %v14678_v22 = vld [vmem:[#allocation121_spill] sm:$0xff]  ;;  %v14681_v39 = vld [vmem:[#allocation23_spill] sm:$0xff] }
 0x42e   :  { %v3598_v11 = vsel %vm3540_vm7, %v3533_v14, %v6073_v16  ;;  %v3600_v32 = vsel %vm3540_vm7, %v3535_v63, %v6078_v57  ;;  %v3599_v52 = vsel %vm3540_vm7, %v3534_v0, %v6077_v4  ;;  %v6233_v10 = vunpack.i.h.bf16 %v14677_v5 }
 0x42f   :  { %v6232_v55 = vunpack.i.l.bf16 %v14677_v5  ;;  %5477 = vmatmul.mubr.msk.bf16.gmra.mrb[52].mxu1 %vm274_vm0, %v4022_v46  ;;  %v5932_v60 = vunpack.i.l.bf16 %v14676_v7  ;;  %v5938_v6 = vunpack.i.h.bf16 %v14678_v22  ;;  %v6703_v2 = vunpack.i.h.bf16 %v6701_v1  ;;  %v6731_v59 = vpop.permute.xlu0 %6730 }
 0x430   :  { %v6702_v12 = vunpack.i.l.bf16 %v6701_v1  ;;  %v5937_v58 = vunpack.i.l.bf16 %v14678_v22  ;;  %v3662_v16 = vsel %vm3605_vm8, %v3597_v42, %v5677_v62  ;;  %v6713_v48 = vunpack.i.h.bf16 %v6711_v38  ;;  %v6726_v1 = vpop.permute.xlu1 %6725 }
 0x431   :  { %v6712_v30 = vunpack.i.l.bf16 %v6711_v38  ;;  %v6083_v54 = vunpack.i.h.bf16 %v14679_v47  ;;  %v3663_v26 = vsel %vm3605_vm8, %v3598_v11, %v5678_v8  ;;  %v3664_v23 = vsel %vm3605_vm8, %v3599_v52, %v5682_v37  ;;  %v14682_v52 = vld [vmem:[#allocation53_spill] sm:$0xff] }
 0x432   :  { %v3665_v41 = vsel %vm3605_vm8, %v3600_v32, %v5683_v27  ;;  %v3727_v20 = vsel %vm3670_vm9, %v3662_v16, %v6232_v55  ;;  %v3728_v36 = vsel %vm3670_vm9, %v3663_v26, %v6233_v10  ;;  %v6723_v44 = vunpack.i.h.bf16 %v6721_v34  ;;  %v6905_v26 = vld [vmem:[#allocation2 + $0x320] sm:$0xff] }
 0x433   :  { %v6722_v24 = vunpack.i.l.bf16 %v6721_v34  ;;  %v6238_v25 = vunpack.i.h.bf16 %v14680_v19  ;;  %v6237_v13 = vunpack.i.l.bf16 %v14680_v19  ;;  %v3792_v40 = vsel %vm3735_vm10, %v3727_v20, %v6702_v12  ;;  %v6741_v46 = vpop.permute.xlu0 %6740  ;;  %v6903_v12 = vld [vmem:[#allocation2 + $0x308] sm:$0xff] }
 0x434   :  { %v3793_v28 = vsel %vm3735_vm10, %v3728_v36, %v6703_v2  ;;  %v6708_v21 = vunpack.i.h.bf16 %v6706_v43  ;;  %v6707_v37 = vunpack.i.l.bf16 %v6706_v43  ;;  %v3857_v15 = vsel %vm3800_vm11, %v3792_v40, %v6712_v30  ;;  %v6736_v35 = vpop.permute.xlu1 %6735 }
 0x435   :  { %v3858_v27 = vsel %vm3800_vm11, %v3793_v28, %v6713_v48  ;;  %v6718_v18 = vunpack.i.h.bf16 %v6716_v53  ;;  %v6717_v17 = vunpack.i.l.bf16 %v6716_v53  ;;  %v6733_v50 = vunpack.i.h.bf16 %v6731_v59  ;;  %v6904_v48 = vld [vmem:[#allocation2 + $0x300] sm:$0xff] }
 0x436   :  { %v6732_v61 = vunpack.i.l.bf16 %v6731_v59  ;;  %v3922_v57 = vsel %vm3865_vm12, %v3857_v15, %v6722_v24  ;;  %v3923_v4 = vsel %vm3865_vm12, %v3858_v27, %v6723_v44  ;;  %v6728_v51 = vunpack.i.h.bf16 %v6726_v1  ;;  %v14683_v44 = vld [vmem:[#allocation80_spill] sm:$0xff] }
 0x437   :  { %v6727_v33 = vunpack.i.l.bf16 %v6726_v1  ;;  %v3729_v9 = vsel %vm3670_vm9, %v3664_v23, %v6237_v13  ;;  %v3730_v8 = vsel %vm3670_vm9, %v3665_v41, %v6238_v25  ;;  %v3988_v56 = vsel %vm3930_vm13, %v3923_v4, %v6733_v50  ;;  %v6906_v41 = vld [vmem:[#allocation2 + $0x318] sm:$0xff] }
 0x438   :  { %v3987_v62 = vsel %vm3930_vm13, %v3922_v57, %v6732_v61  ;;  %v6082_v45 = vunpack.i.l.bf16 %v14679_v47  ;;  %v3794_v31 = vsel %vm3735_vm10, %v3729_v9, %v6707_v37  ;;  %v3795_v14 = vsel %vm3735_vm10, %v3730_v8, %v6708_v21  ;;  %v6746_v34 = vpop.permute.xlu1 %6745  ;;  %v6751_v47 = vpop.permute.xlu0 %6750  ;;  %v14685_v61 = vld [vmem:[#allocation71_spill] sm:$0xff] }
 0x439   :  { %v4023_v3 = vpack.c.bf16 %v3988_v56, %v3987_v62  ;;  %v3859_v43 = vsel %vm3800_vm11, %v3794_v31, %v6717_v17  ;;  %v3860_v38 = vsel %vm3800_vm11, %v3795_v14, %v6718_v18  ;;  %v6738_v49 = vunpack.i.h.bf16 %v6736_v35 }
 0x43a   :  { %v6737_v63 = vunpack.i.l.bf16 %v6736_v35  ;;  %v6088_v0 = vunpack.i.h.bf16 %v14681_v39  ;;  %v6087_v42 = vunpack.i.l.bf16 %v14681_v39  ;;  %v3924_v11 = vsel %vm3865_vm12, %v3859_v43, %v6727_v33 }
 0x43b   :  { %v3925_v32 = vsel %vm3865_vm12, %v3860_v38, %v6728_v51  ;;  %5480 = vmatprep.mubr.msk.bf16.mxu1 %vm274_vm0, %v4023_v3  ;;  %v5693_v5 = vunpack.i.h.bf16 %v14682_v52  ;;  %v5692_v2 = vunpack.i.l.bf16 %v14682_v52  ;;  %v3537_v16 = vsel %vm664_vm2, %v6903_v12, %v5933_v29 }
 0x43c   :  { %v3989_v10 = vsel %vm3930_vm13, %v3924_v11, %v6737_v63  ;;  %v3990_v55 = vsel %vm3930_vm13, %v3925_v32, %v6738_v49  ;;  %v3536_v30 = vsel %vm664_vm2, %v6904_v48, %v5932_v60  ;;  %v3539_v23 = vsel %vm664_vm2, %v6905_v26, %v5938_v6  ;;  %v14684_v6 = vld [vmem:[#allocation54_spill] sm:$0xff]  ;;  %v6756_v21 = vpop.permute.xlu1 %6755 }
 0x43d   :  { %v4024_v53 = vpack.c.bf16 %v3990_v55, %v3989_v10  ;;  %v3538_v20 = vsel %vm664_vm2, %v6906_v41, %v5937_v58  ;;  %v3601_v29 = vsel %vm3540_vm7, %v3536_v30, %v6082_v45  ;;  %v3602_v36 = vsel %vm3540_vm7, %v3537_v16, %v6083_v54  ;;  %v6761_v54 = vpop.permute.xlu0 %6760 }
 0x43e   :  { %v3604_v7 = vsel %vm3540_vm7, %v3539_v23, %v6088_v0  ;;  %v3603_v60 = vsel %vm3540_vm7, %v3538_v20, %v6087_v42  ;;  %v6243_v24 = vunpack.i.h.bf16 %v14683_v44  ;;  %v6242_v19 = vunpack.i.l.bf16 %v14683_v44 }
 0x43f   :  { %5481 = vmatmul.mubr.msk.bf16.gmra.mrb[56].mxu1 %vm274_vm0, %v4024_v53  ;;  %v5688_v25 = vunpack.i.h.bf16 %v14684_v6  ;;  %v5687_v22 = vunpack.i.l.bf16 %v14684_v6  ;;  %v6743_v13 = vunpack.i.h.bf16 %v6741_v46  ;;  %v6742_v58 = vunpack.i.l.bf16 %v6741_v46 }
 0x440   :  { %v6753_v40 = vunpack.i.h.bf16 %v6751_v47  ;;  %v6752_v28 = vunpack.i.l.bf16 %v6751_v47  ;;  %v3668_v27 = vsel %vm3605_vm8, %v3603_v60, %v5692_v2  ;;  %v3669_v1 = vsel %vm3605_vm8, %v3604_v7, %v5693_v5  ;;  %v6766_v45 = vpop.permute.xlu1 %6765 }
 0x441   :  { %v3666_v37 = vsel %vm3605_vm8, %v3601_v29, %v5687_v22  ;;  %v3667_v15 = vsel %vm3605_vm8, %v3602_v36, %v5688_v25  ;;  %v6763_v17 = vunpack.i.h.bf16 %v6761_v54  ;;  %v6762_v50 = vunpack.i.l.bf16 %v6761_v54  ;;  %v6771_v31 = vpop.permute.xlu0 %6770 }
 0x442   :  { %v3731_v59 = vsel %vm3670_vm9, %v3666_v37, %v6242_v19  ;;  %v3732_v18 = vsel %vm3670_vm9, %v3667_v15, %v6243_v24  ;;  %v6248_v57 = vunpack.i.h.bf16 %v14685_v61  ;;  %v6247_v4 = vunpack.i.l.bf16 %v14685_v61 }
 0x443   :  { %v3796_v51 = vsel %vm3735_vm10, %v3731_v59, %v6742_v58  ;;  %v3797_v33 = vsel %vm3735_vm10, %v3732_v18, %v6743_v13  ;;  %v6748_v9 = vunpack.i.h.bf16 %v6746_v34  ;;  %v6747_v8 = vunpack.i.l.bf16 %v6746_v34 }
 0x444   :  { %v3861_v62 = vsel %vm3800_vm11, %v3796_v51, %v6752_v28  ;;  %v3862_v56 = vsel %vm3800_vm11, %v3797_v33, %v6753_v40  ;;  %v6758_v14 = vunpack.i.h.bf16 %v6756_v21  ;;  %v6757_v3 = vunpack.i.l.bf16 %v6756_v21  ;;  %v6776_v10 = vpop.permute.xlu1 %6775 }
 0x445   :  { %v6773_v35 = vunpack.i.h.bf16 %v6771_v31  ;;  %v6772_v46 = vunpack.i.l.bf16 %v6771_v31  ;;  %v3926_v43 = vsel %vm3865_vm12, %v3861_v62, %v6762_v50  ;;  %v3927_v38 = vsel %vm3865_vm12, %v3862_v56, %v6763_v17 }
 0x446   :  { %v6768_v49 = vunpack.i.h.bf16 %v6766_v45  ;;  %v6767_v63 = vunpack.i.l.bf16 %v6766_v45  ;;  %v3733_v39 = vsel %vm3670_vm9, %v3668_v27, %v6247_v4  ;;  %v3734_v0 = vsel %vm3670_vm9, %v3669_v1, %v6248_v57 }
 0x447   :  { %v3991_v42 = vsel %vm3930_vm13, %v3926_v43, %v6772_v46  ;;  %v3992_v11 = vsel %vm3930_vm13, %v3927_v38, %v6773_v35  ;;  %v3798_v32 = vsel %vm3735_vm10, %v3733_v39, %v6747_v8  ;;  %v3799_v52 = vsel %vm3735_vm10, %v3734_v0, %v6748_v9 }
 0x448   :  { %v4025_v5 = vpack.c.bf16 %v3992_v11, %v3991_v42  ;;  %v3863_v55 = vsel %vm3800_vm11, %v3798_v32, %v6757_v3  ;;  %v3864_v2 = vsel %vm3800_vm11, %v3799_v52, %v6758_v14  ;;  %v6778_v12 = vunpack.i.h.bf16 %v6776_v10 }
 0x449   :  { %v6777_v16 = vunpack.i.l.bf16 %v6776_v10  ;;  %v3928_v48 = vsel %vm3865_vm12, %v3863_v55, %v6767_v63  ;;  %v3929_v30 = vsel %vm3865_vm12, %v3864_v2, %v6768_v49 }
 0x44a   :  { %5484 = vmatprep.mubr.msk.bf16.mxu1 %vm274_vm0, %v4025_v5  ;;  %v3994_v34 = vsel %vm3930_vm13, %v3929_v30, %v6778_v12 }
 0x44b   :  { %v3993_v53 = vsel %vm3930_vm13, %v3928_v48, %v6777_v16 }
 0x44c   :  { %v4026_v47 = vpack.c.bf16 %v3994_v34, %v3993_v53 }
 0x44e   :  { %5485 = vmatmul.mubr.msk.bf16.gmra.mrb[60].mxu1 %vm274_vm0, %v4026_v47 }
 0x46c   :  { %v11661_v26 = vpop.f32.mrb[0].mxu1 }
 0x46d   :  { %v11663_v23 = vpop.f32.mrb[1].mxu1  ;;  %v4570_v36 = vmul.f32 %v11661_v26, %v11661_v26  ;;  %v4438_v19 = vsel %vm664_vm2, %v11661_v26, 0.0 }
 0x46e   :  { %v4568_v41 = vmul.f32 %v11663_v23, %v11663_v23  ;;  %v11667_v20 = vpop.f32.mrb[2].mxu1  ;;  %v4435_v7 = vsel %vm664_vm2, %v11663_v23, 0.0 }
 0x46f   :  { %v11669_v29 = vpop.f32.mrb[3].mxu1  ;;  %v4571_v25 = vmul.f32 %v11667_v20, %v11667_v20  ;;  %v4635_v40 = vsel %vm664_vm2, %v4570_v36, 0.0  ;;  %v4440_v28 = vsel %vm664_vm2, %v11667_v20, 0.0 }
 0x470   :  { %v4436_v60 = vsel %vm664_vm2, %v11669_v29, 0.0  ;;  %v4569_v44 = vmul.f32 %v11669_v29, %v11669_v29  ;;  %v4632_v6 = vsel %vm664_vm2, %v4568_v41, 0.0 }
 0x471   :  { %v4437_v24 = vadd.f32 %v4436_v60, %v4435_v7  ;;  %v4637_v27 = vsel %vm664_vm2, %v4571_v25, 0.0 }
 0x472   :  { %v4633_v22 = vsel %vm664_vm2, %v4569_v44, 0.0 }
 0x473   :  { %v4439_v13 = vadd.f32 %v4438_v19, %v4437_v24  ;;  %v4634_v58 = vadd.f32 %v4633_v22, %v4632_v6 }
 0x475   :  { %v11688_v21 = vpop.f32.mrb[4].mxu1  ;;  %v4636_v54 = vadd.f32 %v4635_v40, %v4634_v58  ;;  %v4441_v15 = vadd.f32 %v4440_v28, %v4439_v13 }
 0x476   :  { %v11690_v37 = vpop.f32.mrb[5].mxu1  ;;  %v4574_v57 = vmul.f32 %v11688_v21, %v11688_v21  ;;  %v4446_v62 = vsel %vm664_vm2, %v11688_v21, 0.0 }
 0x477   :  { %v4442_v1 = vsel %vm664_vm2, %v11690_v37, 0.0  ;;  %v4572_v59 = vmul.f32 %v11690_v37, %v11690_v37  ;;  %v11697_v18 = vpop.f32.mrb[6].mxu1  ;;  %v4638_v50 = vadd.f32 %v4637_v27, %v4636_v54 }
 0x478   :  { %v4443_v17 = vadd.f32 %v4442_v1, %v4441_v15  ;;  %v11699_v61 = vpop.f32.mrb[7].mxu1  ;;  %v4575_v56 = vmul.f32 %v11697_v18, %v11697_v18  ;;  %v4643_v3 = vsel %vm664_vm2, %v4574_v57, 0.0  ;;  %v4448_v35 = vsel %vm664_vm2, %v11697_v18, 0.0 }
 0x479   :  { %v4639_v4 = vsel %vm664_vm2, %v4572_v59, 0.0  ;;  %v4444_v51 = vsel %vm664_vm2, %v11699_v61, 0.0  ;;  %v4573_v33 = vmul.f32 %v11699_v61, %v11699_v61 }
 0x47a   :  { %v4640_v9 = vadd.f32 %v4639_v4, %v4638_v50  ;;  %v4445_v8 = vadd.f32 %v4444_v51, %v4443_v17  ;;  %v4645_v63 = vsel %vm664_vm2, %v4575_v56, 0.0 }
 0x47b   :  { %v4641_v45 = vsel %vm664_vm2, %v4573_v33, 0.0 }
 0x47c   :  { %v4447_v31 = vadd.f32 %v4446_v62, %v4445_v8  ;;  %v4642_v14 = vadd.f32 %v4641_v45, %v4640_v9 }
 0x47e   :  { %v11716_v46 = vpop.f32.mrb[8].mxu1  ;;  %v4644_v43 = vadd.f32 %v4643_v3, %v4642_v14  ;;  %v4449_v49 = vadd.f32 %v4448_v35, %v4447_v31 }
 0x47f   :  { %v11718_v38 = vpop.f32.mrb[9].mxu1  ;;  %v4578_v5 = vmul.f32 %v11716_v46, %v11716_v46  ;;  %v4454_v48 = vsel %vm664_vm2, %v11716_v46, 0.0 }
 0x480   :  { %v4450_v39 = vsel %vm664_vm2, %v11718_v38, 0.0  ;;  %v4576_v0 = vmul.f32 %v11718_v38, %v11718_v38  ;;  %v11725_v42 = vpop.f32.mrb[10].mxu1  ;;  %v4646_v32 = vadd.f32 %v4645_v63, %v4644_v43 }
 0x481   :  { %v4451_v11 = vadd.f32 %v4450_v39, %v4449_v49  ;;  %v11727_v52 = vpop.f32.mrb[11].mxu1  ;;  %v4579_v30 = vmul.f32 %v11725_v42, %v11725_v42  ;;  %v4651_v41 = vsel %vm664_vm2, %v4578_v5, 0.0  ;;  %v4456_v36 = vsel %vm664_vm2, %v11725_v42, 0.0 }
 0x482   :  { %v4647_v10 = vsel %vm664_vm2, %v4576_v0, 0.0  ;;  %v4452_v55 = vsel %vm664_vm2, %v11727_v52, 0.0  ;;  %v4577_v2 = vmul.f32 %v11727_v52, %v11727_v52 }
 0x483   :  { %v4648_v12 = vadd.f32 %v4647_v10, %v4646_v32  ;;  %v4453_v16 = vadd.f32 %v4452_v55, %v4451_v11  ;;  %v4653_v19 = vsel %vm664_vm2, %v4579_v30, 0.0 }
 0x484   :  { %v4649_v53 = vsel %vm664_vm2, %v4577_v2, 0.0 }
 0x485   :  { %v4455_v34 = vadd.f32 %v4454_v48, %v4453_v16  ;;  %v4650_v47 = vadd.f32 %v4649_v53, %v4648_v12 }
 0x487   :  { %v4652_v60 = vadd.f32 %v4651_v41, %v4650_v47  ;;  %v4457_v24 = vadd.f32 %v4456_v36, %v4455_v34 }
 0x488   :  { %v11744_v7 = vpop.f32.mrb[12].mxu1 }
 0x489   :  { %v11746_v44 = vpop.f32.mrb[13].mxu1  ;;  %v4654_v58 = vadd.f32 %v4653_v19, %v4652_v60  ;;  %v4582_v28 = vmul.f32 %v11744_v7, %v11744_v7  ;;  %v4462_v17 = vsel %vm664_vm2, %v11744_v7, 0.0 }
 0x48a   :  { %v4458_v6 = vsel %vm664_vm2, %v11746_v44, 0.0  ;;  %v4580_v25 = vmul.f32 %v11746_v44, %v11746_v44  ;;  %v11753_v22 = vpop.f32.mrb[14].mxu1 }
 0x48b   :  { %v4459_v13 = vadd.f32 %v4458_v6, %v4457_v24  ;;  %v11755_v40 = vpop.f32.mrb[15].mxu1  ;;  %v4583_v50 = vmul.f32 %v11753_v22, %v11753_v22  ;;  %v4659_v33 = vsel %vm664_vm2, %v4582_v28, 0.0  ;;  %v4464_v9 = vsel %vm664_vm2, %v11753_v22, 0.0 }
 0x48c   :  { %v4655_v54 = vsel %vm664_vm2, %v4580_v25, 0.0  ;;  %v4460_v15 = vsel %vm664_vm2, %v11755_v40, 0.0  ;;  %v4581_v27 = vmul.f32 %v11755_v40, %v11755_v40 }
 0x48d   :  { %v4656_v1 = vadd.f32 %v4655_v54, %v4654_v58  ;;  %v4461_v59 = vadd.f32 %v4460_v15, %v4459_v13  ;;  %v4661_v31 = vsel %vm664_vm2, %v4583_v50, 0.0 }
 0x48e   :  { %v4657_v57 = vsel %vm664_vm2, %v4581_v27, 0.0 }
 0x48f   :  { %v4463_v4 = vadd.f32 %v4462_v17, %v4461_v59  ;;  %v4658_v51 = vadd.f32 %v4657_v57, %v4656_v1 }
 0x491   :  { %v11772_v8 = vpop.f32.mrb[16].mxu1  ;;  %v4660_v62 = vadd.f32 %v4659_v33, %v4658_v51  ;;  %v4465_v45 = vadd.f32 %v4464_v9, %v4463_v4 }
 0x492   :  { %v11774_v56 = vpop.f32.mrb[17].mxu1  ;;  %v4586_v39 = vmul.f32 %v11772_v8, %v11772_v8  ;;  %v4470_v55 = vsel %vm664_vm2, %v11772_v8, 0.0 }
 0x493   :  { %v4466_v14 = vsel %vm664_vm2, %v11774_v56, 0.0  ;;  %v4584_v3 = vmul.f32 %v11774_v56, %v11774_v56  ;;  %v11781_v35 = vpop.f32.mrb[18].mxu1  ;;  %v4662_v49 = vadd.f32 %v4661_v31, %v4660_v62 }
 0x494   :  { %v4467_v43 = vadd.f32 %v4466_v14, %v4465_v45  ;;  %v11783_v63 = vpop.f32.mrb[19].mxu1  ;;  %v4587_v2 = vmul.f32 %v11781_v35, %v11781_v35  ;;  %v4667_v30 = vsel %vm664_vm2, %v4586_v39, 0.0  ;;  %v4472_v53 = vsel %vm664_vm2, %v11781_v35, 0.0 }
 0x495   :  { %v4663_v0 = vsel %vm664_vm2, %v4584_v3, 0.0  ;;  %v4468_v11 = vsel %vm664_vm2, %v11783_v63, 0.0  ;;  %v4585_v32 = vmul.f32 %v11783_v63, %v11783_v63 }
 0x496   :  { %v4664_v5 = vadd.f32 %v4663_v0, %v4662_v49  ;;  %v4469_v10 = vadd.f32 %v4468_v11, %v4467_v43  ;;  %v4669_v60 = vsel %vm664_vm2, %v4587_v2, 0.0 }
 0x497   :  { %v4665_v12 = vsel %vm664_vm2, %v4585_v32, 0.0 }
 0x498   :  { %v4471_v16 = vadd.f32 %v4470_v55, %v4469_v10  ;;  %v4666_v48 = vadd.f32 %v4665_v12, %v4664_v5 }
 0x49a   :  { %v11800_v34 = vpop.f32.mrb[20].mxu1  ;;  %v4668_v47 = vadd.f32 %v4667_v30, %v4666_v48  ;;  %v4473_v36 = vadd.f32 %v4472_v53, %v4471_v16 }
 0x49b   :  { %v11802_v41 = vpop.f32.mrb[21].mxu1  ;;  %v4590_v28 = vmul.f32 %v11800_v34, %v11800_v34  ;;  %v4478_v17 = vsel %vm664_vm2, %v11800_v34, 0.0 }
 0x49c   :  { %v4474_v24 = vsel %vm664_vm2, %v11802_v41, 0.0  ;;  %v4588_v19 = vmul.f32 %v11802_v41, %v11802_v41  ;;  %v11809_v6 = vpop.f32.mrb[22].mxu1  ;;  %v4670_v13 = vadd.f32 %v4669_v60, %v4668_v47 }
 0x49d   :  { %v4475_v25 = vadd.f32 %v4474_v24, %v4473_v36  ;;  %v11811_v58 = vpop.f32.mrb[23].mxu1  ;;  %v4591_v50 = vmul.f32 %v11809_v6, %v11809_v6  ;;  %v4675_v33 = vsel %vm664_vm2, %v4590_v28, 0.0  ;;  %v4480_v9 = vsel %vm664_vm2, %v11809_v6, 0.0 }
 0x49e   :  { %v4671_v54 = vsel %vm664_vm2, %v4588_v19, 0.0  ;;  %v4476_v15 = vsel %vm664_vm2, %v11811_v58, 0.0  ;;  %v4589_v27 = vmul.f32 %v11811_v58, %v11811_v58 }
 0x49f   :  { %v4672_v1 = vadd.f32 %v4671_v54, %v4670_v13  ;;  %v4477_v59 = vadd.f32 %v4476_v15, %v4475_v25  ;;  %v4677_v3 = vsel %vm664_vm2, %v4591_v50, 0.0 }
 0x4a0   :  { %v4673_v57 = vsel %vm664_vm2, %v4589_v27, 0.0 }
 0x4a1   :  { %v4479_v4 = vadd.f32 %v4478_v17, %v4477_v59  ;;  %v4674_v51 = vadd.f32 %v4673_v57, %v4672_v1 }
 0x4a3   :  { %v4676_v45 = vadd.f32 %v4675_v33, %v4674_v51  ;;  %v4481_v14 = vadd.f32 %v4480_v9, %v4479_v4 }
 0x4a4   :  { %v11828_v62 = vpop.f32.mrb[24].mxu1 }
 0x4a5   :  { %v11830_v31 = vpop.f32.mrb[25].mxu1  ;;  %v4678_v11 = vadd.f32 %v4677_v3, %v4676_v45  ;;  %v4594_v5 = vmul.f32 %v11828_v62, %v11828_v62  ;;  %v4486_v48 = vsel %vm664_vm2, %v11828_v62, 0.0 }
 0x4a6   :  { %v4482_v43 = vsel %vm664_vm2, %v11830_v31, 0.0  ;;  %v4592_v49 = vmul.f32 %v11830_v31, %v11830_v31  ;;  %v11837_v39 = vpop.f32.mrb[26].mxu1 }
 0x4a7   :  { %v4483_v0 = vadd.f32 %v4482_v43, %v4481_v14  ;;  %v11839_v32 = vpop.f32.mrb[27].mxu1  ;;  %v4595_v30 = vmul.f32 %v11837_v39, %v11837_v39  ;;  %v4683_v60 = vsel %vm664_vm2, %v4594_v5, 0.0  ;;  %v4488_v24 = vsel %vm664_vm2, %v11837_v39, 0.0 }
 0x4a8   :  { %v4679_v10 = vsel %vm664_vm2, %v4592_v49, 0.0  ;;  %v4484_v55 = vsel %vm664_vm2, %v11839_v32, 0.0  ;;  %v4593_v2 = vmul.f32 %v11839_v32, %v11839_v32 }
 0x4a9   :  { %v4680_v12 = vadd.f32 %v4679_v10, %v4678_v11  ;;  %v4485_v16 = vadd.f32 %v4484_v55, %v4483_v0  ;;  %v4685_v54 = vsel %vm664_vm2, %v4595_v30, 0.0 }
 0x4aa   :  { %v4681_v53 = vsel %vm664_vm2, %v4593_v2, 0.0 }
 0x4ab   :  { %v4487_v47 = vadd.f32 %v4486_v48, %v4485_v16  ;;  %v4682_v36 = vadd.f32 %v4681_v53, %v4680_v12 }
 0x4ad   :  { %v11856_v19 = vpop.f32.mrb[28].mxu1  ;;  %v4684_v25 = vadd.f32 %v4683_v60, %v4682_v36  ;;  %v4489_v28 = vadd.f32 %v4488_v24, %v4487_v47 }
 0x4ae   :  { %v11858_v13 = vpop.f32.mrb[29].mxu1  ;;  %v4598_v57 = vmul.f32 %v11856_v19, %v11856_v19  ;;  %v4494_v14 = vsel %vm664_vm2, %v11856_v19, 0.0 }
 0x4af   :  { %v4490_v15 = vsel %vm664_vm2, %v11858_v13, 0.0  ;;  %v4596_v27 = vmul.f32 %v11858_v13, %v11858_v13  ;;  %v11865_v1 = vpop.f32.mrb[30].mxu1  ;;  %v4686_v17 = vadd.f32 %v4685_v54, %v4684_v25 }
 0x4b0   :  { %v4491_v59 = vadd.f32 %v4490_v15, %v4489_v28  ;;  %v11867_v50 = vpop.f32.mrb[31].mxu1  ;;  %v4599_v3 = vmul.f32 %v11865_v1, %v11865_v1  ;;  %v4691_v11 = vsel %vm664_vm2, %v4598_v57, 0.0  ;;  %v4496_v5 = vsel %vm664_vm2, %v11865_v1, 0.0 }
 0x4b1   :  { %v4687_v4 = vsel %vm664_vm2, %v4596_v27, 0.0  ;;  %v4492_v51 = vsel %vm664_vm2, %v11867_v50, 0.0  ;;  %v4597_v33 = vmul.f32 %v11867_v50, %v11867_v50 }
 0x4b2   :  { %v4688_v9 = vadd.f32 %v4687_v4, %v4686_v17  ;;  %v4493_v45 = vadd.f32 %v4492_v51, %v4491_v59  ;;  %v4693_v16 = vsel %vm664_vm2, %v4599_v3, 0.0 }
 0x4b3   :  { %v4689_v43 = vsel %vm664_vm2, %v4597_v33, 0.0 }
 0x4b4   :  { %v4495_v49 = vadd.f32 %v4494_v14, %v4493_v45  ;;  %v4690_v0 = vadd.f32 %v4689_v43, %v4688_v9 }
 0x4b6   :  { %v11884_v10 = vpop.f32.mrb[32].mxu1  ;;  %v4692_v55 = vadd.f32 %v4691_v11, %v4690_v0  ;;  %v4497_v12 = vadd.f32 %v4496_v5, %v4495_v49 }
 0x4b7   :  { %v11886_v2 = vpop.f32.mrb[33].mxu1  ;;  %v4602_v24 = vmul.f32 %v11884_v10, %v11884_v10  ;;  %v4502_v59 = vsel %vm664_vm2, %v11884_v10, 0.0 }
 0x4b8   :  { %v4498_v48 = vsel %vm664_vm2, %v11886_v2, 0.0  ;;  %v4600_v30 = vmul.f32 %v11886_v2, %v11886_v2  ;;  %v11893_v53 = vpop.f32.mrb[34].mxu1  ;;  %v4694_v36 = vadd.f32 %v4693_v16, %v4692_v55 }
 0x4b9   :  { %v4499_v47 = vadd.f32 %v4498_v48, %v4497_v12  ;;  %v11895_v60 = vpop.f32.mrb[35].mxu1  ;;  %v4603_v17 = vmul.f32 %v11893_v53, %v11893_v53  ;;  %v4699_v33 = vsel %vm664_vm2, %v4602_v24, 0.0  ;;  %v4504_v9 = vsel %vm664_vm2, %v11893_v53, 0.0 }
 0x4ba   :  { %v4695_v25 = vsel %vm664_vm2, %v4600_v30, 0.0  ;;  %v4500_v28 = vsel %vm664_vm2, %v11895_v60, 0.0  ;;  %v4601_v54 = vmul.f32 %v11895_v60, %v11895_v60 }
 0x4bb   :  { %v4696_v15 = vadd.f32 %v4695_v25, %v4694_v36  ;;  %v4501_v27 = vadd.f32 %v4500_v28, %v4499_v47  ;;  %v4701_v49 = vsel %vm664_vm2, %v4603_v17, 0.0 }
 0x4bc   :  { %v4697_v57 = vsel %vm664_vm2, %v4601_v54, 0.0 }
 0x4bd   :  { %v4503_v4 = vadd.f32 %v4502_v59, %v4501_v27  ;;  %v4698_v51 = vadd.f32 %v4697_v57, %v4696_v15 }
 0x4bf   :  { %v4700_v14 = vadd.f32 %v4699_v33, %v4698_v51  ;;  %v4505_v43 = vadd.f32 %v4504_v9, %v4503_v4 }
 0x4c0   :  { %v11912_v45 = vpop.f32.mrb[36].mxu1 }
 0x4c1   :  { %v11914_v3 = vpop.f32.mrb[37].mxu1  ;;  %v4702_v12 = vadd.f32 %v4701_v49, %v4700_v14  ;;  %v4606_v48 = vmul.f32 %v11912_v45, %v11912_v45  ;;  %v4510_v28 = vsel %vm664_vm2, %v11912_v45, 0.0 }
 0x4c2   :  { %v4506_v0 = vsel %vm664_vm2, %v11914_v3, 0.0  ;;  %v4604_v11 = vmul.f32 %v11914_v3, %v11914_v3  ;;  %v11921_v5 = vpop.f32.mrb[38].mxu1 }
 0x4c3   :  { %v4507_v55 = vadd.f32 %v4506_v0, %v4505_v43  ;;  %v11923_v16 = vpop.f32.mrb[39].mxu1  ;;  %v4607_v54 = vmul.f32 %v11921_v5, %v11921_v5  ;;  %v4707_v17 = vsel %vm664_vm2, %v4606_v48, 0.0  ;;  %v4512_v57 = vsel %vm664_vm2, %v11921_v5, 0.0 }
 0x4c4   :  { %v4703_v30 = vsel %vm664_vm2, %v4604_v11, 0.0  ;;  %v4508_v47 = vsel %vm664_vm2, %v11923_v16, 0.0  ;;  %v4605_v36 = vmul.f32 %v11923_v16, %v11923_v16 }
 0x4c5   :  { %v4704_v24 = vadd.f32 %v4703_v30, %v4702_v12  ;;  %v4509_v25 = vadd.f32 %v4508_v47, %v4507_v55  ;;  %v4709_v33 = vsel %vm664_vm2, %v4607_v54, 0.0 }
 0x4c6   :  { %v4705_v15 = vsel %vm664_vm2, %v4605_v36, 0.0 }
 0x4c7   :  { %v4511_v27 = vadd.f32 %v4510_v28, %v4509_v25  ;;  %v4706_v59 = vadd.f32 %v4705_v15, %v4704_v24 }
 0x4c9   :  { %v4708_v4 = vadd.f32 %v4707_v17, %v4706_v59  ;;  %v4513_v51 = vadd.f32 %v4512_v57, %v4511_v27 }
 0x4cb   :  { %v4710_v9 = vadd.f32 %v4709_v33, %v4708_v4 }
 0x4d0   :  { %v11941_v14 = vpop.f32.mrb[40].mxu1 }
 0x4d1   :  { %14686 = vst [vmem:[#allocation129_spill] sm:$0xff] %v11941_v14  ;;  %v11943_v43 = vpop.f32.mrb[41].mxu1  ;;  %v4610_v48 = vmul.f32 %v11941_v14, %v11941_v14  ;;  %v4518_v28 = vsel %vm664_vm2, %v11941_v14, 0.0 }
 0x4d2   :  { %14687 = vst [vmem:[#allocation130_spill] sm:$0xff] %v11943_v43  ;;  %v4514_v49 = vsel %vm664_vm2, %v11943_v43, 0.0  ;;  %v4608_v0 = vmul.f32 %v11943_v43, %v11943_v43  ;;  %v11949_v11 = vpop.f32.mrb[42].mxu1 }
 0x4d3   :  { %14688 = vst [vmem:[#allocation57_spill] sm:$0xff] %v11949_v11  ;;  %v4515_v55 = vadd.f32 %v4514_v49, %v4513_v51  ;;  %v11951_v12 = vpop.f32.mrb[43].mxu1  ;;  %v4611_v54 = vmul.f32 %v11949_v11, %v11949_v11  ;;  %v4715_v17 = vsel %vm664_vm2, %v4610_v48, 0.0  ;;  %v4520_v57 = vsel %vm664_vm2, %v11949_v11, 0.0 }
 0x4d4   :  { %14689 = vst [vmem:[#allocation131_spill] sm:$0xff] %v11951_v12  ;;  %v4711_v30 = vsel %vm664_vm2, %v4608_v0, 0.0  ;;  %v4516_v47 = vsel %vm664_vm2, %v11951_v12, 0.0  ;;  %v4609_v36 = vmul.f32 %v11951_v12, %v11951_v12 }
 0x4d5   :  { %v4712_v24 = vadd.f32 %v4711_v30, %v4710_v9  ;;  %v4517_v25 = vadd.f32 %v4516_v47, %v4515_v55  ;;  %v4717_v33 = vsel %vm664_vm2, %v4611_v54, 0.0 }
 0x4d6   :  { %v4713_v15 = vsel %vm664_vm2, %v4609_v36, 0.0 }
 0x4d7   :  { %v4519_v27 = vadd.f32 %v4518_v28, %v4517_v25  ;;  %v4714_v59 = vadd.f32 %v4713_v15, %v4712_v24 }
 0x4d9   :  { %v4716_v4 = vadd.f32 %v4715_v17, %v4714_v59  ;;  %v4521_v51 = vadd.f32 %v4520_v57, %v4519_v27 }
 0x4db   :  { %v4718_v9 = vadd.f32 %v4717_v33, %v4716_v4 }
 0x4e1   :  { %v11969_v49 = vpop.f32.mrb[44].mxu1 }
 0x4e2   :  { %14690 = vst [vmem:[#allocation132_spill] sm:$0xff] %v11969_v49  ;;  %v11971_v0 = vpop.f32.mrb[45].mxu1  ;;  %v4614_v24 = vmul.f32 %v11969_v49, %v11969_v49  ;;  %v4526_v59 = vsel %vm664_vm2, %v11969_v49, 0.0 }
 0x4e3   :  { %14691 = vst [vmem:[#allocation91_spill] sm:$0xff] %v11971_v0  ;;  %v4522_v55 = vsel %vm664_vm2, %v11971_v0, 0.0  ;;  %v4612_v30 = vmul.f32 %v11971_v0, %v11971_v0  ;;  %v11977_v47 = vpop.f32.mrb[46].mxu1 }
 0x4e4   :  { %14692 = vst [vmem:[#allocation133_spill] sm:$0xff] %v11977_v47  ;;  %v4523_v48 = vadd.f32 %v4522_v55, %v4521_v51  ;;  %v11979_v36 = vpop.f32.mrb[47].mxu1  ;;  %v4615_v17 = vmul.f32 %v11977_v47, %v11977_v47  ;;  %v4723_v33 = vsel %vm664_vm2, %v4614_v24, 0.0  ;;  %v4528_v55 = vsel %vm664_vm2, %v11977_v47, 0.0 }
 0x4e5   :  { %14693 = vst [vmem:[#allocation135_spill] sm:$0xff] %v11979_v36  ;;  %v4719_v25 = vsel %vm664_vm2, %v4612_v30, 0.0  ;;  %v4524_v28 = vsel %vm664_vm2, %v11979_v36, 0.0  ;;  %v4613_v54 = vmul.f32 %v11979_v36, %v11979_v36 }
 0x4e6   :  { %v4720_v15 = vadd.f32 %v4719_v25, %v4718_v9  ;;  %v4525_v27 = vadd.f32 %v4524_v28, %v4523_v48  ;;  %v4725_v9 = vsel %vm664_vm2, %v4615_v17, 0.0 }
 0x4e7   :  { %v4721_v57 = vsel %vm664_vm2, %v4613_v54, 0.0 }
 0x4e8   :  { %v4527_v4 = vadd.f32 %v4526_v59, %v4525_v27  ;;  %v4722_v51 = vadd.f32 %v4721_v57, %v4720_v15 }
 0x4ea   :  { %v4724_v30 = vadd.f32 %v4723_v33, %v4722_v51  ;;  %v4529_v0 = vadd.f32 %v4528_v55, %v4527_v4 }
 0x4ec   :  { %v4726_v48 = vadd.f32 %v4725_v9, %v4724_v30 }
 0x4f2   :  { %v11997_v25 = vpop.f32.mrb[48].mxu1 }
 0x4f3   :  { %14694 = vst [vmem:[#allocation7_spill] sm:$0xff] %v11997_v25  ;;  %v11999_v28 = vpop.f32.mrb[49].mxu1  ;;  %v4618_v59 = vmul.f32 %v11997_v25, %v11997_v25  ;;  %v4534_v55 = vsel %vm664_vm2, %v11997_v25, 0.0 }
 0x4f4   :  { %14695 = vst [vmem:[#allocation73_spill] sm:$0xff] %v11999_v28  ;;  %v4530_v49 = vsel %vm664_vm2, %v11999_v28, 0.0  ;;  %v4616_v54 = vmul.f32 %v11999_v28, %v11999_v28  ;;  %v12005_v15 = vpop.f32.mrb[50].mxu1 }
 0x4f5   :  { %14696 = vst [vmem:[#allocation70_spill] sm:$0xff] %v12005_v15  ;;  %v4531_v24 = vadd.f32 %v4530_v49, %v4529_v0  ;;  %v12007_v27 = vpop.f32.mrb[51].mxu1  ;;  %v4619_v49 = vmul.f32 %v12005_v15, %v12005_v15  ;;  %v4536_v28 = vsel %vm664_vm2, %v12005_v15, 0.0 }
 0x4f6   :  { %14697 = vst [vmem:[#allocation78_spill] sm:$0xff] %v12007_v27  ;;  %v4727_v17 = vsel %vm664_vm2, %v4616_v54, 0.0  ;;  %v4532_v57 = vsel %vm664_vm2, %v12007_v27, 0.0  ;;  %v4617_v4 = vmul.f32 %v12007_v27, %v12007_v27  ;;  %v4731_v54 = vsel %vm664_vm2, %v4618_v59, 0.0 }
 0x4f7   :  { %v4728_v51 = vadd.f32 %v4727_v17, %v4726_v48  ;;  %v4533_v33 = vadd.f32 %v4532_v57, %v4531_v24  ;;  %v4733_v48 = vsel %vm664_vm2, %v4619_v49, 0.0 }
 0x4f8   :  { %v4729_v0 = vsel %vm664_vm2, %v4617_v4, 0.0 }
 0x4f9   :  { %v4535_v30 = vadd.f32 %v4534_v55, %v4533_v33  ;;  %v4730_v9 = vadd.f32 %v4729_v0, %v4728_v51 }
 0x4fb   :  { %v4732_v47 = vadd.f32 %v4731_v54, %v4730_v9  ;;  %v4537_v36 = vadd.f32 %v4536_v28, %v4535_v30 }
 0x4fd   :  { %v4734_v24 = vadd.f32 %v4733_v48, %v4732_v47 }
 0x502   :  { %v12025_v17 = vpop.f32.mrb[52].mxu1 }
 0x503   :  { %14698 = vst [vmem:[#allocation35_spill] sm:$0xff] %v12025_v17  ;;  %v12027_v57 = vpop.f32.mrb[53].mxu1  ;;  %v4622_v28 = vmul.f32 %v12025_v17, %v12025_v17  ;;  %v4542_v9 = vsel %vm664_vm2, %v12025_v17, 0.0 }
 0x504   :  { %14699 = vst [vmem:[#allocation77_spill] sm:$0xff] %v12027_v57  ;;  %v4538_v25 = vsel %vm664_vm2, %v12027_v57, 0.0  ;;  %v4620_v4 = vmul.f32 %v12027_v57, %v12027_v57  ;;  %v12033_v51 = vpop.f32.mrb[54].mxu1 }
 0x505   :  { %14700 = vst [vmem:[#allocation76_spill] sm:$0xff] %v12033_v51  ;;  %v4539_v59 = vadd.f32 %v4538_v25, %v4537_v36  ;;  %v12035_v33 = vpop.f32.mrb[55].mxu1  ;;  %v4623_v36 = vmul.f32 %v12033_v51, %v12033_v51  ;;  %v4544_v57 = vsel %vm664_vm2, %v12033_v51, 0.0 }
 0x506   :  { %14701 = vst [vmem:[#allocation11_spill] sm:$0xff] %v12035_v33  ;;  %v4735_v47 = vsel %vm664_vm2, %v4620_v4, 0.0  ;;  %v4540_v55 = vsel %vm664_vm2, %v12035_v33, 0.0  ;;  %v4621_v49 = vmul.f32 %v12035_v33, %v12035_v33  ;;  %v4739_v4 = vsel %vm664_vm2, %v4622_v28, 0.0 }
 0x507   :  { %v4736_v0 = vadd.f32 %v4735_v47, %v4734_v24  ;;  %v4541_v30 = vadd.f32 %v4540_v55, %v4539_v59  ;;  %v4741_v24 = vsel %vm664_vm2, %v4623_v36, 0.0 }
 0x508   :  { %v4737_v25 = vsel %vm664_vm2, %v4621_v49, 0.0 }
 0x509   :  { %v4543_v54 = vadd.f32 %v4542_v9, %v4541_v30  ;;  %v4738_v48 = vadd.f32 %v4737_v25, %v4736_v0 }
 0x50b   :  { %v4740_v15 = vadd.f32 %v4739_v4, %v4738_v48  ;;  %v4545_v27 = vadd.f32 %v4544_v57, %v4543_v54 }
 0x50d   :  { %v4742_v59 = vadd.f32 %v4741_v24, %v4740_v15 }
 0x512   :  { %v12053_v47 = vpop.f32.mrb[56].mxu1 }
 0x513   :  { %14702 = vst [vmem:[#allocation56_spill] sm:$0xff] %v12053_v47  ;;  %v12055_v55 = vpop.f32.mrb[57].mxu1  ;;  %v4626_v57 = vmul.f32 %v12053_v47, %v12053_v47  ;;  %v4550_v48 = vsel %vm664_vm2, %v12053_v47, 0.0 }
 0x514   :  { %14703 = vst [vmem:[#allocation145_spill] sm:$0xff] %v12055_v55  ;;  %v4546_v17 = vsel %vm664_vm2, %v12055_v55, 0.0  ;;  %v4624_v49 = vmul.f32 %v12055_v55, %v12055_v55  ;;  %v12061_v0 = vpop.f32.mrb[58].mxu1 }
 0x515   :  { %14704 = vst [vmem:[#allocation93_spill] sm:$0xff] %v12061_v0  ;;  %v4547_v28 = vadd.f32 %v4546_v17, %v4545_v27  ;;  %v12063_v30 = vpop.f32.mrb[59].mxu1  ;;  %v4627_v27 = vmul.f32 %v12061_v0, %v12061_v0  ;;  %v4552_v55 = vsel %vm664_vm2, %v12061_v0, 0.0 }
 0x516   :  { %14705 = vst [vmem:[#allocation146_spill] sm:$0xff] %v12063_v30  ;;  %v4743_v15 = vsel %vm664_vm2, %v4624_v49, 0.0  ;;  %v4548_v9 = vsel %vm664_vm2, %v12063_v30, 0.0  ;;  %v4625_v36 = vmul.f32 %v12063_v30, %v12063_v30  ;;  %v4747_v49 = vsel %vm664_vm2, %v4626_v57, 0.0 }
 0x517   :  { %v4744_v25 = vadd.f32 %v4743_v15, %v4742_v59  ;;  %v4549_v54 = vadd.f32 %v4548_v9, %v4547_v28  ;;  %v4749_v59 = vsel %vm664_vm2, %v4627_v27, 0.0 }
 0x518   :  { %v4745_v17 = vsel %vm664_vm2, %v4625_v36, 0.0 }
 0x519   :  { %v4551_v4 = vadd.f32 %v4550_v48, %v4549_v54  ;;  %v4746_v24 = vadd.f32 %v4745_v17, %v4744_v25 }
 0x51b   :  { %v4748_v51 = vadd.f32 %v4747_v49, %v4746_v24  ;;  %v4553_v33 = vadd.f32 %v4552_v55, %v4551_v4 }
 0x51d   :  { %v4750_v28 = vadd.f32 %v4749_v59, %v4748_v51 }
 0x521   :  { %v12081_v15 = vpop.f32.mrb[60].mxu1 }
 0x522   :  { %14706 = vst [vmem:[#allocation148_spill] sm:$0xff] %v12081_v15  ;;  %v12083_v9 = vpop.f32.mrb[61].mxu1  ;;  %v4630_v55 = vmul.f32 %v12081_v15, %v12081_v15  ;;  %v4558_v24 = vsel %vm664_vm2, %v12081_v15, 0.0 }
 0x523   :  { %14707 = vst [vmem:[#allocation81_spill] sm:$0xff] %v12083_v9  ;;  %v4554_v47 = vsel %vm664_vm2, %v12083_v9, 0.0  ;;  %v4628_v36 = vmul.f32 %v12083_v9, %v12083_v9  ;;  %v12089_v25 = vpop.f32.mrb[62].mxu1 }
 0x524   :  { %14708 = vst [vmem:[#allocation19_spill] sm:$0xff] %v12089_v25  ;;  %v4555_v57 = vadd.f32 %v4554_v47, %v4553_v33  ;;  %v12091_v54 = vpop.f32.mrb[63].mxu1  ;;  %v4631_v33 = vmul.f32 %v12089_v25, %v12089_v25  ;;  %v4560_v9 = vsel %vm664_vm2, %v12089_v25, 0.0 }
 0x525   :  { %14709 = vst [vmem:[#allocation149_spill] sm:$0xff] %v12091_v54  ;;  %v4751_v51 = vsel %vm664_vm2, %v4628_v36, 0.0  ;;  %v4556_v48 = vsel %vm664_vm2, %v12091_v54, 0.0  ;;  %v4629_v27 = vmul.f32 %v12091_v54, %v12091_v54  ;;  %v4755_v36 = vsel %vm664_vm2, %v4630_v55, 0.0 }
 0x526   :  { %v4752_v17 = vadd.f32 %v4751_v51, %v4750_v28  ;;  %v4557_v4 = vadd.f32 %v4556_v48, %v4555_v57  ;;  %v4757_v28 = vsel %vm664_vm2, %v4631_v33, 0.0 }
 0x527   :  { %v4753_v47 = vsel %vm664_vm2, %v4629_v27, 0.0 }
 0x528   :  { %v4559_v49 = vadd.f32 %v4558_v24, %v4557_v4  ;;  %v4754_v59 = vadd.f32 %v4753_v47, %v4752_v17 }
 0x52a   :  { %v4561_v0 = vadd.f32 %v4560_v9, %v4559_v49  ;;  %v4756_v30 = vadd.f32 %v4755_v36, %v4754_v59 }
 0x52c   :  { %v4562_v57 = vrot.slane %v4561_v0, 4  ;;  %v4758_v51 = vadd.f32 %v4757_v28, %v4756_v30 }
 0x52e   :  { %v4563_v48 = vadd.f32 %v4562_v57, %v4561_v0  ;;  %v4759_v15 = vrot.slane %v4758_v51, 4  ;;  %v4769_v0 = vld [vmem:[%s13351_s6] sm:$0x1]  ;;  %v14711_v57 = vld [vmem:[#allocation130_spill] sm:$0xff] }
 0x530   :  { %v4564_v54 = vrot.slane %v4563_v48, 2  ;;  %v4760_v11 = vadd.f32 %v4759_v15, %v4758_v51  ;;  %v12115_v15 = vld [vmem:[%s13352_s7] sm:$0x1] }
 0x531   :  { %v14712_v51 = vld [vmem:[#allocation131_spill] sm:$0xff] }
 0x532   :  { %v4565_v14 = vadd.f32 %v4564_v54, %v4563_v48  ;;  %v4761_v12 = vrot.slane %v4760_v11, 2  ;;  %v14713_v48 = vld [vmem:[#allocation129_spill] sm:$0xff] }
 0x534   :  { %v4566_v27 = vrot.slane %v4565_v14, 1  ;;  %v4762_v4 = vadd.f32 %v4761_v12, %v4760_v11  ;;  %v14710_v11 = vld [vmem:[#allocation27_spill] sm:$0xff] }
 0x536   :  { %v4567_v17 = vadd.f32 %v4566_v27, %v4565_v14  ;;  %v4763_v24 = vrot.slane %v4762_v4, 1  ;;  %v14714_v27 = vld [vmem:[#allocation57_spill] sm:$0xff] }
 0x538   :  { %v4764_v55 = vadd.f32 %v4763_v24, %v4762_v4  ;;  %v4765_v47 = vmul.f32 0.001953125, %v4567_v17  ;;  %v14715_v4 = vld [vmem:[#allocation91_spill] sm:$0xff] }
 0x539   :  { %v14716_v17 = vld [vmem:[#allocation135_spill] sm:$0xff] }
 0x53a   :  { %v4766_v43 = vmul.f32 0.001953125, %v4764_v55  ;;  %v4767_v25 = vmul.f32 %v4765_v47, %v4765_v47  ;;  %v14717_v55 = vld [vmem:[#allocation132_spill] sm:$0xff] }
 0x53c   :  { %v4768_v9 = vsub.f32 %v4766_v43, %v4767_v25  ;;  %v14730_v43 = vld [vmem:[#allocation35_spill] sm:$0xff] }
 0x53e   :  { %v4770_v49 = vadd.f32 1e-05, %v4768_v9  ;;  %v14718_v9 = vld [vmem:[#allocation133_spill] sm:$0xff] }
 0x540   :  { %6819 = vrsqrt.f32 %v4770_v49 }
 0x54a   :  { %v6820_v30 = vpop.eup %6819 }
 0x54b   :  { %v4772_v33 = vmul.f32 %v6820_v30, %v4769_v0  ;;  %v14719_v0 = vld [vmem:[#allocation73_spill] sm:$0xff] }
 0x54d   :  { %v12117_v14 = vmul.f32 %v4772_v33, %v4765_v47  ;;  %v12120_v12 = vrot.slane %v4772_v33, %v14710_v11  ;;  %v14720_v33 = vld [vmem:[#allocation78_spill] sm:$0xff] }
 0x54f   :  { %v12126_v25 = vmul.f32 %v12120_v12, %v11663_v23  ;;  %v12130_v54 = vmul.f32 %v12120_v12, %v11669_v29  ;;  %v12134_v59 = vmul.f32 %v11661_v26, %v12120_v12  ;;  %v12138_v36 = vmul.f32 %v11667_v20, %v12120_v12 }
 0x550   :  { %v12142_v28 = vmul.f32 %v12120_v12, %v11690_v37  ;;  %v12146_v23 = vmul.f32 %v12120_v12, %v11699_v61  ;;  %v12150_v29 = vmul.f32 %v11688_v21, %v12120_v12  ;;  %v12154_v26 = vmul.f32 %v11697_v18, %v12120_v12 }
 0x551   :  { %v12158_v20 = vmul.f32 %v12120_v12, %v11718_v38  ;;  %v12162_v37 = vmul.f32 %v12120_v12, %v11727_v52  ;;  %v12166_v61 = vmul.f32 %v11716_v46, %v12120_v12  ;;  %v12170_v21 = vmul.f32 %v11725_v42, %v12120_v12 }
 0x552   :  { %v12174_v18 = vmul.f32 %v12120_v12, %v11746_v44  ;;  %v12178_v38 = vmul.f32 %v12120_v12, %v11755_v40  ;;  %v12182_v52 = vmul.f32 %v11744_v7, %v12120_v12  ;;  %v12186_v46 = vmul.f32 %v11753_v22, %v12120_v12 }
 0x553   :  { %v12190_v42 = vmul.f32 %v12120_v12, %v11774_v56  ;;  %v12194_v44 = vmul.f32 %v12120_v12, %v11783_v63  ;;  %v12198_v40 = vmul.f32 %v11772_v8, %v12120_v12  ;;  %v12202_v7 = vmul.f32 %v11781_v35, %v12120_v12 }
 0x554   :  { %v12206_v22 = vmul.f32 %v12120_v12, %v11802_v41  ;;  %v12210_v56 = vmul.f32 %v12120_v12, %v11811_v58  ;;  %v12214_v63 = vmul.f32 %v11800_v34, %v12120_v12  ;;  %v12218_v8 = vmul.f32 %v11809_v6, %v12120_v12 }
 0x555   :  { %v12222_v35 = vmul.f32 %v12120_v12, %v11830_v31  ;;  %v12226_v41 = vmul.f32 %v12120_v12, %v11839_v32  ;;  %v12230_v58 = vmul.f32 %v11828_v62, %v12120_v12  ;;  %v12234_v34 = vmul.f32 %v11837_v39, %v12120_v12 }
 0x556   :  { %v12238_v6 = vmul.f32 %v12120_v12, %v11858_v13  ;;  %v12242_v31 = vmul.f32 %v12120_v12, %v11867_v50  ;;  %v12246_v32 = vmul.f32 %v11856_v19, %v12120_v12  ;;  %v12250_v62 = vmul.f32 %v11865_v1, %v12120_v12 }
 0x557   :  { %v12254_v39 = vmul.f32 %v12120_v12, %v11886_v2  ;;  %v12258_v13 = vmul.f32 %v12120_v12, %v11895_v60  ;;  %v12262_v50 = vmul.f32 %v11884_v10, %v12120_v12  ;;  %v12266_v19 = vmul.f32 %v11893_v53, %v12120_v12 }
 0x558   :  { %v12270_v1 = vmul.f32 %v12120_v12, %v11914_v3  ;;  %v12274_v2 = vmul.f32 %v12120_v12, %v11923_v16  ;;  %v12278_v60 = vmul.f32 %v11912_v45, %v12120_v12  ;;  %v12282_v10 = vmul.f32 %v11921_v5, %v12120_v12 }
 0x559   :  { %v12286_v53 = vmul.f32 %v12120_v12, %v14711_v57  ;;  %v12290_v3 = vmul.f32 %v12120_v12, %v14712_v51  ;;  %v12294_v16 = vmul.f32 %v14713_v48, %v12120_v12  ;;  %v12298_v45 = vmul.f32 %v14714_v27, %v12120_v12  ;;  %v14722_v51 = vld [vmem:[#allocation7_spill] sm:$0xff]  ;;  %v14724_v27 = vld [vmem:[#allocation70_spill] sm:$0xff] }
 0x55a   :  { %v12302_v5 = vmul.f32 %v12120_v12, %v14715_v4  ;;  %v12306_v24 = vmul.f32 %v12120_v12, %v14716_v17  ;;  %v12310_v47 = vmul.f32 %v14717_v55, %v12120_v12  ;;  %v12314_v49 = vmul.f32 %v14718_v9, %v12120_v12  ;;  %v14726_v17 = vld [vmem:[#allocation77_spill] sm:$0xff]  ;;  %v14728_v9 = vld [vmem:[#allocation11_spill] sm:$0xff] }
 0x55b   :  { %v12318_v30 = vmul.f32 %v12120_v12, %v14719_v0  ;;  %v12322_v57 = vmul.f32 %v12120_v12, %v14720_v33  ;;  %v12326_v48 = vmul.f32 %v14722_v51, %v12120_v12  ;;  %v12330_v4 = vmul.f32 %v14724_v27, %v12120_v12 }
 0x55c   :  { %v12334_v55 = vmul.f32 %v12120_v12, %v14726_v17  ;;  %v12338_v0 = vmul.f32 %v12120_v12, %v14728_v9  ;;  %v12342_v33 = vmul.f32 %v14730_v43, %v12120_v12 }
 0x55d   :  { %14721 = vst [vmem:[#allocation20_spill] sm:$0xff] %v12322_v57  ;;  %14723 = vst [vmem:[#allocation79_spill] sm:$0xff] %v12326_v48  ;;  %v14732_v57 = vld [vmem:[#allocation76_spill] sm:$0xff]  ;;  %v14734_v48 = vld [vmem:[#allocation145_spill] sm:$0xff] }
 0x55e   :  { %14725 = vst [vmem:[#allocation60_spill] sm:$0xff] %v12330_v4  ;;  %14727 = vst [vmem:[#allocation147_spill] sm:$0xff] %v12334_v55  ;;  %v12346_v51 = vmul.f32 %v14732_v57, %v12120_v12  ;;  %v12350_v27 = vmul.f32 %v12120_v12, %v14734_v48  ;;  %v14736_v4 = vld [vmem:[#allocation146_spill] sm:$0xff]  ;;  %v14738_v55 = vld [vmem:[#allocation56_spill] sm:$0xff] }
 0x55f   :  { %14729 = vst [vmem:[#allocation66_spill] sm:$0xff] %v12338_v0  ;;  %14731 = vst [vmem:[#allocation64_spill] sm:$0xff] %v12342_v33  ;;  %v12354_v17 = vmul.f32 %v12120_v12, %v14736_v4  ;;  %v12358_v9 = vmul.f32 %v14738_v55, %v12120_v12  ;;  %v14739_v0 = vld [vmem:[#allocation93_spill] sm:$0xff] }
 0x560   :  { %14733 = vst [vmem:[#allocation8_spill] sm:$0xff] %v12346_v51  ;;  %14735 = vst [vmem:[#allocation9_spill] sm:$0xff] %v12350_v27  ;;  %v12362_v43 = vmul.f32 %v14739_v0, %v12120_v12  ;;  %v14741_v33 = vld [vmem:[#allocation81_spill] sm:$0xff]  ;;  %v14743_v27 = vld [vmem:[#allocation148_spill] sm:$0xff]  ;;  %v14745_v0 = vsub.f32 %v12115_v15, %v12117_v14 }
 0x561   :  { %14737 = vst [vmem:[#allocation22_spill] sm:$0xff] %v12354_v17  ;;  %v12366_v57 = vmul.f32 %v12120_v12, %v14741_v33  ;;  %v14742_v51 = vld [vmem:[#allocation149_spill] sm:$0xff]  ;;  %v12374_v4 = vmul.f32 %v14743_v27, %v12120_v12  ;;  %v14744_v17 = vld [vmem:[#allocation19_spill] sm:$0xff] }
 0x562   :  { %14740 = vst [vmem:[#allocation25_spill] sm:$0xff] %v12362_v43  ;;  %v12370_v48 = vmul.f32 %v12120_v12, %v14742_v51  ;;  %v12378_v55 = vmul.f32 %v14744_v17, %v12120_v12  ;;  %v12384_v43 = vrot.slane %v14745_v0, %v14710_v11 }
 0x564   :  { %v12388_v33 = vadd.f32 %v12384_v43, %v12126_v25  ;;  %v12392_v51 = vadd.f32 %v12384_v43, %v12130_v54  ;;  %v12396_v27 = vadd.f32 %v12384_v43, %v12134_v59  ;;  %v12400_v12 = vadd.f32 %v12384_v43, %v12138_v36  ;;  %v14763_v17 = vld [vmem:[#allocation79_spill] sm:$0xff] }
 0x565   :  { %v12404_v15 = vadd.f32 %v12384_v43, %v12142_v28  ;;  %v12408_v14 = vadd.f32 %v12384_v43, %v12146_v23  ;;  %v12412_v11 = vadd.f32 %v12384_v43, %v12150_v29  ;;  %v12416_v25 = vadd.f32 %v12384_v43, %v12154_v26 }
 0x566   :  { %v12420_v54 = vadd.f32 %v12384_v43, %v12158_v20  ;;  %v12424_v59 = vadd.f32 %v12384_v43, %v12162_v37  ;;  %v12428_v36 = vadd.f32 %v12384_v43, %v12166_v61  ;;  %v12432_v28 = vadd.f32 %v12384_v43, %v12170_v21 }
 0x567   :  { %v12436_v23 = vadd.f32 %v12384_v43, %v12174_v18  ;;  %v12440_v29 = vadd.f32 %v12384_v43, %v12178_v38  ;;  %v12444_v26 = vadd.f32 %v12384_v43, %v12182_v52  ;;  %v12448_v20 = vadd.f32 %v12384_v43, %v12186_v46 }
 0x568   :  { %v12452_v37 = vadd.f32 %v12384_v43, %v12190_v42  ;;  %v12456_v61 = vadd.f32 %v12384_v43, %v12194_v44  ;;  %v12460_v21 = vadd.f32 %v12384_v43, %v12198_v40  ;;  %v12464_v18 = vadd.f32 %v12384_v43, %v12202_v7 }
 0x569   :  { %v12468_v38 = vadd.f32 %v12384_v43, %v12206_v22  ;;  %v12472_v52 = vadd.f32 %v12384_v43, %v12210_v56  ;;  %v12476_v46 = vadd.f32 %v12384_v43, %v12214_v63  ;;  %v12480_v42 = vadd.f32 %v12384_v43, %v12218_v8 }
 0x56a   :  { %v12484_v44 = vadd.f32 %v12384_v43, %v12222_v35  ;;  %v12488_v40 = vadd.f32 %v12384_v43, %v12226_v41  ;;  %v12492_v7 = vadd.f32 %v12384_v43, %v12230_v58  ;;  %v12496_v22 = vadd.f32 %v12384_v43, %v12234_v34 }
 0x56b   :  { %v12500_v56 = vadd.f32 %v12384_v43, %v12238_v6  ;;  %v12504_v63 = vadd.f32 %v12384_v43, %v12242_v31  ;;  %v12508_v8 = vadd.f32 %v12384_v43, %v12246_v32  ;;  %v12512_v35 = vadd.f32 %v12384_v43, %v12250_v62 }
 0x56c   :  { %v12516_v41 = vadd.f32 %v12384_v43, %v12254_v39  ;;  %v12520_v58 = vadd.f32 %v12384_v43, %v12258_v13  ;;  %v12524_v34 = vadd.f32 %v12384_v43, %v12262_v50  ;;  %v12528_v6 = vadd.f32 %v12384_v43, %v12266_v19 }
 0x56d   :  { %v12532_v31 = vadd.f32 %v12384_v43, %v12270_v1  ;;  %v12536_v32 = vadd.f32 %v12384_v43, %v12274_v2  ;;  %v12540_v62 = vadd.f32 %v12384_v43, %v12278_v60  ;;  %v12544_v39 = vadd.f32 %v12384_v43, %v12282_v10 }
 0x56e   :  { %14746 = vst [vmem:[#allocation67_spill] sm:$0xff] %v12524_v34  ;;  %14747 = vst [vmem:[#allocation3_spill] sm:$0xff] %v12528_v6  ;;  %v12548_v13 = vadd.f32 %v12384_v43, %v12286_v53  ;;  %v12552_v50 = vadd.f32 %v12384_v43, %v12290_v3  ;;  %v12556_v19 = vadd.f32 %v12384_v43, %v12294_v16  ;;  %v4916_v3 = vld [vmem:[%s13353_s1] sm:$0xff]  ;;  %v4917_v16 = vld [vmem:[%s13353_s1 + $0x8] sm:$0xff] }
 0x56f   :  { %14748 = vst [vmem:[#allocation150_spill] sm:$0xff] %v12532_v31  ;;  %14749 = vst [vmem:[#allocation6_spill] sm:$0xff] %v12536_v32  ;;  %v12560_v1 = vadd.f32 %v12384_v43, %v12298_v45  ;;  %v12564_v2 = vadd.f32 %v12384_v43, %v12302_v5  ;;  %v12568_v60 = vadd.f32 %v12384_v43, %v12306_v24  ;;  %v4918_v45 = vld [vmem:[%s13353_s1 + $0x10] sm:$0xff]  ;;  %v4919_v5 = vld [vmem:[%s13353_s1 + $0x18] sm:$0xff] }
 0x570   :  { %14750 = vst [vmem:[#allocation51_spill] sm:$0xff] %v12540_v62  ;;  %14751 = vst [vmem:[#allocation157_spill] sm:$0xff] %v12544_v39  ;;  %v12572_v10 = vadd.f32 %v12384_v43, %v12310_v47  ;;  %v12576_v53 = vadd.f32 %v12384_v43, %v12314_v49  ;;  %v12592_v24 = vadd.f32 %v12384_v43, %v12318_v30  ;;  %v14761_v47 = vld [vmem:[#allocation20_spill] sm:$0xff]  ;;  %v4928_v62 = vld [vmem:[%s13353_s1 + $0x60] sm:$0xff] }
 0x571   :  { %14752 = vst [vmem:[#allocation158_spill] sm:$0xff] %v12548_v13  ;;  %14753 = vst [vmem:[#allocation94_spill] sm:$0xff] %v12552_v50  ;;  %v12596_v49 = vadd.f32 %v12384_v43, %v14761_v47  ;;  %v12600_v0 = vadd.f32 %v12384_v43, %v14763_v17  ;;  %v4921_v30 = vld [vmem:[%s13353_s1 + $0x28] sm:$0xff]  ;;  %v4922_v47 = vld [vmem:[%s13353_s1 + $0x30] sm:$0xff]  ;;  %v12721_v32 = vadd.f32 %v4918_v45, %v12396_v27 }
 0x572   :  { %14754 = vst [vmem:[#allocation167_spill] sm:$0xff] %v12556_v19  ;;  %14755 = vst [vmem:[#allocation92_spill] sm:$0xff] %v12560_v1  ;;  %v4923_v17 = vld [vmem:[%s13353_s1 + $0x38] sm:$0xff]  ;;  %v14773_v1 = vld [vmem:[#allocation8_spill] sm:$0xff]  ;;  %v12724_v31 = vadd.f32 %v4919_v5, %v12400_v12  ;;  %v12742_v12 = vadd.f32 %v4921_v30, %v12408_v14 }
 0x573   :  { %14756 = vst [vmem:[#allocation31_spill] sm:$0xff] %v12564_v2  ;;  %14757 = vst [vmem:[#allocation170_spill] sm:$0xff] %v12568_v60  ;;  %v4920_v60 = vld [vmem:[%s13353_s1 + $0x20] sm:$0xff]  ;;  %v12632_v19 = vadd.f32 %v12384_v43, %v14773_v1  ;;  %v14780_v13 = vld [vmem:[#allocation25_spill] sm:$0xff] }
 0x574   :  { %14758 = vst [vmem:[#allocation168_spill] sm:$0xff] %v12572_v10  ;;  %14759 = vst [vmem:[#allocation84_spill] sm:$0xff] %v12576_v53  ;;  %v14765_v53 = vld [vmem:[#allocation60_spill] sm:$0xff]  ;;  %v4924_v50 = vld [vmem:[%s13353_s1 + $0x40] sm:$0xff]  ;;  %v12660_v39 = vadd.f32 %v12384_v43, %v14780_v13  ;;  %v12676_v13 = vadd.f32 %v12384_v43, %v12366_v57  ;;  %v12739_v27 = vadd.f32 %v4920_v60, %v12404_v15 }
 0x575   :  { %14760 = vst [vmem:[#allocation154_spill] sm:$0xff] %v12592_v24  ;;  %14762 = vst [vmem:[#allocation153_spill] sm:$0xff] %v12596_v49  ;;  %v12604_v10 = vadd.f32 %v12384_v43, %v14765_v53  ;;  %v14771_v24 = vld [vmem:[#allocation64_spill] sm:$0xff]  ;;  %v4940_v6 = vld [vmem:[%s13353_s1 + $0xc0] sm:$0xff] }
 0x576   :  { %14764 = vst [vmem:[#allocation62_spill] sm:$0xff] %v12600_v0  ;;  %v14767_v0 = vld [vmem:[#allocation147_spill] sm:$0xff]  ;;  %v12628_v2 = vadd.f32 %v12384_v43, %v14771_v24  ;;  %14774 = vst [vmem:[#allocation96_spill] sm:$0xff] %v12632_v19  ;;  %v4927_v24 = vld [vmem:[%s13353_s1 + $0x58] sm:$0xff] }
 0x577   :  { %14766 = vst [vmem:[#allocation156_spill] sm:$0xff] %v12604_v10  ;;  %v12620_v53 = vadd.f32 %v12384_v43, %v14767_v0  ;;  %v14769_v10 = vld [vmem:[#allocation66_spill] sm:$0xff]  ;;  %v4925_v0 = vld [vmem:[%s13353_s1 + $0x48] sm:$0xff]  ;;  %14781 = vst [vmem:[#allocation63_spill] sm:$0xff] %v12660_v39  ;;  %v12680_v39 = vadd.f32 %v12384_v43, %v12370_v48  ;;  %v12772_v30 = vadd.f32 %v4927_v24, %v12432_v28 }
 0x578   :  { %v12624_v49 = vadd.f32 %v12384_v43, %v14769_v10  ;;  %14772 = vst [vmem:[#allocation4_spill] sm:$0xff] %v12628_v2  ;;  %v4926_v10 = vld [vmem:[%s13353_s1 + $0x50] sm:$0xff]  ;;  %v14777_v19 = vld [vmem:[#allocation22_spill] sm:$0xff]  ;;  %14782 = vst [vmem:[#allocation28_spill] sm:$0xff] %v12676_v13  ;;  %v12718_v13 = vadd.f32 %v4917_v16, %v12392_v51  ;;  %v12748_v16 = vadd.f32 %v4923_v17, %v12416_v25 }
 0x579   :  { %14768 = vst [vmem:[#allocation155_spill] sm:$0xff] %v12620_v53  ;;  %v14775_v2 = vld [vmem:[#allocation9_spill] sm:$0xff]  ;;  %v12656_v53 = vadd.f32 %v12384_v43, %v12358_v9  ;;  %v4931_v9 = vld [vmem:[%s13353_s1 + $0x78] sm:$0xff]  ;;  %14783 = vst [vmem:[#allocation160_spill] sm:$0xff] %v12680_v39  ;;  %v12715_v39 = vadd.f32 %v4916_v3, %v12388_v33  ;;  %v12745_v3 = vadd.f32 %v4922_v47, %v12412_v11 }
 0x57a   :  { %14770 = vst [vmem:[#allocation95_spill] sm:$0xff] %v12624_v49  ;;  %v12648_v1 = vadd.f32 %v12384_v43, %v14775_v2  ;;  %v12652_v49 = vadd.f32 %v12384_v43, %v14777_v19  ;;  %v4929_v2 = vld [vmem:[%s13353_s1 + $0x68] sm:$0xff]  ;;  %v4930_v19 = vld [vmem:[%s13353_s1 + $0x70] sm:$0xff]  ;;  %v4943_v51 = vld [vmem:[%s13353_s1 + $0xd8] sm:$0xff]  ;;  %v12763_v11 = vadd.f32 %v4924_v50, %v12420_v54  ;;  %v12766_v25 = vadd.f32 %v4925_v0, %v12424_v59 }
 0x57b   :  { %14779 = vst [vmem:[#allocation29_spill] sm:$0xff] %v12656_v53  ;;  %v12684_v53 = vadd.f32 %v12384_v43, %v12374_v4  ;;  %v4933_v57 = vld [vmem:[%s13353_s1 + $0x88] sm:$0xff]  ;;  %v4934_v48 = vld [vmem:[%s13353_s1 + $0x90] sm:$0xff]  ;;  %v4935_v4 = vld [vmem:[%s13353_s1 + $0x98] sm:$0xff]  ;;  %v12769_v60 = vadd.f32 %v4926_v10, %v12428_v36  ;;  %v12787_v36 = vadd.f32 %v4928_v62, %v12436_v23  ;;  %v12790_v28 = vadd.f32 %v4929_v2, %v12440_v29 }
 0x57c   :  { %14776 = vst [vmem:[#allocation108_spill] sm:$0xff] %v12648_v1  ;;  %14778 = vst [vmem:[#allocation97_spill] sm:$0xff] %v12652_v49  ;;  %v12688_v49 = vadd.f32 %v12384_v43, %v12378_v55  ;;  %v4932_v1 = vld [vmem:[%s13353_s1 + $0x80] sm:$0xff]  ;;  %v4937_v55 = vld [vmem:[%s13353_s1 + $0xa8] sm:$0xff]  ;;  %v12793_v50 = vadd.f32 %v4930_v19, %v12444_v26  ;;  %v12796_v0 = vadd.f32 %v4931_v9, %v12448_v20 }
 0x57d   :  { %14784 = vst [vmem:[#allocation159_spill] sm:$0xff] %v12684_v53  ;;  %v4936_v43 = vld [vmem:[%s13353_s1 + $0xa0] sm:$0xff]  ;;  %v4939_v53 = vld [vmem:[%s13353_s1 + $0xb8] sm:$0xff]  ;;  %v4941_v34 = vld [vmem:[%s13353_s1 + $0xc8] sm:$0xff]  ;;  %v12811_v26 = vadd.f32 %v4932_v1, %v12452_v37  ;;  %v12814_v20 = vadd.f32 %v4933_v57, %v12456_v61  ;;  %v12817_v62 = vadd.f32 %v4934_v48, %v12460_v21  ;;  %v12820_v2 = vadd.f32 %v4935_v4, %v12464_v18 }
 0x57e   :  { %14785 = vst [vmem:[#allocation98_spill] sm:$0xff] %v12688_v49  ;;  %v4938_v49 = vld [vmem:[%s13353_s1 + $0xb0] sm:$0xff]  ;;  %v4944_v45 = vld [vmem:[%s13353_s1 + $0xe0] sm:$0xff]  ;;  %v4945_v5 = vld [vmem:[%s13353_s1 + $0xe8] sm:$0xff]  ;;  %v12832_v61 = vadd.f32 %v4936_v43, %v12468_v38  ;;  %v12835_v21 = vadd.f32 %v4937_v55, %v12472_v52  ;;  %v12841_v1 = vadd.f32 %v4939_v53, %v12480_v42  ;;  %v12853_v52 = vadd.f32 %v4940_v6, %v12484_v44 }
 0x57f   :  { %v4942_v33 = vld [vmem:[%s13353_s1 + $0xd0] sm:$0xff]  ;;  %v4947_v14 = vld [vmem:[%s13353_s1 + $0xf8] sm:$0xff]  ;;  %v4948_v47 = vld [vmem:[%s13353_s1 + $0x100] sm:$0xff]  ;;  %v12838_v18 = vadd.f32 %v4938_v49, %v12476_v46  ;;  %v12856_v46 = vadd.f32 %v4941_v34, %v12488_v40  ;;  %v12862_v49 = vadd.f32 %v4943_v51, %v12496_v22  ;;  %v12874_v40 = vadd.f32 %v4944_v45, %v12500_v56 }
 0x580   :  { %v4946_v15 = vld [vmem:[%s13353_s1 + $0xf0] sm:$0xff]  ;;  %v4949_v17 = vld [vmem:[%s13353_s1 + $0x108] sm:$0xff]  ;;  %v4951_v59 = vld [vmem:[%s13353_s1 + $0x118] sm:$0xff]  ;;  %v12859_v42 = vadd.f32 %v4942_v33, %v12492_v7  ;;  %v12877_v7 = vadd.f32 %v4945_v5, %v12504_v63  ;;  %v12883_v34 = vadd.f32 %v4947_v14, %v12512_v35  ;;  %v12895_v63 = vadd.f32 %v4948_v47, %v12516_v41 }
 0x581   :  { %v4950_v54 = vld [vmem:[%s13353_s1 + $0x110] sm:$0xff]  ;;  %v4952_v10 = vld [vmem:[%s13353_s1 + $0x120] sm:$0xff]  ;;  %v4953_v24 = vld [vmem:[%s13353_s1 + $0x128] sm:$0xff]  ;;  %v12880_v22 = vadd.f32 %v4946_v15, %v12508_v8  ;;  %v12898_v8 = vadd.f32 %v4949_v17, %v12520_v58 }
 0x582   :  { %v4954_v23 = vld [vmem:[%s13353_s1 + $0x130] sm:$0xff]  ;;  %v4955_v29 = vld [vmem:[%s13353_s1 + $0x138] sm:$0xff]  ;;  %v4956_v19 = vld [vmem:[%s13353_s1 + $0x140] sm:$0xff] }
 0x583   :  { %v4957_v9 = vld [vmem:[%s13353_s1 + $0x148] sm:$0xff]  ;;  %v4958_v37 = vld [vmem:[%s13353_s1 + $0x150] sm:$0xff]  ;;  %v4959_v57 = vld [vmem:[%s13353_s1 + $0x158] sm:$0xff] }
 0x584   :  { %v4960_v48 = vld [vmem:[%s13353_s1 + $0x160] sm:$0xff]  ;;  %v4961_v38 = vld [vmem:[%s13353_s1 + $0x168] sm:$0xff]  ;;  %v4962_v53 = vld [vmem:[%s13353_s1 + $0x170] sm:$0xff] }
 0x585   :  { %v4963_v4 = vld [vmem:[%s13353_s1 + $0x178] sm:$0xff]  ;;  %v4964_v44 = vld [vmem:[%s13353_s1 + $0x180] sm:$0xff]  ;;  %v4965_v6 = vld [vmem:[%s13353_s1 + $0x188] sm:$0xff] }
 0x586   :  { %v4966_v43 = vld [vmem:[%s13353_s1 + $0x190] sm:$0xff]  ;;  %v4967_v56 = vld [vmem:[%s13353_s1 + $0x198] sm:$0xff]  ;;  %v14786_v35 = vld [vmem:[#allocation67_spill] sm:$0xff] }
 0x587   :  { %v12901_v55 = vadd.f32 %v4950_v54, %v14786_v35  ;;  %v14788_v33 = vld [vmem:[#allocation3_spill] sm:$0xff]  ;;  %v4969_v5 = vld [vmem:[%s13353_s1 + $0x1a8] sm:$0xff]  ;;  %v4970_v41 = vld [vmem:[%s13353_s1 + $0x1b0] sm:$0xff] }
 0x588   :  { %v12904_v51 = vadd.f32 %v4951_v59, %v14788_v33  ;;  %v4968_v45 = vld [vmem:[%s13353_s1 + $0x1a0] sm:$0xff]  ;;  %v14790_v58 = vld [vmem:[#allocation150_spill] sm:$0xff]  ;;  %v14796_v59 = vld [vmem:[#allocation157_spill] sm:$0xff] }
 0x589   :  { %14787 = vst [vmem:[#allocation162_spill] sm:$0xff] %v12901_v55  ;;  %v12916_v15 = vadd.f32 %v4952_v10, %v14790_v58  ;;  %v14792_v14 = vld [vmem:[#allocation6_spill] sm:$0xff]  ;;  %v14794_v17 = vld [vmem:[#allocation51_spill] sm:$0xff]  ;;  %v12925_v35 = vadd.f32 %v4955_v29, %v14796_v59  ;;  %v4973_v10 = vld [vmem:[%s13353_s1 + $0x1c8] sm:$0xff] }
 0x58a   :  { %14789 = vst [vmem:[#allocation161_spill] sm:$0xff] %v12904_v51  ;;  %v12919_v47 = vadd.f32 %v4953_v24, %v14792_v14  ;;  %v12922_v54 = vadd.f32 %v4954_v23, %v14794_v17  ;;  %v4971_v33 = vld [vmem:[%s13353_s1 + $0x1b8] sm:$0xff]  ;;  %v4972_v51 = vld [vmem:[%s13353_s1 + $0x1c0] sm:$0xff]  ;;  %v14804_v59 = vld [vmem:[#allocation92_spill] sm:$0xff] }
 0x58b   :  { %14791 = vst [vmem:[#allocation18_spill] sm:$0xff] %v12916_v15  ;;  %14797 = vst [vmem:[#allocation72_spill] sm:$0xff] %v12925_v35  ;;  %v14798_v24 = vld [vmem:[#allocation158_spill] sm:$0xff]  ;;  %v14802_v29 = vld [vmem:[#allocation167_spill] sm:$0xff]  ;;  %v12946_v35 = vadd.f32 %v4959_v57, %v14804_v59 }
 0x58c   :  { %14793 = vst [vmem:[#allocation74_spill] sm:$0xff] %v12919_v47  ;;  %14795 = vst [vmem:[#allocation46_spill] sm:$0xff] %v12922_v54  ;;  %v12937_v58 = vadd.f32 %v4956_v19, %v14798_v24  ;;  %v14800_v23 = vld [vmem:[#allocation94_spill] sm:$0xff]  ;;  %v12943_v17 = vadd.f32 %v4958_v37, %v14802_v29  ;;  %v4974_v54 = vld [vmem:[%s13353_s1 + $0x1d0] sm:$0xff] }
 0x58d   :  { %v12940_v14 = vadd.f32 %v4957_v9, %v14800_v23  ;;  %14805 = vst [vmem:[#allocation38_spill] sm:$0xff] %v12946_v35  ;;  %v4975_v47 = vld [vmem:[%s13353_s1 + $0x1d8] sm:$0xff]  ;;  %v4976_v19 = vld [vmem:[%s13353_s1 + $0x1e0] sm:$0xff]  ;;  %v14810_v57 = vld [vmem:[#allocation168_spill] sm:$0xff] }
 0x58e   :  { %14799 = vst [vmem:[#allocation99_spill] sm:$0xff] %v12937_v58  ;;  %14803 = vst [vmem:[#allocation24_spill] sm:$0xff] %v12943_v17  ;;  %v14806_v9 = vld [vmem:[#allocation31_spill] sm:$0xff]  ;;  %v14808_v37 = vld [vmem:[#allocation170_spill] sm:$0xff]  ;;  %v12964_v29 = vadd.f32 %v4962_v53, %v14810_v57 }
 0x58f   :  { %14801 = vst [vmem:[#allocation13_spill] sm:$0xff] %v12940_v14  ;;  %v12958_v24 = vadd.f32 %v4960_v48, %v14806_v9  ;;  %v12961_v23 = vadd.f32 %v4961_v38, %v14808_v37  ;;  %v14812_v59 = vld [vmem:[#allocation84_spill] sm:$0xff]  ;;  %v4978_v14 = vld [vmem:[%s13353_s1 + $0x1f0] sm:$0xff]  ;;  %v4979_v48 = vld [vmem:[%s13353_s1 + $0x1f8] sm:$0xff] }
 0x590   :  { %14811 = vst [vmem:[#allocation30_spill] sm:$0xff] %v12964_v29  ;;  %v12967_v35 = vadd.f32 %v4963_v4, %v14812_v59  ;;  %v4977_v17 = vld [vmem:[%s13353_s1 + $0x1e8] sm:$0xff]  ;;  %v14814_v38 = vld [vmem:[#allocation154_spill] sm:$0xff]  ;;  %v14815_v53 = vld [vmem:[#allocation153_spill] sm:$0xff] }
 0x591   :  { %14807 = vst [vmem:[#allocation164_spill] sm:$0xff] %v12958_v24  ;;  %14809 = vst [vmem:[#allocation163_spill] sm:$0xff] %v12961_v23  ;;  %v12979_v9 = vadd.f32 %v4964_v44, %v14814_v38  ;;  %v12982_v37 = vadd.f32 %v4965_v6, %v14815_v53  ;;  %v14816_v4 = vld [vmem:[#allocation62_spill] sm:$0xff]  ;;  %v14817_v59 = vld [vmem:[#allocation156_spill] sm:$0xff] }
 0x592   :  { %14813 = vst [vmem:[#allocation101_spill] sm:$0xff] %v12967_v35  ;;  %v12985_v57 = vadd.f32 %v4966_v43, %v14816_v4  ;;  %v12988_v35 = vadd.f32 %v4967_v56, %v14817_v59  ;;  %v14818_v29 = vld [vmem:[#allocation155_spill] sm:$0xff]  ;;  %v14820_v15 = vld [vmem:[#allocation4_spill] sm:$0xff]  ;;  %v14823_v43 = vld [vmem:[#allocation97_spill] sm:$0xff] }
 0x593   :  { %v12991_v23 = vadd.f32 %v4968_v45, %v14818_v29  ;;  %v14819_v24 = vld [vmem:[#allocation95_spill] sm:$0xff]  ;;  %v12997_v55 = vadd.f32 %v4970_v41, %v14820_v15  ;;  %v14821_v44 = vld [vmem:[#allocation96_spill] sm:$0xff]  ;;  %v13006_v4 = vadd.f32 %v4973_v10, %v14823_v43  ;;  %v14824_v56 = vld [vmem:[#allocation29_spill] sm:$0xff]  ;;  %v5044_v10 = vmax.f32 %v12715_v39, 0.0 }
 0x594   :  { %v12994_v58 = vadd.f32 %v4969_v5, %v14819_v24  ;;  %v13000_v38 = vadd.f32 %v4971_v33, %v14821_v44  ;;  %v14822_v6 = vld [vmem:[#allocation108_spill] sm:$0xff]  ;;  %v13009_v59 = vadd.f32 %v4974_v54, %v14824_v56  ;;  %v14825_v45 = vld [vmem:[#allocation63_spill] sm:$0xff]  ;;  %v5045_v54 = vmax.f32 %v12718_v13, 0.0 }
 0x595   :  { %v13003_v53 = vadd.f32 %v4972_v51, %v14822_v6  ;;  %v13012_v29 = vadd.f32 %v4975_v47, %v14825_v45  ;;  %v14826_v5 = vld [vmem:[#allocation28_spill] sm:$0xff]  ;;  %v14828_v33 = vld [vmem:[#allocation159_spill] sm:$0xff]  ;;  %v14829_v51 = vld [vmem:[#allocation98_spill] sm:$0xff]  ;;  %v5046_v43 = vmax.f32 %v12721_v32, 0.0  ;;  %v5047_v47 = vmax.f32 %v12724_v31, 0.0  ;;  %5108 = vst.msk [vmem:[%s13354_s8] sm:$0xff] %vm664_vm2, %v5044_v10 }
 0x596   :  { %v13015_v24 = vadd.f32 %v4976_v19, %v14826_v5  ;;  %v14827_v41 = vld [vmem:[#allocation160_spill] sm:$0xff]  ;;  %v13021_v44 = vadd.f32 %v4978_v14, %v14828_v33  ;;  %v13024_v6 = vadd.f32 %v4979_v48, %v14829_v51  ;;  %v5048_v19 = vmax.f32 %v12739_v27, 0.0  ;;  %5109 = vst.msk [vmem:[%s13354_s8 + $0x8] sm:$0xff] %vm664_vm2, %v5045_v54  ;;  %v14836_v33 = vld [vmem:[#allocation99_spill] sm:$0xff]  ;;  %v14837_v10 = vld [vmem:[#allocation13_spill] sm:$0xff] }
 0x597   :  { %v13018_v15 = vadd.f32 %v4977_v17, %v14827_v41  ;;  %v5049_v56 = vmax.f32 %v12742_v12, 0.0  ;;  %v5050_v17 = vmax.f32 %v12745_v3, 0.0  ;;  %v5051_v14 = vmax.f32 %v12748_v16, 0.0  ;;  %5110 = vst.msk [vmem:[%s13354_s8 + $0x10] sm:$0xff] %vm664_vm2, %v5046_v43  ;;  %5111 = vst.msk [vmem:[%s13354_s8 + $0x18] sm:$0xff] %vm664_vm2, %v5047_v47  ;;  %v14835_v5 = vld [vmem:[#allocation72_spill] sm:$0xff] }
 0x598   :  { %v5052_v45 = vmax.f32 %v12763_v11, 0.0  ;;  %v5053_v48 = vmax.f32 %v12766_v25, 0.0  ;;  %v5054_v39 = vmax.f32 %v12769_v60, 0.0  ;;  %v5055_v13 = vmax.f32 %v12772_v30, 0.0  ;;  %5112 = vst.msk [vmem:[%s13354_s8 + $0x20] sm:$0xff] %vm664_vm2, %v5048_v19  ;;  %v14838_v43 = vld [vmem:[#allocation24_spill] sm:$0xff] }
 0x599   :  { %v5056_v31 = vmax.f32 %v12787_v36, 0.0  ;;  %v5057_v32 = vmax.f32 %v12790_v28, 0.0  ;;  %v5058_v27 = vmax.f32 %v12793_v50, 0.0  ;;  %v5059_v12 = vmax.f32 %v12796_v0, 0.0  ;;  %5113 = vst.msk [vmem:[%s13354_s8 + $0x28] sm:$0xff] %vm664_vm2, %v5049_v56  ;;  %5114 = vst.msk [vmem:[%s13354_s8 + $0x30] sm:$0xff] %vm664_vm2, %v5050_v17 }
 0x59a   :  { %5115 = vst.msk [vmem:[%s13354_s8 + $0x38] sm:$0xff] %vm664_vm2, %v5051_v14  ;;  %v5060_v3 = vmax.f32 %v12811_v26, 0.0  ;;  %v5061_v16 = vmax.f32 %v12814_v20, 0.0  ;;  %v5062_v11 = vmax.f32 %v12817_v62, 0.0  ;;  %v5063_v25 = vmax.f32 %v12820_v2, 0.0  ;;  %5116 = vst.msk [vmem:[%s13354_s8 + $0x40] sm:$0xff] %vm664_vm2, %v5052_v45 }
 0x59b   :  { %5117 = vst.msk [vmem:[%s13354_s8 + $0x48] sm:$0xff] %vm664_vm2, %v5053_v48  ;;  %5118 = vst.msk [vmem:[%s13354_s8 + $0x50] sm:$0xff] %vm664_vm2, %v5054_v39  ;;  %v5064_v60 = vmax.f32 %v12832_v61, 0.0  ;;  %v5065_v30 = vmax.f32 %v12835_v21, 0.0  ;;  %v5066_v36 = vmax.f32 %v12838_v18, 0.0  ;;  %v5067_v28 = vmax.f32 %v12841_v1, 0.0 }
 0x59c   :  { %5119 = vst.msk [vmem:[%s13354_s8 + $0x58] sm:$0xff] %vm664_vm2, %v5055_v13  ;;  %5120 = vst.msk [vmem:[%s13354_s8 + $0x60] sm:$0xff] %vm664_vm2, %v5056_v31  ;;  %v5068_v50 = vmax.f32 %v12853_v52, 0.0  ;;  %v5069_v0 = vmax.f32 %v12856_v46, 0.0  ;;  %v5070_v26 = vmax.f32 %v12859_v42, 0.0  ;;  %v5071_v20 = vmax.f32 %v12862_v49, 0.0 }
 0x59d   :  { %5121 = vst.msk [vmem:[%s13354_s8 + $0x68] sm:$0xff] %vm664_vm2, %v5057_v32  ;;  %5122 = vst.msk [vmem:[%s13354_s8 + $0x70] sm:$0xff] %vm664_vm2, %v5058_v27  ;;  %v5072_v62 = vmax.f32 %v12874_v40, 0.0  ;;  %v5073_v2 = vmax.f32 %v12877_v7, 0.0  ;;  %v5074_v61 = vmax.f32 %v12880_v22, 0.0  ;;  %v5075_v21 = vmax.f32 %v12883_v34, 0.0 }
 0x59e   :  { %5123 = vst.msk [vmem:[%s13354_s8 + $0x78] sm:$0xff] %vm664_vm2, %v5059_v12  ;;  %5124 = vst.msk [vmem:[%s13354_s8 + $0x80] sm:$0xff] %vm664_vm2, %v5060_v3  ;;  %v5076_v18 = vmax.f32 %v12895_v63, 0.0  ;;  %v5077_v1 = vmax.f32 %v12898_v8, 0.0  ;;  %v14830_v52 = vld [vmem:[#allocation162_spill] sm:$0xff]  ;;  %v14831_v42 = vld [vmem:[#allocation161_spill] sm:$0xff] }
 0x59f   :  { %5125 = vst.msk [vmem:[%s13354_s8 + $0x88] sm:$0xff] %vm664_vm2, %v5061_v16  ;;  %5126 = vst.msk [vmem:[%s13354_s8 + $0x90] sm:$0xff] %vm664_vm2, %v5062_v11  ;;  %v5078_v46 = vmax.f32 %v14830_v52, 0.0  ;;  %v5079_v49 = vmax.f32 %v14831_v42, 0.0  ;;  %v14832_v40 = vld [vmem:[#allocation18_spill] sm:$0xff]  ;;  %v5083_v41 = vmax.f32 %v14835_v5, 0.0 }
 0x5a0   :  { %5127 = vst.msk [vmem:[%s13354_s8 + $0x98] sm:$0xff] %vm664_vm2, %v5063_v25  ;;  %5128 = vst.msk [vmem:[%s13354_s8 + $0xa0] sm:$0xff] %vm664_vm2, %v5064_v60  ;;  %v5080_v7 = vmax.f32 %v14832_v40, 0.0  ;;  %v14833_v22 = vld [vmem:[#allocation74_spill] sm:$0xff]  ;;  %v5084_v51 = vmax.f32 %v14836_v33, 0.0  ;;  %v5085_v54 = vmax.f32 %v14837_v10, 0.0 }
 0x5a1   :  { %5129 = vst.msk [vmem:[%s13354_s8 + $0xa8] sm:$0xff] %vm664_vm2, %v5065_v30  ;;  %5130 = vst.msk [vmem:[%s13354_s8 + $0xb0] sm:$0xff] %vm664_vm2, %v5066_v36  ;;  %v5081_v34 = vmax.f32 %v14833_v22, 0.0  ;;  %v14834_v63 = vld [vmem:[#allocation46_spill] sm:$0xff]  ;;  %v5086_v47 = vmax.f32 %v14838_v43, 0.0  ;;  %v14840_v17 = vld [vmem:[#allocation164_spill] sm:$0xff] }
 0x5a2   :  { %5131 = vst.msk [vmem:[%s13354_s8 + $0xb8] sm:$0xff] %vm664_vm2, %v5067_v28  ;;  %5132 = vst.msk [vmem:[%s13354_s8 + $0xc0] sm:$0xff] %vm664_vm2, %v5068_v50  ;;  %v5082_v8 = vmax.f32 %v14834_v63, 0.0  ;;  %v14839_v19 = vld [vmem:[#allocation38_spill] sm:$0xff]  ;;  %v5088_v14 = vmax.f32 %v14840_v17, 0.0  ;;  %v14841_v45 = vld [vmem:[#allocation163_spill] sm:$0xff] }
 0x5a3   :  { %5133 = vst.msk [vmem:[%s13354_s8 + $0xc8] sm:$0xff] %vm664_vm2, %v5069_v0  ;;  %5134 = vst.msk [vmem:[%s13354_s8 + $0xd0] sm:$0xff] %vm664_vm2, %v5070_v26  ;;  %v5087_v56 = vmax.f32 %v14839_v19, 0.0  ;;  %v5089_v48 = vmax.f32 %v14841_v45, 0.0  ;;  %v14842_v39 = vld [vmem:[#allocation30_spill] sm:$0xff]  ;;  %v14843_v31 = vld [vmem:[#allocation101_spill] sm:$0xff] }
 0x5a4   :  { %5135 = vst.msk [vmem:[%s13354_s8 + $0xd8] sm:$0xff] %vm664_vm2, %v5071_v20  ;;  %5136 = vst.msk [vmem:[%s13354_s8 + $0xe0] sm:$0xff] %vm664_vm2, %v5072_v62  ;;  %v5090_v13 = vmax.f32 %v14842_v39, 0.0  ;;  %v5091_v32 = vmax.f32 %v14843_v31, 0.0  ;;  %v5092_v27 = vmax.f32 %v12979_v9, 0.0  ;;  %v5093_v12 = vmax.f32 %v12982_v37, 0.0 }
 0x5a5   :  { %5137 = vst.msk [vmem:[%s13354_s8 + $0xe8] sm:$0xff] %vm664_vm2, %v5073_v2  ;;  %5138 = vst.msk [vmem:[%s13354_s8 + $0xf0] sm:$0xff] %vm664_vm2, %v5074_v61  ;;  %v5094_v3 = vmax.f32 %v12985_v57, 0.0  ;;  %v5095_v16 = vmax.f32 %v12988_v35, 0.0  ;;  %v5096_v35 = vmax.f32 %v12991_v23, 0.0  ;;  %v5097_v9 = vmax.f32 %v12994_v58, 0.0 }
 0x5a6   :  { %5139 = vst.msk [vmem:[%s13354_s8 + $0xf8] sm:$0xff] %vm664_vm2, %v5075_v21  ;;  %5140 = vst.msk [vmem:[%s13354_s8 + $0x100] sm:$0xff] %vm664_vm2, %v5076_v18  ;;  %v5098_v37 = vmax.f32 %v12997_v55, 0.0  ;;  %v5099_v57 = vmax.f32 %v13000_v38, 0.0  ;;  %v5100_v55 = vmax.f32 %v13003_v53, 0.0  ;;  %v5101_v58 = vmax.f32 %v13006_v4, 0.0 }
 0x5a7   :  { %5141 = vst.msk [vmem:[%s13354_s8 + $0x108] sm:$0xff] %vm664_vm2, %v5077_v1  ;;  %5142 = vst.msk [vmem:[%s13354_s8 + $0x110] sm:$0xff] %vm664_vm2, %v5078_v46  ;;  %v5102_v23 = vmax.f32 %v13009_v59, 0.0  ;;  %v5103_v38 = vmax.f32 %v13012_v29, 0.0  ;;  %v5104_v53 = vmax.f32 %v13015_v24, 0.0  ;;  %v5105_v4 = vmax.f32 %v13018_v15, 0.0 }
 0x5a8   :  { %5143 = vst.msk [vmem:[%s13354_s8 + $0x118] sm:$0xff] %vm664_vm2, %v5079_v49  ;;  %5144 = vst.msk [vmem:[%s13354_s8 + $0x120] sm:$0xff] %vm664_vm2, %v5080_v7  ;;  %v5106_v59 = vmax.f32 %v13021_v44, 0.0  ;;  %v5107_v29 = vmax.f32 %v13024_v6, 0.0 }
 0x5a9   :  { %5145 = vst.msk [vmem:[%s13354_s8 + $0x128] sm:$0xff] %vm664_vm2, %v5081_v34  ;;  %5146 = vst.msk [vmem:[%s13354_s8 + $0x130] sm:$0xff] %vm664_vm2, %v5082_v8 }
 0x5aa   :  { %5147 = vst.msk [vmem:[%s13354_s8 + $0x138] sm:$0xff] %vm664_vm2, %v5083_v41  ;;  %5148 = vst.msk [vmem:[%s13354_s8 + $0x140] sm:$0xff] %vm664_vm2, %v5084_v51 }
 0x5ab   :  { %5149 = vst.msk [vmem:[%s13354_s8 + $0x148] sm:$0xff] %vm664_vm2, %v5085_v54  ;;  %5150 = vst.msk [vmem:[%s13354_s8 + $0x150] sm:$0xff] %vm664_vm2, %v5086_v47 }
 0x5ac   :  { %5151 = vst.msk [vmem:[%s13354_s8 + $0x158] sm:$0xff] %vm664_vm2, %v5087_v56  ;;  %5152 = vst.msk [vmem:[%s13354_s8 + $0x160] sm:$0xff] %vm664_vm2, %v5088_v14 }
 0x5ad   :  { %5153 = vst.msk [vmem:[%s13354_s8 + $0x168] sm:$0xff] %vm664_vm2, %v5089_v48  ;;  %5154 = vst.msk [vmem:[%s13354_s8 + $0x170] sm:$0xff] %vm664_vm2, %v5090_v13 }
 0x5ae   :  { %5155 = vst.msk [vmem:[%s13354_s8 + $0x178] sm:$0xff] %vm664_vm2, %v5091_v32  ;;  %5156 = vst.msk [vmem:[%s13354_s8 + $0x180] sm:$0xff] %vm664_vm2, %v5092_v27 }
 0x5af   :  { %5157 = vst.msk [vmem:[%s13354_s8 + $0x188] sm:$0xff] %vm664_vm2, %v5093_v12  ;;  %5158 = vst.msk [vmem:[%s13354_s8 + $0x190] sm:$0xff] %vm664_vm2, %v5094_v3 }
 0x5b0   :  { %5159 = vst.msk [vmem:[%s13354_s8 + $0x198] sm:$0xff] %vm664_vm2, %v5095_v16  ;;  %5160 = vst.msk [vmem:[%s13354_s8 + $0x1a0] sm:$0xff] %vm664_vm2, %v5096_v35 }
 0x5b1   :  { %5161 = vst.msk [vmem:[%s13354_s8 + $0x1a8] sm:$0xff] %vm664_vm2, %v5097_v9  ;;  %5162 = vst.msk [vmem:[%s13354_s8 + $0x1b0] sm:$0xff] %vm664_vm2, %v5098_v37 }
 0x5b2   :  { %5163 = vst.msk [vmem:[%s13354_s8 + $0x1b8] sm:$0xff] %vm664_vm2, %v5099_v57  ;;  %5164 = vst.msk [vmem:[%s13354_s8 + $0x1c0] sm:$0xff] %vm664_vm2, %v5100_v55 }
 0x5b3   :  { %5165 = vst.msk [vmem:[%s13354_s8 + $0x1c8] sm:$0xff] %vm664_vm2, %v5101_v58  ;;  %5166 = vst.msk [vmem:[%s13354_s8 + $0x1d0] sm:$0xff] %vm664_vm2, %v5102_v23 }
 0x5b4   :  { %5167 = vst.msk [vmem:[%s13354_s8 + $0x1d8] sm:$0xff] %vm664_vm2, %v5103_v38  ;;  %5168 = vst.msk [vmem:[%s13354_s8 + $0x1e0] sm:$0xff] %vm664_vm2, %v5104_v53 }
 0x5b5   :  { %5169 = vst.msk [vmem:[%s13354_s8 + $0x1e8] sm:$0xff] %vm664_vm2, %v5105_v4  ;;  %5170 = vst.msk [vmem:[%s13354_s8 + $0x1f0] sm:$0xff] %vm664_vm2, %v5106_v59 }
 0x5b6   :  { %5171 = vst.msk [vmem:[%s13354_s8 + $0x1f8] sm:$0xff] %vm664_vm2, %v5107_v29 }

</bundles_post_ra>
